<compile_context>
chip_gen: v6e
topology: v6e:2x2x1
jax: 0.10.0
libtpu: 0.0.40
codegen_flags: <defaults>
</compile_context>

<pallas_src>
import jax
import jax.numpy as jnp
import numpy as np
from jax.experimental import pallas as pl
from jax.experimental.pallas import tpu as pltpu


# ---------------------------------------------------------------------------
# Fused per-stage kernel (conv(s) + BN + ReLU + residual + max-pool)
# ---------------------------------------------------------------------------

def _make_stage_kernel(n_convs, residual, H, W, KH, KW, cin_list, cout, ph, pw):
    """Build the fused kernel for one encoder stage.

    Ref order (as delivered by pallas_call):
        x_ref,
        [w_ref, scale_ref, shift_ref] * n_convs,
        [wsc_ref, bsc_ref]            (if residual),
        map_ref, pool_ref,            (outputs, batch dim squeezed)
        pad_ref                       (VMEM scratch: padded bf16 activations)
    """
    Ho, Wo = H // ph, W // pw
    pad_h, pad_w = KH // 2, KW // 2
    Hp, Wp = H + KH - 1, W + KW - 1
    cmax = max(cin_list)

    def kernel(*refs):
        i = 0
        x_ref = refs[i]; i += 1
        convs = []
        for _ in range(n_convs):
            convs.append((refs[i], refs[i + 1], refs[i + 2])); i += 3
        if residual:
            wsc_ref, bsc_ref = refs[i], refs[i + 1]; i += 2
        map_ref, pool_ref = refs[i], refs[i + 1]; i += 2
        pad_ref = refs[i]

        # ---- 'same' padding: zero only the thin halo strips.  The interior
        # is fully overwritten below; the convs never write the halo.  Done
        # every grid step so correctness does not depend on which TensorCore
        # owns which grid index.
        zdt = pad_ref.dtype
        if pad_h > 0:
            pad_ref[0:pad_h, :, :] = jnp.zeros((pad_h, Wp, cmax), zdt)
            pad_ref[pad_h + H:Hp, :, :] = jnp.zeros((pad_h, Wp, cmax), zdt)
        if pad_w > 0:
            pad_ref[:, 0:pad_w, :] = jnp.zeros((Hp, pad_w, cmax), zdt)
            pad_ref[:, pad_w + W:Wp, :] = jnp.zeros((Hp, pad_w, cmax), zdt)

        # place the input tile in the interior, already cast to bf16 for the MXU
        cin0 = cin_list[0]
        pad_ref[pad_h:pad_h + H, pad_w:pad_w + W, :cin0] = (
            x_ref[...].astype(zdt))

        # ---- residual 1x1 projection of X, computed from the bf16 copy of X
        # already resident in pad_ref (before any intermediate overwrite).
        res = None
        if residual:
            x_bf = pad_ref[pad_h:pad_h + H, pad_w:pad_w + W, :cin0].reshape(
                H * W, cin0)
            res = jnp.dot(x_bf, wsc_ref[...],
                          preferred_element_type=jnp.float32) + bsc_ref[...]

        # ---- conv blocks: each conv = KH*KW directly-accumulated matmuls
        # (no im2col slab; f32 accumulator stays in vregs/VMEM spill).
        y = None
        for j in range(n_convs):
            cin_j = cin_list[j]
            w_ref, scale_ref, shift_ref = convs[j]

            acc = jnp.zeros((H * W, cout), jnp.float32)
            for kh in range(KH):
                for kw in range(KW):
                    lhs = pad_ref[kh:kh + H, kw:kw + W, :cin_j].reshape(
                        H * W, cin_j)
                    acc = acc + jnp.dot(lhs, w_ref[kh, kw],
                                        preferred_element_type=jnp.float32)

            # folded Conv-bias + BatchNorm (bias pre-folded into shift) + ReLU
            y = jnp.maximum(acc * scale_ref[...] + shift_ref[...], 0.0)

            if j + 1 < n_convs:
                # keep the intermediate activation in the padded VMEM scratch
                # (bf16) for the next conv -- never touches HBM.
                pad_ref[pad_h:pad_h + H, pad_w:pad_w + W, :cout] = (
                    y.reshape(H, W, cout).astype(zdt))

        if residual:
            y = y + res

        # ---- pre-pool feature map: single store; this output block is also
        # the pooling source (no separate f32 scratch).
        map_ref[...] = y.reshape(H, W, cout)

        # ---- max-pool straight out of the VMEM-resident map block with
        # strided reads (no wrapper-side relayout, no extra scratch).
        pooled = map_ref[pl.ds(0, Ho, stride=ph), pl.ds(0, Wo, stride=pw), :]
        for di in range(ph):
            for dj in range(pw):
                if di == 0 and dj == 0:
                    continue
                pooled = jnp.maximum(
                    pooled,
                    map_ref[pl.ds(di, Ho, stride=ph),
                            pl.ds(dj, Wo, stride=pw), :])
        pool_ref[...] = pooled

    return kernel


# ---------------------------------------------------------------------------
# Wrapper: one pallas_call per encoder stage
# ---------------------------------------------------------------------------

def encoder_stage(x, stage_params, pooling_size):
    """x: (N, H, W, Cin) f32 -> (pooled (N, Ho, Wo, Cout) f32,
                                 pre-pool map (N, H, W, Cout) f32)."""
    N, H, W, cin = x.shape
    convs = stage_params["convs"]
    shortcut = stage_params["shortcut"]
    n_convs = len(convs)
    KH, KW, _, cout = convs[0][0].shape
    ph, pw = pooling_size
    assert KH % 2 == 1 and KW % 2 == 1, "odd kernel sizes only ('same' padding)"
    assert H % ph == 0 and W % pw == 0, "pooling size must divide spatial dims"
    Ho, Wo = H // ph, W // pw
    Hp, Wp = H + KH - 1, W + KW - 1
    cin_list = [cin] + [cout] * (n_convs - 1)
    cmax = max(cin_list)
    residual = shortcut is not None

    inputs = [x]
    # batch dim squeezed out of all kernel refs (block dim = None)
    in_specs = [pl.BlockSpec((None, H, W, cin), lambda n: (n, 0, 0, 0))]
    for (w4, scale, shift) in convs:
        kh_, kw_, ci_, co_ = w4.shape
        inputs += [w4.astype(jnp.bfloat16), scale, shift]
        in_specs += [
            pl.BlockSpec((kh_, kw_, ci_, co_), lambda n: (0, 0, 0, 0)),
            pl.BlockSpec((1, co_), lambda n: (0, 0)),
            pl.BlockSpec((1, co_), lambda n: (0, 0)),
        ]
    if residual:
        w_sc, b_sc = shortcut
        inputs += [w_sc.astype(jnp.bfloat16), b_sc]
        in_specs += [
            pl.BlockSpec((cin, cout), lambda n: (0, 0)),
            pl.BlockSpec((1, cout), lambda n: (0, 0)),
        ]

    kernel = _make_stage_kernel(n_convs, residual, H, W, KH, KW,
                                cin_list, cout, ph, pw)

    # Size the scoped VMEM limit from the actual footprint (double-buffered
    # I/O blocks + scratch, last dims padded to the 128-lane vreg width).
    def _lanes(c):
        return ((c + 127) // 128) * 128

    est = 2 * H * W * _lanes(cin) * 4                       # input blocks
    est += 2 * H * W * _lanes(cout) * 4                     # map blocks
    est += 2 * Ho * Wo * _lanes(cout) * 4                   # pooled blocks
    est += Hp * Wp * _lanes(cmax) * 2                       # pad scratch (bf16)
    est += 2 * sum(int(np.prod(w.shape[:-1])) * _lanes(w.shape[-1]) * 2
                   for (w, _, _) in convs)                  # weights (bf16)
    est += 2 * 2 * cin * _lanes(cout) * 2                   # shortcut (approx)
    vmem_limit = int(min(max(4 * est, 16 * 2 ** 20), 64 * 2 ** 20))

    map_out, pooled = pl.pallas_call(
        kernel,
        out_shape=(jax.ShapeDtypeStruct((N, H, W, cout), jnp.float32),
                   jax.ShapeDtypeStruct((N, Ho, Wo, cout), jnp.float32)),
        grid=(N,),
        in_specs=in_specs,
        out_specs=(pl.BlockSpec((None, H, W, cout), lambda n: (n, 0, 0, 0)),
                   pl.BlockSpec((None, Ho, Wo, cout), lambda n: (n, 0, 0, 0))),
        scratch_shapes=[
            pltpu.VMEM((Hp, Wp, cmax), jnp.bfloat16),        # padded acts
        ],
        compiler_params=pltpu.CompilerParams(
            dimension_semantics=("parallel",),
            vmem_limit_bytes=vmem_limit),
    )(*inputs)
    return pooled, map_out


# ---------------------------------------------------------------------------
# Parameter init (deterministic, shapes follow the torch module __init__);
# conv bias is folded into the BatchNorm shift:  (x+b)*s + t == x*s + (b*s+t)
# ---------------------------------------------------------------------------

def init_encoder_params(key, in_features, features, kernel_size,
                        n_convs_per_block=1, normalize=True, residuals=True):
    KH, KW = kernel_size
    eps = 1e-5  # torch BatchNorm2d default
    params = []
    cin = in_features
    for cout in features:
        convs = []
        c_prev = cin
        for _ in range(n_convs_per_block):
            key, kw_, kb_, kg_, kbt_ = jax.random.split(key, 5)
            fan_in = KH * KW * c_prev
            w = jax.random.normal(kw_, (KH, KW, c_prev, cout),
                                  jnp.float32) / np.sqrt(fan_in)
            b = 0.1 * jax.random.normal(kb_, (1, cout), jnp.float32)
            if normalize:
                gamma = 1.0 + 0.1 * jax.random.normal(kg_, (1, cout), jnp.float32)
                beta = 0.1 * jax.random.normal(kbt_, (1, cout), jnp.float32)
                running_mean = jnp.zeros((1, cout), jnp.float32)
                running_var = jnp.ones((1, cout), jnp.float32)
                scale = gamma / jnp.sqrt(running_var + eps)
                shift = beta - running_mean * scale
            else:
                scale = jnp.ones((1, cout), jnp.float32)
                shift = jnp.zeros((1, cout), jnp.float32)
            shift = b * scale + shift          # fold conv bias into BN shift
            convs.append((w, scale, shift))
            c_prev = cout
        shortcut = None
        if residuals:
            key, ks_, ksb_ = jax.random.split(key, 3)
            w_sc = jax.random.normal(ks_, (cin, cout), jnp.float32) / np.sqrt(cin)
            b_sc = 0.1 * jax.random.normal(ksb_, (1, cout), jnp.float32)
            shortcut = (w_sc, b_sc)
        params.append({"convs": convs, "shortcut": shortcut})
        cin = cout
    return params


# ---------------------------------------------------------------------------
# Forward passes
# ---------------------------------------------------------------------------

def convolutional_encoder_forward(x_nchw, params, pooling_size, maps=None):
    """Pallas forward.  x_nchw: (N, Cin, H, W) -> (N, Cout, Hout, Wout)."""
    x = jnp.transpose(x_nchw, (0, 2, 3, 1))            # NCHW -> NHWC
    for stage in params:
        x, fmap = encoder_stage(x, stage, pooling_size)
        if maps is not None:
            maps.append(jnp.transpose(fmap, (0, 3, 1, 2)))  # store NCHW map
    return jnp.transpose(x, (0, 3, 1, 2))               # back to NCHW


def reference_forward(x_nchw, params, pooling_size):
    """Pure-JAX (XLA) reference with matching precision (bf16 matmul inputs,
    f32 accumulation / epilogue)."""
    x = jnp.transpose(x_nchw, (0, 2, 3, 1))
    ph, pw = pooling_size
    maps = []
    for stage in params:
        x_in = x
        y = x
        for (w, scale, shift) in stage["convs"]:
            y = jax.lax.conv_general_dilated(
                y.astype(jnp.bfloat16), w.astype(jnp.bfloat16),
                window_strides=(1, 1), padding="SAME",
                dimension_numbers=("NHWC", "HWIO", "NHWC"),
                preferred_element_type=jnp.float32)
            y = y * scale.reshape(1, 1, 1, -1) + shift.reshape(1, 1, 1, -1)
            y = jnp.maximum(y, 0.0)
        if stage["shortcut"] is not None:
            w_sc, b_sc = stage["shortcut"]
            r = jnp.einsum("nhwc,cd->nhwd",
                           x_in.astype(jnp.bfloat16), w_sc.astype(jnp.bfloat16),
                           preferred_element_type=jnp.float32)
            y = y + r + b_sc.reshape(1, 1, 1, -1)
        maps.append(jnp.transpose(y, (0, 3, 1, 2)))
        x = jax.lax.reduce_window(y, -jnp.inf, jax.lax.max,
                                  (1, ph, pw, 1), (1, ph, pw, 1), "VALID")
    return jnp.transpose(x, (0, 3, 1, 2)), maps


# ---------------------------------------------------------------------------
# Demo
# ---------------------------------------------------------------------------

if __name__ == "__main__":
    key = jax.random.PRNGKey(0)

    # small shapes consistent with the module's forward (N, Cin, H, W)
    N, Cin, H, W = 2, 4, 16, 16
    features = (8, 16)
    kernel_size = (3, 3)
    pooling_size = (2, 2)
    n_convs_per_block = 2

    key, kx = jax.random.split(key)
    x_nchw = jax.random.normal(kx, (N, Cin, H, W), jnp.float32)

    params = init_encoder_params(key, Cin, features, kernel_size,
                                 n_convs_per_block=n_convs_per_block,
                                 normalize=True, residuals=True)

    maps = []
    out = convolutional_encoder_forward(x_nchw, params, pooling_size, maps=maps)
    out = jax.block_until_ready(out)

    # shape check: each stage halves H and W; channels follow `features`
    expected_shape = (N, features[-1],
                      H // (pooling_size[0] ** len(features)),
                      W // (pooling_size[1] ** len(features)))
    assert out.shape == expected_shape, (out.shape, expected_shape)
    assert len(maps) == len(features)

    # numerical check against a pure-JAX reference
    ref_out, ref_maps = reference_forward(x_nchw, params, pooling_size)
    np.testing.assert_allclose(np.asarray(out), np.asarray(ref_out),
                               rtol=2e-2, atol=2e-2)
    for m, rm in zip(maps, ref_maps):
        np.testing.assert_allclose(np.asarray(m), np.asarray(rm),
                                   rtol=2e-2, atol=2e-2)

    print("KERNEL_OK")
</pallas_src>

<mosaic_0001>
module attributes {stable_mosaic.version = 11 : i64} {
  func.func @kernel(%arg0: i32, %arg1: memref<1x16x16x4xf32, #tpu.memory_space<vmem>>, %arg2: memref<3x3x4x8xbf16, #tpu.memory_space<vmem>>, %arg3: memref<1x8xf32, #tpu.memory_space<vmem>>, %arg4: memref<1x8xf32, #tpu.memory_space<vmem>>, %arg5: memref<3x3x8x8xbf16, #tpu.memory_space<vmem>>, %arg6: memref<1x8xf32, #tpu.memory_space<vmem>>, %arg7: memref<1x8xf32, #tpu.memory_space<vmem>>, %arg8: memref<4x8xbf16, #tpu.memory_space<vmem>>, %arg9: memref<1x8xf32, #tpu.memory_space<vmem>>, %arg10: memref<1x16x16x8xf32, #tpu.memory_space<vmem>>, %arg11: memref<1x8x8x8xf32, #tpu.memory_space<vmem>>, %arg12: memref<18x18x8xbf16, #tpu.memory_space<vmem>>) attributes {dimension_semantics = [#tpu.dimension_semantics<parallel>], iteration_bounds = array<i64: 2>, scalar_prefetch = 0 : i64, scratch_operands = 1 : i64, tpu.core_type = #tpu.core_type<tc>, window_params = [{transform_indices = @transform_0, window_bounds = array<i64: 1, 16, 16, 4>}, {pipeline_mode = #tpu.pipeline_mode<synchronous>, transform_indices = @transform_1, window_bounds = array<i64: 3, 3, 4, 8>}, {pipeline_mode = #tpu.pipeline_mode<synchronous>, transform_indices = @transform_2, window_bounds = array<i64: 1, 8>}, {pipeline_mode = #tpu.pipeline_mode<synchronous>, transform_indices = @transform_3, window_bounds = array<i64: 1, 8>}, {pipeline_mode = #tpu.pipeline_mode<synchronous>, transform_indices = @transform_4, window_bounds = array<i64: 3, 3, 8, 8>}, {pipeline_mode = #tpu.pipeline_mode<synchronous>, transform_indices = @transform_5, window_bounds = array<i64: 1, 8>}, {pipeline_mode = #tpu.pipeline_mode<synchronous>, transform_indices = @transform_6, window_bounds = array<i64: 1, 8>}, {pipeline_mode = #tpu.pipeline_mode<synchronous>, transform_indices = @transform_7, window_bounds = array<i64: 4, 8>}, {pipeline_mode = #tpu.pipeline_mode<synchronous>, transform_indices = @transform_8, window_bounds = array<i64: 1, 8>}, {transform_indices = @transform_9, window_bounds = array<i64: 1, 16, 16, 8>}, {transform_indices = @transform_10, window_bounds = array<i64: 1, 8, 8, 8>}]} {
    %cst = arith.constant 0.000000e+00 : bf16
    %0 = vector.broadcast %cst : bf16 to vector<1x18x8xbf16>
    %c0 = arith.constant 0 : index
    %c0_0 = arith.constant 0 : index
    %c0_1 = arith.constant 0 : index
    %1 = vector.load %arg12[%c0, %c0_0, %c0_1] : memref<18x18x8xbf16, #tpu.memory_space<vmem>>, vector<1x18x8xbf16>
    tpu.vector_store %arg12[%c0, %c0_0, %c0_1], %0 {strides = array<i32>} : memref<18x18x8xbf16, #tpu.memory_space<vmem>>, vector<1x18x8xbf16>,
    %cst_2 = arith.constant 0.000000e+00 : bf16
    %2 = vector.broadcast %cst_2 : bf16 to vector<1x18x8xbf16>
    %c17 = arith.constant 17 : index
    %c0_3 = arith.constant 0 : index
    %c0_4 = arith.constant 0 : index
    %3 = vector.load %arg12[%c17, %c0_3, %c0_4] : memref<18x18x8xbf16, #tpu.memory_space<vmem>>, vector<1x18x8xbf16>
    tpu.vector_store %arg12[%c17, %c0_3, %c0_4], %2 {strides = array<i32>} : memref<18x18x8xbf16, #tpu.memory_space<vmem>>, vector<1x18x8xbf16>,
    %cst_5 = arith.constant 0.000000e+00 : bf16
    %4 = vector.broadcast %cst_5 : bf16 to vector<18x1x8xbf16>
    %c0_6 = arith.constant 0 : index
    %c0_7 = arith.constant 0 : index
    %c0_8 = arith.constant 0 : index
    %5 = vector.load %arg12[%c0_6, %c0_7, %c0_8] : memref<18x18x8xbf16, #tpu.memory_space<vmem>>, vector<18x1x8xbf16>
    tpu.vector_store %arg12[%c0_6, %c0_7, %c0_8], %4 {strides = array<i32>} : memref<18x18x8xbf16, #tpu.memory_space<vmem>>, vector<18x1x8xbf16>,
    %cst_9 = arith.constant 0.000000e+00 : bf16
    %6 = vector.broadcast %cst_9 : bf16 to vector<18x1x8xbf16>
    %c0_10 = arith.constant 0 : index
    %c17_11 = arith.constant 17 : index
    %c0_12 = arith.constant 0 : index
    %7 = vector.load %arg12[%c0_10, %c17_11, %c0_12] : memref<18x18x8xbf16, #tpu.memory_space<vmem>>, vector<18x1x8xbf16>
    tpu.vector_store %arg12[%c0_10, %c17_11, %c0_12], %6 {strides = array<i32>} : memref<18x18x8xbf16, #tpu.memory_space<vmem>>, vector<18x1x8xbf16>,
    %c0_13 = arith.constant 0 : index
    %c0_14 = arith.constant 0 : index
    %c0_15 = arith.constant 0 : index
    %c0_16 = arith.constant 0 : index
    %8 = vector.load %arg1[%c0_13, %c0_14, %c0_15, %c0_16] : memref<1x16x16x4xf32, #tpu.memory_space<vmem>>, vector<1x16x16x4xf32>
    %9 = vector.shape_cast %8 : vector<1x16x16x4xf32> to vector<16x16x4xf32>
    %10 = arith.truncf %9 : vector<16x16x4xf32> to vector<16x16x4xbf16>
    %c1 = arith.constant 1 : index
    %c1_17 = arith.constant 1 : index
    %c0_18 = arith.constant 0 : index
    %11 = vector.load %arg12[%c1, %c1_17, %c0_18] : memref<18x18x8xbf16, #tpu.memory_space<vmem>>, vector<16x16x4xbf16>
    tpu.vector_store %arg12[%c1, %c1_17, %c0_18], %10 {strides = array<i32>} : memref<18x18x8xbf16, #tpu.memory_space<vmem>>, vector<16x16x4xbf16>,
    %c1_19 = arith.constant 1 : index
    %c1_20 = arith.constant 1 : index
    %c0_21 = arith.constant 0 : index
    %12 = vector.load %arg12[%c1_19, %c1_20, %c0_21] : memref<18x18x8xbf16, #tpu.memory_space<vmem>>, vector<16x16x4xbf16>
    %13 = vector.shape_cast %12 : vector<16x16x4xbf16> to vector<256x4xbf16>
    %c0_22 = arith.constant 0 : index
    %c0_23 = arith.constant 0 : index
    %14 = vector.load %arg8[%c0_22, %c0_23] : memref<4x8xbf16, #tpu.memory_space<vmem>>, vector<4x8xbf16>
    %cst_24 = arith.constant dense<0.000000e+00> : vector<256x8xf32>
    %15 = tpu.matmul %13, %14, %cst_24 {dimension_numbers = #tpu.dot_dimension_numbers<[1], [0], [0], [1], [0, 0, 1, 1], [], []>} : vector<256x4xbf16>, vector<4x8xbf16>, vector<256x8xf32> -> vector<256x8xf32>
    %c0_25 = arith.constant 0 : index
    %c0_26 = arith.constant 0 : index
    %16 = vector.load %arg9[%c0_25, %c0_26] : memref<1x8xf32, #tpu.memory_space<vmem>>, vector<1x8xf32>
    %17 = vector.broadcast %16 : vector<1x8xf32> to vector<256x8xf32>
    %18 = arith.addf %15, %17 : vector<256x8xf32>
    %cst_27 = arith.constant 0.000000e+00 : f32
    %19 = vector.broadcast %cst_27 : f32 to vector<256x8xf32>
    %c0_28 = arith.constant 0 : index
    %c0_29 = arith.constant 0 : index
    %c0_30 = arith.constant 0 : index
    %20 = vector.load %arg12[%c0_28, %c0_29, %c0_30] : memref<18x18x8xbf16, #tpu.memory_space<vmem>>, vector<16x16x4xbf16>
    %21 = vector.shape_cast %20 : vector<16x16x4xbf16> to vector<256x4xbf16>
    %c0_31 = arith.constant 0 : index
    %c0_32 = arith.constant 0 : index
    %c0_33 = arith.constant 0 : index
    %c0_34 = arith.constant 0 : index
    %22 = vector.load %arg2[%c0_31, %c0_32, %c0_33, %c0_34] : memref<3x3x4x8xbf16, #tpu.memory_space<vmem>>, vector<1x1x4x8xbf16>
    %23 = vector.shape_cast %22 : vector<1x1x4x8xbf16> to vector<4x8xbf16>
    %cst_35 = arith.constant dense<0.000000e+00> : vector<256x8xf32>
    %24 = tpu.matmul %21, %23, %cst_35 {dimension_numbers = #tpu.dot_dimension_numbers<[1], [0], [0], [1], [0, 0, 1, 1], [], []>} : vector<256x4xbf16>, vector<4x8xbf16>, vector<256x8xf32> -> vector<256x8xf32>
    %25 = arith.addf %19, %24 : vector<256x8xf32>
    %c0_36 = arith.constant 0 : index
    %c1_37 = arith.constant 1 : index
    %c0_38 = arith.constant 0 : index
    %26 = vector.load %arg12[%c0_36, %c1_37, %c0_38] : memref<18x18x8xbf16, #tpu.memory_space<vmem>>, vector<16x16x4xbf16>
    %27 = vector.shape_cast %26 : vector<16x16x4xbf16> to vector<256x4xbf16>
    %c0_39 = arith.constant 0 : index
    %c1_40 = arith.constant 1 : index
    %c0_41 = arith.constant 0 : index
    %c0_42 = arith.constant 0 : index
    %28 = vector.load %arg2[%c0_39, %c1_40, %c0_41, %c0_42] : memref<3x3x4x8xbf16, #tpu.memory_space<vmem>>, vector<1x1x4x8xbf16>
    %29 = vector.shape_cast %28 : vector<1x1x4x8xbf16> to vector<4x8xbf16>
    %cst_43 = arith.constant dense<0.000000e+00> : vector<256x8xf32>
    %30 = tpu.matmul %27, %29, %cst_43 {dimension_numbers = #tpu.dot_dimension_numbers<[1], [0], [0], [1], [0, 0, 1, 1], [], []>} : vector<256x4xbf16>, vector<4x8xbf16>, vector<256x8xf32> -> vector<256x8xf32>
    %31 = arith.addf %25, %30 : vector<256x8xf32>
    %c0_44 = arith.constant 0 : index
    %c2 = arith.constant 2 : index
    %c0_45 = arith.constant 0 : index
    %32 = vector.load %arg12[%c0_44, %c2, %c0_45] : memref<18x18x8xbf16, #tpu.memory_space<vmem>>, vector<16x16x4xbf16>
    %33 = vector.shape_cast %32 : vector<16x16x4xbf16> to vector<256x4xbf16>
    %c0_46 = arith.constant 0 : index
    %c2_47 = arith.constant 2 : index
    %c0_48 = arith.constant 0 : index
    %c0_49 = arith.constant 0 : index
    %34 = vector.load %arg2[%c0_46, %c2_47, %c0_48, %c0_49] : memref<3x3x4x8xbf16, #tpu.memory_space<vmem>>, vector<1x1x4x8xbf16>
    %35 = vector.shape_cast %34 : vector<1x1x4x8xbf16> to vector<4x8xbf16>
    %cst_50 = arith.constant dense<0.000000e+00> : vector<256x8xf32>
    %36 = tpu.matmul %33, %35, %cst_50 {dimension_numbers = #tpu.dot_dimension_numbers<[1], [0], [0], [1], [0, 0, 1, 1], [], []>} : vector<256x4xbf16>, vector<4x8xbf16>, vector<256x8xf32> -> vector<256x8xf32>
    %37 = arith.addf %31, %36 : vector<256x8xf32>
    %c1_51 = arith.constant 1 : index
    %c0_52 = arith.constant 0 : index
    %c0_53 = arith.constant 0 : index
    %38 = vector.load %arg12[%c1_51, %c0_52, %c0_53] : memref<18x18x8xbf16, #tpu.memory_space<vmem>>, vector<16x16x4xbf16>
    %39 = vector.shape_cast %38 : vector<16x16x4xbf16> to vector<256x4xbf16>
    %c1_54 = arith.constant 1 : index
    %c0_55 = arith.constant 0 : index
    %c0_56 = arith.constant 0 : index
    %c0_57 = arith.constant 0 : index
    %40 = vector.load %arg2[%c1_54, %c0_55, %c0_56, %c0_57] : memref<3x3x4x8xbf16, #tpu.memory_space<vmem>>, vector<1x1x4x8xbf16>
    %41 = vector.shape_cast %40 : vector<1x1x4x8xbf16> to vector<4x8xbf16>
    %cst_58 = arith.constant dense<0.000000e+00> : vector<256x8xf32>
    %42 = tpu.matmul %39, %41, %cst_58 {dimension_numbers = #tpu.dot_dimension_numbers<[1], [0], [0], [1], [0, 0, 1, 1], [], []>} : vector<256x4xbf16>, vector<4x8xbf16>, vector<256x8xf32> -> vector<256x8xf32>
    %43 = arith.addf %37, %42 : vector<256x8xf32>
    %c1_59 = arith.constant 1 : index
    %c1_60 = arith.constant 1 : index
    %c0_61 = arith.constant 0 : index
    %44 = vector.load %arg12[%c1_59, %c1_60, %c0_61] : memref<18x18x8xbf16, #tpu.memory_space<vmem>>, vector<16x16x4xbf16>
    %45 = vector.shape_cast %44 : vector<16x16x4xbf16> to vector<256x4xbf16>
    %c1_62 = arith.constant 1 : index
    %c1_63 = arith.constant 1 : index
    %c0_64 = arith.constant 0 : index
    %c0_65 = arith.constant 0 : index
    %46 = vector.load %arg2[%c1_62, %c1_63, %c0_64, %c0_65] : memref<3x3x4x8xbf16, #tpu.memory_space<vmem>>, vector<1x1x4x8xbf16>
    %47 = vector.shape_cast %46 : vector<1x1x4x8xbf16> to vector<4x8xbf16>
    %cst_66 = arith.constant dense<0.000000e+00> : vector<256x8xf32>
    %48 = tpu.matmul %45, %47, %cst_66 {dimension_numbers = #tpu.dot_dimension_numbers<[1], [0], [0], [1], [0, 0, 1, 1], [], []>} : vector<256x4xbf16>, vector<4x8xbf16>, vector<256x8xf32> -> vector<256x8xf32>
    %49 = arith.addf %43, %48 : vector<256x8xf32>
    %c1_67 = arith.constant 1 : index
    %c2_68 = arith.constant 2 : index
    %c0_69 = arith.constant 0 : index
    %50 = vector.load %arg12[%c1_67, %c2_68, %c0_69] : memref<18x18x8xbf16, #tpu.memory_space<vmem>>, vector<16x16x4xbf16>
    %51 = vector.shape_cast %50 : vector<16x16x4xbf16> to vector<256x4xbf16>
    %c1_70 = arith.constant 1 : index
    %c2_71 = arith.constant 2 : index
    %c0_72 = arith.constant 0 : index
    %c0_73 = arith.constant 0 : index
    %52 = vector.load %arg2[%c1_70, %c2_71, %c0_72, %c0_73] : memref<3x3x4x8xbf16, #tpu.memory_space<vmem>>, vector<1x1x4x8xbf16>
    %53 = vector.shape_cast %52 : vector<1x1x4x8xbf16> to vector<4x8xbf16>
    %cst_74 = arith.constant dense<0.000000e+00> : vector<256x8xf32>
    %54 = tpu.matmul %51, %53, %cst_74 {dimension_numbers = #tpu.dot_dimension_numbers<[1], [0], [0], [1], [0, 0, 1, 1], [], []>} : vector<256x4xbf16>, vector<4x8xbf16>, vector<256x8xf32> -> vector<256x8xf32>
    %55 = arith.addf %49, %54 : vector<256x8xf32>
    %c2_75 = arith.constant 2 : index
    %c0_76 = arith.constant 0 : index
    %c0_77 = arith.constant 0 : index
    %56 = vector.load %arg12[%c2_75, %c0_76, %c0_77] : memref<18x18x8xbf16, #tpu.memory_space<vmem>>, vector<16x16x4xbf16>
    %57 = vector.shape_cast %56 : vector<16x16x4xbf16> to vector<256x4xbf16>
    %c2_78 = arith.constant 2 : index
    %c0_79 = arith.constant 0 : index
    %c0_80 = arith.constant 0 : index
    %c0_81 = arith.constant 0 : index
    %58 = vector.load %arg2[%c2_78, %c0_79, %c0_80, %c0_81] : memref<3x3x4x8xbf16, #tpu.memory_space<vmem>>, vector<1x1x4x8xbf16>
    %59 = vector.shape_cast %58 : vector<1x1x4x8xbf16> to vector<4x8xbf16>
    %cst_82 = arith.constant dense<0.000000e+00> : vector<256x8xf32>
    %60 = tpu.matmul %57, %59, %cst_82 {dimension_numbers = #tpu.dot_dimension_numbers<[1], [0], [0], [1], [0, 0, 1, 1], [], []>} : vector<256x4xbf16>, vector<4x8xbf16>, vector<256x8xf32> -> vector<256x8xf32>
    %61 = arith.addf %55, %60 : vector<256x8xf32>
    %c2_83 = arith.constant 2 : index
    %c1_84 = arith.constant 1 : index
    %c0_85 = arith.constant 0 : index
    %62 = vector.load %arg12[%c2_83, %c1_84, %c0_85] : memref<18x18x8xbf16, #tpu.memory_space<vmem>>, vector<16x16x4xbf16>
    %63 = vector.shape_cast %62 : vector<16x16x4xbf16> to vector<256x4xbf16>
    %c2_86 = arith.constant 2 : index
    %c1_87 = arith.constant 1 : index
    %c0_88 = arith.constant 0 : index
    %c0_89 = arith.constant 0 : index
    %64 = vector.load %arg2[%c2_86, %c1_87, %c0_88, %c0_89] : memref<3x3x4x8xbf16, #tpu.memory_space<vmem>>, vector<1x1x4x8xbf16>
    %65 = vector.shape_cast %64 : vector<1x1x4x8xbf16> to vector<4x8xbf16>
    %cst_90 = arith.constant dense<0.000000e+00> : vector<256x8xf32>
    %66 = tpu.matmul %63, %65, %cst_90 {dimension_numbers = #tpu.dot_dimension_numbers<[1], [0], [0], [1], [0, 0, 1, 1], [], []>} : vector<256x4xbf16>, vector<4x8xbf16>, vector<256x8xf32> -> vector<256x8xf32>
    %67 = arith.addf %61, %66 : vector<256x8xf32>
    %c2_91 = arith.constant 2 : index
    %c2_92 = arith.constant 2 : index
    %c0_93 = arith.constant 0 : index
    %68 = vector.load %arg12[%c2_91, %c2_92, %c0_93] : memref<18x18x8xbf16, #tpu.memory_space<vmem>>, vector<16x16x4xbf16>
    %69 = vector.shape_cast %68 : vector<16x16x4xbf16> to vector<256x4xbf16>
    %c2_94 = arith.constant 2 : index
    %c2_95 = arith.constant 2 : index
    %c0_96 = arith.constant 0 : index
    %c0_97 = arith.constant 0 : index
    %70 = vector.load %arg2[%c2_94, %c2_95, %c0_96, %c0_97] : memref<3x3x4x8xbf16, #tpu.memory_space<vmem>>, vector<1x1x4x8xbf16>
    %71 = vector.shape_cast %70 : vector<1x1x4x8xbf16> to vector<4x8xbf16>
    %cst_98 = arith.constant dense<0.000000e+00> : vector<256x8xf32>
    %72 = tpu.matmul %69, %71, %cst_98 {dimension_numbers = #tpu.dot_dimension_numbers<[1], [0], [0], [1], [0, 0, 1, 1], [], []>} : vector<256x4xbf16>, vector<4x8xbf16>, vector<256x8xf32> -> vector<256x8xf32>
    %73 = arith.addf %67, %72 : vector<256x8xf32>
    %c0_99 = arith.constant 0 : index
    %c0_100 = arith.constant 0 : index
    %74 = vector.load %arg3[%c0_99, %c0_100] : memref<1x8xf32, #tpu.memory_space<vmem>>, vector<1x8xf32>
    %75 = vector.broadcast %74 : vector<1x8xf32> to vector<256x8xf32>
    %76 = arith.mulf %73, %75 : vector<256x8xf32>
    %c0_101 = arith.constant 0 : index
    %c0_102 = arith.constant 0 : index
    %77 = vector.load %arg4[%c0_101, %c0_102] : memref<1x8xf32, #tpu.memory_space<vmem>>, vector<1x8xf32>
    %78 = vector.broadcast %77 : vector<1x8xf32> to vector<256x8xf32>
    %79 = arith.addf %76, %78 : vector<256x8xf32>
    %cst_103 = arith.constant 0.000000e+00 : f32
    %80 = vector.broadcast %cst_103 : f32 to vector<256x8xf32>
    %81 = arith.maximumf %79, %80 : vector<256x8xf32>
    %82 = vector.shape_cast %81 : vector<256x8xf32> to vector<16x16x8xf32>
    %83 = arith.truncf %82 : vector<16x16x8xf32> to vector<16x16x8xbf16>
    %c1_104 = arith.constant 1 : index
    %c1_105 = arith.constant 1 : index
    %c0_106 = arith.constant 0 : index
    %84 = vector.load %arg12[%c1_104, %c1_105, %c0_106] : memref<18x18x8xbf16, #tpu.memory_space<vmem>>, vector<16x16x8xbf16>
    tpu.vector_store %arg12[%c1_104, %c1_105, %c0_106], %83 {strides = array<i32>} : memref<18x18x8xbf16, #tpu.memory_space<vmem>>, vector<16x16x8xbf16>,
    %cst_107 = arith.constant 0.000000e+00 : f32
    %85 = vector.broadcast %cst_107 : f32 to vector<256x8xf32>
    %c0_108 = arith.constant 0 : index
    %c0_109 = arith.constant 0 : index
    %c0_110 = arith.constant 0 : index
    %86 = vector.load %arg12[%c0_108, %c0_109, %c0_110] : memref<18x18x8xbf16, #tpu.memory_space<vmem>>, vector<16x16x8xbf16>
    %87 = vector.shape_cast %86 : vector<16x16x8xbf16> to vector<256x8xbf16>
    %c0_111 = arith.constant 0 : index
    %c0_112 = arith.constant 0 : index
    %c0_113 = arith.constant 0 : index
    %c0_114 = arith.constant 0 : index
    %88 = vector.load %arg5[%c0_111, %c0_112, %c0_113, %c0_114] : memref<3x3x8x8xbf16, #tpu.memory_space<vmem>>, vector<1x1x8x8xbf16>
    %89 = vector.shape_cast %88 : vector<1x1x8x8xbf16> to vector<8x8xbf16>
    %cst_115 = arith.constant dense<0.000000e+00> : vector<256x8xf32>
    %90 = tpu.matmul %87, %89, %cst_115 {dimension_numbers = #tpu.dot_dimension_numbers<[1], [0], [0], [1], [0, 0, 1, 1], [], []>} : vector<256x8xbf16>, vector<8x8xbf16>, vector<256x8xf32> -> vector<256x8xf32>
    %91 = arith.addf %85, %90 : vector<256x8xf32>
    %c0_116 = arith.constant 0 : index
    %c1_117 = arith.constant 1 : index
    %c0_118 = arith.constant 0 : index
    %92 = vector.load %arg12[%c0_116, %c1_117, %c0_118] : memref<18x18x8xbf16, #tpu.memory_space<vmem>>, vector<16x16x8xbf16>
    %93 = vector.shape_cast %92 : vector<16x16x8xbf16> to vector<256x8xbf16>
    %c0_119 = arith.constant 0 : index
    %c1_120 = arith.constant 1 : index
    %c0_121 = arith.constant 0 : index
    %c0_122 = arith.constant 0 : index
    %94 = vector.load %arg5[%c0_119, %c1_120, %c0_121, %c0_122] : memref<3x3x8x8xbf16, #tpu.memory_space<vmem>>, vector<1x1x8x8xbf16>
    %95 = vector.shape_cast %94 : vector<1x1x8x8xbf16> to vector<8x8xbf16>
    %cst_123 = arith.constant dense<0.000000e+00> : vector<256x8xf32>
    %96 = tpu.matmul %93, %95, %cst_123 {dimension_numbers = #tpu.dot_dimension_numbers<[1], [0], [0], [1], [0, 0, 1, 1], [], []>} : vector<256x8xbf16>, vector<8x8xbf16>, vector<256x8xf32> -> vector<256x8xf32>
    %97 = arith.addf %91, %96 : vector<256x8xf32>
    %c0_124 = arith.constant 0 : index
    %c2_125 = arith.constant 2 : index
    %c0_126 = arith.constant 0 : index
    %98 = vector.load %arg12[%c0_124, %c2_125, %c0_126] : memref<18x18x8xbf16, #tpu.memory_space<vmem>>, vector<16x16x8xbf16>
    %99 = vector.shape_cast %98 : vector<16x16x8xbf16> to vector<256x8xbf16>
    %c0_127 = arith.constant 0 : index
    %c2_128 = arith.constant 2 : index
    %c0_129 = arith.constant 0 : index
    %c0_130 = arith.constant 0 : index
    %100 = vector.load %arg5[%c0_127, %c2_128, %c0_129, %c0_130] : memref<3x3x8x8xbf16, #tpu.memory_space<vmem>>, vector<1x1x8x8xbf16>
    %101 = vector.shape_cast %100 : vector<1x1x8x8xbf16> to vector<8x8xbf16>
    %cst_131 = arith.constant dense<0.000000e+00> : vector<256x8xf32>
    %102 = tpu.matmul %99, %101, %cst_131 {dimension_numbers = #tpu.dot_dimension_numbers<[1], [0], [0], [1], [0, 0, 1, 1], [], []>} : vector<256x8xbf16>, vector<8x8xbf16>, vector<256x8xf32> -> vector<256x8xf32>
    %103 = arith.addf %97, %102 : vector<256x8xf32>
    %c1_132 = arith.constant 1 : index
    %c0_133 = arith.constant 0 : index
    %c0_134 = arith.constant 0 : index
    %104 = vector.load %arg12[%c1_132, %c0_133, %c0_134] : memref<18x18x8xbf16, #tpu.memory_space<vmem>>, vector<16x16x8xbf16>
    %105 = vector.shape_cast %104 : vector<16x16x8xbf16> to vector<256x8xbf16>
    %c1_135 = arith.constant 1 : index
    %c0_136 = arith.constant 0 : index
    %c0_137 = arith.constant 0 : index
    %c0_138 = arith.constant 0 : index
    %106 = vector.load %arg5[%c1_135, %c0_136, %c0_137, %c0_138] : memref<3x3x8x8xbf16, #tpu.memory_space<vmem>>, vector<1x1x8x8xbf16>
    %107 = vector.shape_cast %106 : vector<1x1x8x8xbf16> to vector<8x8xbf16>
    %cst_139 = arith.constant dense<0.000000e+00> : vector<256x8xf32>
    %108 = tpu.matmul %105, %107, %cst_139 {dimension_numbers = #tpu.dot_dimension_numbers<[1], [0], [0], [1], [0, 0, 1, 1], [], []>} : vector<256x8xbf16>, vector<8x8xbf16>, vector<256x8xf32> -> vector<256x8xf32>
    %109 = arith.addf %103, %108 : vector<256x8xf32>
    %c1_140 = arith.constant 1 : index
    %c1_141 = arith.constant 1 : index
    %c0_142 = arith.constant 0 : index
    %110 = vector.load %arg12[%c1_140, %c1_141, %c0_142] : memref<18x18x8xbf16, #tpu.memory_space<vmem>>, vector<16x16x8xbf16>
    %111 = vector.shape_cast %110 : vector<16x16x8xbf16> to vector<256x8xbf16>
    %c1_143 = arith.constant 1 : index
    %c1_144 = arith.constant 1 : index
    %c0_145 = arith.constant 0 : index
    %c0_146 = arith.constant 0 : index
    %112 = vector.load %arg5[%c1_143, %c1_144, %c0_145, %c0_146] : memref<3x3x8x8xbf16, #tpu.memory_space<vmem>>, vector<1x1x8x8xbf16>
    %113 = vector.shape_cast %112 : vector<1x1x8x8xbf16> to vector<8x8xbf16>
    %cst_147 = arith.constant dense<0.000000e+00> : vector<256x8xf32>
    %114 = tpu.matmul %111, %113, %cst_147 {dimension_numbers = #tpu.dot_dimension_numbers<[1], [0], [0], [1], [0, 0, 1, 1], [], []>} : vector<256x8xbf16>, vector<8x8xbf16>, vector<256x8xf32> -> vector<256x8xf32>
    %115 = arith.addf %109, %114 : vector<256x8xf32>
    %c1_148 = arith.constant 1 : index
    %c2_149 = arith.constant 2 : index
    %c0_150 = arith.constant 0 : index
    %116 = vector.load %arg12[%c1_148, %c2_149, %c0_150] : memref<18x18x8xbf16, #tpu.memory_space<vmem>>, vector<16x16x8xbf16>
    %117 = vector.shape_cast %116 : vector<16x16x8xbf16> to vector<256x8xbf16>
    %c1_151 = arith.constant 1 : index
    %c2_152 = arith.constant 2 : index
    %c0_153 = arith.constant 0 : index
    %c0_154 = arith.constant 0 : index
    %118 = vector.load %arg5[%c1_151, %c2_152, %c0_153, %c0_154] : memref<3x3x8x8xbf16, #tpu.memory_space<vmem>>, vector<1x1x8x8xbf16>
    %119 = vector.shape_cast %118 : vector<1x1x8x8xbf16> to vector<8x8xbf16>
    %cst_155 = arith.constant dense<0.000000e+00> : vector<256x8xf32>
    %120 = tpu.matmul %117, %119, %cst_155 {dimension_numbers = #tpu.dot_dimension_numbers<[1], [0], [0], [1], [0, 0, 1, 1], [], []>} : vector<256x8xbf16>, vector<8x8xbf16>, vector<256x8xf32> -> vector<256x8xf32>
    %121 = arith.addf %115, %120 : vector<256x8xf32>
    %c2_156 = arith.constant 2 : index
    %c0_157 = arith.constant 0 : index
    %c0_158 = arith.constant 0 : index
    %122 = vector.load %arg12[%c2_156, %c0_157, %c0_158] : memref<18x18x8xbf16, #tpu.memory_space<vmem>>, vector<16x16x8xbf16>
    %123 = vector.shape_cast %122 : vector<16x16x8xbf16> to vector<256x8xbf16>
    %c2_159 = arith.constant 2 : index
    %c0_160 = arith.constant 0 : index
    %c0_161 = arith.constant 0 : index
    %c0_162 = arith.constant 0 : index
    %124 = vector.load %arg5[%c2_159, %c0_160, %c0_161, %c0_162] : memref<3x3x8x8xbf16, #tpu.memory_space<vmem>>, vector<1x1x8x8xbf16>
    %125 = vector.shape_cast %124 : vector<1x1x8x8xbf16> to vector<8x8xbf16>
    %cst_163 = arith.constant dense<0.000000e+00> : vector<256x8xf32>
    %126 = tpu.matmul %123, %125, %cst_163 {dimension_numbers = #tpu.dot_dimension_numbers<[1], [0], [0], [1], [0, 0, 1, 1], [], []>} : vector<256x8xbf16>, vector<8x8xbf16>, vector<256x8xf32> -> vector<256x8xf32>
    %127 = arith.addf %121, %126 : vector<256x8xf32>
    %c2_164 = arith.constant 2 : index
    %c1_165 = arith.constant 1 : index
    %c0_166 = arith.constant 0 : index
    %128 = vector.load %arg12[%c2_164, %c1_165, %c0_166] : memref<18x18x8xbf16, #tpu.memory_space<vmem>>, vector<16x16x8xbf16>
    %129 = vector.shape_cast %128 : vector<16x16x8xbf16> to vector<256x8xbf16>
    %c2_167 = arith.constant 2 : index
    %c1_168 = arith.constant 1 : index
    %c0_169 = arith.constant 0 : index
    %c0_170 = arith.constant 0 : index
    %130 = vector.load %arg5[%c2_167, %c1_168, %c0_169, %c0_170] : memref<3x3x8x8xbf16, #tpu.memory_space<vmem>>, vector<1x1x8x8xbf16>
    %131 = vector.shape_cast %130 : vector<1x1x8x8xbf16> to vector<8x8xbf16>
    %cst_171 = arith.constant dense<0.000000e+00> : vector<256x8xf32>
    %132 = tpu.matmul %129, %131, %cst_171 {dimension_numbers = #tpu.dot_dimension_numbers<[1], [0], [0], [1], [0, 0, 1, 1], [], []>} : vector<256x8xbf16>, vector<8x8xbf16>, vector<256x8xf32> -> vector<256x8xf32>
    %133 = arith.addf %127, %132 : vector<256x8xf32>
    %c2_172 = arith.constant 2 : index
    %c2_173 = arith.constant 2 : index
    %c0_174 = arith.constant 0 : index
    %134 = vector.load %arg12[%c2_172, %c2_173, %c0_174] : memref<18x18x8xbf16, #tpu.memory_space<vmem>>, vector<16x16x8xbf16>
    %135 = vector.shape_cast %134 : vector<16x16x8xbf16> to vector<256x8xbf16>
    %c2_175 = arith.constant 2 : index
    %c2_176 = arith.constant 2 : index
    %c0_177 = arith.constant 0 : index
    %c0_178 = arith.constant 0 : index
    %136 = vector.load %arg5[%c2_175, %c2_176, %c0_177, %c0_178] : memref<3x3x8x8xbf16, #tpu.memory_space<vmem>>, vector<1x1x8x8xbf16>
    %137 = vector.shape_cast %136 : vector<1x1x8x8xbf16> to vector<8x8xbf16>
    %cst_179 = arith.constant dense<0.000000e+00> : vector<256x8xf32>
    %138 = tpu.matmul %135, %137, %cst_179 {dimension_numbers = #tpu.dot_dimension_numbers<[1], [0], [0], [1], [0, 0, 1, 1], [], []>} : vector<256x8xbf16>, vector<8x8xbf16>, vector<256x8xf32> -> vector<256x8xf32>
    %139 = arith.addf %133, %138 : vector<256x8xf32>
    %c0_180 = arith.constant 0 : index
    %c0_181 = arith.constant 0 : index
    %140 = vector.load %arg6[%c0_180, %c0_181] : memref<1x8xf32, #tpu.memory_space<vmem>>, vector<1x8xf32>
    %141 = vector.broadcast %140 : vector<1x8xf32> to vector<256x8xf32>
    %142 = arith.mulf %139, %141 : vector<256x8xf32>
    %c0_182 = arith.constant 0 : index
    %c0_183 = arith.constant 0 : index
    %143 = vector.load %arg7[%c0_182, %c0_183] : memref<1x8xf32, #tpu.memory_space<vmem>>, vector<1x8xf32>
    %144 = vector.broadcast %143 : vector<1x8xf32> to vector<256x8xf32>
    %145 = arith.addf %142, %144 : vector<256x8xf32>
    %cst_184 = arith.constant 0.000000e+00 : f32
    %146 = vector.broadcast %cst_184 : f32 to vector<256x8xf32>
    %147 = arith.maximumf %145, %146 : vector<256x8xf32>
    %148 = arith.addf %147, %18 : vector<256x8xf32>
    %149 = vector.shape_cast %148 : vector<256x8xf32> to vector<16x16x8xf32>
    %c0_185 = arith.constant 0 : index
    %c0_186 = arith.constant 0 : index
    %c0_187 = arith.constant 0 : index
    %c0_188 = arith.constant 0 : index
    %150 = vector.load %arg10[%c0_185, %c0_186, %c0_187, %c0_188] : memref<1x16x16x8xf32, #tpu.memory_space<vmem>>, vector<1x16x16x8xf32>
    %151 = vector.shape_cast %150 : vector<1x16x16x8xf32> to vector<16x16x8xf32>
    %152 = vector.shape_cast %149 : vector<16x16x8xf32> to vector<1x16x16x8xf32>
    tpu.vector_store %arg10[%c0_185, %c0_186, %c0_187, %c0_188], %152 {strides = array<i32>} : memref<1x16x16x8xf32, #tpu.memory_space<vmem>>, vector<1x16x16x8xf32>,
    %c0_189 = arith.constant 0 : index
    %c0_190 = arith.constant 0 : index
    %c0_191 = arith.constant 0 : index
    %c0_192 = arith.constant 0 : index
    %153 = tpu.strided_load %arg10[%c0_189, %c0_190, %c0_191, %c0_192] {strides = array<i32: 1, 2, 2, 1>} : memref<1x16x16x8xf32, #tpu.memory_space<vmem>>, vector<1x8x8x8xf32>
    %154 = vector.shape_cast %153 : vector<1x8x8x8xf32> to vector<8x8x8xf32>
    %c0_193 = arith.constant 0 : index
    %c0_194 = arith.constant 0 : index
    %c1_195 = arith.constant 1 : index
    %c0_196 = arith.constant 0 : index
    %155 = tpu.strided_load %arg10[%c0_193, %c0_194, %c1_195, %c0_196] {strides = array<i32: 1, 2, 2, 1>} : memref<1x16x16x8xf32, #tpu.memory_space<vmem>>, vector<1x8x8x8xf32>
    %156 = vector.shape_cast %155 : vector<1x8x8x8xf32> to vector<8x8x8xf32>
    %157 = arith.maximumf %154, %156 : vector<8x8x8xf32>
    %c0_197 = arith.constant 0 : index
    %c1_198 = arith.constant 1 : index
    %c0_199 = arith.constant 0 : index
    %c0_200 = arith.constant 0 : index
    %158 = tpu.strided_load %arg10[%c0_197, %c1_198, %c0_199, %c0_200] {strides = array<i32: 1, 2, 2, 1>} : memref<1x16x16x8xf32, #tpu.memory_space<vmem>>, vector<1x8x8x8xf32>
    %159 = vector.shape_cast %158 : vector<1x8x8x8xf32> to vector<8x8x8xf32>
    %160 = arith.maximumf %157, %159 : vector<8x8x8xf32>
    %c0_201 = arith.constant 0 : index
    %c1_202 = arith.constant 1 : index
    %c1_203 = arith.constant 1 : index
    %c0_204 = arith.constant 0 : index
    %161 = tpu.strided_load %arg10[%c0_201, %c1_202, %c1_203, %c0_204] {strides = array<i32: 1, 2, 2, 1>} : memref<1x16x16x8xf32, #tpu.memory_space<vmem>>, vector<1x8x8x8xf32>
    %162 = vector.shape_cast %161 : vector<1x8x8x8xf32> to vector<8x8x8xf32>
    %163 = arith.maximumf %160, %162 : vector<8x8x8xf32>
    %c0_205 = arith.constant 0 : index
    %c0_206 = arith.constant 0 : index
    %c0_207 = arith.constant 0 : index
    %c0_208 = arith.constant 0 : index
    %164 = vector.load %arg11[%c0_205, %c0_206, %c0_207, %c0_208] : memref<1x8x8x8xf32, #tpu.memory_space<vmem>>, vector<1x8x8x8xf32>
    %165 = vector.shape_cast %164 : vector<1x8x8x8xf32> to vector<8x8x8xf32>
    %166 = vector.shape_cast %163 : vector<8x8x8xf32> to vector<1x8x8x8xf32>
    tpu.vector_store %arg11[%c0_205, %c0_206, %c0_207, %c0_208], %166 {strides = array<i32>} : memref<1x8x8x8xf32, #tpu.memory_space<vmem>>, vector<1x8x8x8xf32>,
    return
  }
  func.func @transform_0(%arg0: i32) -> (i32, i32, i32, i32) {
    %c0_i32 = arith.constant 0 : i32
    %c0_i32_0 = arith.constant 0 : i32
    %c0_i32_1 = arith.constant 0 : i32
    %c0_i32_2 = arith.constant 0 : i32
    return %arg0, %c0_i32, %c0_i32_0, %c0_i32_1 : i32, i32, i32, i32
  }
  func.func @transform_1(%arg0: i32) -> (i32, i32, i32, i32) {
    %c0_i32 = arith.constant 0 : i32
    %c0_i32_0 = arith.constant 0 : i32
    %c0_i32_1 = arith.constant 0 : i32
    %c0_i32_2 = arith.constant 0 : i32
    %c0_i32_3 = arith.constant 0 : i32
    return %c0_i32, %c0_i32_0, %c0_i32_1, %c0_i32_2 : i32, i32, i32, i32
  }
  func.func @transform_2(%arg0: i32) -> (i32, i32) {
    %c0_i32 = arith.constant 0 : i32
    %c0_i32_0 = arith.constant 0 : i32
    %c0_i32_1 = arith.constant 0 : i32
    return %c0_i32, %c0_i32_0 : i32, i32
  }
  func.func @transform_3(%arg0: i32) -> (i32, i32) {
    %c0_i32 = arith.constant 0 : i32
    %c0_i32_0 = arith.constant 0 : i32
    %c0_i32_1 = arith.constant 0 : i32
    return %c0_i32, %c0_i32_0 : i32, i32
  }
  func.func @transform_4(%arg0: i32) -> (i32, i32, i32, i32) {
    %c0_i32 = arith.constant 0 : i32
    %c0_i32_0 = arith.constant 0 : i32
    %c0_i32_1 = arith.constant 0 : i32
    %c0_i32_2 = arith.constant 0 : i32
    %c0_i32_3 = arith.constant 0 : i32
    return %c0_i32, %c0_i32_0, %c0_i32_1, %c0_i32_2 : i32, i32, i32, i32
  }
  func.func @transform_5(%arg0: i32) -> (i32, i32) {
    %c0_i32 = arith.constant 0 : i32
    %c0_i32_0 = arith.constant 0 : i32
    %c0_i32_1 = arith.constant 0 : i32
    return %c0_i32, %c0_i32_0 : i32, i32
  }
  func.func @transform_6(%arg0: i32) -> (i32, i32) {
    %c0_i32 = arith.constant 0 : i32
    %c0_i32_0 = arith.constant 0 : i32
    %c0_i32_1 = arith.constant 0 : i32
    return %c0_i32, %c0_i32_0 : i32, i32
  }
  func.func @transform_7(%arg0: i32) -> (i32, i32) {
    %c0_i32 = arith.constant 0 : i32
    %c0_i32_0 = arith.constant 0 : i32
    %c0_i32_1 = arith.constant 0 : i32
    return %c0_i32, %c0_i32_0 : i32, i32
  }
  func.func @transform_8(%arg0: i32) -> (i32, i32) {
    %c0_i32 = arith.constant 0 : i32
    %c0_i32_0 = arith.constant 0 : i32
    %c0_i32_1 = arith.constant 0 : i32
    return %c0_i32, %c0_i32_0 : i32, i32
  }
  func.func @transform_9(%arg0: i32) -> (i32, i32, i32, i32) {
    %c0_i32 = arith.constant 0 : i32
    %c0_i32_0 = arith.constant 0 : i32
    %c0_i32_1 = arith.constant 0 : i32
    %c0_i32_2 = arith.constant 0 : i32
    return %arg0, %c0_i32, %c0_i32_0, %c0_i32_1 : i32, i32, i32, i32
  }
  func.func @transform_10(%arg0: i32) -> (i32, i32, i32, i32) {
    %c0_i32 = arith.constant 0 : i32
    %c0_i32_0 = arith.constant 0 : i32
    %c0_i32_1 = arith.constant 0 : i32
    %c0_i32_2 = arith.constant 0 : i32
    return %arg0, %c0_i32, %c0_i32_0, %c0_i32_1 : i32, i32, i32, i32
  }
}

</mosaic_0001>

<bundles_post_ra>
// kernel: tpu_custom_call.1
= control target key start
LH: loop header
LB: loop body
LE: loop exit
PB: predicated region body
PF: predicated region fallthrough
CT: control target
= control target key end

     0   :  { %16 = vsyncpa [#allocation4], 0  ;;  %s18855_s0 = inlined_call_operand.vmem [shape: f32[2,16,16,4], index: 0, kind: input, shape index: {}]   ;;  %s18856_s1 = inlined_call_operand.vmem [shape: bf16[3,3,4,8], index: 1, kind: input, shape index: {}]   ;;  %s18857_s2 = inlined_call_operand.vmem [shape: f32[1,8], index: 2, kind: input, shape index: {}]   ;;  %s18858_s3 = inlined_call_operand.vmem [shape: f32[1,8], index: 3, kind: input, shape index: {}]   ;;  %s18859_s4 = inlined_call_operand.vmem [shape: bf16[3,3,8,8], index: 4, kind: input, shape index: {}]   ;;  %s18860_s5 = inlined_call_operand.vmem [shape: f32[1,8], index: 5, kind: input, shape index: {}]   ;;  %s18861_s6 = inlined_call_operand.vmem [shape: f32[1,8], index: 6, kind: input, shape index: {}]   ;;  %s18862_s7 = inlined_call_operand.vmem [shape: bf16[4,8], index: 7, kind: input, shape index: {}]   ;;  %s18863_s8 = inlined_call_operand.vmem [shape: f32[1,8], index: 8, kind: input, shape index: {}]   ;;  %s18864_s9 = inlined_call_operand.vmem [shape: f32[2,16,16,8], index: 9, kind: output, shape index: {0}]   ;;  %s18865_s10 = inlined_call_operand.hbm [shape: f32[2,8,8,8], index: 10, kind: output, shape index: {1}]  }
   0x1   :  { %18 = vsyncpa [#allocation4 + $0x1], 0  ;;  %s13559_s13 = smov 0   ;;  %s13561_s14 = smov 0  }
   0x2   :  { %s13563_s15 = smov 0   ;;  %s13565_s16 = smov 0  }
   0x3 LB: > { %s13580_s17 = sadd.s32 4294967295, %s13498_s16   ;;  %s11375_s18 = sadd.s32 4294967294, %s13498_s16   ;;  %s13498_s16 = sphi %s13565_s16, %s19426_s16   ;;  %s13494_s15 = sphi %s13563_s15, %s19425_s15   ;;  %s13490_s14 = sphi %s13561_s14, %s19424_s14   ;;  %s13486_s13 = sphi %s13559_s13, %s19423_s13  }
   0x4   : > { %s13584_s19 = sadd.s32 1, %s13498_s16   ;;  %s251_s20 = sadd.s32 1, %s13494_s15 }
   0x5   : > { %s248_s21 = ssub.s32 %s13498_s16, %s13584_s19  ;;  %p261_p0 = scmp.ne.s32.totalorder %s13494_s15, %s13490_s14 }
   0x6   : > { %p249_p1 = scmp.eq.s32.totalorder %s248_s21, 0  ;;  %p262_p2 = scmp.eq.s32.totalorder %s13580_s17, 1 }
   0x7   : > { %p267_p3 = scmp.ne.s32.totalorder %s13490_s14, %s13486_s13  ;;  %p268_p4 = scmp.eq.s32.totalorder %s11375_s18, 1 }
   0x8   : > { %s13595_s22 = scalar_select %p249_p1, %s13494_s15, %s251_s20  }
   0x9   : > { %p13597_p5 = por %p262_p2, %p261_p0  ;;  %p13601_p6 = por %p268_p4, %p267_p3 }
   0xa   : > { %p11378_p7 = scmp.ge.s32.totalorder %s13498_s16, 1  ;;  %p318_p8 = scmp.lt.s32.totalorder %s13498_s16, 3 }
   0xc   : > { %p319_p9 = pnand %p11378_p7, %p318_p8 }
   0xe   : > { %322 = sbr.rel (%p319_p9) target bundleno = 1313 (0x521), region = 56 }
  0x13   : > { %v1497_v0 = vld [vmem:[%s18862_s7] sm:$0x3]  ;;  %vm1602_vm0 = vcmask 1041408   ;;  %p361_p10 = scmp.lt.s32.totalorder %s13580_s17, 1  ;;  %vm375_vm1 = vcmask 57344   ;;  %v18915_v3 = vmov 0 }
  0x14   : > { %13232 = vmatprep.subr.msk.bf16.mxu1 %vm1602_vm0, %v1497_v0  ;;  %13231 = vmatprep.subr.msk.bf16.mxu0 %vm1602_vm0, %v1497_v0  ;;  %v1604_v1 = vsel %vm1602_vm0, %v1497_v0, 0  ;;  %vm382_vm2 = vsmask.f32 256  ;;  %v387_v2 = vld [vmem:[#allocation2 + $0xc] sm:$0x1]  ;;  %v18918_v6 = vmov 0 }
  0x15   : > { %13230 = vmatpush3.bf16.msra.mxu1 %v1604_v1  ;;  %12584 = vmatpush3.bf16.msra.mxu0 %v1604_v1  ;;  %s13615_s27 = scalar_select %p361_p10, %s13580_s17, 1  ;;  %vm13619_vm3 = vmand %vm375_vm1, %vm382_vm2  ;;  %vm438_vm4 = vsmask.f32 7938  ;;  %v443_v4 = vld [vmem:[#allocation2 + $0x14] sm:$0x1]  ;;  %vm372_vm7 = vcmask 60416  }
  0x16   : > { %v18916_v3 = vsel %vm13619_vm3, 4294967295, %v18915_v3  ;;  %v388_v5 = vsel %vm13619_vm3, 0, %v387_v2  ;;  %vm13627_vm5 = vmand %vm375_vm1, %vm438_vm4  ;;  %v411_v8 = vld [vmem:[#allocation2 + $0x6c] sm:$0x1]  ;;  %v467_v10 = vld [vmem:[#allocation2 + $0x74] sm:$0x1] }
  0x17   : > { %18917 = vst [vmem:[#allocation6_spill] sm:$0xff] %v18916_v3  ;;  %v18919_v6 = vsel %vm13627_vm5, 4294967295, %v18918_v6  ;;  %s12193_s28 = sshll.u32 %s13615_s27, 8  ;;  %389 = vst [vmem:[#allocation2 + $0xc] sm:$0x1] %v388_v5  ;;  %v444_v7 = vsel %vm13627_vm5, 0, %v443_v4 }
  0x18   : > { %18920 = vst [vmem:[#allocation7_spill] sm:$0xff] %v18919_v6  ;;  %s13639_s11 = scalar_lea.vmem %s18855_s0, %s12193_s28  ;;  %445 = vst [vmem:[#allocation2 + $0x14] sm:$0x1] %v444_v7  ;;  %v412_v9 = vsel %vm13619_vm3, 0, %v411_v8  ;;  %v13646_v11 = vld [vmem:[%s18856_s1 + $0x2] sm:$0x3]  ;;  %s18451_s29 = scalar_lea.vmem %s18864_s9, %s12193_s28 }
  0x19   : > { %v494_v12 = vld [vmem:[%s13639_s11] sm:$0xff]  ;;  %v495_v13 = vld [vmem:[%s13639_s11 + $0x8] sm:$0xff]  ;;  %vm622_vm6 = vsmask.f32 4368  ;;  %413 = vst [vmem:[#allocation2 + $0x6c] sm:$0x1] %v412_v9  ;;  %13233 = vmatprep.subr.msk.bf16.mxu1 %vm1602_vm0, %v13646_v11 }
  0x1a   : > { %v468_v14 = vsel %vm13627_vm5, 0, %v467_v10  ;;  %v12195_v15 = vpack.c.bf16 %v494_v12, %v494_v12  ;;  %v12196_v16 = vpack.c.bf16 %v495_v13, %v495_v13  ;;  %v510_v17 = vld [vmem:[%s13639_s11 + $0x80] sm:$0xff]  ;;  %v511_v18 = vld [vmem:[%s13639_s11 + $0x88] sm:$0xff]  ;;  %vm945_vm8 = vcmask 27648   ;;  %v390_v21 = vld [vmem:[#allocation2 + $0x18] sm:$0x1] }
  0x1b   : > { %469 = vst [vmem:[#allocation2 + $0x74] sm:$0x1] %v468_v14  ;;  %vm952_vm9 = vcmask 24576   ;;  %v12211_v19 = vpack.c.bf16 %v510_v17, %v510_v17  ;;  %v12212_v20 = vpack.c.bf16 %v511_v18, %v511_v18  ;;  %v446_v22 = vld [vmem:[#allocation2 + $0x20] sm:$0x1]  ;;  %v13500_v23 = vmov 0   ;;  %vm13666_vm10 = vmor %vm382_vm2, %vm622_vm6 }
  0x1c   : > { %373 = vst.msk [vmem:[#allocation2] sm:$0xf] %vm372_vm7, %v13500_v23  ;;  %374 = vst.msk [vmem:[#allocation2 + $0x4] sm:$0xf] %vm372_vm7, %v13500_v23  ;;  %v625_v24 = vshrl.u32 %v12195_v15, 16  ;;  %v628_v25 = vshll.u32 %v12195_v15, 16 }
  0x1d   : > { %376 = vst.msk [vmem:[#allocation2 + $0x8] sm:$0x1] %vm375_vm1, %v13500_v23  ;;  %380 = vst.msk [vmem:[#allocation2 + $0xd4] sm:$0x1] %vm375_vm1, %v13500_v23  ;;  %v633_v26 = vshrl.u32 %v12196_v16, 16  ;;  %v636_v27 = vshll.u32 %v12196_v16, 16 }
  0x1e   : > { %378 = vst.msk [vmem:[#allocation2 + $0xcc] sm:$0xf] %vm372_vm7, %v13500_v23  ;;  %379 = vst.msk [vmem:[#allocation2 + $0xd0] sm:$0xf] %vm372_vm7, %v13500_v23  ;;  %v496_v28 = vld [vmem:[%s13639_s11 + $0x10] sm:$0xff]  ;;  %v497_v29 = vld [vmem:[%s13639_s11 + $0x18] sm:$0xff] }
  0x1f   : > { %v18921_v30 = vmov 0  ;;  %v761_v31 = vshrl.u32 %v12211_v19, 16  ;;  %v764_v32 = vshll.u32 %v12211_v19, 16  ;;  %v769_v33 = vshrl.u32 %v12212_v20, 16  ;;  %vm13672_vm11 = vmand %vm945_vm8, %vm438_vm4  ;;  %v947_v40 = vld [vmem:[#allocation2 + $0xc] sm:$0xf] }
  0x20   : > { %v18922_v30 = vsel %vm13666_vm10, 4294967295, %v18921_v30  ;;  %v772_v34 = vshll.u32 %v12212_v20, 16  ;;  %v627_v35 = vrot.slane %v625_v24, 7  ;;  %v635_v36 = vrot.slane %v633_v26, 7  ;;  %vm13682_vm12 = vmand %vm952_vm9, %vm382_vm2  ;;  %v954_v42 = vld [vmem:[#allocation2 + $0x14] sm:$0x1] }
  0x21   : > { %18923 = vst [vmem:[#allocation8_spill] sm:$0xff] %v18922_v30  ;;  %v391_v38 = vsel %vm13619_vm3, 0, %v390_v21  ;;  %v447_v39 = vsel %vm13627_vm5, 0, %v446_v22  ;;  %v763_v43 = vrot.slane %v761_v31, 7  ;;  %v771_v44 = vrot.slane %v769_v33, 7  ;;  %v512_v52 = vld [vmem:[%s13639_s11 + $0x90] sm:$0xff]  ;;  %vm15902_vm9 = vmand %vm372_vm7, %vm438_vm4 }
  0x22   : > { %392 = vst [vmem:[#allocation2 + $0x18] sm:$0x1] %v391_v38  ;;  %448 = vst [vmem:[#allocation2 + $0x20] sm:$0x1] %v447_v39  ;;  %v12197_v45 = vpack.c.bf16 %v496_v28, %v496_v28  ;;  %v12198_v46 = vpack.c.bf16 %v497_v29, %v497_v29  ;;  %v630_v47 = vor.u32 %v628_v25, %v627_v35  ;;  %v631_v48 = vrot.slane %v627_v35, 4  ;;  %v513_v0 = vld [vmem:[%s13639_s11 + $0x98] sm:$0xff] }
  0x23   : > { %v638_v49 = vor.u32 %v636_v27, %v635_v36  ;;  %v640_v50 = vrot.slane %v635_v36, 4  ;;  %v1006_v51 = vld [vmem:[#allocation2 + $0x6c] sm:$0xf]  ;;  %v766_v53 = vor.u32 %v764_v32, %v763_v43  ;;  %v767_v54 = vrot.slane %v763_v43, 4  ;;  %v1010_v57 = vld [vmem:[#allocation2 + $0x74] sm:$0x1] }
  0x24   : > { %v774_v55 = vor.u32 %v772_v34, %v771_v44  ;;  %v776_v56 = vrot.slane %v771_v44, 4  ;;  %v414_v58 = vld [vmem:[#allocation2 + $0x78] sm:$0x1]  ;;  %v948_v60 = vsel %vm13672_vm11, %v630_v47, %v947_v40  ;;  %v642_v62 = vshrl.u32 %v12197_v45, 16  ;;  %v470_v63 = vld [vmem:[#allocation2 + $0x80] sm:$0x1] }
  0x25   : > { %v639_v59 = vsel %vm13666_vm10, %v631_v48, %v638_v49  ;;  %v955_v61 = vsel %vm13682_vm12, %v640_v50, %v954_v42  ;;  %v393_v1 = vld [vmem:[#allocation2 + $0x24] sm:$0x1]  ;;  %949 = vst [vmem:[#allocation2 + $0xc] sm:$0xf] %v948_v60  ;;  %v1007_v4 = vsel %vm13672_vm11, %v766_v53, %v1006_v51  ;;  %v645_v7 = vshll.u32 %v12197_v45, 16  ;;  %v499_v38 = vld [vmem:[%s13639_s11 + $0x28] sm:$0xff] }
  0x26   : > { %951 = vst.msk [vmem:[#allocation2 + $0x10] sm:$0xf] %vm945_vm8, %v639_v59  ;;  %956 = vst [vmem:[#allocation2 + $0x14] sm:$0x1] %v955_v61  ;;  %v775_v2 = vsel %vm13666_vm10, %v767_v54, %v774_v55  ;;  %v1011_v5 = vsel %vm13682_vm12, %v776_v56, %v1010_v57  ;;  %v644_v8 = vrot.slane %v642_v62, 7  ;;  %v650_v9 = vshrl.u32 %v12198_v46, 16 }
  0x27   : > { %1008 = vst [vmem:[#allocation2 + $0x6c] sm:$0xf] %v1007_v4  ;;  %1009 = vst.msk [vmem:[#allocation2 + $0x70] sm:$0xf] %vm945_vm8, %v775_v2  ;;  %v653_v10 = vshll.u32 %v12198_v46, 16  ;;  %v415_v12 = vsel %vm13619_vm3, 0, %v414_v58  ;;  %v12213_v15 = vpack.c.bf16 %v512_v52, %v512_v52  ;;  %v13707_v16 = vpack.c.bf16 %v513_v0, %v513_v0 }
  0x28   : > { %1012 = vst [vmem:[#allocation2 + $0x74] sm:$0x1] %v1011_v5  ;;  %v498_v13 = vld [vmem:[%s13639_s11 + $0x20] sm:$0xff]  ;;  %vm1110_vm13 = vsmask.f32 3328  ;;  %v471_v14 = vsel %vm13627_vm5, 0, %v470_v63  ;;  %v647_v19 = vor.u32 %v645_v7, %v644_v8  ;;  %v13734_v53 = vpack.c.bf16 %v499_v38, %v499_v38 }
  0x29   : > { %416 = vst [vmem:[#allocation2 + $0x78] sm:$0x1] %v415_v12  ;;  %v394_v17 = vsel %vm13619_vm3, 0, %v393_v1  ;;  %v449_v18 = vld [vmem:[#allocation2 + $0x2c] sm:$0x1]  ;;  %v648_v20 = vrot.slane %v644_v8, 4  ;;  %v13712_v27 = vpack.c.bf16 %v498_v13, %v498_v13 }
  0x2a   : > { %vm1111_vm14 = vsmask.f32 7440  ;;  %v652_v21 = vrot.slane %v650_v9, 7  ;;  %v957_v22 = vld [vmem:[#allocation2 + $0x18] sm:$0xf]  ;;  %v778_v24 = vshrl.u32 %v12213_v15, 16 }
  0x2b   : > { %472 = vst [vmem:[#allocation2 + $0x80] sm:$0x1] %v471_v14  ;;  %395 = vst [vmem:[#allocation2 + $0x24] sm:$0x1] %v394_v17  ;;  %v961_v23 = vld [vmem:[#allocation2 + $0x20] sm:$0x1]  ;;  %v958_v31 = vsel %vm13672_vm11, %v647_v19, %v957_v22 }
  0x2c   : > { %v781_v25 = vshll.u32 %v12213_v15, 16  ;;  %v786_v26 = vshrl.u32 %v13707_v16, 16  ;;  %v655_v28 = vor.u32 %v653_v10, %v652_v21  ;;  %v657_v29 = vrot.slane %v652_v21, 4  ;;  %959 = vst [vmem:[#allocation2 + $0x18] sm:$0xf] %v958_v31  ;;  %vm13739_vm1 = vmor %vm1110_vm13, %vm1111_vm14  ;;  %s358_s27 = sand.u32 1, %s13490_s14  }
  0x2d   : > { %v450_v32 = vsel %vm13627_vm5, 0, %v449_v18  ;;  %v13718_v33 = vrot.slane %v778_v24, 7  ;;  %v789_v35 = vshll.u32 %v13707_v16, 16  ;;  %v13725_v36 = vsel %vm1602_vm0, %v13646_v11, 0  ;;  %v1062_v39 = vld [vmem:[#allocation2 + $0xc] sm:$0xf] }
  0x2e   : > { %v13720_v34 = vrot.slane %v786_v26, 7  ;;  %451 = vst [vmem:[#allocation2 + $0x2c] sm:$0x1] %v450_v32  ;;  %v1063_v40 = vld [vmem:[#allocation2 + $0x10] sm:$0xf]  ;;  %v656_v43 = vsel %vm13666_vm10, %v648_v20, %v655_v28  ;;  %v962_v44 = vsel %vm13682_vm12, %v657_v29, %v961_v23  ;;  %v1114_v45 = vshrl.u32 %v1062_v39, 16 }
  0x2f   : > { %v1064_v42 = vld [vmem:[#allocation2 + $0x14] sm:$0x1]  ;;  %v1117_v46 = vshll.u32 %v1062_v39, 16  ;;  %v1123_v47 = vshll.u32 %v1063_v40, 16  ;;  %v1127_v48 = vshrl.u32 %v1063_v40, 16  ;;  %vm1553_vm15 = vcmask 31744  }
  0x30   : > { %v1086_v49 = vld [vmem:[#allocation2 + $0x6c] sm:$0xf]  ;;  %960 = vst.msk [vmem:[#allocation2 + $0x1c] sm:$0xf] %vm945_vm8, %v656_v43  ;;  %963 = vst [vmem:[#allocation2 + $0x20] sm:$0x1] %v962_v44  ;;  %v783_v52 = vor.u32 %v781_v25, %v13718_v33  ;;  %v791_v12 = vor.u32 %v789_v35, %v13720_v34 }
  0x31   : > { %v1133_v11 = vshll.u32 %v1064_v42, 16  ;;  %v1087_v50 = vld [vmem:[#allocation2 + $0x70] sm:$0xf]  ;;  %v1088_v51 = vld [vmem:[#allocation2 + $0x74] sm:$0x1]  ;;  %v659_v54 = vshrl.u32 %v13712_v27, 16 }
  0x32   : > { %v1116_v55 = vrot.slane %v1114_v45, 4  ;;  %v1119_v56 = vrot.slane %v1117_v46, 5  ;;  %v1125_v57 = vrot.slane %v1123_v47, 5  ;;  %v1129_v58 = vrot.slane %v1127_v48, 4  ;;  %v1013_v4 = vld [vmem:[#allocation2 + $0x78] sm:$0xf] }
  0x33   : > { %v1135_v59 = vrot.slane %v1133_v11, 5  ;;  %v1306_v60 = vshrl.u32 %v1086_v49, 16  ;;  %v1309_v61 = vshll.u32 %v1086_v49, 16  ;;  %v1315_v62 = vshll.u32 %v1087_v50, 16  ;;  %v1065_v10 = vld [vmem:[#allocation2 + $0x18] sm:$0xf] }
  0x34   : > { %v1120_v63 = vor.u32 %v1119_v56, %v1116_v55  ;;  %v1130_v0 = vor.u32 %v1129_v58, %v1125_v57  ;;  %v1319_v1 = vshrl.u32 %v1087_v50, 16  ;;  %v1325_v2 = vshll.u32 %v1088_v51, 16  ;;  %v514_v28 = vld [vmem:[%s13639_s11 + $0xa0] sm:$0xff]  ;;  %v515_v29 = vld [vmem:[%s13639_s11 + $0xa8] sm:$0xff]  ;;  %v14255_v30 = vld [vmem:[#allocation2 + $0x70] sm:$0xf] }
  0x35   : > { %v18928_v5 = vmov 0  ;;  %v1308_v7 = vrot.slane %v1306_v60, 4  ;;  %v1311_v8 = vrot.slane %v1309_v61, 5  ;;  %v1317_v9 = vrot.slane %v1315_v62, 5  ;;  %v1017_v51 = vld [vmem:[#allocation2 + $0x80] sm:$0x1] }
  0x36   : > { %v18929_v5 = vsel %vm13739_vm1, 4294967295, %v18928_v5  ;;  %v1121_v13 = vrot.slane %v1120_v63, 4  ;;  %v1131_v14 = vrot.slane %v1130_v0, 4  ;;  %v1321_v15 = vrot.slane %v1319_v1, 4  ;;  %v417_v62 = vld [vmem:[#allocation2 + $0x84] sm:$0x1] }
  0x37   : > { %18930 = vst [vmem:[#allocation9_spill] sm:$0xff] %v18929_v5  ;;  %v1327_v16 = vrot.slane %v1325_v2, 5  ;;  %v1312_v17 = vor.u32 %v1311_v8, %v1308_v7  ;;  %v1066_v18 = vld [vmem:[#allocation2 + $0x1c] sm:$0xf]  ;;  %v1067_v19 = vld [vmem:[#allocation2 + $0x20] sm:$0x1]  ;;  %v1014_v22 = vsel %vm13672_vm11, %v783_v52, %v1013_v4  ;;  %v13758_v46 = vpack.c.bf16 %v514_v28, %v514_v28 }
  0x38   : > { %v1138_v20 = vshrl.u32 %v1065_v10, 16  ;;  %v1141_v21 = vshll.u32 %v1065_v10, 16  ;;  %v1126_v23 = vsel %vm13739_vm1, %v1121_v13, %v1125_v57  ;;  %v1136_v24 = vsel %vm13739_vm1, %v1131_v14, %v1135_v59  ;;  %1015 = vst [vmem:[#allocation2 + $0x78] sm:$0xf] %v1014_v22  ;;  %v473_v63 = vld [vmem:[#allocation2 + $0x8c] sm:$0x1] }
  0x39   : > { %v1322_v25 = vor.u32 %v1321_v15, %v1317_v9  ;;  %v1147_v26 = vshll.u32 %v1066_v18, 16  ;;  %v13752_v31 = vcombine.low %v1126_v23, %v1136_v24  ;;  %v1313_v32 = vrot.slane %v1312_v17, 4  ;;  %v968_v17 = vld [vmem:[#allocation2 + $0x2c] sm:$0x1]  ;;  %v452_v23 = vld [vmem:[#allocation2 + $0x38] sm:$0x1] }
  0x3a   : > { %v1140_v35 = vrot.slane %v1138_v20, 4  ;;  %v1143_v38 = vrot.slane %v1141_v21, 5  ;;  %v1151_v42 = vshrl.u32 %v1066_v18, 16  ;;  %v1157_v43 = vshll.u32 %v1067_v19, 16  ;;  %v396_v18 = vld [vmem:[#allocation2 + $0x30] sm:$0x1] }
  0x3b   : > { %v1323_v39 = vrot.slane %v1322_v25, 4  ;;  %v1149_v40 = vrot.slane %v1147_v26, 5  ;;  %12585 = vmatprep.mubr.msk.bf16.mxu0 %vm1553_vm15, %v13752_v31  ;;  %v1318_v44 = vsel %vm13739_vm1, %v1313_v32, %v1317_v9  ;;  %v13760_v47 = vpack.c.bf16 %v515_v29, %v515_v29  ;;  %v500_v24 = vld [vmem:[%s13639_s11 + $0x30] sm:$0xff]  ;;  %v501_v32 = vld [vmem:[%s13639_s11 + $0x38] sm:$0xff]  ;;  %s18573_s28 = sshll.u32 %s358_s27, 6  ;;  %s18815_s25 = scalar_lea.sflag [#allocation4], %s358_s27 }
  0x3c   : > { %v1144_v45 = vor.u32 %v1143_v38, %v1140_v35  ;;  %v1153_v49 = vrot.slane %v1151_v42, 4  ;;  %v1159_v11 = vrot.slane %v1157_v43, 5  ;;  %v784_v50 = vrot.slane %v13718_v33, 4  ;;  %v420_v35 = vld [vmem:[#allocation2 + $0x90] sm:$0x1]  ;;  %s18611_s30 = scalar_lea.vmem [#allocation3], %s18573_s28 }
  0x3d   : > { %v1328_v48 = vsel %vm13739_vm1, %v1323_v39, %v1327_v16  ;;  %v793_v56 = vrot.slane %v13720_v34, 4  ;;  %v661_v57 = vrot.slane %v659_v54, 7  ;;  %v662_v60 = vshll.u32 %v13712_v27, 16  ;;  %v964_v27 = vld [vmem:[#allocation2 + $0x24] sm:$0xf]  ;;  %v516_v43 = vld [vmem:[%s13639_s11 + $0xb0] sm:$0xff] }
  0x3e   : > { %v13765_v52 = vcombine.low %v1318_v44, %v1328_v48  ;;  %v1145_v55 = vrot.slane %v1144_v45, 4  ;;  %v1154_v58 = vor.u32 %v1153_v49, %v1149_v40  ;;  %v792_v59 = vsel %vm13666_vm10, %v784_v50, %v791_v12  ;;  %v13808_v44 = vld [vmem:[%s18856_s1] sm:$0x3]  ;;  %s11273_s12 = sshll.u32 %s18611_s30, 4  ;;  %s13501_s26 = smov [#allocation3]   ;;  %s18809_s12 = int_to_ptr.vmem [resolvable:$true] %s11273_s12 }
  0x3f   : > { %v667_v61 = vshrl.u32 %v13734_v53, 16  ;;  %1016 = vst.msk [vmem:[#allocation2 + $0x7c] sm:$0xf] %vm945_vm8, %v792_v59  ;;  %v1018_v34 = vsel %vm13682_vm12, %v793_v56, %v1017_v51  ;;  %v1089_v54 = vld [vmem:[#allocation2 + $0x78] sm:$0xf]  ;;  %v665_v0 = vrot.slane %v661_v57, 4  ;;  %v664_v8 = vor.u32 %v662_v60, %v661_v57  ;;  %13234 = vmatprep.subr.msk.bf16.mxu0 %vm1602_vm0, %v13808_v44 }
  0x40   : > { %18931 = vst [vmem:[#allocation10_spill] sm:$0xff] %v13765_v52  ;;  %12601 = vmatprep.mubr.msk.bf16.mxu1 %vm1553_vm15, %v13765_v52  ;;  %v1150_v33 = vsel %vm13739_vm1, %v1145_v55, %v1149_v40  ;;  %v670_v1 = vshll.u32 %v13734_v53, 16  ;;  %v1155_v2 = vrot.slane %v1154_v58, 4  ;;  %1019 = vst [vmem:[#allocation2 + $0x80] sm:$0x1] %v1018_v34  ;;  %v1330_v4 = vshrl.u32 %v1089_v54, 16 }
  0x41   : > { %v1333_v7 = vshll.u32 %v1089_v54, 16  ;;  %v669_v9 = vrot.slane %v667_v61, 7  ;;  %v418_v10 = vsel %vm13619_vm3, 0, %v417_v62  ;;  %v474_v12 = vsel %vm13627_vm5, 0, %v473_v63 }
  0x42   : > { %v795_v13 = vshrl.u32 %v13758_v46, 16  ;;  %v1160_v14 = vsel %vm13739_vm1, %v1155_v2, %v1159_v11  ;;  %v1332_v53 = vrot.slane %v1330_v4, 4  ;;  %v965_v16 = vsel %vm13672_vm11, %v664_v8, %v964_v27  ;;  %419 = vst [vmem:[#allocation2 + $0x84] sm:$0x1] %v418_v10  ;;  %475 = vst [vmem:[#allocation2 + $0x8c] sm:$0x1] %v474_v12 }
  0x43   : > { %v1335_v15 = vrot.slane %v1333_v7, 5  ;;  %v13789_v19 = vcombine.low %v1150_v33, %v1160_v14  ;;  %v672_v20 = vor.u32 %v670_v1, %v669_v9  ;;  %v674_v21 = vrot.slane %v669_v9, 4  ;;  %966 = vst [vmem:[#allocation2 + $0x24] sm:$0xf] %v965_v16  ;;  %v517_v11 = vld [vmem:[%s13639_s11 + $0xb8] sm:$0xff]  ;;  %v502_v8 = vld [vmem:[%s13639_s11 + $0x40] sm:$0xff] }
  0x44   : > { %v797_v22 = vrot.slane %v795_v13, 7  ;;  %v798_v26 = vshll.u32 %v13758_v46, 16  ;;  %v803_v28 = vshrl.u32 %v13760_v47, 16  ;;  %v806_v29 = vshll.u32 %v13760_v47, 16  ;;  %v503_v9 = vld [vmem:[%s13639_s11 + $0x48] sm:$0xff] }
  0x45   : > { %v1336_v25 = vor.u32 %v1335_v15, %v1332_v53  ;;  %12586 = vmatmul.mubr.msk.bf16.vlgmr.msra.gmra.mxu0 %vm1553_vm15, %v13789_v19  ;;  %v673_v38 = vsel %vm13666_vm10, %v665_v0, %v672_v20  ;;  %v969_v39 = vsel %vm13682_vm12, %v674_v21, %v968_v17  ;;  %v397_v42 = vsel %vm13619_vm3, 0, %v396_v18  ;;  %v476_v18 = vld [vmem:[#allocation2 + $0x98] sm:$0x1] }
  0x46   : > { %v801_v40 = vrot.slane %v797_v22, 4  ;;  %v1090_v45 = vld [vmem:[#allocation2 + $0x7c] sm:$0xf]  ;;  %967 = vst.msk [vmem:[#allocation2 + $0x28] sm:$0xf] %vm945_vm8, %v673_v38  ;;  %v800_v47 = vor.u32 %v798_v26, %v797_v22  ;;  %v805_v48 = vrot.slane %v803_v28, 7  ;;  %v12201_v56 = vpack.c.bf16 %v500_v24, %v500_v24 }
  0x47   : > { %v1337_v46 = vrot.slane %v1336_v25, 4  ;;  %970 = vst [vmem:[#allocation2 + $0x2c] sm:$0x1] %v969_v39  ;;  %398 = vst [vmem:[#allocation2 + $0x30] sm:$0x1] %v397_v42  ;;  %v453_v49 = vsel %vm13627_vm5, 0, %v452_v23  ;;  %v12202_v57 = vpack.c.bf16 %v501_v32, %v501_v32  ;;  %v13818_v54 = vpack.c.bf16 %v516_v43, %v516_v43 }
  0x48   : > { %v1091_v50 = vld [vmem:[#allocation2 + $0x80] sm:$0x1]  ;;  %v1339_v51 = vshll.u32 %v1090_v45, 16  ;;  %v1343_v55 = vshrl.u32 %v1090_v45, 16  ;;  %454 = vst [vmem:[#allocation2 + $0x38] sm:$0x1] %v453_v49  ;;  %v808_v59 = vor.u32 %v806_v29, %v805_v48  ;;  %v13820_v0 = vpack.c.bf16 %v517_v11, %v517_v11 }
  0x49   : > { %v1349_v58 = vshll.u32 %v1091_v50, 16  ;;  %v810_v60 = vrot.slane %v805_v48, 4  ;;  %v421_v61 = vsel %vm13619_vm3, 0, %v420_v35  ;;  %v1020_v33 = vld [vmem:[#allocation2 + $0x84] sm:$0xf]  ;;  %v676_v53 = vshrl.u32 %v12201_v56, 16 }
  0x4a   : > { %v1341_v62 = vrot.slane %v1339_v51, 5  ;;  %v1345_v63 = vrot.slane %v1343_v55, 4  ;;  %v1024_v34 = vld [vmem:[#allocation2 + $0x8c] sm:$0x1]  ;;  %422 = vst [vmem:[#allocation2 + $0x90] sm:$0x1] %v421_v61  ;;  %v809_v2 = vsel %vm13666_vm10, %v801_v40, %v808_v59  ;;  %v1021_v4 = vsel %vm13672_vm11, %v800_v47, %v1020_v33 }
  0x4b   : > { %v1351_v1 = vrot.slane %v1349_v58, 5  ;;  %v1068_v27 = vld [vmem:[#allocation2 + $0x24] sm:$0xf]  ;;  %v1025_v7 = vsel %vm13682_vm12, %v810_v60, %v1024_v34  ;;  %1022 = vst [vmem:[#allocation2 + $0x84] sm:$0xf] %v1021_v4  ;;  %v679_v15 = vshll.u32 %v12201_v56, 16  ;;  %v13833_v24 = vpack.c.bf16 %v502_v8, %v502_v8 }
  0x4c   : > { %v1342_v10 = vsel %vm13739_vm1, %v1337_v46, %v1341_v62  ;;  %v1346_v12 = vor.u32 %v1345_v63, %v1341_v62  ;;  %v1162_v13 = vshrl.u32 %v1068_v27, 16  ;;  %v1165_v14 = vshll.u32 %v1068_v27, 16  ;;  %1023 = vst.msk [vmem:[#allocation2 + $0x88] sm:$0xf] %vm945_vm8, %v809_v2  ;;  %1026 = vst [vmem:[#allocation2 + $0x8c] sm:$0x1] %v1025_v7 }
  0x4d   : > { %v684_v16 = vshrl.u32 %v12202_v57, 16  ;;  %v687_v17 = vshll.u32 %v12202_v57, 16  ;;  %v1069_v21 = vld [vmem:[#allocation2 + $0x28] sm:$0xf]  ;;  %v13835_v25 = vpack.c.bf16 %v503_v9, %v503_v9  ;;  %v678_v38 = vrot.slane %v676_v53, 7  ;;  %v518_v42 = vld [vmem:[%s13639_s11 + $0xc0] sm:$0xff] }
  0x4e   : > { %v1347_v20 = vrot.slane %v1346_v12, 4  ;;  %v1070_v22 = vld [vmem:[#allocation2 + $0x2c] sm:$0x1]  ;;  %v1164_v23 = vrot.slane %v1162_v13, 4  ;;  %v1167_v26 = vrot.slane %v1165_v14, 5  ;;  %v1171_v28 = vshll.u32 %v1069_v21, 16 }
  0x4f   : > { %v1175_v29 = vshrl.u32 %v1069_v21, 16  ;;  %v1181_v32 = vshll.u32 %v1070_v22, 16  ;;  %v686_v39 = vrot.slane %v684_v16, 7  ;;  %v477_v40 = vsel %vm13627_vm5, 0, %v476_v18  ;;  %v11530_v48 = vld [vmem:[%s18856_s1 + $0x4] sm:$0x3] }
  0x50   : > { %v1352_v35 = vsel %vm13739_vm1, %v1347_v20, %v1351_v1  ;;  %v1168_v45 = vor.u32 %v1167_v26, %v1164_v23  ;;  %v1173_v46 = vrot.slane %v1171_v28, 5  ;;  %478 = vst [vmem:[#allocation2 + $0x98] sm:$0x1] %v477_v40  ;;  %v681_v11 = vor.u32 %v679_v15, %v678_v38  ;;  %v971_v55 = vld [vmem:[#allocation2 + $0x30] sm:$0xf] }
  0x51   : > { %v13842_v43 = vcombine.low %v1342_v10, %v1352_v35  ;;  %v1177_v47 = vrot.slane %v1175_v29, 4  ;;  %v1183_v49 = vrot.slane %v1181_v32, 5  ;;  %v682_v50 = vrot.slane %v678_v38, 4  ;;  %v975_v56 = vld [vmem:[#allocation2 + $0x38] sm:$0x1] }
  0x52   : > { %v689_v51 = vor.u32 %v687_v17, %v686_v39  ;;  %v1169_v57 = vrot.slane %v1168_v45, 4  ;;  %v1092_v59 = vld [vmem:[#allocation2 + $0x84] sm:$0xf]  ;;  %v691_v61 = vrot.slane %v686_v39, 4  ;;  %v13849_v62 = vpack.c.bf16 %v518_v42, %v518_v42  ;;  %v1027_v42 = vld [vmem:[#allocation2 + $0x90] sm:$0xf] }
  0x53   : > { %18932 = vst [vmem:[#allocation11_spill] sm:$0xff] %v13842_v43  ;;  %12602 = vmatmul.mubr.msk.bf16.vlgmr.msra.gmra.mxu1 %vm1553_vm15, %v13842_v43  ;;  %v1178_v58 = vor.u32 %v1177_v47, %v1173_v46  ;;  %v1093_v60 = vld [vmem:[#allocation2 + $0x88] sm:$0xf]  ;;  %v1094_v63 = vld [vmem:[#allocation2 + $0x8c] sm:$0x1]  ;;  %v1354_v33 = vshrl.u32 %v1092_v59, 16  ;;  %v972_v15 = vsel %vm13672_vm11, %v681_v11, %v971_v55 }
  0x54   : > { %12618 = vmatpush3.bf16.msra.mxu1 %v13725_v36  ;;  %v1357_v34 = vshll.u32 %v1092_v59, 16  ;;  %v1363_v1 = vshll.u32 %v1093_v60, 16  ;;  %v1367_v27 = vshrl.u32 %v1093_v60, 16  ;;  %v1174_v2 = vsel %vm13739_vm1, %v1169_v57, %v1173_v46  ;;  %v399_v36 = vld [vmem:[#allocation2 + $0x3c] sm:$0x1] }
  0x55   : > { %v1179_v4 = vrot.slane %v1178_v58, 4  ;;  %v1373_v7 = vshll.u32 %v1094_v63, 16  ;;  %v690_v8 = vsel %vm13666_vm10, %v682_v50, %v689_v51  ;;  %13235 = vmatprep.subr.msk.bf16.mxu1 %vm1602_vm0, %v11530_v48  ;;  %v1356_v9 = vrot.slane %v1354_v33, 4  ;;  %v455_v17 = vld [vmem:[#allocation2 + $0x44] sm:$0x1] }
  0x56   : > { %v1359_v10 = vrot.slane %v1357_v34, 5  ;;  %v1365_v12 = vrot.slane %v1363_v1, 5  ;;  %v1369_v13 = vrot.slane %v1367_v27, 4  ;;  %974 = vst.msk [vmem:[#allocation2 + $0x34] sm:$0xf] %vm945_vm8, %v690_v8  ;;  %v976_v16 = vsel %vm13682_vm12, %v691_v61, %v975_v56 }
  0x57   : > { %v1184_v14 = vsel %vm13739_vm1, %v1179_v4, %v1183_v49  ;;  %v1375_v53 = vrot.slane %v1373_v7, 5  ;;  %973 = vst [vmem:[#allocation2 + $0x30] sm:$0xf] %v972_v15  ;;  %977 = vst [vmem:[#allocation2 + $0x38] sm:$0x1] %v976_v16  ;;  %v812_v22 = vshrl.u32 %v13818_v54, 16 }
  0x58   : > { %v13864_v18 = vcombine.low %v1174_v2, %v1184_v14  ;;  %v1360_v20 = vor.u32 %v1359_v10, %v1356_v9  ;;  %v1370_v21 = vor.u32 %v1369_v13, %v1365_v12  ;;  %v815_v23 = vshll.u32 %v13818_v54, 16  ;;  %v1031_v11 = vld [vmem:[#allocation2 + $0x98] sm:$0x1]  ;;  %v423_v58 = vld [vmem:[#allocation2 + $0x9c] sm:$0x1]  ;;  %v519_v7 = vld [vmem:[%s13639_s11 + $0xc8] sm:$0xff] }
  0x59   : > { %v820_v26 = vshrl.u32 %v13820_v0, 16  ;;  %v823_v28 = vshll.u32 %v13820_v0, 16  ;;  %v400_v29 = vsel %vm13619_vm3, 0, %v399_v36  ;;  %v814_v38 = vrot.slane %v812_v22, 7  ;;  %v479_v63 = vld [vmem:[#allocation2 + $0xa4] sm:$0x1] }
  0x5a   : > { %12589 = vmatprep.mubr.msk.bf16.mxu0 %vm1553_vm15, %v13864_v18  ;;  %v1361_v32 = vrot.slane %v1360_v20, 4  ;;  %v1371_v35 = vrot.slane %v1370_v21, 4  ;;  %401 = vst [vmem:[#allocation2 + $0x3c] sm:$0x1] %v400_v29  ;;  %v456_v39 = vsel %vm13627_vm5, 0, %v455_v17  ;;  %v693_v54 = vshrl.u32 %v13833_v24, 16 }
  0x5b   : > { %v822_v40 = vrot.slane %v820_v26, 7  ;;  %457 = vst [vmem:[#allocation2 + $0x44] sm:$0x1] %v456_v39  ;;  %v696_v0 = vshll.u32 %v13833_v24, 16  ;;  %v701_v45 = vshrl.u32 %v13835_v25, 16  ;;  %v817_v48 = vor.u32 %v815_v23, %v814_v38 }
  0x5c   : > { %v1366_v46 = vsel %vm13739_vm1, %v1361_v32, %v1365_v12  ;;  %v1376_v47 = vsel %vm13739_vm1, %v1371_v35, %v1375_v53  ;;  %v818_v49 = vrot.slane %v814_v38, 4  ;;  %v695_v57 = vrot.slane %v693_v54, 7  ;;  %v402_v13 = vld [vmem:[#allocation2 + $0x48] sm:$0x1]  ;;  %v458_v26 = vld [vmem:[#allocation2 + $0x50] sm:$0x1] }
  0x5d   : > { %v13883_v50 = vcombine.low %v1366_v46, %v1376_v47  ;;  %v1072_v51 = vld [vmem:[#allocation2 + $0x34] sm:$0xf]  ;;  %v825_v55 = vor.u32 %v823_v28, %v822_v40  ;;  %v827_v56 = vrot.slane %v822_v40, 4  ;;  %v1028_v60 = vsel %vm13672_vm11, %v817_v48, %v1027_v42  ;;  %v505_v38 = vld [vmem:[%s13639_s11 + $0x58] sm:$0xff] }
  0x5e   : > { %v1195_v24 = vshll.u32 %v1072_v51, 16  ;;  %v1199_v59 = vshrl.u32 %v1072_v51, 16  ;;  %v703_v61 = vrot.slane %v701_v45, 7  ;;  %v1071_v33 = vld [vmem:[#allocation2 + $0x30] sm:$0xf]  ;;  %v698_v2 = vor.u32 %v696_v0, %v695_v57 }
  0x5f   : > { %18933 = vst [vmem:[#allocation12_spill] sm:$0xff] %v13883_v50  ;;  %12605 = vmatprep.mubr.msk.bf16.mxu1 %vm1553_vm15, %v13883_v50  ;;  %v1073_v34 = vld [vmem:[#allocation2 + $0x38] sm:$0x1]  ;;  %v826_v1 = vsel %vm13666_vm10, %v818_v49, %v825_v55  ;;  %1029 = vst [vmem:[#allocation2 + $0x90] sm:$0xf] %v1028_v60  ;;  %v1032_v27 = vsel %vm13682_vm12, %v827_v56, %v1031_v11  ;;  %v699_v4 = vrot.slane %v695_v57, 4 }
  0x60   : > { %v1186_v8 = vshrl.u32 %v1071_v33, 16  ;;  %v1189_v9 = vshll.u32 %v1071_v33, 16  ;;  %v1197_v10 = vrot.slane %v1195_v24, 5  ;;  %v1201_v12 = vrot.slane %v1199_v59, 4  ;;  %1030 = vst.msk [vmem:[#allocation2 + $0x94] sm:$0xf] %vm945_vm8, %v826_v1 }
  0x61   : > { %1033 = vst [vmem:[#allocation2 + $0x98] sm:$0x1] %v1032_v27  ;;  %v1205_v36 = vshll.u32 %v1073_v34, 16  ;;  %v704_v14 = vshll.u32 %v13835_v25, 16  ;;  %v708_v53 = vrot.slane %v703_v61, 4  ;;  %v424_v16 = vsel %vm13619_vm3, 0, %v423_v58 }
  0x62   : > { %v978_v15 = vld [vmem:[#allocation2 + $0x3c] sm:$0xf]  ;;  %v1188_v17 = vrot.slane %v1186_v8, 4  ;;  %v1191_v20 = vrot.slane %v1189_v9, 5  ;;  %v1202_v21 = vor.u32 %v1201_v12, %v1197_v10  ;;  %v982_v23 = vld [vmem:[#allocation2 + $0x44] sm:$0x1]  ;;  %v12220_v42 = vpack.c.bf16 %v519_v7, %v519_v7 }
  0x63   : > { %v979_v22 = vsel %vm13672_vm11, %v698_v2, %v978_v15  ;;  %425 = vst [vmem:[#allocation2 + $0x9c] sm:$0x1] %v424_v16  ;;  %v1207_v28 = vrot.slane %v1205_v36, 5  ;;  %v706_v29 = vor.u32 %v704_v14, %v703_v61  ;;  %v983_v25 = vsel %vm13682_vm12, %v708_v53, %v982_v23  ;;  %v504_v35 = vld [vmem:[%s13639_s11 + $0x50] sm:$0xff] }
  0x64   : > { %980 = vst [vmem:[#allocation2 + $0x3c] sm:$0xf] %v979_v22  ;;  %v480_v32 = vsel %vm13627_vm5, 0, %v479_v63  ;;  %v1192_v39 = vor.u32 %v1191_v20, %v1188_v17  ;;  %v1203_v40 = vrot.slane %v1202_v21, 4  ;;  %984 = vst [vmem:[#allocation2 + $0x44] sm:$0x1] %v983_v25  ;;  %v13917_v24 = vpack.c.bf16 %v504_v35, %v504_v35 }
  0x65   : > { %481 = vst [vmem:[#allocation2 + $0xa4] sm:$0x1] %v480_v32  ;;  %v829_v54 = vshrl.u32 %v13849_v62, 16  ;;  %v707_v0 = vsel %vm13666_vm10, %v699_v4, %v706_v29  ;;  %v832_v45 = vshll.u32 %v13849_v62, 16  ;;  %v403_v46 = vsel %vm13619_vm3, 0, %v402_v13 }
  0x66   : > { %v459_v47 = vsel %vm13627_vm5, 0, %v458_v26  ;;  %v1193_v48 = vrot.slane %v1192_v39, 4  ;;  %v1208_v49 = vsel %vm13739_vm1, %v1203_v40, %v1207_v28  ;;  %v1095_v11 = vld [vmem:[#allocation2 + $0x90] sm:$0xf]  ;;  %981 = vst.msk [vmem:[#allocation2 + $0x40] sm:$0xf] %vm945_vm8, %v707_v0  ;;  %v13919_v59 = vpack.c.bf16 %v505_v38, %v505_v38 }
  0x67   : > { %v831_v51 = vrot.slane %v829_v54, 7  ;;  %v837_v55 = vshrl.u32 %v12220_v42, 16  ;;  %404 = vst [vmem:[#allocation2 + $0x48] sm:$0x1] %v403_v46  ;;  %460 = vst [vmem:[#allocation2 + $0x50] sm:$0x1] %v459_v47 }
  0x68   : > { %v1096_v56 = vld [vmem:[#allocation2 + $0x94] sm:$0xf]  ;;  %v1097_v57 = vld [vmem:[#allocation2 + $0x98] sm:$0x1]  ;;  %v1378_v62 = vshrl.u32 %v1095_v11, 16  ;;  %v1381_v58 = vshll.u32 %v1095_v11, 16  ;;  %v1198_v60 = vsel %vm13739_vm1, %v1193_v48, %v1197_v10 }
  0x69   : > { %v1387_v61 = vshll.u32 %v1096_v56, 16  ;;  %v1391_v63 = vshrl.u32 %v1096_v56, 16  ;;  %v1397_v33 = vshll.u32 %v1097_v57, 16  ;;  %v13923_v34 = vcombine.low %v1198_v60, %v1208_v49  ;;  %v482_v11 = vld [vmem:[#allocation2 + $0xb0] sm:$0x1] }
  0x6a   : > { %v1380_v1 = vrot.slane %v1378_v62, 4  ;;  %v1383_v27 = vrot.slane %v1381_v58, 5  ;;  %v834_v2 = vor.u32 %v832_v45, %v831_v51  ;;  %v1034_v4 = vld [vmem:[#allocation2 + $0x9c] sm:$0xf]  ;;  %v835_v13 = vrot.slane %v831_v51, 4  ;;  %v520_v51 = vld [vmem:[%s13639_s11 + $0xd0] sm:$0xff] }
  0x6b   : > { %v1389_v7 = vrot.slane %v1387_v61, 5  ;;  %v1393_v8 = vrot.slane %v1391_v63, 4  ;;  %v1399_v9 = vrot.slane %v1397_v33, 5  ;;  %v1074_v12 = vld [vmem:[#allocation2 + $0x3c] sm:$0xf]  ;;  %12590 = vmatmul.mubr.msk.bf16.gmra.mxu0 %vm1553_vm15, %v13923_v34  ;;  %v839_v15 = vrot.slane %v837_v55, 7 }
  0x6c   : > { %v1384_v36 = vor.u32 %v1383_v27, %v1380_v1  ;;  %v1076_v14 = vld [vmem:[#allocation2 + $0x44] sm:$0x1]  ;;  %v1210_v10 = vshrl.u32 %v1074_v12, 16  ;;  %v1213_v53 = vshll.u32 %v1074_v12, 16  ;;  %v840_v20 = vshll.u32 %v12220_v42, 16  ;;  %v521_v1 = vld [vmem:[%s13639_s11 + $0xd8] sm:$0xff] }
  0x6d   : > { %v1394_v16 = vor.u32 %v1393_v8, %v1389_v7  ;;  %v1229_v17 = vshll.u32 %v1076_v14, 16  ;;  %v1035_v21 = vsel %vm13672_vm11, %v834_v2, %v1034_v4  ;;  %v1038_v22 = vld [vmem:[#allocation2 + $0xa4] sm:$0x1]  ;;  %v1075_v26 = vld [vmem:[#allocation2 + $0x40] sm:$0xf]  ;;  %v844_v25 = vrot.slane %v839_v15, 4 }
  0x6e   : > { %v1385_v23 = vrot.slane %v1384_v36, 4  ;;  %v1212_v28 = vrot.slane %v1210_v10, 4  ;;  %v1215_v29 = vrot.slane %v1213_v53, 5  ;;  %1036 = vst [vmem:[#allocation2 + $0x9c] sm:$0xf] %v1035_v21  ;;  %v1219_v35 = vshll.u32 %v1075_v26, 16 }
  0x6f   : > { %v1395_v32 = vrot.slane %v1394_v16, 4  ;;  %v1223_v38 = vshrl.u32 %v1075_v26, 16  ;;  %v1231_v39 = vrot.slane %v1229_v17, 5  ;;  %v842_v42 = vor.u32 %v840_v20, %v839_v15  ;;  %v426_v45 = vld [vmem:[#allocation2 + $0xa8] sm:$0x1] }
  0x70   : > { %v1390_v40 = vsel %vm13739_vm1, %v1385_v23, %v1389_v7  ;;  %v1216_v54 = vor.u32 %v1215_v29, %v1212_v28  ;;  %v1039_v0 = vsel %vm13682_vm12, %v844_v25, %v1038_v22  ;;  %v1221_v47 = vrot.slane %v1219_v35, 5  ;;  %v985_v58 = vld [vmem:[#allocation2 + $0x48] sm:$0xf]  ;;  %v989_v14 = vld [vmem:[#allocation2 + $0x50] sm:$0x1] }
  0x71   : > { %v1400_v46 = vsel %vm13739_vm1, %v1395_v32, %v1399_v9  ;;  %v1225_v48 = vrot.slane %v1223_v38, 4  ;;  %1040 = vst [vmem:[#allocation2 + $0xa4] sm:$0x1] %v1039_v0  ;;  %v710_v49 = vshrl.u32 %v13917_v24, 16  ;;  %v843_v57 = vsel %vm13666_vm10, %v835_v13, %v842_v42  ;;  %v405_v38 = vld [vmem:[#allocation2 + $0x54] sm:$0x1] }
  0x72   : > { %v13937_v55 = vcombine.low %v1390_v40, %v1400_v46  ;;  %v1217_v56 = vrot.slane %v1216_v54, 4  ;;  %v713_v62 = vshll.u32 %v13917_v24, 16  ;;  %1037 = vst.msk [vmem:[#allocation2 + $0xa0] sm:$0xf] %vm945_vm8, %v843_v57  ;;  %v718_v63 = vshrl.u32 %v13919_v59, 16  ;;  %v507_v40 = vld [vmem:[%s13639_s11 + $0x68] sm:$0xff] }
  0x73   : > { %v1226_v60 = vor.u32 %v1225_v48, %v1221_v47  ;;  %v712_v61 = vrot.slane %v710_v49, 7  ;;  %v721_v33 = vshll.u32 %v13919_v59, 16  ;;  %v427_v2 = vsel %vm13619_vm3, 0, %v426_v45  ;;  %v14303_v3 = vld [vmem:[#allocation2 + $0x94] sm:$0xf] }
  0x74   : > { %18934 = vst [vmem:[#allocation13_spill] sm:$0xff] %v13937_v55  ;;  %12606 = vmatmul.mubr.msk.bf16.gmra.mxu1 %vm1553_vm15, %v13937_v55  ;;  %v1222_v27 = vsel %vm13739_vm1, %v1217_v56, %v1221_v47  ;;  %v483_v24 = vsel %vm13627_vm5, 0, %v482_v11  ;;  %v12221_v4 = vpack.c.bf16 %v520_v51, %v520_v51  ;;  %v720_v13 = vrot.slane %v718_v63, 7  ;;  %428 = vst [vmem:[#allocation2 + $0xa8] sm:$0x1] %v427_v2 }
  0x75   : > { %v1227_v7 = vrot.slane %v1226_v60, 4  ;;  %v1098_v8 = vld [vmem:[#allocation2 + $0x9c] sm:$0xf]  ;;  %v715_v9 = vor.u32 %v713_v62, %v712_v61  ;;  %v716_v12 = vrot.slane %v712_v61, 4  ;;  %484 = vst [vmem:[#allocation2 + $0xb0] sm:$0x1] %v483_v24  ;;  %v12222_v10 = vpack.c.bf16 %v521_v1, %v521_v1 }
  0x76   : > { %v1402_v59 = vshrl.u32 %v1098_v8, 16  ;;  %v1405_v36 = vshll.u32 %v1098_v8, 16  ;;  %v846_v53 = vshrl.u32 %v12221_v4, 16  ;;  %v723_v16 = vor.u32 %v721_v33, %v720_v13  ;;  %v461_v51 = vld [vmem:[#allocation2 + $0x5c] sm:$0x1]  ;;  %v522_v8 = vld [vmem:[%s13639_s11 + $0xe0] sm:$0xff] }
  0x77   : > { %v1232_v15 = vsel %vm13739_vm1, %v1227_v7, %v1231_v39  ;;  %v725_v17 = vrot.slane %v720_v13, 4  ;;  %v986_v20 = vsel %vm13672_vm11, %v715_v9, %v985_v58  ;;  %v849_v35 = vshll.u32 %v12221_v4, 16  ;;  %v506_v39 = vld [vmem:[%s13639_s11 + $0x60] sm:$0xff]  ;;  %v523_v9 = vld [vmem:[%s13639_s11 + $0xe8] sm:$0xff] }
  0x78   : > { %v13958_v21 = vcombine.low %v1222_v27, %v1232_v15  ;;  %v1100_v22 = vld [vmem:[#allocation2 + $0xa4] sm:$0x1]  ;;  %v1404_v23 = vrot.slane %v1402_v59, 4  ;;  %v1407_v26 = vrot.slane %v1405_v36, 5  ;;  %987 = vst [vmem:[#allocation2 + $0x48] sm:$0xf] %v986_v20  ;;  %v724_v25 = vsel %vm13666_vm10, %v716_v12, %v723_v16 }
  0x79   : > { %v848_v28 = vrot.slane %v846_v53, 7  ;;  %v1421_v29 = vshll.u32 %v1100_v22, 16  ;;  %v990_v32 = vsel %vm13682_vm12, %v725_v17, %v989_v14  ;;  %v1099_v54 = vld [vmem:[#allocation2 + $0xa0] sm:$0xf]  ;;  %988 = vst.msk [vmem:[#allocation2 + $0x4c] sm:$0xf] %vm945_vm8, %v724_v25  ;;  %v12207_v58 = vpack.c.bf16 %v506_v39, %v506_v39 }
  0x7a   : > { %12593 = vmatprep.mubr.msk.bf16.mxu0 %vm1553_vm15, %v13958_v21  ;;  %v1408_v42 = vor.u32 %v1407_v26, %v1404_v23  ;;  %991 = vst [vmem:[#allocation2 + $0x50] sm:$0x1] %v990_v32  ;;  %v854_v45 = vshrl.u32 %v12222_v10, 16  ;;  %v857_v46 = vshll.u32 %v12222_v10, 16  ;;  %v1411_v47 = vshll.u32 %v1099_v54, 16 }
  0x7b   : > { %v852_v0 = vrot.slane %v848_v28, 4  ;;  %v1415_v48 = vshrl.u32 %v1099_v54, 16  ;;  %v1423_v49 = vrot.slane %v1421_v29, 5  ;;  %v851_v11 = vor.u32 %v849_v35, %v848_v28  ;;  %v1041_v62 = vld [vmem:[#allocation2 + $0xa8] sm:$0xf] }
  0x7c   : > { %v1409_v56 = vrot.slane %v1408_v42, 4  ;;  %v856_v57 = vrot.slane %v854_v45, 7  ;;  %v12208_v60 = vpack.c.bf16 %v507_v40, %v507_v40  ;;  %v1413_v61 = vrot.slane %v1411_v47, 5  ;;  %v1045_v1 = vld [vmem:[#allocation2 + $0xb0] sm:$0x1] }
  0x7d   : > { %v1417_v63 = vrot.slane %v1415_v48, 4  ;;  %v1042_v33 = vsel %vm13672_vm11, %v851_v11, %v1041_v62  ;;  %v406_v27 = vsel %vm13619_vm3, 0, %v405_v38  ;;  %v462_v4 = vsel %vm13627_vm5, 0, %v461_v51  ;;  %v429_v38 = vld [vmem:[#allocation2 + $0xb4] sm:$0x1] }
  0x7e   : > { %v859_v2 = vor.u32 %v857_v46, %v856_v57  ;;  %v861_v24 = vrot.slane %v856_v57, 4  ;;  %1043 = vst [vmem:[#allocation2 + $0xa8] sm:$0xf] %v1042_v33  ;;  %407 = vst [vmem:[#allocation2 + $0x54] sm:$0x1] %v406_v27  ;;  %v727_v7 = vshrl.u32 %v12207_v58, 16  ;;  %v1414_v12 = vsel %vm13739_vm1, %v1409_v56, %v1413_v61 }
  0x7f   : > { %v1418_v13 = vor.u32 %v1417_v63, %v1413_v61  ;;  %v1077_v59 = vld [vmem:[#allocation2 + $0x48] sm:$0xf]  ;;  %463 = vst [vmem:[#allocation2 + $0x5c] sm:$0x1] %v462_v4  ;;  %v730_v36 = vshll.u32 %v12207_v58, 16  ;;  %v735_v14 = vshrl.u32 %v12208_v60, 16  ;;  %v13984_v26 = vpack.c.bf16 %v522_v8, %v522_v8 }
  0x80   : > { %v1234_v10 = vshrl.u32 %v1077_v59, 16  ;;  %v1237_v53 = vshll.u32 %v1077_v59, 16  ;;  %v860_v15 = vsel %vm13666_vm10, %v852_v0, %v859_v2  ;;  %v1046_v16 = vsel %vm13682_vm12, %v861_v24, %v1045_v1  ;;  %v1078_v20 = vld [vmem:[#allocation2 + $0x4c] sm:$0xf]  ;;  %v485_v48 = vld [vmem:[#allocation2 + $0xbc] sm:$0x1] }
  0x81   : > { %v1419_v17 = vrot.slane %v1418_v13, 4  ;;  %v1079_v22 = vld [vmem:[#allocation2 + $0x50] sm:$0x1]  ;;  %1044 = vst.msk [vmem:[#allocation2 + $0xac] sm:$0xf] %vm945_vm8, %v860_v15  ;;  %v729_v23 = vrot.slane %v727_v7, 7  ;;  %v13986_v28 = vpack.c.bf16 %v523_v9, %v523_v9 }
  0x82   : > { %1047 = vst [vmem:[#allocation2 + $0xb0] sm:$0x1] %v1046_v16  ;;  %v1236_v29 = vrot.slane %v1234_v10, 4  ;;  %v1239_v25 = vrot.slane %v1237_v53, 5  ;;  %v1243_v32 = vshll.u32 %v1078_v20, 16  ;;  %v1247_v35 = vshrl.u32 %v1078_v20, 16 }
  0x83   : > { %v1424_v39 = vsel %vm13739_vm1, %v1419_v17, %v1423_v49  ;;  %v1253_v40 = vshll.u32 %v1079_v22, 16  ;;  %v732_v54 = vor.u32 %v730_v36, %v729_v23  ;;  %v733_v42 = vrot.slane %v729_v23, 4  ;;  %v508_v11 = vld [vmem:[%s13639_s11 + $0x70] sm:$0xff]  ;;  %v408_v22 = vld [vmem:[#allocation2 + $0x60] sm:$0x1] }
  0x84   : > { %v13990_v0 = vcombine.low %v1414_v12, %v1424_v39  ;;  %v1240_v45 = vor.u32 %v1239_v25, %v1236_v29  ;;  %v1245_v46 = vrot.slane %v1243_v32, 5  ;;  %v1249_v47 = vrot.slane %v1247_v35, 4  ;;  %v464_v35 = vld [vmem:[#allocation2 + $0x68] sm:$0x1] }
  0x85   : > { %v1255_v51 = vrot.slane %v1253_v40, 5  ;;  %v1101_v56 = vld [vmem:[#allocation2 + $0xa8] sm:$0xf]  ;;  %v737_v57 = vrot.slane %v735_v14, 7  ;;  %v738_v62 = vshll.u32 %v12208_v60, 16  ;;  %v430_v58 = vsel %vm13619_vm3, 0, %v429_v38 }
  0x86   : > { %18935 = vst [vmem:[#allocation14_spill] sm:$0xff] %v13990_v0  ;;  %12609 = vmatprep.mubr.msk.bf16.mxu1 %vm1553_vm15, %v13990_v0  ;;  %v1241_v49 = vrot.slane %v1240_v45, 4  ;;  %v1250_v61 = vor.u32 %v1249_v47, %v1245_v46  ;;  %v1426_v63 = vshrl.u32 %v1101_v56, 16  ;;  %v1429_v33 = vshll.u32 %v1101_v56, 16  ;;  %v992_v1 = vld [vmem:[#allocation2 + $0x54] sm:$0xf] }
  0x87   : > { %431 = vst [vmem:[#allocation2 + $0xb4] sm:$0x1] %v430_v58  ;;  %v740_v27 = vor.u32 %v738_v62, %v737_v57  ;;  %v742_v2 = vrot.slane %v737_v57, 4  ;;  %v993_v24 = vsel %vm13672_vm11, %v732_v54, %v992_v1  ;;  %v996_v4 = vld [vmem:[#allocation2 + $0x5c] sm:$0x1]  ;;  %v486_v60 = vsel %vm13627_vm5, 0, %v485_v48 }
  0x88   : > { %v1246_v7 = vsel %vm13739_vm1, %v1241_v49, %v1245_v46  ;;  %v1251_v8 = vrot.slane %v1250_v61, 4  ;;  %v1102_v9 = vld [vmem:[#allocation2 + $0xac] sm:$0xf]  ;;  %v1428_v13 = vrot.slane %v1426_v63, 4  ;;  %994 = vst [vmem:[#allocation2 + $0x54] sm:$0xf] %v993_v24  ;;  %v14003_v59 = vpack.c.bf16 %v508_v11, %v508_v11 }
  0x89   : > { %v1103_v12 = vld [vmem:[#allocation2 + $0xb0] sm:$0x1]  ;;  %487 = vst [vmem:[#allocation2 + $0xbc] sm:$0x1] %v486_v60  ;;  %v1431_v36 = vrot.slane %v1429_v33, 5  ;;  %v1435_v14 = vshll.u32 %v1102_v9, 16  ;;  %v741_v16 = vsel %vm13666_vm10, %v733_v42, %v740_v27  ;;  %v997_v17 = vsel %vm13682_vm12, %v742_v2, %v996_v4 }
  0x8a   : > { %v1439_v10 = vshrl.u32 %v1102_v9, 16  ;;  %v1445_v53 = vshll.u32 %v1103_v12, 16  ;;  %v1256_v15 = vsel %vm13739_vm1, %v1251_v8, %v1255_v51  ;;  %v863_v20 = vshrl.u32 %v13984_v26, 16  ;;  %995 = vst.msk [vmem:[#allocation2 + $0x58] sm:$0xf] %vm945_vm8, %v741_v16  ;;  %v509_v38 = vld [vmem:[%s13639_s11 + $0x78] sm:$0xff] }
  0x8b   : > { %v14012_v23 = vcombine.low %v1246_v7, %v1256_v15  ;;  %v1432_v29 = vor.u32 %v1431_v36, %v1428_v13  ;;  %v1437_v25 = vrot.slane %v1435_v14, 5  ;;  %998 = vst [vmem:[#allocation2 + $0x5c] sm:$0x1] %v997_v17  ;;  %v866_v54 = vshll.u32 %v13984_v26, 16  ;;  %v432_v16 = vld [vmem:[#allocation2 + $0xc0] sm:$0x1] }
  0x8c   : > { %v1441_v32 = vrot.slane %v1439_v10, 4  ;;  %v1447_v39 = vrot.slane %v1445_v53, 5  ;;  %v865_v40 = vrot.slane %v863_v20, 7  ;;  %v871_v42 = vshrl.u32 %v13986_v28, 16  ;;  %v14331_v43 = vld [vmem:[#allocation2 + $0xac] sm:$0xf] }
  0x8d   : > { %18936 = vst [vmem:[#allocation15_spill] sm:$0xff] %v14012_v23  ;;  %12594 = vmatmul.mubr.msk.bf16.gmra.mxu0 %vm1553_vm15, %v14012_v23  ;;  %v1433_v45 = vrot.slane %v1432_v29, 4  ;;  %v874_v47 = vshll.u32 %v13986_v28, 16  ;;  %v409_v11 = vsel %vm13619_vm3, 0, %v408_v22  ;;  %v465_v26 = vsel %vm13627_vm5, 0, %v464_v35  ;;  %v525_v35 = vld [vmem:[%s13639_s11 + $0xf8] sm:$0xff] }
  0x8e   : > { %v1442_v46 = vor.u32 %v1441_v32, %v1437_v25  ;;  %v1048_v48 = vld [vmem:[#allocation2 + $0xb4] sm:$0xf]  ;;  %v868_v51 = vor.u32 %v866_v54, %v865_v40  ;;  %v869_v56 = vrot.slane %v865_v40, 4  ;;  %v873_v57 = vrot.slane %v871_v42, 7  ;;  %410 = vst [vmem:[#allocation2 + $0x60] sm:$0x1] %v409_v11 }
  0x8f   : > { %v1438_v62 = vsel %vm13739_vm1, %v1433_v45, %v1437_v25  ;;  %v1080_v49 = vld [vmem:[#allocation2 + $0x54] sm:$0xf]  ;;  %466 = vst [vmem:[#allocation2 + $0x68] sm:$0x1] %v465_v26  ;;  %v12210_v61 = vpack.c.bf16 %v509_v38, %v509_v38  ;;  %v744_v28 = vshrl.u32 %v14003_v59, 16  ;;  %v747_v7 = vshll.u32 %v14003_v59, 16 }
  0x90   : > { %v1443_v58 = vrot.slane %v1442_v46, 4  ;;  %v1258_v63 = vshrl.u32 %v1080_v49, 16  ;;  %v1261_v33 = vshll.u32 %v1080_v49, 16  ;;  %v876_v1 = vor.u32 %v874_v47, %v873_v57  ;;  %v1052_v2 = vld [vmem:[#allocation2 + $0xbc] sm:$0x1]  ;;  %v524_v32 = vld [vmem:[%s13639_s11 + $0xf0] sm:$0xff] }
  0x91   : > { %v878_v27 = vrot.slane %v873_v57, 4  ;;  %v1049_v4 = vsel %vm13672_vm11, %v868_v51, %v1048_v48  ;;  %v746_v60 = vrot.slane %v744_v28, 7  ;;  %v1081_v9 = vld [vmem:[#allocation2 + $0x58] sm:$0xf]  ;;  %v752_v29 = vshrl.u32 %v12210_v61, 16  ;;  %v13308_v23 = vld [vmem:[#allocation2 + $0xc] sm:$0xff]  }
  0x92   : > { %v1448_v24 = vsel %vm13739_vm1, %v1443_v58, %v1447_v39  ;;  %v1082_v12 = vld [vmem:[#allocation2 + $0x5c] sm:$0x1]  ;;  %v1260_v13 = vrot.slane %v1258_v63, 4  ;;  %v1263_v36 = vrot.slane %v1261_v33, 5  ;;  %v877_v14 = vsel %vm13666_vm10, %v869_v56, %v876_v1  ;;  %1050 = vst [vmem:[#allocation2 + $0xb4] sm:$0xf] %v1049_v4 }
  0x93   : > { %v14033_v8 = vcombine.low %v1438_v62, %v1448_v24  ;;  %v1267_v10 = vshll.u32 %v1081_v9, 16  ;;  %v1271_v53 = vshrl.u32 %v1081_v9, 16  ;;  %v1277_v15 = vshll.u32 %v1082_v12, 16  ;;  %1051 = vst.msk [vmem:[#allocation2 + $0xb8] sm:$0xf] %vm945_vm8, %v877_v14  ;;  %s12259_s11 = sshll.u32 %s13580_s17, 10 }
  0x94   : > { %v1053_v59 = vsel %vm13682_vm12, %v878_v27, %v1052_v2  ;;  %v1264_v17 = vor.u32 %v1263_v36, %v1260_v13  ;;  %v749_v20 = vor.u32 %v747_v7, %v746_v60  ;;  %v750_v22 = vrot.slane %v746_v60, 4  ;;  %v488_v25 = vld [vmem:[#allocation2 + $0xc8] sm:$0x1]  ;;  %v11563_v45 = vld [vmem:[%s18856_s1 + $0x6] sm:$0x3]  ;;  %s18807_s21 = scalar_lea.hbm %s18865_s10, %s12259_s11  ;;  %s13438_s17 = scalar_lea.vmem %s18809_s12, 1024 }
  0x95   : > { %18937 = vst [vmem:[#allocation16_spill] sm:$0xff] %v14033_v8  ;;  %12610 = vmatmul.mubr.msk.bf16.gmra.mxu1 %vm1553_vm15, %v14033_v8  ;;  %1054 = vst [vmem:[#allocation2 + $0xbc] sm:$0x1] %v1053_v59  ;;  %v1269_v38 = vrot.slane %v1267_v10, 5  ;;  %v1273_v39 = vrot.slane %v1271_v53, 4  ;;  %v1279_v40 = vrot.slane %v1277_v15, 5  ;;  %v12225_v26 = vpack.c.bf16 %v524_v32, %v524_v32  ;;  %p13439_p11 = scmp.ne.s32.totalorder %s18809_s12, %s13438_s17 }
  0x96   : > { %v755_v54 = vshll.u32 %v12210_v61, 16  ;;  %v999_v42 = vld [vmem:[#allocation2 + $0x60] sm:$0xf]  ;;  %v1265_v46 = vrot.slane %v1264_v17, 4  ;;  %v754_v47 = vrot.slane %v752_v29, 7  ;;  %v433_v51 = vsel %vm13619_vm3, 0, %v432_v16 }
  0x97   : > { %v1000_v48 = vsel %vm13672_vm11, %v749_v20, %v999_v42  ;;  %v1003_v11 = vld [vmem:[#allocation2 + $0x68] sm:$0x1]  ;;  %v1274_v56 = vor.u32 %v1273_v39, %v1269_v38  ;;  %434 = vst [vmem:[#allocation2 + $0xc0] sm:$0x1] %v433_v51  ;;  %v489_v57 = vsel %vm13627_vm5, 0, %v488_v25  ;;  %v12226_v62 = vpack.c.bf16 %v525_v35, %v525_v35  ;;  %p13440_p12 = pnand %p13439_p11, %p13597_p5 }
  0x98   : > { %1001 = vst [vmem:[#allocation2 + $0x60] sm:$0xf] %v1000_v48  ;;  %v1270_v58 = vsel %vm13739_vm1, %v1265_v46, %v1269_v38  ;;  %v757_v49 = vor.u32 %v755_v54, %v754_v47  ;;  %v759_v61 = vrot.slane %v754_v47, 4  ;;  %490 = vst [vmem:[#allocation2 + $0xc8] sm:$0x1] %v489_v57  ;;  %v2591_v28 = vsel %vm1602_vm0, %v13808_v44, 0 }
  0x99   : > { %v1275_v63 = vrot.slane %v1274_v56, 4  ;;  %v1104_v33 = vld [vmem:[#allocation2 + $0xb4] sm:$0xf]  ;;  %v880_v1 = vshrl.u32 %v12225_v26, 16  ;;  %v883_v27 = vshll.u32 %v12225_v26, 16  ;;  %v888_v2 = vshrl.u32 %v12226_v62, 16  ;;  %12652 = vmatpush3.bf16.msra.mxu0 %v2591_v28  ;;  %p13441_p13 = pneg %p13440_p12 }
  0x9a   : > { %v1105_v24 = vld [vmem:[#allocation2 + $0xb8] sm:$0xf]  ;;  %v1450_v4 = vshrl.u32 %v1104_v33, 16  ;;  %v1453_v60 = vshll.u32 %v1104_v33, 16  ;;  %v758_v7 = vsel %vm13666_vm10, %v750_v22, %v757_v49  ;;  %v1004_v9 = vsel %vm13682_vm12, %v759_v61, %v1003_v11  ;;  %13236 = vmatprep.subr.msk.bf16.mxu0 %vm1602_vm0, %v11563_v45  ;;  %v384_v16 = vld [vmem:[#allocation2] sm:$0x1] }
  0x9b   : > { %v1280_v44 = vsel %vm13739_vm1, %v1275_v63, %v1279_v40  ;;  %v1459_v13 = vshll.u32 %v1105_v24, 16  ;;  %v1463_v36 = vshrl.u32 %v1105_v24, 16  ;;  %1002 = vst.msk [vmem:[#allocation2 + $0x64] sm:$0xf] %vm945_vm8, %v758_v7  ;;  %1005 = vst [vmem:[#allocation2 + $0x68] sm:$0x1] %v1004_v9 }
  0x9c   : > { %v1106_v12 = vld [vmem:[#allocation2 + $0xbc] sm:$0x1]  ;;  %v882_v14 = vrot.slane %v880_v1, 7  ;;  %v14065_v10 = vcombine.low %v1270_v58, %v1280_v44  ;;  %v1452_v53 = vrot.slane %v1450_v4, 4  ;;  %v1455_v15 = vrot.slane %v1453_v60, 5 }
  0x9d   : > { %v1469_v59 = vshll.u32 %v1106_v12, 16  ;;  %v14067_v17 = vld [vmem:[#allocation2 + $0xc] sm:$0xf]  ;;  %v1461_v20 = vrot.slane %v1459_v13, 5  ;;  %v1465_v22 = vrot.slane %v1463_v36, 4  ;;  %v890_v54 = vrot.slane %v888_v2, 7 }
  0x9e   : > { %18938 = vst [vmem:[#allocation17_spill] sm:$0xff] %v14065_v10  ;;  %v885_v29 = vor.u32 %v883_v27, %v882_v14  ;;  %v886_v25 = vrot.slane %v882_v14, 4  ;;  %v440_v32 = vld [vmem:[#allocation2 + $0x8] sm:$0x1]  ;;  %v14069_v35 = vld [vmem:[#allocation2 + $0x10] sm:$0xf]  ;;  %12597 = vmatprep.mubr.msk.bf16.mxu0 %vm1553_vm15, %v14065_v10  ;;  %v1456_v38 = vor.u32 %v1455_v15, %v1452_v53 }
  0x9f   : > { %v1471_v39 = vrot.slane %v1469_v59, 5  ;;  %v1083_v40 = vld [vmem:[#allocation2 + $0x60] sm:$0xf]  ;;  %v891_v42 = vshll.u32 %v12226_v62, 16  ;;  %v1466_v45 = vor.u32 %v1465_v22, %v1461_v20  ;;  %v1059_v11 = vld [vmem:[#allocation2 + $0xc8] sm:$0x1]  ;;  %v11483_v51 = vcombine.low %v14067_v17, %v14069_v35 }
  0xa0   : > { %v1282_v46 = vshrl.u32 %v1083_v40, 16  ;;  %v1285_v47 = vshll.u32 %v1083_v40, 16  ;;  %v1055_v48 = vld [vmem:[#allocation2 + $0xc0] sm:$0xf]  ;;  %v1457_v56 = vrot.slane %v1456_v38, 4  ;;  %v895_v26 = vrot.slane %v890_v54, 4 }
  0xa1   : > { %v893_v57 = vor.u32 %v891_v42, %v890_v54  ;;  %v1056_v58 = vsel %vm13672_vm11, %v885_v29, %v1055_v48  ;;  %v1467_v49 = vrot.slane %v1466_v45, 4  ;;  %v385_v62 = vsel %vm13619_vm3, 0, %v384_v16  ;;  %v14079_v63 = vld [vmem:[#allocation2 + $0x4] sm:$0xf]  ;;  %v14096_v15 = vld [vmem:[#allocation2 + $0x14] sm:$0x1] }
  0xa2   : > { %v1284_v61 = vrot.slane %v1282_v46, 4  ;;  %v1287_v28 = vrot.slane %v1285_v47, 5  ;;  %1057 = vst [vmem:[#allocation2 + $0xc0] sm:$0xf] %v1056_v58  ;;  %v1462_v33 = vsel %vm13739_vm1, %v1457_v56, %v1461_v20  ;;  %v1084_v1 = vld [vmem:[#allocation2 + $0x64] sm:$0xf]  ;;  %v1060_v37 = vsel %vm13682_vm12, %v895_v26, %v1059_v11 }
  0xa3   : > { %v1085_v27 = vld [vmem:[#allocation2 + $0x68] sm:$0x1]  ;;  %v894_v2 = vsel %vm13666_vm10, %v886_v25, %v893_v57  ;;  %386 = vst [vmem:[#allocation2] sm:$0x1] %v385_v62  ;;  %v441_v24 = vsel %vm13627_vm5, 0, %v440_v32  ;;  %v1472_v4 = vsel %vm13739_vm1, %v1467_v49, %v1471_v39  ;;  %v1291_v7 = vshll.u32 %v1084_v1, 16 }
  0xa4   : > { %v1288_v60 = vor.u32 %v1287_v28, %v1284_v61  ;;  %v1295_v9 = vshrl.u32 %v1084_v1, 16  ;;  %1058 = vst.msk [vmem:[#allocation2 + $0xc4] sm:$0xf] %vm945_vm8, %v894_v2  ;;  %1061 = vst [vmem:[#allocation2 + $0xc8] sm:$0x1] %v1060_v37  ;;  %v14092_v44 = vcombine.low %v1462_v33, %v1472_v4  ;;  %v1301_v12 = vshll.u32 %v1085_v27, 16 }
  0xa5   : > { %442 = vst [vmem:[#allocation2 + $0x8] sm:$0x1] %v441_v24  ;;  %v1826_v41 = vshll.u32 %v14079_v63, 16  ;;  %v1830_v13 = vshrl.u32 %v14079_v63, 16  ;;  %v1293_v14 = vrot.slane %v1291_v7, 5  ;;  %v1841_v59 = vshrl.u32 %v14067_v17, 16 }
  0xa6   : > { %18939 = vst [vmem:[#allocation18_spill] sm:$0xff] %v14092_v44  ;;  %v1289_v36 = vrot.slane %v1288_v60, 4  ;;  %v1297_v53 = vrot.slane %v1295_v9, 4  ;;  %12613 = vmatprep.mubr.msk.bf16.mxu1 %vm1553_vm15, %v14092_v44  ;;  %v1303_v16 = vrot.slane %v1301_v12, 5  ;;  %v1844_v29 = vshll.u32 %v14067_v17, 16 }
  0xa7   : > { %v14101_v20 = vrot.slane %v1826_v41, 5  ;;  %v1832_v22 = vrot.slane %v1830_v13, 4  ;;  %v1843_v38 = vrot.slane %v1841_v59, 4  ;;  %v1850_v39 = vshll.u32 %v14069_v35, 16  ;;  %v14107_v40 = vld [vmem:[#allocation2 + $0x18] sm:$0xf] }
  0xa8   : > { %v1294_v25 = vsel %vm13739_vm1, %v1289_v36, %v1293_v14  ;;  %v1298_v32 = vor.u32 %v1297_v53, %v1293_v14  ;;  %v14109_v54 = vld [vmem:[#allocation2 + $0x1c] sm:$0xf]  ;;  %v14111_v42 = vld [vmem:[#allocation2 + $0x24] sm:$0xf]  ;;  %v14113_v45 = vld [vmem:[#allocation2 + $0x28] sm:$0xf] }
  0xa9   : > { %v1107_v46 = vld [vmem:[#allocation2 + $0xc0] sm:$0xf]  ;;  %v1833_v47 = vor.u32 %v1832_v22, %v14101_v20  ;;  %v1846_v48 = vrot.slane %v1844_v29, 5  ;;  %v1854_v11 = vshrl.u32 %v14069_v35, 16  ;;  %v1860_v56 = vshll.u32 %v14096_v15, 16 }
  0xaa   : > { %v1299_v57 = vrot.slane %v1298_v32, 4  ;;  %v1474_v26 = vshrl.u32 %v1107_v46, 16  ;;  %v1477_v58 = vshll.u32 %v1107_v46, 16  ;;  %v1767_v49 = vld [vmem:[#allocation2] sm:$0xf]  ;;  %v1852_v61 = vrot.slane %v1850_v39, 5 }
  0xab   : > { %v1108_v28 = vld [vmem:[#allocation2 + $0xc4] sm:$0xf]  ;;  %v1109_v62 = vld [vmem:[#allocation2 + $0xc8] sm:$0x1]  ;;  %v11482_v33 = vcombine.low %v1767_v49, %v14079_v63  ;;  %v1847_v1 = vor.u32 %v1846_v48, %v1843_v38  ;;  %v11484_v27 = vcombine.low %v14107_v40, %v14109_v54  ;;  %v11485_v2 = vcombine.low %v14111_v42, %v14113_v45  ;;  %v14345_v52 = vld [vmem:[#allocation2 + $0xb8] sm:$0xf] }
  0xac   : > { %v1304_v37 = vsel %vm13739_vm1, %v1299_v57, %v1303_v16  ;;  %v1476_v24 = vrot.slane %v1474_v26, 4  ;;  %v1479_v4 = vrot.slane %v1477_v58, 5  ;;  %v1483_v60 = vshll.u32 %v1108_v28, 16  ;;  %v14125_v7 = vld [vmem:[#allocation2 + $0x8] sm:$0x1] }
  0xad   : > { %v14127_v9 = vcombine.low %v1294_v25, %v1304_v37  ;;  %v1487_v12 = vshrl.u32 %v1108_v28, 16  ;;  %v1493_v41 = vshll.u32 %v1109_v62, 16  ;;  %v1817_v13 = vshrl.u32 %v1767_v49, 16 }
  0xae   : > { %v1480_v36 = vor.u32 %v1479_v4, %v1476_v24  ;;  %v1485_v14 = vrot.slane %v1483_v60, 5  ;;  %v1820_v53 = vshll.u32 %v1767_v49, 16  ;;  %v1834_v59 = vrot.slane %v1833_v47, 4  ;;  %v13388_v47 = vld [vmem:[%s18856_s1 + $0x4] sm:$0x3] }
  0xaf   : > { %18940 = vst [vmem:[#allocation19_spill] sm:$0xff] %v14127_v9  ;;  %12598 = vmatmul.mubr.msk.bf16.gmra.mxu0 %vm1553_vm15, %v14127_v9  ;;  %v1489_v22 = vrot.slane %v1487_v12, 4  ;;  %v1495_v29 = vrot.slane %v1493_v41, 5  ;;  %v1819_v16 = vrot.slane %v1817_v13, 4  ;;  %v1836_v32 = vshll.u32 %v14125_v7, 16 }
  0xb0   : > { %v1481_v38 = vrot.slane %v1480_v36, 4  ;;  %v1822_v39 = vrot.slane %v1820_v53, 5  ;;  %12653 = vmatprep.mubr.msk.bf16.mxu0 %vm1553_vm15, %v11482_v33  ;;  %v1848_v25 = vrot.slane %v1847_v1, 4  ;;  %v1856_v46 = vrot.slane %v1854_v11, 4  ;;  %v14143_v1 = vld [vmem:[#allocation2 + $0x20] sm:$0x1] }
  0xb1   : > { %v1490_v48 = vor.u32 %v1489_v22, %v1485_v14  ;;  %v1838_v57 = vrot.slane %v1836_v32, 5  ;;  %v1862_v26 = vrot.slane %v1860_v56, 5  ;;  %v14137_v58 = vsel %vm1602_vm0, %v13388_v47, 0  ;;  %v14163_v32 = vld [vmem:[#allocation2 + $0x30] sm:$0xf] }
  0xb2   : > { %v1486_v49 = vsel %vm13739_vm1, %v1481_v38, %v1485_v14  ;;  %v1823_v28 = vor.u32 %v1822_v39, %v1819_v16  ;;  %v1853_v62 = vsel %vm13739_vm1, %v1848_v25, %v1852_v61  ;;  %v1857_v33 = vor.u32 %v1856_v46, %v1852_v61  ;;  %v14161_v16 = vld [vmem:[#allocation2 + $0x2c] sm:$0x1]  ;;  %v14169_v46 = vld [vmem:[#allocation2 + $0x34] sm:$0xf] }
  0xb3   : > { %v1491_v11 = vrot.slane %v1490_v48, 4  ;;  %v1839_v56 = vsel %vm13739_vm1, %v1834_v59, %v1838_v57  ;;  %v1865_v37 = vshrl.u32 %v14107_v40, 16  ;;  %v1868_v24 = vshll.u32 %v14107_v40, 16 }
  0xb4   : > { %v1824_v4 = vrot.slane %v1823_v28, 4  ;;  %v1858_v60 = vrot.slane %v1857_v33, 4  ;;  %v1874_v12 = vshll.u32 %v14109_v54, 16  ;;  %v1878_v41 = vshrl.u32 %v14109_v54, 16 }
  0xb5   : > { %v1496_v13 = vsel %vm13739_vm1, %v1491_v11, %v1495_v29  ;;  %v1867_v61 = vrot.slane %v1865_v37, 4  ;;  %v1870_v36 = vrot.slane %v1868_v24, 5  ;;  %v1884_v14 = vshll.u32 %v14143_v1, 16  ;;  %v14180_v11 = vld [vmem:[#allocation2 + $0x38] sm:$0x1] }
  0xb6   : > { %v14154_v53 = vcombine.low %v1486_v49, %v1496_v13  ;;  %v1829_v59 = vsel %vm13739_vm1, %v1824_v4, %v14101_v20  ;;  %v1863_v40 = vsel %vm13739_vm1, %v1858_v60, %v1862_v26  ;;  %v1876_v22 = vrot.slane %v1874_v12, 5 }
  0xb7   : > { %v11450_v38 = vcombine.low %v1829_v59, %v1839_v56  ;;  %v11451_v29 = vcombine.low %v1853_v62, %v1863_v40  ;;  %12654 = vmatmul.mubr.msk.bf16.vlgmr.msra.gmra.mxu0 %vm1553_vm15, %v11483_v51  ;;  %v1871_v39 = vor.u32 %v1870_v36, %v1867_v61  ;;  %v1880_v25 = vrot.slane %v1878_v41, 4  ;;  %v1777_v61 = vld [vmem:[#allocation2 + $0x3c] sm:$0xf] }
  0xb8   : > { %18941 = vst [vmem:[#allocation20_spill] sm:$0xff] %v14154_v53  ;;  %12614 = vmatmul.mubr.msk.bf16.gmra.mxu1 %vm1553_vm15, %v14154_v53  ;;  %v1886_v20 = vrot.slane %v1884_v14, 5  ;;  %12657 = vmatprep.mubr.msk.bf16.mxu0 %vm1553_vm15, %v11484_v27  ;;  %v1889_v48 = vshrl.u32 %v14111_v42, 16  ;;  %v1892_v57 = vshll.u32 %v14111_v42, 16  ;;  %v1898_v26 = vshll.u32 %v14113_v45, 16 }
  0xb9   : > { %12619 = vmatprep.mubr.msk.bf16.mxu1 %vm1553_vm15, %v11450_v38  ;;  %v1872_v17 = vrot.slane %v1871_v39, 4  ;;  %v1881_v51 = vor.u32 %v1880_v25, %v1876_v22  ;;  %v1902_v47 = vshrl.u32 %v14113_v45, 16  ;;  %v1908_v49 = vshll.u32 %v14161_v16, 16  ;;  %v14191_v38 = vld [vmem:[#allocation2 + $0x40] sm:$0xf] }
  0xba   : > { %v1891_v28 = vrot.slane %v1889_v48, 4  ;;  %v1894_v62 = vrot.slane %v1892_v57, 5  ;;  %v1900_v33 = vrot.slane %v1898_v26, 5  ;;  %v1913_v27 = vshrl.u32 %v14163_v32, 16  ;;  %v14193_v57 = vld [vmem:[#allocation2 + $0x44] sm:$0x1] }
  0xbb   : > { %v1877_v56 = vsel %vm13739_vm1, %v1872_v17, %v1876_v22  ;;  %v1882_v37 = vrot.slane %v1881_v51, 4  ;;  %v1904_v24 = vrot.slane %v1902_v47, 4  ;;  %v1910_v4 = vrot.slane %v1908_v49, 5  ;;  %v14198_v26 = vld [vmem:[%s18856_s1 + $0x8] sm:$0x3] }
  0xbc   : > { %v1895_v60 = vor.u32 %v1894_v62, %v1891_v28  ;;  %v1915_v12 = vrot.slane %v1913_v27, 4  ;;  %v1916_v41 = vshll.u32 %v14163_v32, 16  ;;  %v1922_v13 = vshll.u32 %v14169_v46, 16  ;;  %v1779_v49 = vld [vmem:[#allocation2 + $0x48] sm:$0xf] }
  0xbd   : > { %v1887_v36 = vsel %vm13739_vm1, %v1882_v37, %v1886_v20  ;;  %v1905_v14 = vor.u32 %v1904_v24, %v1900_v33  ;;  %v1926_v59 = vshrl.u32 %v14169_v46, 16  ;;  %v1932_v40 = vshll.u32 %v14180_v11, 16  ;;  %v14215_v24 = vld [vmem:[#allocation2 + $0x4c] sm:$0xf] }
  0xbe   : > { %v11452_v22 = vcombine.low %v1877_v56, %v1887_v36  ;;  %v1896_v39 = vrot.slane %v1895_v60, 4  ;;  %v1918_v25 = vrot.slane %v1916_v41, 5  ;;  %v1924_v48 = vrot.slane %v1922_v13, 5  ;;  %v14218_v41 = vld [vmem:[#allocation2 + $0x50] sm:$0x1] }
  0xbf   : > { %v1906_v17 = vrot.slane %v1905_v14, 4  ;;  %12658 = vmatmul.mubr.msk.bf16.gmra.mxu0 %vm1553_vm15, %v11485_v2  ;;  %v1928_v20 = vrot.slane %v1926_v59, 4  ;;  %v1934_v51 = vrot.slane %v1932_v40, 5  ;;  %v11486_v47 = vcombine.low %v14163_v32, %v14169_v46  ;;  %v1781_v14 = vld [vmem:[#allocation2 + $0x54] sm:$0xf] }
  0xc0   : > { %12620 = vmatmul.mubr.msk.bf16.vlgmr.msra.gmra.mxu1 %vm1553_vm15, %v11451_v29  ;;  %v1901_v28 = vsel %vm13739_vm1, %v1896_v39, %v1900_v33  ;;  %v1919_v62 = vor.u32 %v1918_v25, %v1915_v12  ;;  %v1937_v27 = vshrl.u32 %v1777_v61, 16  ;;  %v1940_v56 = vshll.u32 %v1777_v61, 16 }
  0xc1   : > { %12686 = vmatpush3.bf16.msra.mxu1 %v14137_v58  ;;  %12623 = vmatprep.mubr.msk.bf16.mxu1 %vm1553_vm15, %v11452_v22  ;;  %v1911_v42 = vsel %vm13739_vm1, %v1906_v17, %v1910_v4  ;;  %v1929_v2 = vor.u32 %v1928_v20, %v1924_v48  ;;  %v1946_v37 = vshll.u32 %v14191_v38, 16  ;;  %v1950_v32 = vshrl.u32 %v14191_v38, 16 }
  0xc2   : > { %v11453_v29 = vcombine.low %v1901_v28, %v1911_v42  ;;  %v1920_v60 = vrot.slane %v1919_v62, 4  ;;  %12661 = vmatprep.mubr.msk.bf16.mxu0 %vm1553_vm15, %v11486_v47  ;;  %v1939_v33 = vrot.slane %v1937_v27, 4  ;;  %v1942_v12 = vrot.slane %v1940_v56, 5  ;;  %13237 = vmatprep.subr.msk.bf16.mxu1 %vm1602_vm0, %v14198_v26  ;;  %v14228_v28 = vld [vmem:[#allocation2 + $0x58] sm:$0xf] }
  0xc3   : > { %v1930_v58 = vrot.slane %v1929_v2, 4  ;;  %v1948_v4 = vrot.slane %v1946_v37, 5  ;;  %v1952_v13 = vrot.slane %v1950_v32, 4  ;;  %v1956_v36 = vshll.u32 %v14193_v57, 16  ;;  %v14231_v2 = vld [vmem:[#allocation2 + $0x5c] sm:$0x1] }
  0xc4   : > { %v1925_v59 = vsel %vm13739_vm1, %v1920_v60, %v1924_v48  ;;  %v1943_v40 = vor.u32 %v1942_v12, %v1939_v33  ;;  %v11487_v22 = vcombine.low %v1777_v61, %v14191_v38  ;;  %v1961_v39 = vshrl.u32 %v1779_v49, 16  ;;  %v1783_v32 = vld [vmem:[#allocation2 + $0x60] sm:$0xf] }
  0xc5   : > { %v1935_v25 = vsel %vm13739_vm1, %v1930_v58, %v1934_v51  ;;  %v1953_v17 = vor.u32 %v1952_v13, %v1948_v4  ;;  %v1958_v20 = vrot.slane %v1956_v36, 5  ;;  %v1964_v47 = vshll.u32 %v1779_v49, 16 }
  0xc6   : > { %v11454_v62 = vcombine.low %v1925_v59, %v1935_v25  ;;  %v1944_v27 = vrot.slane %v1943_v40, 4  ;;  %v1963_v56 = vrot.slane %v1961_v39, 4  ;;  %v1970_v42 = vshll.u32 %v14215_v24, 16 }
  0xc7   : > { %v1954_v48 = vrot.slane %v1953_v17, 4  ;;  %12662 = vmatmul.mubr.msk.bf16.gmra.mxu0 %vm1553_vm15, %v11487_v22  ;;  %v1966_v61 = vrot.slane %v1964_v47, 5  ;;  %v1974_v37 = vshrl.u32 %v14215_v24, 16  ;;  %v1980_v51 = vshll.u32 %v14218_v41, 16  ;;  %v14243_v22 = vld [vmem:[#allocation2 + $0x64] sm:$0xf] }
  0xc8   : > { %12624 = vmatmul.mubr.msk.bf16.gmra.mxu1 %vm1553_vm15, %v11453_v29  ;;  %v1949_v60 = vsel %vm13739_vm1, %v1944_v27, %v1948_v4  ;;  %v1972_v33 = vrot.slane %v1970_v42, 5  ;;  %v11488_v12 = vcombine.low %v1779_v49, %v14215_v24  ;;  %v1985_v58 = vshrl.u32 %v1781_v14, 16  ;;  %v14247_v17 = vld [vmem:[#allocation2 + $0x68] sm:$0x1] }
  0xc9   : > { %12627 = vmatprep.mubr.msk.bf16.mxu1 %vm1553_vm15, %v11454_v62  ;;  %v1959_v13 = vsel %vm13739_vm1, %v1954_v48, %v1958_v20  ;;  %v1967_v36 = vor.u32 %v1966_v61, %v1963_v56  ;;  %v1976_v59 = vrot.slane %v1974_v37, 4  ;;  %v1982_v40 = vrot.slane %v1980_v51, 5 }
  0xca   : > { %v11455_v39 = vcombine.low %v1949_v60, %v1959_v13  ;;  %12665 = vmatprep.mubr.msk.bf16.mxu0 %vm1553_vm15, %v11488_v12  ;;  %v1987_v29 = vrot.slane %v1985_v58, 4  ;;  %v1988_v25 = vshll.u32 %v1781_v14, 16  ;;  %v1994_v4 = vshll.u32 %v14228_v28, 16  ;;  %v1785_v12 = vld [vmem:[#allocation2 + $0x6c] sm:$0xf] }
  0xcb   : > { %v1968_v49 = vrot.slane %v1967_v36, 4  ;;  %v1977_v47 = vor.u32 %v1976_v59, %v1972_v33  ;;  %v1998_v62 = vshrl.u32 %v14228_v28, 16  ;;  %v2004_v20 = vshll.u32 %v14231_v2, 16 }
  0xcc   : > { %v1990_v27 = vrot.slane %v1988_v25, 5  ;;  %v1996_v56 = vrot.slane %v1994_v4, 5  ;;  %v11489_v42 = vcombine.low %v1781_v14, %v14228_v28  ;;  %v2009_v48 = vshrl.u32 %v1783_v32, 16 }
  0xcd   : > { %v1973_v61 = vsel %vm13739_vm1, %v1968_v49, %v1972_v33  ;;  %v1978_v37 = vrot.slane %v1977_v47, 4  ;;  %v2000_v51 = vrot.slane %v1998_v62, 4  ;;  %v2006_v60 = vrot.slane %v2004_v20, 5  ;;  %v14263_v20 = vld [vmem:[#allocation2 + $0x74] sm:$0x1] }
  0xce   : > { %v1991_v58 = vor.u32 %v1990_v27, %v1987_v29  ;;  %v2011_v13 = vrot.slane %v2009_v48, 4  ;;  %v2012_v36 = vshll.u32 %v1783_v32, 16  ;;  %v2018_v59 = vshll.u32 %v14243_v22, 16 }
  0xcf   : > { %v1983_v25 = vsel %vm13739_vm1, %v1978_v37, %v1982_v40  ;;  %v2001_v4 = vor.u32 %v2000_v51, %v1996_v56  ;;  %12666 = vmatmul.mubr.msk.bf16.gmra.mxu0 %vm1553_vm15, %v11489_v42  ;;  %v2022_v14 = vshrl.u32 %v14243_v22, 16  ;;  %v2028_v33 = vshll.u32 %v14247_v17, 16  ;;  %v1787_v37 = vld [vmem:[#allocation2 + $0x78] sm:$0xf] }
  0xd0   : > { %12628 = vmatmul.mubr.msk.bf16.gmra.mxu1 %vm1553_vm15, %v11455_v39  ;;  %v11456_v49 = vcombine.low %v1973_v61, %v1983_v25  ;;  %v1992_v29 = vrot.slane %v1991_v58, 4  ;;  %v2014_v47 = vrot.slane %v2012_v36, 5  ;;  %v2020_v62 = vrot.slane %v2018_v59, 5 }
  0xd1   : > { %v2002_v27 = vrot.slane %v2001_v4, 4  ;;  %v2024_v48 = vrot.slane %v2022_v14, 4  ;;  %v2030_v53 = vrot.slane %v2028_v33, 5  ;;  %v11490_v40 = vcombine.low %v1783_v32, %v14243_v22  ;;  %v14274_v32 = vld [vmem:[#allocation2 + $0x7c] sm:$0xf] }
  0xd2   : > { %12631 = vmatprep.mubr.msk.bf16.mxu1 %vm1553_vm15, %v11456_v49  ;;  %v1997_v42 = vsel %vm13739_vm1, %v1992_v29, %v1996_v56  ;;  %v2015_v51 = vor.u32 %v2014_v47, %v2011_v13  ;;  %v2033_v44 = vshrl.u32 %v1785_v12, 16  ;;  %v2036_v39 = vshll.u32 %v1785_v12, 16  ;;  %v1789_v47 = vld [vmem:[#allocation2 + $0x84] sm:$0xf] }
  0xd3   : > { %v2007_v61 = vsel %vm13739_vm1, %v2002_v27, %v2006_v60  ;;  %v2025_v58 = vor.u32 %v2024_v48, %v2020_v62  ;;  %12669 = vmatprep.mubr.msk.bf16.mxu0 %vm1553_vm15, %v11490_v40  ;;  %v2042_v36 = vshll.u32 %v14255_v30, 16  ;;  %v2046_v59 = vshrl.u32 %v14255_v30, 16  ;;  %v14280_v40 = vld [vmem:[#allocation2 + $0x80] sm:$0x1] }
  0xd4   : > { %v11457_v25 = vcombine.low %v1997_v42, %v2007_v61  ;;  %v2016_v4 = vrot.slane %v2015_v51, 4  ;;  %v2035_v14 = vrot.slane %v2033_v44, 4  ;;  %v2038_v33 = vrot.slane %v2036_v39, 5 }
  0xd5   : > { %v2026_v56 = vrot.slane %v2025_v58, 4  ;;  %v2044_v13 = vrot.slane %v2042_v36, 5  ;;  %v2048_v49 = vrot.slane %v2046_v59, 4  ;;  %v2052_v29 = vshll.u32 %v14263_v20, 16 }
  0xd6   : > { %v2021_v60 = vsel %vm13739_vm1, %v2016_v4, %v2020_v62  ;;  %v2039_v27 = vor.u32 %v2038_v33, %v2035_v14  ;;  %v11491_v48 = vcombine.low %v1785_v12, %v14255_v30  ;;  %v2057_v8 = vshrl.u32 %v1787_v37, 16  ;;  %v14289_v33 = vld [vmem:[#allocation2 + $0x88] sm:$0xf] }
  0xd7   : > { %v2031_v42 = vsel %vm13739_vm1, %v2026_v56, %v2030_v53  ;;  %v2049_v44 = vor.u32 %v2048_v49, %v2044_v13  ;;  %v2054_v51 = vrot.slane %v2052_v29, 5  ;;  %v2060_v39 = vshll.u32 %v1787_v37, 16  ;;  %v14295_v49 = vld [vmem:[#allocation2 + $0x8c] sm:$0x1] }
  0xd8   : > { %12632 = vmatmul.mubr.msk.bf16.gmra.mxu1 %vm1553_vm15, %v11457_v25  ;;  %v11458_v61 = vcombine.low %v2021_v60, %v2031_v42  ;;  %v2040_v58 = vrot.slane %v2039_v27, 4  ;;  %12670 = vmatmul.mubr.msk.bf16.gmra.mxu0 %vm1553_vm15, %v11491_v48  ;;  %v2059_v36 = vrot.slane %v2057_v8, 4  ;;  %v2066_v62 = vshll.u32 %v14274_v32, 16  ;;  %v1791_v42 = vld [vmem:[#allocation2 + $0x90] sm:$0xf] }
  0xd9   : > { %v2050_v59 = vrot.slane %v2049_v44, 4  ;;  %v2062_v12 = vrot.slane %v2060_v39, 5  ;;  %v2070_v4 = vshrl.u32 %v14274_v32, 16  ;;  %v2076_v14 = vshll.u32 %v14280_v40, 16 }
  0xda   : > { %12635 = vmatprep.mubr.msk.bf16.mxu1 %vm1553_vm15, %v11458_v61  ;;  %v2045_v53 = vsel %vm13739_vm1, %v2040_v58, %v2044_v13  ;;  %v2068_v25 = vrot.slane %v2066_v62, 5  ;;  %v11492_v56 = vcombine.low %v1787_v37, %v14274_v32  ;;  %v2081_v8 = vshrl.u32 %v1789_v47, 16 }
  0xdb   : > { %v2055_v29 = vsel %vm13739_vm1, %v2050_v59, %v2054_v51  ;;  %v2063_v60 = vor.u32 %v2062_v12, %v2059_v36  ;;  %v2072_v27 = vrot.slane %v2070_v4, 4  ;;  %v2078_v48 = vrot.slane %v2076_v14, 5  ;;  %v14306_v12 = vld [vmem:[#allocation2 + $0x98] sm:$0x1] }
  0xdc   : > { %v11459_v44 = vcombine.low %v2045_v53, %v2055_v29  ;;  %12673 = vmatprep.mubr.msk.bf16.mxu0 %vm1553_vm15, %v11492_v56  ;;  %v2083_v39 = vrot.slane %v2081_v8, 4  ;;  %v2084_v61 = vshll.u32 %v1789_v47, 16  ;;  %v2090_v13 = vshll.u32 %v14289_v33, 16 }
  0xdd   : > { %v2064_v58 = vrot.slane %v2063_v60, 4  ;;  %v2073_v62 = vor.u32 %v2072_v27, %v2068_v25  ;;  %v2094_v37 = vshrl.u32 %v14289_v33, 16  ;;  %v2100_v6 = vshll.u32 %v14295_v49, 16 }
  0xde   : > { %v2086_v51 = vrot.slane %v2084_v61, 5  ;;  %v2092_v36 = vrot.slane %v2090_v13, 5  ;;  %v11493_v59 = vcombine.low %v1789_v47, %v14289_v33  ;;  %v2105_v4 = vshrl.u32 %v1791_v42, 16 }
  0xdf   : > { %v2069_v14 = vsel %vm13739_vm1, %v2064_v58, %v2068_v25  ;;  %v2074_v53 = vrot.slane %v2073_v62, 4  ;;  %v2096_v56 = vrot.slane %v2094_v37, 4  ;;  %v2102_v8 = vrot.slane %v2100_v6, 5  ;;  %v1793_v58 = vld [vmem:[#allocation2 + $0x9c] sm:$0xf] }
  0xe0   : > { %12636 = vmatmul.mubr.msk.bf16.gmra.mxu1 %vm1553_vm15, %v11459_v44  ;;  %v2087_v29 = vor.u32 %v2086_v51, %v2083_v39  ;;  %12674 = vmatmul.mubr.msk.bf16.gmra.mxu0 %vm1553_vm15, %v11493_v59  ;;  %v2107_v60 = vrot.slane %v2105_v4, 4  ;;  %v2108_v27 = vshll.u32 %v1791_v42, 16  ;;  %v2114_v61 = vshll.u32 %v14303_v3, 16  ;;  %v14317_v39 = vld [vmem:[#allocation2 + $0xa0] sm:$0xf] }
  0xe1   : > { %v2079_v47 = vsel %vm13739_vm1, %v2074_v53, %v2078_v48  ;;  %v2097_v13 = vor.u32 %v2096_v56, %v2092_v36  ;;  %v2118_v0 = vshrl.u32 %v14303_v3, 16  ;;  %v2124_v25 = vshll.u32 %v14306_v12, 16  ;;  %v14323_v56 = vld [vmem:[#allocation2 + $0xa4] sm:$0x1] }
  0xe2   : > { %v11460_v62 = vcombine.low %v2069_v14, %v2079_v47  ;;  %v2088_v6 = vrot.slane %v2087_v29, 4  ;;  %v2110_v37 = vrot.slane %v2108_v27, 5  ;;  %v2116_v44 = vrot.slane %v2114_v61, 5  ;;  %v1795_v61 = vld [vmem:[#allocation2 + $0xa8] sm:$0xf] }
  0xe3   : > { %v2098_v51 = vrot.slane %v2097_v13, 4  ;;  %v2120_v59 = vrot.slane %v2118_v0, 4  ;;  %v2126_v4 = vrot.slane %v2124_v25, 5  ;;  %v11494_v55 = vcombine.low %v1791_v42, %v14303_v3 }
  0xe4   : > { %12639 = vmatprep.mubr.msk.bf16.mxu1 %vm1553_vm15, %v11460_v62  ;;  %v2093_v48 = vsel %vm13739_vm1, %v2088_v6, %v2092_v36  ;;  %v2111_v53 = vor.u32 %v2110_v37, %v2107_v60  ;;  %v2129_v50 = vshrl.u32 %v1793_v58, 16  ;;  %v2132_v14 = vshll.u32 %v1793_v58, 16 }
  0xe5   : > { %v2103_v29 = vsel %vm13739_vm1, %v2098_v51, %v2102_v8  ;;  %v2121_v27 = vor.u32 %v2120_v59, %v2116_v44  ;;  %12677 = vmatprep.mubr.msk.bf16.mxu0 %vm1553_vm15, %v11494_v55  ;;  %v2138_v0 = vshll.u32 %v14317_v39, 16  ;;  %v2142_v42 = vshrl.u32 %v14317_v39, 16  ;;  %v14337_v59 = vld [vmem:[#allocation2 + $0xb0] sm:$0x1] }
  0xe6   : > { %v11461_v47 = vcombine.low %v2093_v48, %v2103_v29  ;;  %v2112_v13 = vrot.slane %v2111_v53, 4  ;;  %v2131_v25 = vrot.slane %v2129_v50, 4  ;;  %v2134_v36 = vrot.slane %v2132_v14, 5 }
  0xe7   : > { %v2122_v60 = vrot.slane %v2121_v27, 4  ;;  %v2140_v62 = vrot.slane %v2138_v0, 5  ;;  %v2144_v6 = vrot.slane %v2142_v42, 4  ;;  %v2148_v37 = vshll.u32 %v14323_v56, 16  ;;  %v1797_v27 = vld [vmem:[#allocation2 + $0xb4] sm:$0xf] }
  0xe8   : > { %12640 = vmatmul.mubr.msk.bf16.gmra.mxu1 %vm1553_vm15, %v11461_v47  ;;  %v2117_v55 = vsel %vm13739_vm1, %v2112_v13, %v2116_v44  ;;  %v2135_v8 = vor.u32 %v2134_v36, %v2131_v25  ;;  %v11495_v51 = vcombine.low %v1793_v58, %v14317_v39  ;;  %v2153_v48 = vshrl.u32 %v1795_v61, 16 }
  0xe9   : > { %v2127_v50 = vsel %vm13739_vm1, %v2122_v60, %v2126_v4  ;;  %v2145_v53 = vor.u32 %v2144_v6, %v2140_v62  ;;  %v2150_v14 = vrot.slane %v2148_v37, 5  ;;  %v2156_v29 = vshll.u32 %v1795_v61, 16  ;;  %v14351_v37 = vld [vmem:[#allocation2 + $0xbc] sm:$0x1] }
  0xea   : > { %v11462_v0 = vcombine.low %v2117_v55, %v2127_v50  ;;  %v2136_v42 = vrot.slane %v2135_v8, 4  ;;  %12678 = vmatmul.mubr.msk.bf16.gmra.mxu0 %vm1553_vm15, %v11495_v51  ;;  %v2155_v47 = vrot.slane %v2153_v48, 4  ;;  %v2162_v44 = vshll.u32 %v14331_v43, 16 }
  0xeb   : > { %v2146_v13 = vrot.slane %v2145_v53, 4  ;;  %v2158_v25 = vrot.slane %v2156_v29, 5  ;;  %v2166_v58 = vshrl.u32 %v14331_v43, 16  ;;  %v2172_v36 = vshll.u32 %v14337_v59, 16 }
  0xec   : > { %12643 = vmatprep.mubr.msk.bf16.mxu1 %vm1553_vm15, %v11462_v0  ;;  %v2141_v4 = vsel %vm13739_vm1, %v2136_v42, %v2140_v62  ;;  %v2164_v60 = vrot.slane %v2162_v44, 5  ;;  %v11496_v6 = vcombine.low %v1795_v61, %v14331_v43  ;;  %v2177_v55 = vshrl.u32 %v1797_v27, 16  ;;  %v2754_v62 = vld [vmem:[#allocation2] sm:$0xe] }
  0xed   : > { %v2151_v8 = vsel %vm13739_vm1, %v2146_v13, %v2150_v14  ;;  %v2159_v51 = vor.u32 %v2158_v25, %v2155_v47  ;;  %v2168_v48 = vrot.slane %v2166_v58, 4  ;;  %v2174_v50 = vrot.slane %v2172_v36, 5  ;;  %v14362_v14 = vld [vmem:[%s18856_s1 + $0xa] sm:$0x3]  ;;  %v13389_v58 = vld [vmem:[%s18856_s1 + $0x6] sm:$0x3] }
  0xee   : > { %v11463_v53 = vcombine.low %v2141_v4, %v2151_v8  ;;  %12681 = vmatprep.mubr.msk.bf16.mxu0 %vm1553_vm15, %v11496_v6  ;;  %v2179_v29 = vrot.slane %v2177_v55, 4  ;;  %v2180_v0 = vshll.u32 %v1797_v27, 16  ;;  %v2186_v9 = vshll.u32 %v14345_v52, 16 }
  0xef   : > { %v2160_v42 = vrot.slane %v2159_v51, 4  ;;  %v2169_v44 = vor.u32 %v2168_v48, %v2164_v60  ;;  %v2190_v61 = vshrl.u32 %v14345_v52, 16  ;;  %v2196_v10 = vshll.u32 %v14351_v37, 16 }
  0xf0   : > { %12644 = vmatmul.mubr.msk.bf16.gmra.mxu1 %vm1553_vm15, %v11463_v53  ;;  %v2182_v47 = vrot.slane %v2180_v0, 5  ;;  %v2188_v13 = vrot.slane %v2186_v9, 5  ;;  %v11497_v25 = vcombine.low %v1797_v27, %v14345_v52  ;;  %v3374_v36 = vsel %vm1602_vm0, %v13389_v58, 0  ;;  %v13309_v58 = vld [vmem:[#allocation2 + $0x18] sm:$0xff]  }
  0xf1   : > { %v2165_v4 = vsel %vm13739_vm1, %v2160_v42, %v2164_v60  ;;  %v2170_v6 = vrot.slane %v2169_v44, 4  ;;  %v2192_v55 = vrot.slane %v2190_v61, 4  ;;  %v2198_v8 = vrot.slane %v2196_v10, 5  ;;  %12720 = vmatpush3.bf16.msra.mxu0 %v3374_v36 }
  0xf2   : > { %v2183_v51 = vor.u32 %v2182_v47, %v2179_v29  ;;  %12682 = vmatmul.mubr.msk.bf16.gmra.mxu0 %vm1553_vm15, %v11497_v25  ;;  %vm2802_vm2 = vcmask 1042432   ;;  %vm2803_vm6 = vcmask 1046532   ;;  %v11514_v9 = vrot.slane %v2754_v62, 9  ;;  %13238 = vmatprep.subr.msk.bf16.mxu0 %vm1602_vm0, %v14362_v14  ;;  %v2755_v29 = vld [vmem:[#allocation2 + $0xc] sm:$0xe] }
  0xf3   : > { %v2175_v27 = vsel %vm13739_vm1, %v2170_v6, %v2174_v50  ;;  %v2193_v48 = vor.u32 %v2192_v55, %v2188_v13  ;;  %vm14377_vm8 = vmor %vm2802_vm2, %vm2803_vm6  ;;  %v18942_v53 = vmov 0  ;;  %v2807_v10 = vrot.slane %v14079_v63, 5  ;;  %12721 = vmatprep.mubr.msk.bf16.mxu0 %vm1553_vm15, %v13308_v23  ;;  %v2756_v47 = vld [vmem:[#allocation2 + $0x18] sm:$0xe]  ;;  %v13310_v6 = vld [vmem:[#allocation2 + $0x24] sm:$0xff]  }
  0xf4   : > { %v18943_v53 = vsel %vm14377_vm8, 4294967295, %v18942_v53  ;;  %v2810_v60 = vrot.slane %v14125_v7, 5  ;;  %v11464_v0 = vcombine.low %v2165_v4, %v2175_v27  ;;  %v2184_v62 = vrot.slane %v2183_v51, 4 }
  0xf5   : > { %18944 = vst [vmem:[#allocation21_spill] sm:$0xff] %v18943_v53  ;;  %v2814_v42 = vrot.slane %v14069_v35, 5  ;;  %v2194_v44 = vrot.slane %v2193_v48, 4  ;;  %v2808_v50 = vsel %vm14377_vm8, %v11514_v9, %v2807_v10  ;;  %v2809_v61 = vrot.slane %v2807_v10, 4  ;;  %v2757_v10 = vld [vmem:[#allocation2 + $0x24] sm:$0xe] }
  0xf6   : > { %12647 = vmatprep.mubr.msk.bf16.mxu1 %vm1553_vm15, %v11464_v0  ;;  %v2189_v63 = vsel %vm13739_vm1, %v2184_v62, %v2188_v13  ;;  %v11515_v25 = vrot.slane %v2755_v29, 9  ;;  %v2817_v7 = vrot.slane %v14096_v15, 5  ;;  %v2821_v4 = vrot.slane %v14109_v54, 5  ;;  %v2758_v29 = vld [vmem:[#allocation2 + $0x30] sm:$0xe] }
  0xf7   : > { %v2199_v23 = vsel %vm13739_vm1, %v2194_v44, %v2198_v8  ;;  %v2811_v35 = vsel %vm14377_vm8, %v2809_v61, %v2810_v60  ;;  %v2816_v36 = vrot.slane %v2814_v42, 4  ;;  %v11516_v9 = vrot.slane %v2756_v47, 9  ;;  %v13311_v62 = vld [vmem:[#allocation2 + $0x30] sm:$0xff]  }
  0xf8   : > { %v11465_v55 = vcombine.low %v2189_v63, %v2199_v23  ;;  %v11531_v51 = vcombine.low %v2808_v50, %v2811_v35  ;;  %v2824_v27 = vrot.slane %v14143_v1, 5  ;;  %v2823_v13 = vrot.slane %v2821_v4, 4  ;;  %v2759_v35 = vld [vmem:[#allocation2 + $0x3c] sm:$0xe] }
  0xf9   : > { %v2815_v15 = vsel %vm14377_vm8, %v11515_v25, %v2814_v42  ;;  %v2818_v8 = vsel %vm14377_vm8, %v2816_v36, %v2817_v7  ;;  %v2828_v54 = vrot.slane %v14113_v45, 5  ;;  %v2822_v1 = vsel %vm14377_vm8, %v11516_v9, %v2821_v4  ;;  %v13312_v7 = vld [vmem:[#allocation2 + $0x3c] sm:$0xff]   ;;  %v2760_v4 = vld [vmem:[#allocation2 + $0x48] sm:$0xe] }
  0xfa   : > { %12648 = vmatmul.mubr.msk.bf16.gmra.mxu1 %vm1553_vm15, %v11465_v55  ;;  %12722 = vmatmul.mubr.msk.bf16.vlgmr.msra.gmra.mxu0 %vm1553_vm15, %v13309_v58  ;;  %v2825_v48 = vsel %vm14377_vm8, %v2823_v13, %v2824_v27  ;;  %v2835_v60 = vrot.slane %v14169_v46, 5  ;;  %v11532_v0 = vcombine.low %v2815_v15, %v2818_v8  ;;  %v11517_v44 = vrot.slane %v2757_v10, 9  ;;  %v14418_v46 = vld [vmem:[%s18856_s1 + $0xc] sm:$0x3]  ;;  %v13314_v13 = vld [vmem:[#allocation2 + $0x54] sm:$0xff]  }
  0xfb   : > { %12687 = vmatprep.mubr.msk.bf16.mxu1 %vm1553_vm15, %v11531_v51  ;;  %12725 = vmatprep.mubr.msk.bf16.mxu0 %vm1553_vm15, %v13310_v6  ;;  %v11533_v42 = vcombine.low %v2822_v1, %v2825_v48  ;;  %v2830_v50 = vrot.slane %v2828_v54, 4  ;;  %v2831_v61 = vrot.slane %v14161_v16, 5  ;;  %v3572_v45 = vsel %vm1602_vm0, %v14198_v26, 0  ;;  %v13313_v55 = vld [vmem:[#allocation2 + $0x48] sm:$0xff]   ;;  %v2761_v48 = vld [vmem:[#allocation2 + $0x54] sm:$0xe] }
  0xfc   : > { %v11518_v47 = vrot.slane %v2758_v29, 9  ;;  %v2837_v63 = vrot.slane %v2835_v60, 4  ;;  %v2838_v25 = vrot.slane %v14180_v11, 5  ;;  %v2829_v16 = vsel %vm14377_vm8, %v11517_v44, %v2828_v54  ;;  %v2762_v29 = vld [vmem:[#allocation2 + $0x60] sm:$0xe] }
  0xfd   : > { %v2832_v26 = vsel %vm14377_vm8, %v2830_v50, %v2831_v61  ;;  %v2842_v11 = vrot.slane %v14191_v38, 5  ;;  %v2849_v36 = vrot.slane %v14215_v24, 5  ;;  %v11519_v9 = vrot.slane %v2759_v35, 9  ;;  %v14455_v44 = vld [vmem:[%s18856_s1 + $0xe] sm:$0x3]  ;;  %v13317_v35 = vld [vmem:[#allocation2 + $0x78] sm:$0xff]  }
  0xfe   : > { %v2836_v58 = vsel %vm14377_vm8, %v11518_v47, %v2835_v60  ;;  %v2839_v23 = vsel %vm14377_vm8, %v2837_v63, %v2838_v25  ;;  %v11534_v6 = vcombine.low %v2829_v16, %v2832_v26  ;;  %v2845_v27 = vrot.slane %v14193_v57, 5  ;;  %v2763_v26 = vld [vmem:[#allocation2 + $0x6c] sm:$0xe] }
  0xff   : > { %v11535_v51 = vcombine.low %v2836_v58, %v2839_v23  ;;  %v2844_v38 = vrot.slane %v2842_v11, 4  ;;  %v11520_v15 = vrot.slane %v2760_v4, 9  ;;  %v2851_v8 = vrot.slane %v2849_v36, 4  ;;  %v2764_v58 = vld [vmem:[#allocation2 + $0x78] sm:$0xe] }
 0x100   : > { %v2852_v54 = vrot.slane %v14218_v41, 5  ;;  %v2843_v24 = vsel %vm14377_vm8, %v11519_v9, %v2842_v11  ;;  %v2856_v57 = vrot.slane %v14228_v28, 5  ;;  %v2863_v60 = vrot.slane %v14243_v22, 5 }
 0x101   : > { %v2846_v1 = vsel %vm14377_vm8, %v2844_v38, %v2845_v27  ;;  %v2850_v41 = vsel %vm14377_vm8, %v11520_v15, %v2849_v36  ;;  %v2859_v61 = vrot.slane %v14231_v2, 5  ;;  %v4042_v47 = vsel %vm1602_vm0, %v14362_v14, 0  ;;  %v2765_v15 = vld [vmem:[#allocation2 + $0x84] sm:$0xe] }
 0x102   : > { %12688 = vmatmul.mubr.msk.bf16.vlgmr.msra.gmra.mxu1 %vm1553_vm15, %v11532_v0  ;;  %12726 = vmatmul.mubr.msk.bf16.gmra.mxu0 %vm1553_vm15, %v13311_v62  ;;  %v2853_v10 = vsel %vm14377_vm8, %v2851_v8, %v2852_v54  ;;  %v11536_v0 = vcombine.low %v2843_v24, %v2846_v1  ;;  %v11521_v62 = vrot.slane %v2761_v48, 9  ;;  %v2858_v50 = vrot.slane %v2856_v57, 4  ;;  %v2766_v54 = vld [vmem:[#allocation2 + $0x90] sm:$0xe] }
 0x103   : > { %12754 = vmatpush3.bf16.msra.mxu1 %v3572_v45  ;;  %12691 = vmatprep.mubr.msk.bf16.mxu1 %vm1553_vm15, %v11533_v42  ;;  %v13315_v42 = vld [vmem:[#allocation2 + $0x60] sm:$0xff]   ;;  %v11537_v28 = vcombine.low %v2850_v41, %v2853_v10  ;;  %v13316_v45 = vld [vmem:[#allocation2 + $0x6c] sm:$0xff]   ;;  %v11522_v63 = vrot.slane %v2762_v29, 9  ;;  %v2865_v25 = vrot.slane %v2863_v60, 4  ;;  %v2866_v22 = vrot.slane %v14247_v17, 5 }
 0x104   : > { %12729 = vmatprep.mubr.msk.bf16.mxu0 %vm1553_vm15, %v13312_v7  ;;  %13239 = vmatprep.subr.msk.bf16.mxu1 %vm1602_vm0, %v14418_v46  ;;  %v2857_v2 = vsel %vm14377_vm8, %v11521_v62, %v2856_v57  ;;  %v2860_v14 = vsel %vm14377_vm8, %v2858_v50, %v2859_v61  ;;  %v2870_v7 = vrot.slane %v14255_v30, 5  ;;  %v2877_v11 = vrot.slane %v14274_v32, 5  ;;  %v13318_v30 = vld [vmem:[#allocation2 + $0x84] sm:$0xff]   ;;  %v13319_v1 = vld [vmem:[#allocation2 + $0x90] sm:$0xff]  }
 0x105   : > { %12788 = vmatpush3.bf16.msra.mxu0 %v4042_v47  ;;  %v2864_v17 = vsel %vm14377_vm8, %v11522_v63, %v2863_v60  ;;  %v2867_v16 = vsel %vm14377_vm8, %v2865_v25, %v2866_v22  ;;  %v11538_v23 = vcombine.low %v2857_v2, %v2860_v14  ;;  %v11523_v4 = vrot.slane %v2763_v26, 9  ;;  %v2768_v50 = vld [vmem:[#allocation2 + $0xa8] sm:$0xe]  ;;  %v3767_v63 = vld [vmem:[#allocation2 + $0xc] sm:$0xe] }
 0x106   : > { %13240 = vmatprep.subr.msk.bf16.mxu0 %vm1602_vm0, %v14455_v44  ;;  %v11539_v36 = vcombine.low %v2864_v17, %v2867_v16  ;;  %v2879_v9 = vrot.slane %v2877_v11, 4  ;;  %v2880_v38 = vrot.slane %v14280_v40, 5  ;;  %v2891_v8 = vrot.slane %v14303_v3, 5  ;;  %v13391_v25 = vld [vmem:[#allocation2 + $0x14] sm:$0x1] }
 0x107   : > { %v2871_v32 = vsel %vm14377_vm8, %v11523_v4, %v2870_v7  ;;  %v11525_v57 = vrot.slane %v2765_v15, 9  ;;  %v2887_v10 = vrot.slane %v14295_v49, 5  ;;  %v11526_v60 = vrot.slane %v2766_v54, 9  ;;  %v3769_v15 = vld [vmem:[#allocation2 + $0x24] sm:$0xe] }
 0x108   : > { %v2881_v40 = vsel %vm14377_vm8, %v2879_v9, %v2880_v38  ;;  %v2893_v29 = vrot.slane %v2891_v8, 4  ;;  %v2898_v49 = vrot.slane %v14317_v39, 5  ;;  %v2905_v61 = vrot.slane %v14331_v43, 5  ;;  %v13392_v43 = vld [vmem:[#allocation2 + $0x1c] sm:$0xf] }
 0x109   : > { %v3836_v22 = vrot.slane %v13391_v25, 5  ;;  %v2901_v16 = vrot.slane %v14323_v56, 5  ;;  %v11528_v26 = vrot.slane %v2768_v50, 9  ;;  %v3840_v4 = vrot.slane %v13392_v43, 5  ;;  %v13400_v43 = vld [vmem:[#allocation2 + $0x4c] sm:$0xf] }
 0x10a   : > { %12692 = vmatmul.mubr.msk.bf16.gmra.mxu1 %vm1553_vm15, %v11534_v6  ;;  %12730 = vmatmul.mubr.msk.bf16.gmra.mxu0 %vm1553_vm15, %v13313_v55  ;;  %v2872_v6 = vrot.slane %v2870_v7, 4  ;;  %v2873_v55 = vrot.slane %v14263_v20, 5  ;;  %v13321_v7 = vld [vmem:[#allocation2 + $0xa8] sm:$0xff]   ;;  %v2900_v17 = vrot.slane %v2898_v49, 4 }
 0x10b   : > { %12695 = vmatprep.mubr.msk.bf16.mxu1 %vm1553_vm15, %v11535_v51  ;;  %12733 = vmatprep.mubr.msk.bf16.mxu0 %vm1553_vm15, %v13314_v13  ;;  %v11524_v51 = vrot.slane %v2764_v58, 9  ;;  %v2884_v13 = vrot.slane %v14289_v33, 5  ;;  %v13320_v33 = vld [vmem:[#allocation2 + $0x9c] sm:$0xff]   ;;  %v2907_v58 = vrot.slane %v2905_v61, 4 }
 0x10c   : > { %v2874_v27 = vsel %vm14377_vm8, %v2872_v6, %v2873_v55  ;;  %v2902_v56 = vsel %vm14377_vm8, %v2900_v17, %v2901_v16  ;;  %v2906_v55 = vsel %vm14377_vm8, %v11528_v26, %v2905_v61  ;;  %v3770_v61 = vld [vmem:[#allocation2 + $0x30] sm:$0xe] }
 0x10d   : > { %v2878_v20 = vsel %vm14377_vm8, %v11524_v51, %v2877_v11  ;;  %v11540_v24 = vcombine.low %v2871_v32, %v2874_v27  ;;  %v2886_v41 = vrot.slane %v2884_v13, 4  ;;  %v2885_v3 = vsel %vm14377_vm8, %v11525_v57, %v2884_v13  ;;  %v13322_v11 = vld [vmem:[#allocation2 + $0xb4] sm:$0xff]   ;;  %v13393_v27 = vld [vmem:[#allocation2 + $0x28] sm:$0xf] }
 0x10e   : > { %v11541_v48 = vcombine.low %v2878_v20, %v2881_v40  ;;  %v3768_v51 = vld [vmem:[#allocation2 + $0x18] sm:$0xe]  ;;  %v3847_v13 = vrot.slane %v13393_v27, 5  ;;  %v13394_v20 = vld [vmem:[#allocation2 + $0x20] sm:$0x1] }
 0x10f   : > { %v2888_v62 = vsel %vm14377_vm8, %v2886_v41, %v2887_v10  ;;  %v3843_v40 = vrot.slane %v13394_v20, 5  ;;  %v3842_v10 = vrot.slane %v3840_v4, 4 }
 0x110   : > { %v11542_v2 = vcombine.low %v2885_v3, %v2888_v62 }
 0x112   : > { %12696 = vmatmul.mubr.msk.bf16.gmra.mxu1 %vm1553_vm15, %v11536_v0  ;;  %12734 = vmatmul.mubr.msk.bf16.gmra.mxu0 %vm1553_vm15, %v13315_v42  ;;  %v2894_v0 = vrot.slane %v14306_v12, 5  ;;  %v2767_v42 = vld [vmem:[#allocation2 + $0x9c] sm:$0xe]  ;;  %v2892_v12 = vsel %vm14377_vm8, %v11526_v60, %v2891_v8  ;;  %v3849_v60 = vrot.slane %v3847_v13, 4 }
 0x113   : > { %12699 = vmatprep.mubr.msk.bf16.mxu1 %vm1553_vm15, %v11537_v28  ;;  %12737 = vmatprep.mubr.msk.bf16.mxu0 %vm1553_vm15, %v13316_v45  ;;  %v13390_v45 = vld [vmem:[#allocation2 + $0x10] sm:$0xf]  ;;  %v11527_v14 = vrot.slane %v2767_v42, 9  ;;  %v3844_v42 = vsel %vm14377_vm8, %v3842_v10, %v3843_v40 }
 0x114   : > { %v2895_v28 = vsel %vm14377_vm8, %v2893_v29, %v2894_v0  ;;  %v3833_v47 = vrot.slane %v13390_v45, 5  ;;  %v13395_v29 = vld [vmem:[#allocation2 + $0x2c] sm:$0x1]  ;;  %v13397_v45 = vld [vmem:[#allocation2 + $0x40] sm:$0xf] }
 0x115   : > { %v11543_v39 = vcombine.low %v2892_v12, %v2895_v28  ;;  %v2899_v6 = vsel %vm14377_vm8, %v11527_v14, %v2898_v49  ;;  %v3850_v0 = vrot.slane %v13395_v29, 5  ;;  %v13396_v49 = vld [vmem:[#allocation2 + $0x34] sm:$0xf]  ;;  %v11616_v14 = vrot.slane %v3770_v61, 9  ;;  %v3776_v29 = vld [vmem:[#allocation2 + $0x78] sm:$0xe] }
 0x116   : > { %v11544_v8 = vcombine.low %v2899_v6, %v2902_v56  ;;  %v3854_v12 = vrot.slane %v13396_v49, 5  ;;  %v3772_v6 = vld [vmem:[#allocation2 + $0x48] sm:$0xe]  ;;  %v13401_v56 = vld [vmem:[#allocation2 + $0x58] sm:$0xf] }
 0x117   : > { %v3851_v50 = vsel %vm14377_vm8, %v3849_v60, %v3850_v0  ;;  %v13406_v0 = vld [vmem:[#allocation2 + $0x7c] sm:$0xf] }
 0x11a   : > { %12700 = vmatmul.mubr.msk.bf16.gmra.mxu1 %vm1553_vm15, %v11538_v23  ;;  %12738 = vmatmul.mubr.msk.bf16.gmra.mxu0 %vm1553_vm15, %v13317_v35  ;;  %v2908_v23 = vrot.slane %v14337_v59, 5  ;;  %v11613_v35 = vrot.slane %v3767_v63, 9  ;;  %v2769_v59 = vld [vmem:[#allocation2 + $0xb4] sm:$0xe] }
 0x11b   : > { %12703 = vmatprep.mubr.msk.bf16.mxu1 %vm1553_vm15, %v11539_v36  ;;  %12741 = vmatprep.mubr.msk.bf16.mxu0 %vm1553_vm15, %v13318_v30  ;;  %v3835_v36 = vrot.slane %v3833_v47, 4  ;;  %v2912_v30 = vrot.slane %v14345_v52, 5  ;;  %v11529_v54 = vrot.slane %v2769_v59, 9  ;;  %v2915_v52 = vrot.slane %v14351_v37, 5  ;;  %v3773_v59 = vld [vmem:[#allocation2 + $0x54] sm:$0xe] }
 0x11c   : > { %v2909_v9 = vsel %vm14377_vm8, %v2907_v58, %v2908_v23  ;;  %v3834_v38 = vsel %vm14377_vm8, %v11613_v35, %v3833_v47  ;;  %v3861_v47 = vrot.slane %v13397_v45, 5  ;;  %v5127_v23 = vsel %vm1602_vm0, %v14455_v44, 0 }
 0x11d   : > { %v3837_v32 = vsel %vm14377_vm8, %v3835_v36, %v3836_v22  ;;  %v2914_v57 = vrot.slane %v2912_v30, 4  ;;  %v2913_v3 = vsel %vm14377_vm8, %v11529_v54, %v2912_v30  ;;  %v3771_v22 = vld [vmem:[#allocation2 + $0x3c] sm:$0xe]  ;;  %v3855_v35 = vsel %vm14377_vm8, %v11616_v14, %v3854_v12  ;;  %v13409_v14 = vld [vmem:[#allocation2 + $0x80] sm:$0x1] }
 0x11e   : > { %v11630_v41 = vcombine.low %v3834_v38, %v3837_v32  ;;  %v11617_v16 = vrot.slane %v3771_v22, 9  ;;  %v3863_v26 = vrot.slane %v3861_v47, 4  ;;  %v3875_v44 = vrot.slane %v13401_v56, 5  ;;  %v13402_v32 = vld [vmem:[#allocation2 + $0x50] sm:$0x1]  ;;  %v14589_v22 = vpop.f32.mrf.mxu1 }
 0x11f   : > { %v2916_v37 = vsel %vm14377_vm8, %v2914_v57, %v2915_v52  ;;  %v3871_v27 = vrot.slane %v13402_v32, 5  ;;  %v11619_v40 = vrot.slane %v3773_v59, 9  ;;  %v14567_v52 = vld [vmem:[%s18856_s1 + $0x10] sm:$0x3]  ;;  %v3774_v57 = vld [vmem:[#allocation2 + $0x60] sm:$0xe] }
 0x120   : > { %v11546_v63 = vcombine.low %v2913_v3, %v2916_v37  ;;  %v3896_v3 = vrot.slane %v13406_v0, 5  ;;  %v13407_v37 = vld [vmem:[#allocation2 + $0x74] sm:$0x1]  ;;  %v11620_v49 = vrot.slane %v3774_v57, 9  ;;  %18948 = vst [vmem:[#allocation25_spill] sm:$0xff] %v14589_v22  ;;  %v13327_v22 = vld [vmem:[#allocation2 + $0x3c] sm:$0xff]  }
 0x121   : > { %v13412_v59 = vld [vmem:[#allocation2 + $0x8c] sm:$0x1]  ;;  %v4598_v0 = vld [vmem:[#allocation2 + $0x20] sm:$0x1] }
 0x122   : > { %12704 = vmatmul.mubr.msk.bf16.gmra.mxu1 %vm1553_vm15, %v11540_v24  ;;  %12742 = vmatmul.mubr.msk.bf16.gmra.mxu0 %vm1553_vm15, %v13319_v1  ;;  %v13323_v24 = vld [vmem:[#allocation2 + $0xc0] sm:$0xff]   ;;  %v11614_v1 = vrot.slane %v3768_v51, 9  ;;  %v4401_v51 = vsel %vm1602_vm0, %v14418_v46, 0 }
 0x123   : > { %12707 = vmatprep.mubr.msk.bf16.mxu1 %vm1553_vm15, %v11541_v48  ;;  %12745 = vmatprep.mubr.msk.bf16.mxu0 %vm1553_vm15, %v13320_v33  ;;  %v11545_v48 = vcombine.low %v2906_v55, %v2909_v9  ;;  %v11615_v33 = vrot.slane %v3769_v15, 9  ;;  %v3862_v55 = vsel %vm14377_vm8, %v11617_v16, %v3861_v47  ;;  %v11618_v9 = vrot.slane %v3772_v6, 9  ;;  %v13404_v46 = vld [vmem:[#allocation2 + $0x64] sm:$0xf]  ;;  %v13411_v6 = vld [vmem:[#allocation2 + $0x94] sm:$0xf] }
 0x124   : > { %v3841_v62 = vsel %vm14377_vm8, %v11614_v1, %v3840_v4  ;;  %v3868_v4 = vrot.slane %v13400_v43, 5  ;;  %v3877_v15 = vrot.slane %v3875_v44, 4  ;;  %v3777_v16 = vld [vmem:[#allocation2 + $0x84] sm:$0xe]  ;;  %v3910_v56 = vrot.slane %v13411_v6, 5 }
 0x125   : > { %v3848_v28 = vsel %vm14377_vm8, %v11615_v33, %v3847_v13  ;;  %v11631_v25 = vcombine.low %v3841_v62, %v3844_v42  ;;  %v14562_v13 = vpop.f32.mrf.mxu0  ;;  %v3892_v62 = vrot.slane %v13407_v37, 5 }
 0x126   : > { %v3870_v38 = vrot.slane %v3868_v4, 4  ;;  %18945 = vst [vmem:[#allocation22_spill] sm:$0xff] %v14562_v13  ;;  %v3869_v1 = vsel %vm14377_vm8, %v11618_v9, %v3868_v4  ;;  %v3778_v4 = vld [vmem:[#allocation2 + $0x90] sm:$0xe] }
 0x127   : > { %v14578_v33 = vpop.f32.mrf.mxu0 }
 0x128   : > { %18946 = vst [vmem:[#allocation23_spill] sm:$0xff] %v14578_v33 }
 0x12a   : > { %12708 = vmatmul.mubr.msk.bf16.gmra.mxu1 %vm1553_vm15, %v11542_v2  ;;  %12746 = vmatmul.mubr.msk.bf16.gmra.mxu0 %vm1553_vm15, %v13321_v7  ;;  %v11632_v2 = vcombine.low %v3848_v28, %v3851_v50  ;;  %v3856_v7 = vrot.slane %v3854_v12, 4  ;;  %v13408_v28 = vld [vmem:[#allocation2 + $0x68] sm:$0x1] }
 0x12b   : > { %12711 = vmatprep.mubr.msk.bf16.mxu1 %vm1553_vm15, %v11543_v39  ;;  %12749 = vmatprep.mubr.msk.bf16.mxu0 %vm1553_vm15, %v13322_v11  ;;  %v13398_v39 = vld [vmem:[#allocation2 + $0x38] sm:$0x1]  ;;  %v13399_v11 = vld [vmem:[#allocation2 + $0x44] sm:$0x1]  ;;  %v3885_v50 = vrot.slane %v13408_v28, 5 }
 0x12c   : > { %v3857_v17 = vrot.slane %v13398_v39, 5  ;;  %v3864_v58 = vrot.slane %v13399_v11, 5  ;;  %v13410_v39 = vld [vmem:[#allocation2 + $0x88] sm:$0xf]  ;;  %v13415_v28 = vld [vmem:[#allocation2 + $0xa4] sm:$0x1] }
 0x12e   : > { %v3858_v36 = vsel %vm14377_vm8, %v3856_v7, %v3857_v17  ;;  %v3899_v7 = vrot.slane %v13409_v14, 5  ;;  %v3903_v17 = vrot.slane %v13410_v39, 5 }
 0x12f   : > { %v11633_v30 = vcombine.low %v3855_v35, %v3858_v36 }
 0x132   : > { %12712 = vmatmul.mubr.msk.bf16.gmra.mxu1 %vm1553_vm15, %v11544_v8  ;;  %12750 = vmatmul.mubr.msk.bf16.gmra.mxu0 %vm1553_vm15, %v13323_v24  ;;  %v13403_v8 = vld [vmem:[#allocation2 + $0x5c] sm:$0x1]  ;;  %v3882_v24 = vrot.slane %v13404_v46, 5  ;;  %v13413_v46 = vld [vmem:[#allocation2 + $0x98] sm:$0x1] }
 0x133   : > { %12715 = vmatprep.mubr.msk.bf16.mxu1 %vm1553_vm15, %v11545_v48  ;;  %12789 = vmatprep.mubr.msk.bf16.mxu0 %vm1553_vm15, %v11630_v41  ;;  %v3878_v54 = vrot.slane %v13403_v8, 5  ;;  %v3872_v48 = vsel %vm14377_vm8, %v3870_v38, %v3871_v27  ;;  %v13405_v41 = vld [vmem:[#allocation2 + $0x70] sm:$0xf] }
 0x134   : > { %v3889_v10 = vrot.slane %v13405_v41, 5  ;;  %v11635_v42 = vcombine.low %v3869_v1, %v3872_v48  ;;  %v3884_v12 = vrot.slane %v3882_v24, 4  ;;  %v14619_v48 = vld [vmem:[#allocation2 + $0xa8] sm:$0xe] }
 0x135   : > { %v3879_v60 = vsel %vm14377_vm8, %v3877_v15, %v3878_v54  ;;  %v3912_v54 = vrot.slane %v3910_v56, 4 }
 0x136   : > { %v3891_v47 = vrot.slane %v3889_v10, 4  ;;  %v3886_v11 = vsel %vm14377_vm8, %v3884_v12, %v3885_v50  ;;  %v3920_v50 = vrot.slane %v13415_v28, 5  ;;  %v18959_v28 = vld [vmem:[#allocation19_spill] sm:$0xff] }
 0x13a   : > { %12716 = vmatmul.mubr.msk.bf16.gmra.mxu1 %vm1553_vm15, %v11546_v63  ;;  %12790 = vmatmul.mubr.msk.bf16.vlgmr.msra.gmra.mxu0 %vm1553_vm15, %v11631_v25  ;;  %v11622_v63 = vrot.slane %v3776_v29, 9  ;;  %v14587_v25 = vpop.f32.mrf.mxu0  ;;  %v4599_v29 = vld [vmem:[#allocation2 + $0x24] sm:$0xf] }
 0x13b   : > { %12755 = vmatprep.mubr.msk.bf16.mxu1 %vm1553_vm15, %v13752_v31  ;;  %12793 = vmatprep.mubr.msk.bf16.mxu0 %vm1553_vm15, %v11632_v2  ;;  %v3865_v31 = vsel %vm14377_vm8, %v3863_v26, %v3864_v58  ;;  %18947 = vst [vmem:[#allocation24_spill] sm:$0xff] %v14587_v25  ;;  %v3898_v2 = vrot.slane %v3896_v3, 4  ;;  %v3883_v26 = vsel %vm14377_vm8, %v11620_v49, %v3882_v24  ;;  %v4596_v58 = vld [vmem:[#allocation2 + $0x18] sm:$0xf]  ;;  %v3913_v24 = vrot.slane %v13413_v46, 5  ;;  %v18953_v49 = vld [vmem:[#allocation15_spill] sm:$0xff] }
 0x13c   : > { %12856 = vmatpush3.bf16.msra.mxu0 %v5127_v23  ;;  %v11634_v20 = vcombine.low %v3862_v55, %v3865_v31  ;;  %v4597_v23 = vld [vmem:[#allocation2 + $0x1c] sm:$0xf]  ;;  %v14607_v36 = vsel %vm14377_vm8, %v11622_v63, %v3896_v3  ;;  %v14609_v43 = vpop.f32.mrf.mxu0  ;;  %v11623_v55 = vrot.slane %v3777_v16, 9  ;;  %v3905_v31 = vrot.slane %v3903_v17, 4  ;;  %v4600_v63 = vld [vmem:[#allocation2 + $0x28] sm:$0xf] }
 0x13d   : > { %18949 = vst [vmem:[#allocation26_spill] sm:$0xff] %v14609_v43  ;;  %v4645_v9 = vshrl.u32 %v4596_v58, 16  ;;  %v4648_v38 = vshll.u32 %v4596_v58, 16  ;;  %v4654_v32 = vshll.u32 %v4597_v23, 16  ;;  %v4658_v27 = vshrl.u32 %v4597_v23, 16 }
 0x13e   : > { %v14617_v8 = vpop.f32.mrf.mxu0  ;;  %v14652_v39 = vsel %vm14377_vm8, %v3912_v54, %v3913_v24  ;;  %v3781_v16 = vld [vmem:[#allocation2 + $0xb4] sm:$0xe]  ;;  %v3782_v23 = vld [vmem:[#allocation2 + $0xc0] sm:$0xe]  ;;  %v4669_v6 = vshrl.u32 %v4599_v29, 16 }
 0x13f   : > { %18951 = vst [vmem:[#allocation28_spill] sm:$0xff] %v14617_v8  ;;  %v4647_v3 = vrot.slane %v4645_v9, 4  ;;  %v4650_v37 = vrot.slane %v4648_v38, 5  ;;  %v13419_v38 = vld [vmem:[#allocation2 + $0xb0] sm:$0x1]  ;;  %v11628_v46 = vrot.slane %v3782_v23, 9 }
 0x140   : > { %v13421_v24 = vld [vmem:[#allocation2 + $0xc8] sm:$0x1]  ;;  %v14709_v23 = vld [vmem:[#allocation2 + $0x34] sm:$0xf]  ;;  %v14963_v25 = vld [vmem:[#allocation2 + $0x8c] sm:$0x1] }
 0x141   : > { %v491_v43 = vld [vmem:[#allocation2 + $0xd4] sm:$0x1]  ;;  %19000 = vst [vmem:[#allocation46_spill] sm:$0xff] %v14963_v25 }
 0x142   : > { %12756 = vmatmul.mubr.msk.bf16.vlgmr.msra.gmra.mxu1 %vm1553_vm15, %v13789_v19  ;;  %12794 = vmatmul.mubr.msk.bf16.gmra.mxu0 %vm1553_vm15, %v11633_v30  ;;  %v3876_v19 = vsel %vm14377_vm8, %v11619_v40, %v3875_v44  ;;  %v14611_v44 = vpop.f32.mrf.mxu1  ;;  %v3906_v30 = vrot.slane %v13412_v59, 5  ;;  %v11624_v40 = vrot.slane %v3778_v4, 9  ;;  %v4664_v4 = vshll.u32 %v4598_v0, 16 }
 0x143   : > { %12822 = vmatpush3.bf16.msra.mxu1 %v4401_v51  ;;  %12759 = vmatprep.mubr.msk.bf16.mxu1 %vm1553_vm15, %v13864_v18  ;;  %v3775_v18 = vld [vmem:[#allocation2 + $0x6c] sm:$0xe]  ;;  %v11636_v61 = vcombine.low %v3876_v19, %v3879_v60  ;;  %18950 = vst [vmem:[#allocation27_spill] sm:$0xff] %v14611_v44  ;;  %v3779_v51 = vld [vmem:[#allocation2 + $0x9c] sm:$0xe]  ;;  %v4678_v59 = vshll.u32 %v4600_v63, 16 }
 0x144   : > { %12797 = vmatprep.mubr.msk.bf16.mxu0 %vm1553_vm15, %v11634_v20  ;;  %13241 = vmatprep.subr.msk.bf16.mxu1 %vm1602_vm0, %v14567_v52  ;;  %v11621_v45 = vrot.slane %v3775_v18, 9  ;;  %v11637_v20 = vcombine.low %v3883_v26, %v3886_v11  ;;  %v11625_v1 = vrot.slane %v3779_v51, 9  ;;  %v14623_v41 = vpop.f32.mrf.mxu1  ;;  %v14631_v19 = vsel %vm14377_vm8, %v3905_v31, %v3906_v30  ;;  %v13414_v60 = vld [vmem:[#allocation2 + $0xa0] sm:$0xf]  ;;  %v13417_v26 = vld [vmem:[#allocation2 + $0xb8] sm:$0xf] }
 0x145   : > { %18952 = vst [vmem:[#allocation29_spill] sm:$0xff] %v14623_v41  ;;  %v3917_v18 = vrot.slane %v13414_v60, 5  ;;  %v14640_v12 = vsel %vm14377_vm8, %v11624_v40, %v3910_v56  ;;  %v3931_v11 = vrot.slane %v13417_v26, 5  ;;  %v4672_v56 = vshll.u32 %v4599_v29, 16  ;;  %v14665_v60 = vld [vmem:[#allocation2 + $0x2c] sm:$0x1] }
 0x146   : > { %v3890_v35 = vsel %vm14377_vm8, %v11621_v45, %v3889_v10  ;;  %v14627_v10 = vsel %vm14377_vm8, %v11623_v55, %v3903_v17  ;;  %v13416_v45 = vld [vmem:[#allocation2 + $0xac] sm:$0xf]  ;;  %v14658_v58 = vpop.f32.mrf.mxu1  ;;  %v4651_v55 = vor.u32 %v4650_v37, %v4647_v3  ;;  %v4682_v30 = vshrl.u32 %v4600_v63, 16 }
 0x147   : > { %v11640_v14 = vcombine.low %v14627_v10, %v14631_v19  ;;  %v14656_v17 = vsel %vm14377_vm8, %v11625_v1, %v3917_v18  ;;  %v3919_v51 = vrot.slane %v3917_v18, 4  ;;  %v3933_v40 = vrot.slane %v3931_v11, 4 }
 0x148   : > { %v3941_v1 = vrot.slane %v13421_v24, 5  ;;  %v4666_v19 = vrot.slane %v4664_v4, 5  ;;  %v4671_v29 = vrot.slane %v4669_v6, 4  ;;  %v4674_v18 = vrot.slane %v4672_v56, 5  ;;  %v14746_v24 = vld [vmem:[#allocation2 + $0x4c] sm:$0xf] }
 0x149   : > { %v4652_v0 = vrot.slane %v4651_v55, 4  ;;  %v14667_v37 = vrot.slane %v4678_v59, 5  ;;  %v11641_v56 = vcombine.low %v14640_v12, %v14652_v39  ;;  %v4702_v12 = vshll.u32 %v14709_v23, 16 }
 0x14a   : > { %12760 = vmatmul.mubr.msk.bf16.gmra.mxu1 %vm1553_vm15, %v13923_v34  ;;  %12798 = vmatmul.mubr.msk.bf16.gmra.mxu0 %vm1553_vm15, %v11635_v42  ;;  %v3893_v34 = vsel %vm14377_vm8, %v3891_v47, %v3892_v62  ;;  %v14633_v62 = vrot.slane %v4654_v32, 5  ;;  %v4660_v42 = vrot.slane %v4658_v27, 4  ;;  %v3924_v47 = vrot.slane %v13416_v45, 5 }
 0x14b   : > { %12763 = vmatprep.mubr.msk.bf16.mxu1 %vm1553_vm15, %v13958_v21  ;;  %12801 = vmatprep.mubr.msk.bf16.mxu0 %vm1553_vm15, %v11636_v61  ;;  %v14615_v21 = vsel %vm14377_vm8, %v3898_v2, %v3899_v7  ;;  %v11638_v15 = vcombine.low %v3890_v35, %v3893_v34  ;;  %v11626_v61 = vrot.slane %v14619_v48, 9  ;;  %v18954_v2 = vld [vmem:[#allocation17_spill] sm:$0xff]  ;;  %v14648_v7 = vpop.f32.mrf.mxu0  ;;  %v13418_v35 = vld [vmem:[#allocation2 + $0xc4] sm:$0xf]  ;;  %v3927_v32 = vrot.slane %v13419_v38, 5  ;;  %v14663_v48 = vpop.f32.mrf.mxu1 }
 0x14c   : > { %v11639_v57 = vcombine.low %v14607_v36, %v14615_v21  ;;  %18955 = vst [vmem:[#allocation15_spill] sm:$0xff] %v14648_v7  ;;  %18956 = vst [vmem:[#allocation17_spill] sm:$0xff] %v14658_v58  ;;  %v3938_v34 = vrot.slane %v13418_v35, 5  ;;  %v4661_v31 = vor.u32 %v4660_v42, %v14633_v62  ;;  %v3926_v9 = vrot.slane %v3924_v47, 4  ;;  %v4614_v38 = vld [vmem:[#allocation2 + $0x60] sm:$0xf] }
 0x14d   : > { %v11627_v27 = vrot.slane %v3781_v16, 9  ;;  %18958 = vst [vmem:[#allocation31_spill] sm:$0xff] %v14663_v48  ;;  %v4684_v42 = vrot.slane %v4682_v30, 4  ;;  %v3921_v45 = vsel %vm14377_vm8, %v3919_v51, %v3920_v50  ;;  %v14679_v63 = vsel %vm14377_vm8, %v11626_v61, %v3924_v47  ;;  %v18960_v16 = vld [vmem:[#allocation10_spill] sm:$0xff]  ;;  %v14703_v61 = vpop.f32.mrf.mxu1 }
 0x14e   : > { %v3940_v10 = vrot.slane %v3938_v34, 4  ;;  %v4662_v3 = vrot.slane %v4661_v31, 4  ;;  %v4688_v50 = vshll.u32 %v14665_v60, 16  ;;  %18962 = vst [vmem:[#allocation10_spill] sm:$0xff] %v14703_v61  ;;  %v4657_v4 = vsel %vm13739_vm1, %v4652_v0, %v14633_v62  ;;  %v14724_v30 = vld [vmem:[#allocation2 + $0x38] sm:$0x1] }
 0x14f   : > { %v14692_v36 = vsel %vm14377_vm8, %v11627_v27, %v3931_v11  ;;  %v4685_v6 = vor.u32 %v4684_v42, %v14667_v37  ;;  %v11642_v55 = vcombine.low %v14656_v17, %v3921_v45  ;;  %v4605_v51 = vld [vmem:[#allocation2 + $0x3c] sm:$0xf]  ;;  %v14726_v62 = vld [vmem:[#allocation2 + $0x40] sm:$0xf]  ;;  %v4706_v39 = vshrl.u32 %v14709_v23, 16  ;;  %v14736_v27 = vpop.f32.mrf.mxu1 }
 0x150   : > { %v14707_v47 = vsel %vm14377_vm8, %v3940_v10, %v3941_v1  ;;  %v4608_v17 = vld [vmem:[#allocation2 + $0x48] sm:$0xf]  ;;  %18964 = vst [vmem:[#allocation33_spill] sm:$0xff] %v14736_v27  ;;  %v18965_v0 = vld [vmem:[#allocation11_spill] sm:$0xff]  ;;  %v4730_v42 = vshrl.u32 %v14726_v62, 16 }
 0x151   : > { %v14748_v1 = vrot.slane %v4685_v6, 4  ;;  %v14756_v45 = vld [vmem:[#allocation2 + $0x58] sm:$0xf]  ;;  %v14781_v6 = vld [vmem:[#allocation2 + $0x64] sm:$0xf] }
 0x152   : > { %12764 = vmatmul.mubr.msk.bf16.gmra.mxu1 %vm1553_vm15, %v18953_v49  ;;  %12802 = vmatmul.mubr.msk.bf16.gmra.mxu0 %vm1553_vm15, %v11637_v20  ;;  %v14661_v20 = vpop.f32.mrf.mxu0  ;;  %v4602_v49 = vld [vmem:[#allocation2 + $0x30] sm:$0xf]  ;;  %v4732_v59 = vrot.slane %v4730_v42, 4  ;;  %v435_v27 = vld [vmem:[#allocation2 + $0xcc] sm:$0x1] }
 0x153   : > { %12767 = vmatprep.mubr.msk.bf16.mxu1 %vm1553_vm15, %v18954_v2  ;;  %12805 = vmatprep.mubr.msk.bf16.mxu0 %vm1553_vm15, %v11638_v15  ;;  %18957 = vst [vmem:[#allocation30_spill] sm:$0xff] %v14661_v20  ;;  %v13420_v15 = vld [vmem:[#allocation2 + $0xbc] sm:$0x1]  ;;  %v14683_v2 = vsel %vm14377_vm8, %v3926_v9, %v3927_v32  ;;  %v4693_v11 = vshrl.u32 %v4602_v49, 16  ;;  %v4696_v35 = vshll.u32 %v4602_v49, 16  ;;  %v14732_v32 = vrot.slane %v4688_v50, 5 }
 0x154   : > { %v3934_v54 = vrot.slane %v13420_v15, 5  ;;  %v14688_v26 = vpop.f32.mrf.mxu0  ;;  %v4741_v49 = vshrl.u32 %v4608_v17, 16  ;;  %v18971_v20 = vld [vmem:[#allocation13_spill] sm:$0xff] }
 0x155   : > { %18961 = vst [vmem:[#allocation19_spill] sm:$0xff] %v14688_v26 }
 0x156   : > { %v14696_v21 = vsel %vm14377_vm8, %v3933_v40, %v3934_v54  ;;  %v14728_v9 = vpop.f32.mrf.mxu0  ;;  %v14742_v54 = vrot.slane %v4693_v11, 4  ;;  %v4708_v11 = vrot.slane %v4706_v39, 4  ;;  %v4743_v31 = vrot.slane %v4741_v49, 4 }
 0x157   : > { %18963 = vst [vmem:[#allocation32_spill] sm:$0xff] %v14728_v9 }
 0x158   : > { %v14761_v50 = vpop.f32.mrf.mxu0 }
 0x159   : > { %18967 = vst [vmem:[#allocation11_spill] sm:$0xff] %v14761_v50 }
 0x15a   : > { %12768 = vmatmul.mubr.msk.bf16.gmra.mxu1 %vm1553_vm15, %v18959_v28  ;;  %12806 = vmatmul.mubr.msk.bf16.gmra.mxu0 %vm1553_vm15, %v11639_v57  ;;  %v14700_v57 = vsel %vm14377_vm8, %v11628_v46, %v3938_v34  ;;  %v4667_v34 = vsel %vm13739_vm1, %v4662_v3, %v4666_v19  ;;  %v14744_v46 = vrot.slane %v4696_v35, 5  ;;  %v4717_v19 = vshrl.u32 %v4605_v51, 16  ;;  %v14783_v9 = vpop.f32.mrf.mxu0 }
 0x15b   : > { %12771 = vmatprep.mubr.msk.bf16.mxu1 %vm1553_vm15, %v18960_v16  ;;  %12809 = vmatprep.mubr.msk.bf16.mxu0 %vm1553_vm15, %v11640_v14  ;;  %v4675_v14 = vor.u32 %v4674_v18, %v4671_v29  ;;  %v14738_v40 = vcombine.low %v4657_v4, %v4667_v34  ;;  %v4720_v29 = vshll.u32 %v4605_v51, 16  ;;  %v4611_v18 = vld [vmem:[#allocation2 + $0x54] sm:$0xf]  ;;  %v4726_v3 = vshll.u32 %v14726_v62, 16  ;;  %v18966_v16 = vld [vmem:[#allocation12_spill] sm:$0xff]  ;;  %v14767_v34 = vpop.f32.mrf.mxu1  ;;  %18969 = vst [vmem:[#allocation34_spill] sm:$0xff] %v14783_v9 }
 0x15c   : > { %v4744_v28 = vshll.u32 %v4608_v17, 16  ;;  %v4750_v35 = vshll.u32 %v14746_v24, 16  ;;  %v4754_v4 = vshrl.u32 %v14746_v24, 16  ;;  %18968 = vst [vmem:[#allocation12_spill] sm:$0xff] %v14767_v34  ;;  %v4768_v51 = vshll.u32 %v4611_v18, 16 }
 0x15d   : > { %v14740_v15 = vrot.slane %v4675_v14, 4  ;;  %v14763_v14 = vrot.slane %v4702_v12, 5  ;;  %v14775_v17 = vld [vmem:[#allocation2 + $0x44] sm:$0x1]  ;;  %v4719_v12 = vrot.slane %v4717_v19, 4  ;;  %v4722_v39 = vrot.slane %v4720_v29, 5  ;;  %v14796_v42 = vpop.f32.mrf.mxu1 }
 0x15e   : > { %v14779_v10 = vrot.slane %v4726_v3, 5  ;;  %v4746_v50 = vrot.slane %v4744_v28, 5  ;;  %v14790_v19 = vld [vmem:[#allocation2 + $0x50] sm:$0x1]  ;;  %v14792_v29 = vrot.slane %v4750_v35, 5  ;;  %18970 = vst [vmem:[#allocation35_spill] sm:$0xff] %v14796_v42  ;;  %v18972_v35 = vcombine.low %v14679_v63, %v14683_v2 }
 0x15f   : > { %v14794_v3 = vld [vmem:[#allocation2 + $0x5c] sm:$0x1]  ;;  %v4770_v28 = vrot.slane %v4768_v51, 5  ;;  %v4789_v34 = vshrl.u32 %v4614_v38, 16  ;;  %v4792_v9 = vshll.u32 %v4614_v38, 16  ;;  %v4736_v38 = vshll.u32 %v14775_v17, 16 }
 0x160   : > { %v4747_v51 = vor.u32 %v4746_v50, %v4743_v31  ;;  %v18975_v42 = vcombine.low %v14692_v36, %v14696_v21  ;;  %v4760_v63 = vshll.u32 %v14790_v19, 16  ;;  %v4784_v2 = vshll.u32 %v14794_v3, 16  ;;  %v14823_v31 = vpop.f32.mrf.mxu1  ;;  %v4617_v21 = vld [vmem:[#allocation2 + $0x6c] sm:$0xf] }
 0x161   : > { %v18978_v50 = vshll.u32 %v14724_v30, 16  ;;  %v4794_v36 = vrot.slane %v4792_v9, 5  ;;  %v4738_v58 = vrot.slane %v4736_v38, 5  ;;  %v4816_v38 = vshll.u32 %v4617_v21, 16 }
 0x162   : > { %12772 = vmatmul.mubr.msk.bf16.gmra.mxu1 %vm1553_vm15, %v18965_v0  ;;  %12810 = vmatmul.mubr.msk.bf16.gmra.mxu0 %vm1553_vm15, %v11641_v56  ;;  %v4699_v56 = vor.u32 %v14744_v46, %v14742_v54  ;;  %v4774_v0 = vshll.u32 %v14756_v45, 16  ;;  %v4709_v46 = vor.u32 %v4708_v11, %v14763_v14  ;;  %v4798_v54 = vshll.u32 %v14781_v6, 16 }
 0x163   : > { %12775 = vmatprep.mubr.msk.bf16.mxu1 %vm1553_vm15, %v18966_v16  ;;  %12813 = vmatprep.mubr.msk.bf16.mxu0 %vm1553_vm15, %v11642_v55  ;;  %v4765_v55 = vshrl.u32 %v4611_v18, 16  ;;  %v4778_v16 = vshrl.u32 %v14756_v45, 16  ;;  %v4756_v18 = vrot.slane %v4754_v4, 4  ;;  %v4802_v11 = vshrl.u32 %v14781_v6, 16 }
 0x164   : > { %v14798_v61 = vrot.slane %v4774_v0, 5  ;;  %v4723_v4 = vor.u32 %v4722_v39, %v4719_v12  ;;  %v18973_v0 = vld [vmem:[#allocation14_spill] sm:$0xff]  ;;  %v436_v12 = vsel %vm13619_vm3, 0, %v435_v27  ;;  %v14827_v39 = vrot.slane %v18978_v50, 5 }
 0x165   : > { %v4767_v49 = vrot.slane %v4765_v55, 4  ;;  %v4780_v26 = vrot.slane %v4778_v16, 4  ;;  %v4733_v55 = vor.u32 %v4732_v59, %v14779_v10  ;;  %v14812_v16 = vpop.f32.mrf.mxu0  ;;  %18977 = vst [vmem:[#allocation14_spill] sm:$0xff] %v14823_v31  ;;  %437 = vst [vmem:[#allocation2 + $0xcc] sm:$0x1] %v436_v12  ;;  %v14832_v7 = vrot.slane %v4798_v54, 5 }
 0x166   : > { %18974 = vst [vmem:[#allocation13_spill] sm:$0xff] %v14812_v16  ;;  %v14830_v16 = vld [vmem:[#allocation2 + $0x68] sm:$0x1]  ;;  %v4804_v48 = vrot.slane %v4802_v11, 4  ;;  %v4710_v27 = vrot.slane %v4709_v46, 4  ;;  %v4724_v8 = vrot.slane %v4723_v4, 4 }
 0x167   : > { %v4734_v31 = vrot.slane %v4733_v55, 4  ;;  %v4762_v9 = vrot.slane %v4760_v63, 5  ;;  %v14836_v12 = vld [vmem:[#allocation2 + $0x70] sm:$0xf]  ;;  %v4808_v54 = vshll.u32 %v14830_v16, 16  ;;  %v4813_v11 = vshrl.u32 %v4617_v21, 16 }
 0x168   : > { %v4805_v55 = vor.u32 %v4804_v48, %v14832_v7  ;;  %v18984_v63 = vcombine.low %v14700_v57, %v14707_v47  ;;  %v4715_v48 = vsel %vm13739_vm1, %v4710_v27, %v14827_v39  ;;  %v4729_v57 = vsel %vm13739_vm1, %v4724_v8, %v14779_v10 }
 0x169   : > { %v4739_v47 = vsel %vm13739_vm1, %v4734_v31, %v4738_v58  ;;  %v4815_v8 = vrot.slane %v4813_v11, 4  ;;  %v4818_v27 = vrot.slane %v4816_v38, 5  ;;  %v4623_v38 = vld [vmem:[#allocation2 + $0x84] sm:$0xf] }
 0x16a   : > { %12776 = vmatmul.mubr.msk.bf16.gmra.mxu1 %vm1553_vm15, %v18971_v20  ;;  %12814 = vmatmul.mubr.msk.bf16.gmra.mxu0 %vm1553_vm15, %v18972_v35  ;;  %v4757_v20 = vor.u32 %v4756_v18, %v14792_v29  ;;  %v4771_v35 = vor.u32 %v4770_v28, %v4767_v49  ;;  %v4781_v18 = vor.u32 %v4780_v26, %v14798_v61  ;;  %v4748_v49 = vrot.slane %v4747_v51, 4 }
 0x16b   : > { %12779 = vmatprep.mubr.msk.bf16.mxu1 %vm1553_vm15, %v18973_v0  ;;  %12817 = vmatprep.mubr.msk.bf16.mxu0 %vm1553_vm15, %v18975_v42  ;;  %v4791_v0 = vrot.slane %v4789_v34, 4  ;;  %v4700_v42 = vrot.slane %v4699_v56, 4  ;;  %v4786_v28 = vrot.slane %v4784_v2, 5  ;;  %v14838_v56 = vpop.f32.mrf.mxu1  ;;  %v492_v51 = vsel %vm13627_vm5, 0, %v491_v43 }
 0x16c   : > { %v4758_v34 = vrot.slane %v4757_v20, 4  ;;  %18980 = vst [vmem:[#allocation37_spill] sm:$0xff] %v14838_v56  ;;  %v4772_v26 = vrot.slane %v4771_v35, 4  ;;  %v4782_v4 = vrot.slane %v4781_v18, 4  ;;  %v18983_v20 = vld [vmem:[#allocation16_spill] sm:$0xff]  ;;  %v4822_v35 = vshll.u32 %v14836_v12, 16 }
 0x16d   : > { %v4795_v41 = vor.u32 %v4794_v36, %v4791_v0  ;;  %v4705_v2 = vsel %vm13739_vm1, %v4700_v42, %v14763_v14  ;;  %v4826_v43 = vshrl.u32 %v14836_v12, 16  ;;  %493 = vst [vmem:[#allocation2 + $0xd4] sm:$0x1] %v492_v51  ;;  %v18985_v0 = vld [vmem:[#allocation18_spill] sm:$0xff]  ;;  %v4753_v14 = vsel %vm13739_vm1, %v4748_v49, %v14792_v29  ;;  %v14874_v39 = vpop.f32.mrf.mxu1  ;;  %v14881_v18 = vld [vmem:[#allocation2 + $0x74] sm:$0x1] }
 0x16e   : > { %18987 = vst [vmem:[#allocation16_spill] sm:$0xff] %v14874_v39  ;;  %v4763_v21 = vsel %vm13739_vm1, %v4758_v34, %v4762_v9  ;;  %v4810_v42 = vrot.slane %v4808_v54, 5  ;;  %18988 = vst [vmem:[#allocation18_spill] sm:$0xff] %v14881_v18  ;;  %v4787_v58 = vsel %vm13739_vm1, %v4782_v4, %v4786_v28  ;;  %v4806_v29 = vrot.slane %v4805_v55, 4  ;;  %v13324_v54 = vld [vmem:[#allocation2 + $0x18] sm:$0xff]  }
 0x16f   : > { %v14834_v50 = vpop.f32.mrf.mxu0  ;;  %v4796_v31 = vrot.slane %v4795_v41, 4  ;;  %v14897_v34 = vrot.slane %v4822_v35, 5  ;;  %v4828_v9 = vrot.slane %v4826_v43, 4  ;;  %v14901_v41 = vsel %vm1602_vm0, %v14567_v52, 0  ;;  %v14903_v4 = vld [vmem:[#allocation2 + $0x7c] sm:$0xf] }
 0x170   : > { %18979 = vst [vmem:[#allocation36_spill] sm:$0xff] %v14834_v50  ;;  %v18990_v50 = vsel %vm13739_vm1, %v14748_v1, %v14732_v32  ;;  %v11698_v11 = vcombine.low %v4705_v2, %v4715_v48  ;;  %v14907_v1 = vcombine.low %v4729_v57, %v4739_v47  ;;  %v14909_v55 = vcombine.low %v4753_v14, %v4763_v21  ;;  %v14914_v51 = vld [vmem:[#allocation2 + $0x88] sm:$0xf]  ;;  %v4626_v35 = vld [vmem:[#allocation2 + $0x90] sm:$0xf] }
 0x171   : > { %v14841_v46 = vpop.f32.mrf.mxu0  ;;  %18993 = vst [vmem:[#allocation41_spill] sm:$0xff] %v14914_v51  ;;  %v4801_v52 = vsel %vm13739_vm1, %v4796_v31, %v14832_v7  ;;  %v4819_v2 = vor.u32 %v4818_v27, %v4815_v8  ;;  %v18994_v43 = vld [vmem:[#allocation20_spill] sm:$0xff]  ;;  %v4829_v57 = vor.u32 %v4828_v9, %v14897_v34  ;;  %v4846_v14 = vshll.u32 %v14903_v4, 16  ;;  %v14931_v21 = vld [vmem:[#allocation2 + $0x94] sm:$0xf] }
 0x172   : > { %18981 = vst [vmem:[#allocation38_spill] sm:$0xff] %v14841_v46  ;;  %12780 = vmatmul.mubr.msk.bf16.gmra.mxu1 %vm1553_vm15, %v18983_v20  ;;  %12818 = vmatmul.mubr.msk.bf16.gmra.mxu0 %vm1553_vm15, %v18984_v63  ;;  %v4811_v63 = vsel %vm13739_vm1, %v4806_v29, %v4810_v42  ;;  %v4850_v7 = vshrl.u32 %v14903_v4, 16  ;;  %18996 = vst [vmem:[#allocation42_spill] sm:$0xff] %v14931_v21  ;;  %v4861_v42 = vshrl.u32 %v4623_v38, 16  ;;  %v4864_v8 = vshll.u32 %v4623_v38, 16 }
 0x173   : > { %12783 = vmatprep.mubr.msk.bf16.mxu1 %vm1553_vm15, %v18985_v0  ;;  %v14862_v36 = vpop.f32.mrf.mxu0  ;;  %12857 = vmatprep.mubr.msk.bf16.mxu0 %vm1553_vm15, %v14738_v40  ;;  %v4777_v40 = vsel %vm13739_vm1, %v4772_v26, %v14798_v61  ;;  %v18991_v61 = vsel %vm13739_vm1, %v14740_v15, %v14667_v37  ;;  %v4620_v26 = vld [vmem:[#allocation2 + $0x78] sm:$0xf]  ;;  %v4832_v15 = vshll.u32 %v14881_v18, 16  ;;  %v4874_v31 = vshrl.u32 %v14914_v51, 16  ;;  %v15012_v18 = vld [vmem:[#allocation2 + $0xa4] sm:$0x1] }
 0x174   : > { %18986 = vst [vmem:[#allocation7_spill] sm:$0xff] %v14862_v36  ;;  %v11697_v49 = vcombine.low %v18991_v61, %v18990_v50  ;;  %v14911_v37 = vcombine.low %v4777_v40, %v4787_v58  ;;  %v4837_v48 = vshrl.u32 %v4620_v26, 16  ;;  %v4840_v47 = vshll.u32 %v4620_v26, 16  ;;  %19004 = vst [vmem:[#allocation50_spill] sm:$0xff] %v15012_v18 }
 0x175   : > { %v14883_v10 = vpop.f32.mrf.mxu0  ;;  %v4870_v58 = vshll.u32 %v14914_v51, 16  ;;  %v14941_v27 = vcombine.low %v4801_v52, %v4811_v63  ;;  %v14943_v50 = vrot.slane %v4832_v15, 5  ;;  %v4885_v61 = vshrl.u32 %v4626_v35, 16 }
 0x176   : > { %18989 = vst [vmem:[#allocation39_spill] sm:$0xff] %v14883_v10  ;;  %v14947_v26 = vrot.slane %v4819_v2, 4  ;;  %v4898_v38 = vshrl.u32 %v14931_v21, 16  ;;  %v14953_v52 = vrot.slane %v4829_v57, 4  ;;  %v4842_v15 = vrot.slane %v4840_v47, 5 }
 0x177   : > { %v12655_v28 = vpop.f32.mrf.mxu0  ;;  %v14955_v63 = vrot.slane %v4846_v14, 5  ;;  %v14959_v2 = vld [vmem:[#allocation2 + $0x80] sm:$0x1]  ;;  %v4866_v56 = vrot.slane %v4864_v8, 5  ;;  %v14961_v10 = vrot.slane %v4870_v58, 5  ;;  %v4876_v36 = vrot.slane %v4874_v31, 4 }
 0x178   : > { %v14905_v32 = vpop.f32.mrf.mxu1  ;;  %18999 = vst [vmem:[#allocation45_spill] sm:$0xff] %v14959_v2  ;;  %v4900_v58 = vrot.slane %v4898_v38, 4  ;;  %vm6963_vm0 = vcmask 1043456   ;;  %vm6914_vm5 = vcmask 64512  }
 0x179   : > { %18992 = vst [vmem:[#allocation40_spill] sm:$0xff] %v14905_v32  ;;  %v14916_v20 = vpop.f32.mrf.mxu0  ;;  %v13325_v32 = vld [vmem:[#allocation2 + $0x24] sm:$0xff]   ;;  %v4877_v38 = vor.u32 %v4876_v36, %v14961_v10 }
 0x17a   : > { %12784 = vmatmul.mubr.msk.bf16.gmra.mxu1 %vm1553_vm15, %v18994_v43  ;;  %v14925_v0 = vpop.f32.mrf.mxu1  ;;  %12858 = vmatmul.mubr.msk.bf16.vlgmr.msra.gmra.mxu0 %vm1553_vm15, %v11697_v49  ;;  %v4888_v49 = vshll.u32 %v4626_v35, 16  ;;  %v4629_v43 = vld [vmem:[#allocation2 + $0x9c] sm:$0xf]  ;;  %v4852_v35 = vrot.slane %v4850_v7, 4 }
 0x17b   : > { %18995 = vst [vmem:[#allocation20_spill] sm:$0xff] %v14925_v0  ;;  %12823 = vmatprep.mubr.msk.bf16.mxu1 %vm1553_vm15, %v13324_v54  ;;  %v14934_v40 = vpop.f32.mrf.mxu0  ;;  %12861 = vmatprep.mubr.msk.bf16.mxu0 %vm1553_vm15, %v11698_v11  ;;  %v4839_v54 = vrot.slane %v4837_v48, 4  ;;  %v4894_v11 = vshll.u32 %v14931_v21, 16  ;;  %v4863_v48 = vrot.slane %v4861_v42, 4  ;;  %v4909_v57 = vshrl.u32 %v4629_v43, 16 }
 0x17c   : > { %v14939_v29 = vpop.f32.mrf.mxu1  ;;  %v4890_v44 = vrot.slane %v4888_v49, 5  ;;  %v4912_v33 = vshll.u32 %v4629_v43, 16  ;;  %v14973_v42 = vld [vmem:[#allocation2 + $0x98] sm:$0x1]  ;;  %v4856_v49 = vshll.u32 %v14959_v2, 16  ;;  %v4878_v21 = vrot.slane %v4877_v38, 4 }
 0x17d   : > { %18997 = vst [vmem:[#allocation43_spill] sm:$0xff] %v14939_v29  ;;  %v14945_v9 = vpop.f32.mrf.mxu0  ;;  %v13326_v29 = vld [vmem:[#allocation2 + $0x30] sm:$0xff]   ;;  %19001 = vst [vmem:[#allocation47_spill] sm:$0xff] %v14973_v42  ;;  %v14975_v8 = vrot.slane %v4894_v11, 5  ;;  %v14986_v43 = vld [vmem:[#allocation2 + $0xa0] sm:$0xf]  ;;  %v4867_v11 = vor.u32 %v4866_v56, %v4863_v48 }
 0x17e   : > { %v14951_v0 = vpop.f32.mrf.mxu1  ;;  %19002 = vst [vmem:[#allocation48_spill] sm:$0xff] %v14986_v43  ;;  %v4914_v7 = vrot.slane %v4912_v33, 5  ;;  %v4918_v36 = vshll.u32 %v14986_v43, 16  ;;  %v4922_v48 = vshrl.u32 %v14986_v43, 16  ;;  %v4858_v59 = vrot.slane %v4856_v49, 5  ;;  %v13328_v33 = vld [vmem:[#allocation2 + $0x48] sm:$0xff]  }
 0x17f   : > { %18998 = vst [vmem:[#allocation44_spill] sm:$0xff] %v14951_v0  ;;  %v14957_v39 = vpop.f32.mrf.mxu0  ;;  %v4887_v0 = vrot.slane %v4885_v61, 4  ;;  %v4853_v61 = vor.u32 %v4852_v35, %v14955_v63  ;;  %v4904_v35 = vshll.u32 %v14973_v42, 16  ;;  %v4901_v56 = vor.u32 %v4900_v58, %v14975_v8 }
 0x180   : > { %v12621_v46 = vpop.f32.mrf.mxu1 }
 0x181   : > { %v14965_v47 = vadd.f32 %v12655_v28, %v12621_v46  ;;  %v14967_v14 = vpop.f32.mrf.mxu0  ;;  %v4835_v46 = vsel %vm13739_vm1, %v14953_v52, %v14943_v50  ;;  %v4843_v28 = vor.u32 %v4842_v15, %v4839_v54  ;;  %v4880_v50 = vshll.u32 %v14963_v25, 16  ;;  %v4632_v54 = vld [vmem:[#allocation2 + $0xa8] sm:$0xf]  ;;  %v15007_v25 = vld [vmem:[#allocation2 + $0xac] sm:$0xf] }
 0x182   : > { %12824 = vmatmul.mubr.msk.bf16.vlgmr.msra.gmra.mxu1 %vm1553_vm15, %v13325_v32  ;;  %v2335_v31 = vpop.f32.mrf.mxu1  ;;  %12862 = vmatmul.mubr.msk.bf16.gmra.mxu0 %vm1553_vm15, %v14907_v1  ;;  %v4891_v15 = vor.u32 %v4890_v44, %v4887_v0  ;;  %v4936_v44 = vshll.u32 %v4632_v54, 16  ;;  %19003 = vst [vmem:[#allocation49_spill] sm:$0xff] %v15007_v25  ;;  %v4906_v43 = vrot.slane %v4904_v35, 5 }
 0x183   : > { %12890 = vmatpush3.bf16.msra.mxu1 %v14901_v41  ;;  %v14990_v32 = vadd.f32 %v14916_v20, %v2335_v31  ;;  %12827 = vmatprep.mubr.msk.bf16.mxu1 %vm1553_vm15, %v13326_v29  ;;  %v12660_v1 = vpop.f32.mrf.mxu0  ;;  %v4911_v41 = vrot.slane %v4909_v57, 4  ;;  %v4844_v13 = vrot.slane %v4843_v28, 4  ;;  %v4882_v42 = vrot.slane %v4880_v50, 5 }
 0x184   : > { %v12622_v52 = vpop.f32.mrf.mxu1  ;;  %12865 = vmatprep.mubr.msk.bf16.mxu0 %vm1553_vm15, %v14909_v55  ;;  %v4933_v55 = vshrl.u32 %v4632_v54, 16  ;;  %v4892_v51 = vrot.slane %v4891_v15, 4  ;;  %v4902_v54 = vrot.slane %v4901_v56, 4  ;;  %v4938_v38 = vrot.slane %v4936_v44, 5 }
 0x185   : > { %v14999_v20 = vadd.f32 %v14934_v40, %v12622_v52  ;;  %v2646_v29 = vpop.f32.mrf.mxu0  ;;  %v4854_v40 = vrot.slane %v4853_v61, 4  ;;  %v4868_v52 = vrot.slane %v4867_v11, 4  ;;  %v4915_v2 = vor.u32 %v4914_v7, %v4911_v41 }
 0x186   : > { %v2338_v31 = vpop.f32.mrf.mxu1  ;;  %v4935_v11 = vrot.slane %v4933_v55, 4  ;;  %v4942_v7 = vshll.u32 %v15007_v25, 16  ;;  %v4849_v35 = vsel %vm13739_vm1, %v4844_v13, %v14955_v63  ;;  %v4897_v13 = vsel %vm13739_vm1, %v4892_v51, %v14975_v8 }
 0x187   : > { %v15005_v0 = vadd.f32 %v14945_v9, %v2338_v31  ;;  %v12663_v57 = vpop.f32.mrf.mxu0  ;;  %v15014_v9 = vrot.slane %v4918_v36, 5  ;;  %v4924_v31 = vrot.slane %v4922_v48, 4  ;;  %v4873_v56 = vsel %vm13739_vm1, %v4868_v52, %v14961_v10  ;;  %v15043_v48 = vld [vmem:[#allocation2 + $0xb0] sm:$0x1]  ;;  %v4635_v10 = vld [vmem:[#allocation2 + $0xb4] sm:$0xf] }
 0x188   : > { %v12625_v58 = vpop.f32.mrf.mxu1  ;;  %v4928_v36 = vshll.u32 %v15012_v18, 16  ;;  %19006 = vst [vmem:[#allocation51_spill] sm:$0xff] %v15043_v48  ;;  %v15054_v63 = vrot.slane %v4915_v2, 4  ;;  %v4939_v55 = vor.u32 %v4938_v38, %v4935_v11  ;;  %v15057_v44 = vrot.slane %v4942_v7, 5  ;;  %v13330_v52 = vld [vmem:[#allocation2 + $0x60] sm:$0xff]  }
 0x189   : > { %v15010_v28 = vadd.f32 %v14957_v39, %v12625_v58  ;;  %v2659_v49 = vpop.f32.mrf.mxu0  ;;  %v4946_v39 = vshrl.u32 %v15007_v25, 16  ;;  %v4638_v11 = vld [vmem:[#allocation2 + $0xc0] sm:$0xf]  ;;  %v4641_v25 = vld [vmem:[#allocation2 + $0xcc] sm:$0xf] }
 0x18a   : > { %12828 = vmatmul.mubr.msk.bf16.gmra.mxu1 %vm1553_vm15, %v13327_v22  ;;  %v2351_v61 = vpop.f32.mrf.mxu1  ;;  %12866 = vmatmul.mubr.msk.bf16.gmra.mxu0 %vm1553_vm15, %v14911_v37  ;;  %v19005_v22 = vsel %vm13739_vm1, %v14947_v26, %v14897_v34 }
 0x18b   : > { %v15022_v50 = vadd.f32 %v14967_v14, %v2351_v61  ;;  %12831 = vmatprep.mubr.msk.bf16.mxu1 %vm1553_vm15, %v13328_v33  ;;  %v12664_v15 = vpop.f32.mrf.mxu0  ;;  %12869 = vmatprep.mubr.msk.bf16.mxu0 %vm1553_vm15, %v14941_v27  ;;  %v11703_v37 = vcombine.low %v19005_v22, %v4835_v46  ;;  %v4859_v14 = vsel %vm13739_vm1, %v4854_v40, %v4858_v59  ;;  %v15059_v33 = vld [vmem:[#allocation2 + $0xb8] sm:$0xf]  ;;  %v4957_v61 = vshrl.u32 %v4635_v10, 16 }
 0x18c   : > { %v12626_v41 = vpop.f32.mrf.mxu1  ;;  %v4883_v27 = vsel %vm13739_vm1, %v4878_v21, %v4882_v42  ;;  %v4907_v59 = vsel %vm13739_vm1, %v4902_v54, %v4906_v43  ;;  %v13329_v21 = vld [vmem:[#allocation2 + $0x54] sm:$0xff]   ;;  %v4925_v42 = vor.u32 %v4924_v31, %v15014_v9  ;;  %19007 = vst [vmem:[#allocation52_spill] sm:$0xff] %v15059_v33  ;;  %v11704_v8 = vcombine.low %v4849_v35, %v4859_v14  ;;  %v15076_v35 = vld [vmem:[#allocation2 + $0xc4] sm:$0xf] }
 0x18d   : > { %v15045_v34 = vadd.f32 %v12660_v1, %v12626_v41  ;;  %v15047_v26 = vpop.f32.mrf.mxu0  ;;  %v4948_v1 = vrot.slane %v4946_v39, 4  ;;  %v4952_v43 = vshll.u32 %v15043_v48, 16  ;;  %v15064_v58 = vcombine.low %v4873_v56, %v4883_v27  ;;  %19009 = vst [vmem:[#allocation54_spill] sm:$0xff] %v15076_v35  ;;  %v4642_v48 = vld [vmem:[#allocation2 + $0xd0] sm:$0xf] }
 0x18e   : > { %v2354_v46 = vpop.f32.mrf.mxu1  ;;  %v15066_v54 = vrot.slane %v4928_v36, 5  ;;  %v4960_v31 = vshll.u32 %v4635_v10, 16  ;;  %v15072_v39 = vcombine.low %v4897_v13, %v4907_v59  ;;  %v4970_v22 = vshrl.u32 %v15059_v33, 16  ;;  %v5337_v36 = vld [vmem:[#allocation2 + $0xcc] sm:$0xe] }
 0x18f   : > { %v15061_v40 = vadd.f32 %v2646_v29, %v2354_v46  ;;  %v12667_v51 = vpop.f32.mrf.mxu0  ;;  %v4966_v29 = vshll.u32 %v15059_v33, 16  ;;  %v15084_v14 = vrot.slane %v4925_v42, 4  ;;  %v15086_v56 = vrot.slane %v4939_v55, 4 }
 0x190   : > { %v12629_v2 = vpop.f32.mrf.mxu1  ;;  %v4949_v27 = vor.u32 %v4948_v1, %v15057_v44  ;;  %v4981_v10 = vshrl.u32 %v4638_v11, 16  ;;  %v4984_v46 = vshll.u32 %v4638_v11, 16  ;;  %v4962_v42 = vrot.slane %v4960_v31, 5  ;;  %v15109_v11 = vld [vmem:[#allocation2 + $0xbc] sm:$0x1] }
 0x191   : > { %v15068_v38 = vadd.f32 %v12663_v57, %v12629_v2  ;;  %v15070_v7 = vpop.f32.mrf.mxu0  ;;  %v4959_v2 = vrot.slane %v4957_v61, 4  ;;  %v4990_v55 = vshll.u32 %v15076_v35, 16  ;;  %v4994_v57 = vshrl.u32 %v15076_v35, 16  ;;  %19012 = vst [vmem:[#allocation57_spill] sm:$0xff] %v15109_v11 }
 0x192   : > { %12832 = vmatmul.mubr.msk.bf16.gmra.mxu1 %vm1553_vm15, %v13329_v21  ;;  %v2367_v41 = vpop.f32.mrf.mxu1  ;;  %12870 = vmatmul.mubr.msk.bf16.gmra.mxu0 %vm1553_vm15, %v11703_v37  ;;  %v15093_v37 = vrot.slane %v4952_v43, 5  ;;  %v15099_v33 = vrot.slane %v4966_v29, 5  ;;  %v4931_v61 = vsel %vm13739_vm1, %v15084_v14, %v15066_v54  ;;  %v4945_v31 = vsel %vm13739_vm1, %v15086_v56, %v15057_v44 }
 0x193   : > { %19008 = vst [vmem:[#allocation53_spill] sm:$0xff] %v15068_v38  ;;  %v15089_v13 = vadd.f32 %v2659_v49, %v2367_v41  ;;  %12835 = vmatprep.mubr.msk.bf16.mxu1 %vm1553_vm15, %v13330_v52  ;;  %v12668_v59 = vpop.f32.mrf.mxu0  ;;  %12873 = vmatprep.mubr.msk.bf16.mxu0 %vm1553_vm15, %v11704_v8  ;;  %v13331_v49 = vld [vmem:[#allocation2 + $0x6c] sm:$0xff]   ;;  %v4972_v52 = vrot.slane %v4970_v22, 4  ;;  %v11743_v8 = vrot.slane %v5337_v36, 9  ;;  %v5493_v29 = vrot.slane %v4642_v48, 5  ;;  %v13332_v36 = vld [vmem:[#allocation2 + $0x78] sm:$0xff]  }
 0x194   : > { %v12630_v21 = vpop.f32.mrf.mxu1  ;;  %v4983_v35 = vrot.slane %v4981_v10, 4  ;;  %v4986_v18 = vrot.slane %v4984_v46, 5  ;;  %v4996_v44 = vrot.slane %v4994_v57, 4  ;;  %v4976_v10 = vshll.u32 %v15109_v11, 16  ;;  %v15127_v46 = vld [vmem:[#allocation2 + $0xc8] sm:$0x1] }
 0x195   : > { %19010 = vst [vmem:[#allocation55_spill] sm:$0xff] %v15089_v13  ;;  %v15097_v1 = vadd.f32 %v12664_v15, %v12630_v21  ;;  %v2678_v41 = vpop.f32.mrf.mxu0  ;;  %v4950_v15 = vrot.slane %v4949_v27, 4  ;;  %v15111_v21 = vld [vmem:[#allocation2 + $0xd4] sm:$0x1]  ;;  %v15117_v13 = vrot.slane %v4990_v55, 5  ;;  %v15121_v56 = vsel %vm14377_vm8, %v11743_v8, %v5493_v29  ;;  %19015 = vst [vmem:[#allocation60_spill] sm:$0xff] %v15127_v46 }
 0x196   : > { %v2370_v43 = vpop.f32.mrf.mxu1  ;;  %v5496_v54 = vrot.slane %v15111_v21, 5  ;;  %19014 = vst [vmem:[#allocation59_spill] sm:$0xff] %v15121_v56  ;;  %v5495_v27 = vrot.slane %v5493_v29, 4  ;;  %v5014_v8 = vshll.u32 %v4642_v48, 16  ;;  %v4987_v29 = vor.u32 %v4986_v18, %v4983_v35  ;;  %v13334_v56 = vld [vmem:[#allocation2 + $0x90] sm:$0xff]  }
 0x197   : > { %19011 = vst [vmem:[#allocation56_spill] sm:$0xff] %v15097_v1  ;;  %v15114_v22 = vadd.f32 %v15047_v26, %v2370_v43  ;;  %v4963_v26 = vor.u32 %v4962_v42, %v4959_v2  ;;  %v4973_v43 = vor.u32 %v4972_v52, %v15099_v33  ;;  %v4955_v57 = vsel %vm13739_vm1, %v4950_v15, %v15093_v37 }
 0x198   : > { %v12633_v14 = vpop.f32.mrf.mxu1  ;;  %v12671_v1 = vpop.f32.mrf.mxu0  ;;  %v15137_v2 = vsel %vm14377_vm8, %v5495_v27, %v5496_v54  ;;  %v5000_v54 = vshll.u32 %v15127_v46, 16  ;;  %v11708_v52 = vcombine.low %v4945_v31, %v4955_v57  ;;  %v5016_v35 = vrot.slane %v5014_v8, 5 }
 0x199   : > { %19013 = vst [vmem:[#allocation58_spill] sm:$0xff] %v15114_v22  ;;  %v15123_v38 = vadd.f32 %v12667_v51, %v12633_v14  ;;  %v5005_v51 = vshrl.u32 %v4641_v25, 16  ;;  %19016 = vst [vmem:[#allocation61_spill] sm:$0xff] %v15137_v2  ;;  %v4997_v14 = vor.u32 %v4996_v44, %v15117_v13  ;;  %v4964_v2 = vrot.slane %v4963_v26, 4 }
 0x19a   : > { %12836 = vmatmul.mubr.msk.bf16.gmra.mxu1 %vm1553_vm15, %v13331_v49  ;;  %v2383_v22 = vpop.f32.mrf.mxu1  ;;  %v2691_v55 = vpop.f32.mrf.mxu0  ;;  %12874 = vmatmul.mubr.msk.bf16.gmra.mxu0 %vm1553_vm15, %v15064_v58  ;;  %v5008_v49 = vshll.u32 %v4641_v25, 16  ;;  %v5018_v58 = vshrl.u32 %v4642_v48, 16  ;;  %v4978_v25 = vrot.slane %v4976_v10, 5  ;;  %v4974_v18 = vrot.slane %v4973_v43, 4 }
 0x19b   : > { %v15140_v42 = vadd.f32 %v15070_v7, %v2383_v22  ;;  %12839 = vmatprep.mubr.msk.bf16.mxu1 %vm1553_vm15, %v13332_v36  ;;  %12877 = vmatprep.mubr.msk.bf16.mxu0 %vm1553_vm15, %v15072_v39  ;;  %v19019_v7 = vsel %vm13739_vm1, %v15054_v63, %v15014_v9  ;;  %v13333_v22 = vld [vmem:[#allocation2 + $0x84] sm:$0xff]   ;;  %v4998_v9 = vrot.slane %v4997_v14, 4  ;;  %v5002_v63 = vrot.slane %v5000_v54, 5 }
 0x19c   : > { %v12634_v37 = vpop.f32.mrf.mxu1  ;;  %v12672_v15 = vpop.f32.mrf.mxu0  ;;  %v11707_v39 = vcombine.low %v19019_v7, %v4931_v61  ;;  %v5020_v46 = vrot.slane %v5018_v58, 4  ;;  %v4979_v26 = vsel %vm13739_vm1, %v4974_v18, %v4978_v25  ;;  %v5024_v57 = vshll.u32 %v15111_v21, 16  ;;  %v13422_v18 = vld [vmem:[#allocation2 + $0x1c] sm:$0xf] }
 0x19d   : > { %19017 = vst [vmem:[#allocation62_spill] sm:$0xff] %v15140_v42  ;;  %v15149_v27 = vadd.f32 %v12668_v59, %v12634_v37  ;;  %v5007_v59 = vrot.slane %v5005_v51, 4  ;;  %v5010_v37 = vrot.slane %v5008_v49, 5  ;;  %v4988_v42 = vrot.slane %v4987_v29, 4 }
 0x19e   : > { %v2386_v48 = vpop.f32.mrf.mxu1  ;;  %v15156_v36 = vpop.f32.mrf.mxu0  ;;  %v5026_v54 = vrot.slane %v5024_v57, 5 }
 0x19f   : > { %19018 = vst [vmem:[#allocation63_spill] sm:$0xff] %v15149_v27  ;;  %v15158_v44 = vadd.f32 %v2678_v41, %v2386_v48  ;;  %v4969_v41 = vsel %vm13739_vm1, %v4964_v2, %v15099_v33  ;;  %v4993_v49 = vsel %vm13739_vm1, %v4988_v42, %v15117_v13  ;;  %v5003_v33 = vsel %vm13739_vm1, %v4998_v9, %v5002_v63  ;;  %v5322_v9 = vld [vmem:[#allocation2 + $0x18] sm:$0xe] }
 0x1a0   : > { %v12637_v11 = vpop.f32.mrf.mxu1  ;;  %v12675_v27 = vpop.f32.mrf.mxu0  ;;  %v11710_v29 = vcombine.low %v4993_v49, %v5003_v33 }
 0x1a1   : > { %v15160_v61 = vadd.f32 %v12671_v1, %v12637_v11  ;;  %v5011_v1 = vor.u32 %v5010_v37, %v5007_v59  ;;  %v5021_v11 = vor.u32 %v5020_v46, %v5016_v35  ;;  %v13336_v46 = vld [vmem:[#allocation2 + $0xa8] sm:$0xff]   ;;  %v5388_v59 = vrot.slane %v13422_v18, 5 }
 0x1a2   : > { %12840 = vmatmul.mubr.msk.bf16.gmra.mxu1 %vm1553_vm15, %v13333_v22  ;;  %v2399_v10 = vpop.f32.mrf.mxu1  ;;  %v2707_v31 = vpop.f32.mrf.mxu0  ;;  %12878 = vmatmul.mubr.msk.bf16.gmra.mxu0 %vm1553_vm15, %v11707_v39 }
 0x1a3   : > { %v15169_v43 = vadd.f32 %v2691_v55, %v2399_v10  ;;  %12843 = vmatprep.mubr.msk.bf16.mxu1 %vm1553_vm15, %v13334_v56  ;;  %12881 = vmatprep.mubr.msk.bf16.mxu0 %vm1553_vm15, %v11708_v52  ;;  %v13335_v56 = vld [vmem:[#allocation2 + $0x9c] sm:$0xff]   ;;  %v11709_v52 = vcombine.low %v4969_v41, %v4979_v26  ;;  %v5012_v21 = vrot.slane %v5011_v1, 4  ;;  %v5022_v14 = vrot.slane %v5021_v11, 4  ;;  %v13337_v10 = vld [vmem:[#allocation2 + $0xb4] sm:$0xff]  }
 0x1a4   : > { %v12638_v51 = vpop.f32.mrf.mxu1  ;;  %v12676_v8 = vpop.f32.mrf.mxu0  ;;  %v13338_v26 = vld [vmem:[#allocation2 + $0xc0] sm:$0xff]   ;;  %v5390_v57 = vrot.slane %v5388_v59, 4 }
 0x1a5   : > { %v15179_v2 = vadd.f32 %v12672_v15, %v12638_v51  ;;  %v5017_v25 = vsel %vm13739_vm1, %v5012_v21, %v5016_v35  ;;  %v5027_v48 = vsel %vm13739_vm1, %v5022_v14, %v5026_v54  ;;  %v11728_v35 = vrot.slane %v5322_v9, 9  ;;  %v13423_v51 = vld [vmem:[#allocation2 + $0x20] sm:$0x1] }
 0x1a6   : > { %v15181_v55 = vpop.f32.mrf.mxu1  ;;  %v15183_v58 = vpop.f32.mrf.mxu0  ;;  %v11711_v41 = vcombine.low %v5017_v25, %v5027_v48  ;;  %v5391_v49 = vrot.slane %v13423_v51, 5  ;;  %v5324_v48 = vld [vmem:[#allocation2 + $0x30] sm:$0xe] }
 0x1a7   : > { %v5389_v54 = vsel %vm14377_vm8, %v11728_v35, %v5388_v59  ;;  %v11730_v59 = vrot.slane %v5324_v48, 9  ;;  %v5326_v48 = vld [vmem:[#allocation2 + $0x48] sm:$0xe] }
 0x1a8   : > { %v12641_v7 = vpop.f32.mrf.mxu1 }
 0x1a9   : > { %v15185_v39 = vadd.f32 %v12675_v27, %v12641_v7  ;;  %v5392_v7 = vsel %vm14377_vm8, %v5390_v57, %v5391_v49  ;;  %v5405_v57 = vrot.slane %v14724_v30, 5 }
 0x1aa   : > { %12844 = vmatmul.mubr.msk.bf16.gmra.mxu1 %vm1553_vm15, %v13335_v56  ;;  %v2415_v13 = vpop.f32.mrf.mxu1  ;;  %v12679_v42 = vpop.f32.mrf.mxu0  ;;  %12882 = vmatmul.mubr.msk.bf16.gmra.mxu0 %vm1553_vm15, %v11709_v52  ;;  %v11745_v9 = vcombine.low %v5389_v54, %v5392_v7  ;;  %v5416_v7 = vrot.slane %v14746_v24, 5  ;;  %v5419_v24 = vrot.slane %v14790_v19, 5 }
 0x1ab   : > { %v15189_v15 = vadd.f32 %v2707_v31, %v2415_v13  ;;  %12847 = vmatprep.mubr.msk.bf16.mxu1 %vm1553_vm15, %v13336_v46  ;;  %12885 = vmatprep.mubr.msk.bf16.mxu0 %vm1553_vm15, %v11710_v29  ;;  %v13424_v46 = vld [vmem:[#allocation2 + $0x28] sm:$0xf]  ;;  %v5323_v13 = vld [vmem:[#allocation2 + $0x24] sm:$0xe] }
 0x1ac   : > { %v12642_v27 = vpop.f32.mrf.mxu1  ;;  %v2723_v22 = vpop.f32.mrf.mxu0  ;;  %v5395_v29 = vrot.slane %v13424_v46, 5  ;;  %v5409_v46 = vrot.slane %v14726_v62, 5 }
 0x1ad   : > { %v15197_v37 = vadd.f32 %v12676_v8, %v12642_v27 }
 0x1ae   : > { %v15199_v63 = vpop.f32.mrf.mxu1  ;;  %v12680_v31 = vpop.f32.mrf.mxu0 }
 0x1b0   : > { %v12645_v1 = vpop.f32.mrf.mxu1  ;;  %v15201_v11 = vpop.f32.mrf.mxu0 }
 0x1b1   : > { %v15203_v33 = vadd.f32 %v12679_v42, %v12645_v1  ;;  %v5402_v42 = vrot.slane %v14709_v23, 5 }
 0x1b2   : > { %12848 = vmatmul.mubr.msk.bf16.gmra.mxu1 %vm1553_vm15, %v13337_v10  ;;  %v2431_v8 = vpop.f32.mrf.mxu1  ;;  %v12683_v56 = vpop.f32.mrf.mxu0  ;;  %12886 = vmatmul.mubr.msk.bf16.gmra.mxu0 %vm1553_vm15, %v11711_v41  ;;  %v11729_v10 = vrot.slane %v5323_v13, 9  ;;  %v5397_v41 = vrot.slane %v5395_v29, 4 }
 0x1b3   : > { %v15207_v52 = vadd.f32 %v2723_v22, %v2431_v8  ;;  %12851 = vmatprep.mubr.msk.bf16.mxu1 %vm1553_vm15, %v13338_v26  ;;  %v13339_v22 = vld [vmem:[#allocation2 + $0xcc] sm:$0xff]   ;;  %v5398_v26 = vrot.slane %v14665_v60, 5  ;;  %v5404_v35 = vrot.slane %v5402_v42, 4  ;;  %v5325_v8 = vld [vmem:[#allocation2 + $0x3c] sm:$0xe]  ;;  %v5403_v30 = vsel %vm14377_vm8, %v11730_v59, %v5402_v42 }
 0x1b4   : > { %v12646_v21 = vpop.f32.mrf.mxu1  ;;  %v2739_v14 = vpop.f32.mrf.mxu0  ;;  %v5396_v49 = vsel %vm14377_vm8, %v11729_v10, %v5395_v29  ;;  %v11731_v10 = vrot.slane %v5325_v8, 9  ;;  %v11732_v59 = vrot.slane %v5326_v48, 9  ;;  %v5423_v8 = vrot.slane %v14756_v45, 5 }
 0x1b5   : > { %v15215_v25 = vadd.f32 %v12680_v31, %v12646_v21  ;;  %v5399_v60 = vsel %vm14377_vm8, %v5397_v41, %v5398_v26  ;;  %v5411_v26 = vrot.slane %v5409_v46, 4  ;;  %v5426_v45 = vrot.slane %v14794_v3, 5 }
 0x1b6   : > { %v15217_v27 = vpop.f32.mrf.mxu1  ;;  %v12684_v18 = vpop.f32.mrf.mxu0  ;;  %v5417_v19 = vsel %vm14377_vm8, %v11732_v59, %v5416_v7  ;;  %v5425_v59 = vrot.slane %v5423_v8, 4 }
 0x1b8   : > { %v15220_v1 = vpop.f32.mrf.mxu0 }
 0x1b9   : > { %19020 = vst [vmem:[#allocation64_spill] sm:$0xff] %v15220_v1 }
 0x1ba   : > { %v12649_v51 = vpop.f32.mrf.mxu1  ;;  %12852 = vmatmul.mubr.msk.bf16.gmra.mxu1 %vm1553_vm15, %v13339_v22  ;;  %v12723_v23 = vpop.f32.mrf.mxu0  ;;  %v11746_v22 = vcombine.low %v5396_v49, %v5399_v60  ;;  %v5327_v60 = vld [vmem:[#allocation2 + $0x54] sm:$0xe] }
 0x1bb   : > { %v15224_v31 = vadd.f32 %v12683_v56, %v12649_v51  ;;  %12891 = vmatprep.mubr.msk.bf16.mxu1 %vm1553_vm15, %v11745_v9  ;;  %v5406_v56 = vsel %vm14377_vm8, %v5404_v35, %v5405_v57  ;;  %v5412_v51 = vrot.slane %v14775_v17, 5  ;;  %v5418_v35 = vrot.slane %v5416_v7, 4 }
 0x1bc   : > { %v2447_v21 = vpop.f32.mrf.mxu1  ;;  %v3410_v54 = vpop.f32.mrf.mxu0  ;;  %v11747_v62 = vcombine.low %v5403_v30, %v5406_v56 }
 0x1bd   : > { %v15237_v13 = vadd.f32 %v2739_v14, %v2447_v21  ;;  %v5413_v17 = vsel %vm14377_vm8, %v5411_v26, %v5412_v51  ;;  %v5420_v56 = vsel %vm14377_vm8, %v5418_v35, %v5419_v24  ;;  %v11733_v26 = vrot.slane %v5327_v60, 9 }
 0x1be   : > { %v12650_v29 = vpop.f32.mrf.mxu1  ;;  %v12724_v9 = vpop.f32.mrf.mxu0  ;;  %v11749_v7 = vcombine.low %v5417_v19, %v5420_v56  ;;  %v5427_v60 = vsel %vm14377_vm8, %v5425_v59, %v5426_v45 }
 0x1bf   : > { %v15239_v41 = vadd.f32 %v12684_v18, %v12650_v29  ;;  %v5410_v18 = vsel %vm14377_vm8, %v11731_v10, %v5409_v46  ;;  %v5328_v46 = vld [vmem:[#allocation2 + $0x60] sm:$0xe] }
 0x1c0   : > { %v15242_v1 = vpop.f32.mrf.mxu1  ;;  %v15244_v42 = vpop.f32.mrf.mxu0  ;;  %v11748_v10 = vcombine.low %v5410_v18, %v5413_v17 }
 0x1c1   : > { %19021 = vst [vmem:[#allocation65_spill] sm:$0xff] %v15244_v42 }
 0x1c2   : > { %v12689_v14 = vpop.f32.mrf.mxu1  ;;  %12892 = vmatmul.mubr.msk.bf16.vlgmr.msra.gmra.mxu1 %vm1553_vm15, %v11746_v22  ;;  %v12727_v57 = vpop.f32.mrf.mxu0 }
 0x1c3   : > { %v3181_v49 = vadd.f32 %v12689_v14, %v14965_v47  ;;  %12895 = vmatprep.mubr.msk.bf16.mxu1 %vm1553_vm15, %v11747_v62  ;;  %v5430_v47 = vrot.slane %v14781_v6, 5  ;;  %v11734_v6 = vrot.slane %v5328_v46, 9 }
 0x1c4   : > { %v3052_v21 = vpop.f32.mrf.mxu1  ;;  %v3426_v30 = vpop.f32.mrf.mxu0 }
 0x1c5   : > { %v3179_v48 = vadd.f32 %v3052_v21, %v14990_v32  ;;  %v15261_v29 = vadd.f32 %v12723_v23, %v3181_v49  ;;  %v5432_v32 = vrot.slane %v5430_v47, 4  ;;  %v5433_v23 = vrot.slane %v14830_v16, 5  ;;  %v5329_v16 = vld [vmem:[#allocation2 + $0x6c] sm:$0xe] }
 0x1c6   : > { %v12690_v22 = vpop.f32.mrf.mxu1  ;;  %v12728_v62 = vpop.f32.mrf.mxu0  ;;  %v5431_v19 = vsel %vm14377_vm8, %v11734_v6, %v5430_v47  ;;  %v11735_v45 = vrot.slane %v5329_v16, 9 }
 0x1c7   : > { %v3182_v51 = vadd.f32 %v12690_v22, %v14999_v20  ;;  %v15265_v14 = vadd.f32 %v3410_v54, %v3179_v48  ;;  %v5424_v54 = vsel %vm14377_vm8, %v11733_v26, %v5423_v8  ;;  %v5434_v56 = vsel %vm14377_vm8, %v5432_v32, %v5433_v23  ;;  %v5330_v8 = vld [vmem:[#allocation2 + $0x78] sm:$0xe] }
 0x1c8   : > { %v3055_v35 = vpop.f32.mrf.mxu1  ;;  %v15267_v24 = vpop.f32.mrf.mxu0  ;;  %v11751_v47 = vcombine.low %v5431_v19, %v5434_v56  ;;  %v5331_v19 = vld [vmem:[#allocation2 + $0x84] sm:$0xe]  ;;  %v19028_v56 = vld [vmem:[#allocation41_spill] sm:$0xff] }
 0x1c9   : > { %19022 = vst [vmem:[#allocation66_spill] sm:$0xff] %v15267_v24  ;;  %v15271_v49 = vadd.f32 %v3055_v35, %v15005_v0  ;;  %v15273_v18 = vadd.f32 %v12724_v9, %v3182_v51  ;;  %v5437_v0 = vrot.slane %v14836_v12, 5  ;;  %v19023_v12 = vld [vmem:[#allocation18_spill] sm:$0xff] }
 0x1ca   : > { %v12693_v17 = vpop.f32.mrf.mxu1  ;;  %12896 = vmatmul.mubr.msk.bf16.gmra.mxu1 %vm1553_vm15, %v11748_v10  ;;  %v12731_v3 = vpop.f32.mrf.mxu0  ;;  %v11750_v10 = vcombine.low %v5424_v54, %v5427_v60  ;;  %v5440_v51 = vrot.slane %v19023_v12, 5 }
 0x1cb   : > { %v3185_v20 = vadd.f32 %v12693_v17, %v15010_v28  ;;  %12899 = vmatprep.mubr.msk.bf16.mxu1 %vm1553_vm15, %v11749_v7  ;;  %v5444_v28 = vrot.slane %v14903_v4, 5  ;;  %v5439_v35 = vrot.slane %v5437_v0, 4  ;;  %v11736_v4 = vrot.slane %v5330_v8, 9 }
 0x1cc   : > { %v3068_v21 = vpop.f32.mrf.mxu1  ;;  %v3442_v9 = vpop.f32.mrf.mxu0  ;;  %v5438_v16 = vsel %vm14377_vm8, %v11735_v45, %v5437_v0  ;;  %v5332_v0 = vld [vmem:[#allocation2 + $0x90] sm:$0xe] }
 0x1cd   : > { %v3183_v48 = vadd.f32 %v3068_v21, %v15022_v50  ;;  %v15289_v46 = vadd.f32 %v12727_v57, %v3185_v20  ;;  %v5446_v50 = vrot.slane %v5444_v28, 4  ;;  %v19025_v57 = vld [vmem:[#allocation45_spill] sm:$0xff]  ;;  %v5441_v21 = vsel %vm14377_vm8, %v5439_v35, %v5440_v51 }
 0x1ce   : > { %v12694_v22 = vpop.f32.mrf.mxu1  ;;  %v12732_v26 = vpop.f32.mrf.mxu0  ;;  %v5447_v23 = vrot.slane %v19025_v57, 5  ;;  %v5445_v8 = vsel %vm14377_vm8, %v11736_v4, %v5444_v28  ;;  %v11752_v51 = vcombine.low %v5438_v16, %v5441_v21  ;;  %v11737_v57 = vrot.slane %v5331_v19, 9 }
 0x1cf   : > { %v3186_v7 = vadd.f32 %v12694_v22, %v15045_v34  ;;  %v15293_v59 = vadd.f32 %v3426_v30, %v3183_v48  ;;  %v19027_v30 = vld [vmem:[#allocation53_spill] sm:$0xff] }
 0x1d0   : > { %v3071_v6 = vpop.f32.mrf.mxu1  ;;  %v15295_v32 = vpop.f32.mrf.mxu0  ;;  %v5448_v22 = vsel %vm14377_vm8, %v5446_v50, %v5447_v23 }
 0x1d1   : > { %19024 = vst [vmem:[#allocation18_spill] sm:$0xff] %v15295_v32  ;;  %v15299_v17 = vadd.f32 %v3071_v6, %v15061_v40  ;;  %v15301_v20 = vadd.f32 %v12728_v62, %v3186_v7  ;;  %v5451_v40 = vrot.slane %v19028_v56, 5  ;;  %v19030_v7 = vld [vmem:[#allocation55_spill] sm:$0xff]  ;;  %v19032_v56 = vld [vmem:[#allocation56_spill] sm:$0xff]  ;;  %v11753_v28 = vcombine.low %v5445_v8, %v5448_v22 }
 0x1d2   : > { %v12697_v54 = vpop.f32.mrf.mxu1  ;;  %12900 = vmatmul.mubr.msk.bf16.gmra.mxu1 %vm1553_vm15, %v11750_v10  ;;  %v12735_v34 = vpop.f32.mrf.mxu0  ;;  %v19029_v10 = vld [vmem:[#allocation42_spill] sm:$0xff] }
 0x1d3   : > { %19026 = vst [vmem:[#allocation45_spill] sm:$0xff] %v15299_v17  ;;  %v3189_v60 = vadd.f32 %v12697_v54, %v19027_v30  ;;  %12903 = vmatprep.mubr.msk.bf16.mxu1 %vm1553_vm15, %v11751_v47  ;;  %v5458_v12 = vrot.slane %v19029_v10, 5  ;;  %v19031_v54 = vld [vmem:[#allocation46_spill] sm:$0xff]  ;;  %v5453_v4 = vrot.slane %v5451_v40, 4  ;;  %v11738_v10 = vrot.slane %v5332_v0, 9  ;;  %v19037_v0 = vld [vmem:[#allocation48_spill] sm:$0xff] }
 0x1d4   : > { %v3084_v48 = vpop.f32.mrf.mxu1  ;;  %v3458_v62 = vpop.f32.mrf.mxu0  ;;  %v5454_v30 = vrot.slane %v19031_v54, 5  ;;  %v5452_v8 = vsel %vm14377_vm8, %v11737_v57, %v5451_v40  ;;  %v5334_v40 = vld [vmem:[#allocation2 + $0xa8] sm:$0xe] }
 0x1d5   : > { %v3187_v47 = vadd.f32 %v3084_v48, %v19030_v7  ;;  %v15317_v6 = vadd.f32 %v12731_v3, %v3189_v60  ;;  %v5460_v48 = vrot.slane %v5458_v12, 4  ;;  %v19034_v3 = vld [vmem:[#allocation47_spill] sm:$0xff]  ;;  %v19035_v7 = vld [vmem:[#allocation58_spill] sm:$0xff] }
 0x1d6   : > { %v12698_v45 = vpop.f32.mrf.mxu1  ;;  %v12736_v35 = vpop.f32.mrf.mxu0  ;;  %v5461_v60 = vrot.slane %v19034_v3, 5  ;;  %v5455_v22 = vsel %vm14377_vm8, %v5453_v4, %v5454_v30 }
 0x1d7   : > { %v3190_v32 = vadd.f32 %v12698_v45, %v19032_v56  ;;  %v15321_v24 = vadd.f32 %v3442_v9, %v3187_v47  ;;  %v5333_v47 = vld [vmem:[#allocation2 + $0x9c] sm:$0xe]  ;;  %v5465_v45 = vrot.slane %v19037_v0, 5  ;;  %v11754_v30 = vcombine.low %v5452_v8, %v5455_v22 }
 0x1d8   : > { %v3087_v50 = vpop.f32.mrf.mxu1  ;;  %v15323_v23 = vpop.f32.mrf.mxu0 }
 0x1d9   : > { %19033 = vst [vmem:[#allocation53_spill] sm:$0xff] %v15323_v23  ;;  %v15327_v17 = vadd.f32 %v3087_v50, %v19035_v7  ;;  %v15329_v16 = vadd.f32 %v12732_v26, %v3190_v32  ;;  %v5459_v32 = vsel %vm14377_vm8, %v11738_v10, %v5458_v12  ;;  %v11739_v7 = vrot.slane %v5333_v47, 9  ;;  %v19041_v23 = vld [vmem:[#allocation63_spill] sm:$0xff] }
 0x1da   : > { %v12701_v21 = vpop.f32.mrf.mxu1  ;;  %12904 = vmatmul.mubr.msk.bf16.gmra.mxu1 %vm1553_vm15, %v11752_v51  ;;  %v12739_v19 = vpop.f32.mrf.mxu0  ;;  %v5462_v51 = vsel %vm14377_vm8, %v5460_v48, %v5461_v60  ;;  %v5467_v10 = vrot.slane %v5465_v45, 4 }
 0x1db   : > { %19036 = vst [vmem:[#allocation41_spill] sm:$0xff] %v15327_v17  ;;  %v3193_v9 = vadd.f32 %v12701_v21, %v15123_v38  ;;  %12907 = vmatprep.mubr.msk.bf16.mxu1 %vm1553_vm15, %v11753_v28  ;;  %v19038_v38 = vld [vmem:[#allocation49_spill] sm:$0xff]  ;;  %v19039_v28 = vld [vmem:[#allocation62_spill] sm:$0xff]  ;;  %v11755_v12 = vcombine.low %v5459_v32, %v5462_v51  ;;  %v5466_v47 = vsel %vm14377_vm8, %v11739_v7, %v5465_v45  ;;  %v5336_v45 = vld [vmem:[#allocation2 + $0xc0] sm:$0xe] }
 0x1dc   : > { %v3100_v54 = vpop.f32.mrf.mxu1  ;;  %v3474_v26 = vpop.f32.mrf.mxu0  ;;  %v5472_v56 = vrot.slane %v19038_v38, 5  ;;  %v19040_v21 = vld [vmem:[#allocation50_spill] sm:$0xff]  ;;  %v11740_v38 = vrot.slane %v5334_v40, 9  ;;  %v5335_v51 = vld [vmem:[#allocation2 + $0xb4] sm:$0xe] }
 0x1dd   : > { %v3191_v50 = vadd.f32 %v3100_v54, %v19039_v28  ;;  %v15345_v3 = vadd.f32 %v12735_v34, %v3193_v9  ;;  %v5468_v0 = vrot.slane %v19040_v21, 5  ;;  %v19043_v34 = vld [vmem:[#allocation51_spill] sm:$0xff] }
 0x1de   : > { %v12702_v57 = vpop.f32.mrf.mxu1  ;;  %v12740_v4 = vpop.f32.mrf.mxu0  ;;  %v5474_v54 = vrot.slane %v5472_v56, 4  ;;  %v5475_v9 = vrot.slane %v19043_v34, 5  ;;  %v19046_v34 = vld [vmem:[#allocation57_spill] sm:$0xff] }
 0x1df   : > { %v3194_v17 = vadd.f32 %v12702_v57, %v19041_v23  ;;  %v15349_v42 = vadd.f32 %v3458_v62, %v3191_v50  ;;  %v5469_v32 = vsel %vm14377_vm8, %v5467_v10, %v5468_v0  ;;  %v19044_v50 = vld [vmem:[#allocation52_spill] sm:$0xff] }
 0x1e0   : > { %v3103_v48 = vpop.f32.mrf.mxu1  ;;  %v15351_v60 = vpop.f32.mrf.mxu0  ;;  %v5476_v57 = vsel %vm14377_vm8, %v5474_v54, %v5475_v9  ;;  %v11756_v0 = vcombine.low %v5466_v47, %v5469_v32 }
 0x1e1   : > { %19042 = vst [vmem:[#allocation42_spill] sm:$0xff] %v15351_v60  ;;  %v15355_v28 = vadd.f32 %v3103_v48, %v15158_v44  ;;  %v15357_v8 = vadd.f32 %v12736_v35, %v3194_v17  ;;  %v5479_v44 = vrot.slane %v19044_v50, 5  ;;  %v5473_v35 = vsel %vm14377_vm8, %v11740_v38, %v5472_v56 }
 0x1e2   : > { %v12705_v22 = vpop.f32.mrf.mxu1  ;;  %12908 = vmatmul.mubr.msk.bf16.gmra.mxu1 %vm1553_vm15, %v11754_v30  ;;  %v12743_v23 = vpop.f32.mrf.mxu0  ;;  %v11741_v48 = vrot.slane %v5335_v51, 9  ;;  %v11757_v56 = vcombine.low %v5473_v35, %v5476_v57 }
 0x1e3   : > { %v3197_v62 = vadd.f32 %v12705_v22, %v15160_v61  ;;  %12911 = vmatprep.mubr.msk.bf16.mxu1 %vm1553_vm15, %v11755_v12  ;;  %v19045_v61 = vld [vmem:[#allocation54_spill] sm:$0xff]  ;;  %v5482_v22 = vrot.slane %v19046_v34, 5  ;;  %v5481_v38 = vrot.slane %v5479_v44, 4 }
 0x1e4   : > { %v3116_v40 = vpop.f32.mrf.mxu1  ;;  %v3490_v17 = vpop.f32.mrf.mxu0  ;;  %v5486_v30 = vrot.slane %v19045_v61, 5 }
 0x1e5   : > { %v3195_v21 = vadd.f32 %v3116_v40, %v15169_v43  ;;  %v15373_v12 = vadd.f32 %v12739_v19, %v3197_v62  ;;  %v11742_v43 = vrot.slane %v5336_v45, 9  ;;  %v19047_v62 = vld [vmem:[#allocation60_spill] sm:$0xff]  ;;  %v5483_v51 = vsel %vm14377_vm8, %v5481_v38, %v5482_v22 }
 0x1e6   : > { %v12706_v7 = vpop.f32.mrf.mxu1  ;;  %v12744_v10 = vpop.f32.mrf.mxu0  ;;  %v5488_v19 = vrot.slane %v5486_v30, 4  ;;  %v5489_v40 = vrot.slane %v19047_v62, 5 }
 0x1e7   : > { %v3198_v50 = vadd.f32 %v12706_v7, %v15179_v2  ;;  %v15377_v60 = vadd.f32 %v3474_v26, %v3195_v21  ;;  %v5480_v26 = vsel %vm14377_vm8, %v11741_v48, %v5479_v44 }
 0x1e8   : > { %v15379_v54 = vpop.f32.mrf.mxu1  ;;  %v15381_v9 = vpop.f32.mrf.mxu0  ;;  %v5490_v21 = vsel %vm14377_vm8, %v5488_v19, %v5489_v40 }
 0x1e9   : > { %v15384_v61 = vadd.f32 %v12740_v4, %v3198_v50  ;;  %v5487_v4 = vsel %vm14377_vm8, %v11742_v43, %v5486_v30 }
 0x1ea   : > { %v12709_v47 = vpop.f32.mrf.mxu1  ;;  %12912 = vmatmul.mubr.msk.bf16.gmra.mxu1 %vm1553_vm15, %v11756_v0  ;;  %v12747_v32 = vpop.f32.mrf.mxu0  ;;  %v11758_v0 = vcombine.low %v5480_v26, %v5483_v51  ;;  %v11759_v50 = vcombine.low %v5487_v4, %v5490_v21  ;;  %v19048_v21 = vld [vmem:[#allocation59_spill] sm:$0xff] }
 0x1eb   : > { %v3201_v2 = vadd.f32 %v12709_v47, %v15185_v39  ;;  %12915 = vmatprep.mubr.msk.bf16.mxu1 %vm1553_vm15, %v11757_v56  ;;  %v11811_v39 = vld [vmem:[%s18859_s4 + $0x4] sm:$0xf] }
 0x1ec   : > { %v3132_v35 = vpop.f32.mrf.mxu1  ;;  %v3506_v57 = vpop.f32.mrf.mxu0  ;;  %13242 = vmatprep.subr.msk.bf16.mxu0 %vm6963_vm0, %v11811_v39  ;;  %v6965_v34 = vsel %vm6963_vm0, %v11811_v39, 0 }
 0x1ed   : > { %v3199_v45 = vadd.f32 %v3132_v35, %v15189_v15  ;;  %v15398_v7 = vadd.f32 %v12743_v23, %v3201_v2  ;;  %12924 = vmatpush3.bf16.msra.mxu0 %v6965_v34 }
 0x1ee   : > { %v12710_v44 = vpop.f32.mrf.mxu1  ;;  %v12748_v48 = vpop.f32.mrf.mxu0 }
 0x1ef   : > { %v3202_v30 = vadd.f32 %v12710_v44, %v15197_v37  ;;  %v15406_v22 = vadd.f32 %v3490_v17, %v3199_v45  ;;  %v19049_v45 = vld [vmem:[#allocation61_spill] sm:$0xff] }
 0x1f0   : > { %v15408_v15 = vpop.f32.mrf.mxu1  ;;  %v15410_v23 = vpop.f32.mrf.mxu0  ;;  %v19050_v39 = vcombine.low %v19048_v21, %v19049_v45 }
 0x1f1   : > { %v15412_v56 = vadd.f32 %v12744_v10, %v3202_v30 }
 0x1f2   : > { %v12713_v38 = vpop.f32.mrf.mxu1  ;;  %12916 = vmatmul.mubr.msk.bf16.gmra.mxu1 %vm1553_vm15, %v11758_v0  ;;  %v12751_v43 = vpop.f32.mrf.mxu0 }
 0x1f3   : > { %v3205_v19 = vadd.f32 %v12713_v38, %v15203_v33  ;;  %12919 = vmatprep.mubr.msk.bf16.mxu1 %vm1553_vm15, %v11759_v50 }
 0x1f4   : > { %v3148_v62 = vpop.f32.mrf.mxu1  ;;  %v3522_v37 = vpop.f32.mrf.mxu0 }
 0x1f5   : > { %v3203_v17 = vadd.f32 %v3148_v62, %v15207_v52  ;;  %v15418_v40 = vadd.f32 %v12747_v32, %v3205_v19 }
 0x1f6   : > { %v12714_v47 = vpop.f32.mrf.mxu1  ;;  %v12752_v2 = vpop.f32.mrf.mxu0 }
 0x1f7   : > { %v3206_v26 = vadd.f32 %v12714_v47, %v15215_v25  ;;  %v15421_v10 = vadd.f32 %v3506_v57, %v3203_v17 }
 0x1f8   : > { %v15423_v51 = vpop.f32.mrf.mxu1  ;;  %v15425_v35 = vpop.f32.mrf.mxu0 }
 0x1f9   : > { %v15427_v4 = vadd.f32 %v12748_v48, %v3206_v26 }
 0x1fa   : > { %v12717_v33 = vpop.f32.mrf.mxu1  ;;  %12920 = vmatmul.mubr.msk.bf16.gmra.mxu1 %vm1553_vm15, %v19050_v39  ;;  %v15433_v52 = vpop.f32.mrf.mxu0 }
 0x1fb   : > { %v3209_v32 = vadd.f32 %v12717_v33, %v15224_v31 }
 0x1fc   : > { %v3164_v44 = vpop.f32.mrf.mxu1  ;;  %v15436_v25 = vpop.f32.mrf.mxu0 }
 0x1fd   : > { %v3207_v57 = vadd.f32 %v3164_v44, %v15237_v13  ;;  %v15439_v0 = vadd.f32 %v12751_v43, %v3209_v32 }
 0x1fe   : > { %v12718_v34 = vpop.f32.mrf.mxu1  ;;  %v15441_v48 = vpop.f32.mrf.mxu0 }
 0x1ff   : > { %19051 = vst [vmem:[#allocation55_spill] sm:$0xff] %v15441_v48  ;;  %v3210_v30 = vadd.f32 %v12718_v34, %v15239_v41  ;;  %v15444_v50 = vadd.f32 %v3522_v37, %v3207_v57 }
 0x200   : > { %v15446_v38 = vpop.f32.mrf.mxu1  ;;  %v15448_v19 = vpop.f32.mrf.mxu0 }
 0x201   : > { %19052 = vst [vmem:[#allocation46_spill] sm:$0xff] %v15448_v19  ;;  %v15450_v62 = vadd.f32 %v12752_v2, %v3210_v30 }
 0x202   : > { %v12757_v31 = vpop.f32.mrf.mxu1  ;;  %v15452_v17 = vpop.f32.mrf.mxu0 }
 0x203   : > { %19053 = vst [vmem:[#allocation56_spill] sm:$0xff] %v15452_v17  ;;  %v15455_v13 = vadd.f32 %v12757_v31, %v15261_v29 }
 0x204   : > { %v3608_v43 = vpop.f32.mrf.mxu1  ;;  %v15457_v47 = vpop.f32.mrf.mxu0 }
 0x205   : > { %19054 = vst [vmem:[#allocation47_spill] sm:$0xff] %v15457_v47  ;;  %v15460_v26 = vadd.f32 %v3608_v43, %v15265_v14 }
 0x206   : > { %v12758_v41 = vpop.f32.mrf.mxu1  ;;  %v12796_v37 = vpop.f32.mrf.mxu0 }
 0x207   : > { %v15463_v33 = vadd.f32 %v12758_v41, %v15273_v18 }
 0x208   : > { %v15465_v21 = vpop.f32.mrf.mxu1  ;;  %v15467_v2 = vpop.f32.mrf.mxu0 }
 0x209   : > { %19055 = vst [vmem:[#allocation58_spill] sm:$0xff] %v15467_v2 }
 0x20a   : > { %v12761_v45 = vpop.f32.mrf.mxu1  ;;  %v12799_v39 = vpop.f32.mrf.mxu0 }
 0x20b   : > { %v15470_v29 = vadd.f32 %v12761_v45, %v15289_v46 }
 0x20c   : > { %v3624_v32 = vpop.f32.mrf.mxu1  ;;  %v4110_v44 = vpop.f32.mrf.mxu0 }
 0x20d   : > { %19056 = vst [vmem:[#allocation48_spill] sm:$0xff] %v15470_v29  ;;  %v15473_v57 = vadd.f32 %v3624_v32, %v15293_v59 }
 0x20e   : > { %v12762_v14 = vpop.f32.mrf.mxu1  ;;  %v12800_v34 = vpop.f32.mrf.mxu0 }
 0x20f   : > { %19057 = vst [vmem:[#allocation49_spill] sm:$0xff] %v15473_v57  ;;  %v3742_v30 = vadd.f32 %v12762_v14, %v15301_v20 }
 0x210   : > { %v15476_v18 = vpop.f32.mrf.mxu1  ;;  %v15478_v31 = vpop.f32.mrf.mxu0 }
 0x211   : > { %19058 = vst [vmem:[#allocation62_spill] sm:$0xff] %v15478_v31  ;;  %v15480_v43 = vadd.f32 %v12796_v37, %v3742_v30 }
 0x212   : > { %v12765_v41 = vpop.f32.mrf.mxu1  ;;  %v12803_v53 = vpop.f32.mrf.mxu0 }
 0x213   : > { %v3745_v46 = vadd.f32 %v12765_v41, %v15317_v6 }
 0x214   : > { %v3640_v45 = vpop.f32.mrf.mxu1  ;;  %v4126_v2 = vpop.f32.mrf.mxu0 }
 0x215   : > { %v3743_v47 = vadd.f32 %v3640_v45, %v15321_v24  ;;  %v15484_v59 = vadd.f32 %v12799_v39, %v3745_v46 }
 0x216   : > { %v12766_v32 = vpop.f32.mrf.mxu1  ;;  %v12804_v57 = vpop.f32.mrf.mxu0 }
 0x217   : > { %v3746_v20 = vadd.f32 %v12766_v32, %v15329_v16  ;;  %v15487_v14 = vadd.f32 %v4110_v44, %v3743_v47 }
 0x218   : > { %v15489_v17 = vpop.f32.mrf.mxu1  ;;  %v15491_v37 = vpop.f32.mrf.mxu0 }
 0x219   : > { %19059 = vst [vmem:[#allocation50_spill] sm:$0xff] %v15489_v17  ;;  %19060 = vst [vmem:[#allocation63_spill] sm:$0xff] %v15491_v37  ;;  %v15493_v30 = vadd.f32 %v12800_v34, %v3746_v20 }
 0x21a   : > { %v12769_v31 = vpop.f32.mrf.mxu1  ;;  %v12807_v6 = vpop.f32.mrf.mxu0 }
 0x21b   : > { %v3749_v41 = vadd.f32 %v12769_v31, %v15345_v3 }
 0x21c   : > { %v3656_v29 = vpop.f32.mrf.mxu1  ;;  %v4142_v24 = vpop.f32.mrf.mxu0 }
 0x21d   : > { %v3747_v39 = vadd.f32 %v3656_v29, %v15349_v42  ;;  %v15497_v46 = vadd.f32 %v12803_v53, %v3749_v41 }
 0x21e   : > { %v12770_v45 = vpop.f32.mrf.mxu1  ;;  %v12808_v16 = vpop.f32.mrf.mxu0 }
 0x21f   : > { %v3750_v47 = vadd.f32 %v12770_v45, %v15357_v8  ;;  %v15500_v44 = vadd.f32 %v4126_v2, %v3747_v39 }
 0x220   : > { %v15502_v32 = vpop.f32.mrf.mxu1  ;;  %v15504_v34 = vpop.f32.mrf.mxu0 }
 0x221   : > { %19061 = vst [vmem:[#allocation51_spill] sm:$0xff] %v15502_v32  ;;  %19062 = vst [vmem:[#allocation52_spill] sm:$0xff] %v15504_v34  ;;  %v15506_v20 = vadd.f32 %v12804_v57, %v3750_v47 }
 0x222   : > { %v12773_v37 = vpop.f32.mrf.mxu1  ;;  %v12811_v3 = vpop.f32.mrf.mxu0 }
 0x223   : > { %v3753_v31 = vadd.f32 %v12773_v37, %v15373_v12 }
 0x224   : > { %v3672_v17 = vpop.f32.mrf.mxu1  ;;  %v4158_v42 = vpop.f32.mrf.mxu0 }
 0x225   : > { %v3751_v53 = vadd.f32 %v3672_v17, %v15377_v60  ;;  %v15510_v29 = vadd.f32 %v12807_v6, %v3753_v31 }
 0x226   : > { %v12774_v41 = vpop.f32.mrf.mxu1  ;;  %v12812_v8 = vpop.f32.mrf.mxu0 }
 0x227   : > { %v3754_v2 = vadd.f32 %v12774_v41, %v15384_v61  ;;  %v15513_v39 = vadd.f32 %v4142_v24, %v3751_v53  ;;  %v6463_v24 = vld [vmem:[%s18859_s4] sm:$0xf] }
 0x228   : > { %v15515_v45 = vpop.f32.mrf.mxu1  ;;  %v15517_v57 = vpop.f32.mrf.mxu0  ;;  %13243 = vmatprep.subr.msk.bf16.mxu1 %vm6963_vm0, %v6463_v24 }
 0x229   : > { %19063 = vst [vmem:[#allocation54_spill] sm:$0xff] %v15515_v45  ;;  %19064 = vst [vmem:[#allocation57_spill] sm:$0xff] %v15517_v57  ;;  %v15519_v47 = vadd.f32 %v12808_v16, %v3754_v2 }
 0x22a   : > { %v12777_v34 = vpop.f32.mrf.mxu1  ;;  %v12815_v12 = vpop.f32.mrf.mxu0 }
 0x22b   : > { %v3757_v37 = vadd.f32 %v12777_v34, %v15398_v7  ;;  %v7257_v7 = vsel %vm6963_vm0, %v6463_v24, 0  ;;  %v6431_v34 = vld [vmem:[#allocation2] sm:$0xf] }
 0x22c   : > { %v3688_v32 = vpop.f32.mrf.mxu1  ;;  %v4174_v60 = vpop.f32.mrf.mxu0  ;;  %12958 = vmatpush3.bf16.msra.mxu1 %v7257_v7 }
 0x22d   : > { %v3755_v17 = vadd.f32 %v3688_v32, %v15406_v22  ;;  %v15523_v6 = vadd.f32 %v12811_v3, %v3757_v37  ;;  %v6432_v32 = vld [vmem:[#allocation2 + $0x4] sm:$0xf] }
 0x22e   : > { %v12778_v31 = vpop.f32.mrf.mxu1  ;;  %v12816_v61 = vpop.f32.mrf.mxu0  ;;  %v11844_v57 = vcombine.low %v6431_v34, %v6432_v32  ;;  %v6490_v48 = vshll.u32 %v6432_v32, 16 }
 0x22f   : > { %v3758_v53 = vadd.f32 %v12778_v31, %v15412_v56  ;;  %v15529_v16 = vadd.f32 %v4158_v42, %v3755_v17 }
 0x230   : > { %v15533_v41 = vpop.f32.mrf.mxu1  ;;  %v15535_v22 = vpop.f32.mrf.mxu0  ;;  %12959 = vmatprep.mubr.msk.bf16.mxu1 %vm6914_vm5, %v11844_v57  ;;  %v6481_v57 = vshrl.u32 %v6431_v34, 16 }
 0x231   : > { %19065 = vst [vmem:[#allocation60_spill] sm:$0xff] %v15533_v41  ;;  %19066 = vst [vmem:[#allocation59_spill] sm:$0xff] %v15535_v22  ;;  %v15537_v3 = vadd.f32 %v12812_v8, %v3758_v53 }
 0x232   : > { %v12781_v2 = vpop.f32.mrf.mxu1  ;;  %v12819_v37 = vpop.f32.mrf.mxu0 }
 0x233   : > { %v3761_v56 = vadd.f32 %v12781_v2, %v15418_v40 }
 0x234   : > { %v3704_v42 = vpop.f32.mrf.mxu1  ;;  %v4190_v17 = vpop.f32.mrf.mxu0 }
 0x235   : > { %v3759_v31 = vadd.f32 %v3704_v42, %v15421_v10  ;;  %v15542_v24 = vadd.f32 %v12815_v12, %v3761_v56  ;;  %v6484_v12 = vshll.u32 %v6431_v34, 16 }
 0x236   : > { %v12782_v41 = vpop.f32.mrf.mxu1  ;;  %v12820_v22 = vpop.f32.mrf.mxu0 }
 0x237   : > { %v3762_v7 = vadd.f32 %v12782_v41, %v15427_v4  ;;  %v15545_v8 = vadd.f32 %v4174_v60, %v3759_v31  ;;  %v6494_v41 = vshrl.u32 %v6432_v32, 16 }
 0x238   : > { %v15547_v53 = vpop.f32.mrf.mxu1  ;;  %v15549_v45 = vpop.f32.mrf.mxu0 }
 0x239   : > { %19067 = vst [vmem:[#allocation61_spill] sm:$0xff] %v15547_v53  ;;  %19068 = vst [vmem:[#allocation67_spill] sm:$0xff] %v15549_v45  ;;  %v15551_v19 = vadd.f32 %v12816_v61, %v3762_v7  ;;  %v6483_v61 = vrot.slane %v6481_v57, 4 }
 0x23a   : > { %v12785_v40 = vpop.f32.mrf.mxu1  ;;  %v15553_v2 = vpop.f32.mrf.mxu0 }
 0x23b   : > { %19069 = vst [vmem:[#allocation68_spill] sm:$0xff] %v15553_v2  ;;  %v3765_v10 = vadd.f32 %v12785_v40, %v15439_v0  ;;  %v6486_v2 = vrot.slane %v6484_v12, 5 }
 0x23c   : > { %v3720_v56 = vpop.f32.mrf.mxu1  ;;  %v15556_v42 = vpop.f32.mrf.mxu0 }
 0x23d   : > { %19070 = vst [vmem:[#allocation69_spill] sm:$0xff] %v15556_v42  ;;  %v3763_v4 = vadd.f32 %v3720_v56, %v15444_v50  ;;  %v15559_v60 = vadd.f32 %v12819_v37, %v3765_v10  ;;  %v6492_v50 = vrot.slane %v6490_v48, 5  ;;  %v6496_v37 = vrot.slane %v6494_v41, 4 }
 0x23e   : > { %v12786_v31 = vpop.f32.mrf.mxu1  ;;  %v15561_v53 = vpop.f32.mrf.mxu0  ;;  %v6487_v57 = vor.u32 %v6486_v2, %v6483_v61 }
 0x23f   : > { %19071 = vst [vmem:[#allocation70_spill] sm:$0xff] %v15561_v53  ;;  %v3766_v7 = vadd.f32 %v12786_v31, %v15450_v62  ;;  %v15564_v45 = vadd.f32 %v4190_v17, %v3763_v4  ;;  %v6464_v53 = vld [vmem:[#allocation2 + $0x8] sm:$0x1]  ;;  %v6497_v42 = vor.u32 %v6496_v37, %v6492_v50 }
 0x240   : > { %v15566_v0 = vpop.f32.mrf.mxu1  ;;  %v15568_v34 = vpop.f32.mrf.mxu0  ;;  %v6500_v32 = vshll.u32 %v6464_v53, 16  ;;  %v6488_v12 = vrot.slane %v6487_v57, 4 }
 0x241   : > { %v15570_v40 = vadd.f32 %v12820_v22, %v3766_v7  ;;  %v6498_v4 = vrot.slane %v6497_v42, 4 }
 0x242   : > { %v15572_v10 = vpop.f32.mrf.mxu1  ;;  %v15574_v56 = vpop.f32.mrf.mxu0  ;;  %v6502_v48 = vrot.slane %v6500_v32, 5  ;;  %v6493_v41 = vsel %vm13739_vm1, %v6488_v12, %v6492_v50 }
 0x243   : > { %19072 = vst [vmem:[#allocation71_spill] sm:$0xff] %v15574_v56 }
 0x244   : > { %v15576_v62 = vpop.f32.mrf.mxu1  ;;  %v15578_v17 = vpop.f32.mrf.mxu0  ;;  %v6503_v2 = vsel %vm13739_vm1, %v6498_v4, %v6502_v48  ;;  %v15613_v48 = vld [vmem:[%s18859_s4 + $0x8] sm:$0xf] }
 0x245   : > { %v11812_v61 = vcombine.low %v6493_v41, %v6503_v2  ;;  %19079 = vst [vmem:[#allocation78_spill] sm:$0xff] %v15613_v48  ;;  %13244 = vmatprep.subr.msk.bf16.mxu0 %vm6963_vm0, %v15613_v48 }
 0x246   : > { %v15580_v31 = vpop.f32.mrf.mxu1  ;;  %v15582_v22 = vpop.f32.mrf.mxu0 }
 0x247   : > { %19073 = vst [vmem:[#allocation72_spill] sm:$0xff] %v15582_v22  ;;  %12925 = vmatprep.mubr.msk.bf16.mxu0 %vm6914_vm5, %v11812_v61 }
 0x248   : > { %v15586_v7 = vpop.f32.mrf.mxu1  ;;  %v15588_v56 = vpop.f32.mrf.mxu0 }
 0x249   : > { %19074 = vst [vmem:[#allocation73_spill] sm:$0xff] %v15588_v56 }
 0x24a   : > { %v15592_v37 = vpop.f32.mrf.mxu1  ;;  %v15594_v53 = vpop.f32.mrf.mxu0 }
 0x24b   : > { %19075 = vst [vmem:[#allocation74_spill] sm:$0xff] %v15594_v53 }
 0x24c   : > { %v15597_v42 = vpop.f32.mrf.mxu1  ;;  %v15599_v57 = vpop.f32.mrf.mxu0 }
 0x24d   : > { %19076 = vst [vmem:[#allocation75_spill] sm:$0xff] %v15599_v57 }
 0x24e   : > { %v12830_v32 = vpop.f32.mrf.mxu1  ;;  %v15601_v50 = vpop.f32.mrf.mxu0 }
 0x24f   : > { %19077 = vst [vmem:[#allocation76_spill] sm:$0xff] %v15601_v50  ;;  %v15604_v12 = vadd.f32 %v12830_v32, %v15480_v43 }
 0x250   : > { %v15606_v56 = vpop.f32.mrf.mxu1  ;;  %v15608_v4 = vpop.f32.mrf.mxu0 }
 0x251   : > { %19078 = vst [vmem:[#allocation77_spill] sm:$0xff] %v15608_v4 }
 0x252   : > { %v12833_v41 = vpop.f32.mrf.mxu1  ;;  %v15615_v2 = vpop.f32.mrf.mxu0 }
 0x253   : > { %19080 = vst [vmem:[#allocation79_spill] sm:$0xff] %v15615_v2  ;;  %v15620_v61 = vadd.f32 %v12833_v41, %v15484_v59 }
 0x254   : > { %v4469_v43 = vpop.f32.mrf.mxu1  ;;  %v15622_v32 = vpop.f32.mrf.mxu0 }
 0x255   : > { %19081 = vst [vmem:[#allocation80_spill] sm:$0xff] %v15622_v32  ;;  %v15625_v5 = vadd.f32 %v4469_v43, %v15487_v14 }
 0x256   : > { %v12834_v4 = vpop.f32.mrf.mxu1  ;;  %v15627_v50 = vpop.f32.mrf.mxu0 }
 0x257   : > { %19082 = vst [vmem:[#allocation81_spill] sm:$0xff] %v15627_v50  ;;  %v15630_v57 = vadd.f32 %v12834_v4, %v15493_v30 }
 0x258   : > { %v15632_v53 = vpop.f32.mrf.mxu1  ;;  %v15634_v2 = vpop.f32.mrf.mxu0 }
 0x259   : > { %19083 = vst [vmem:[#allocation82_spill] sm:$0xff] %v15630_v57  ;;  %19084 = vst [vmem:[#allocation83_spill] sm:$0xff] %v15634_v2 }
 0x25a   : > { %v12837_v48 = vpop.f32.mrf.mxu1  ;;  %v15636_v22 = vpop.f32.mrf.mxu0 }
 0x25b   : > { %19085 = vst [vmem:[#allocation84_spill] sm:$0xff] %v15636_v22  ;;  %v15639_v59 = vadd.f32 %v12837_v48, %v15497_v46 }
 0x25c   : > { %v4485_v41 = vpop.f32.mrf.mxu1  ;;  %v15641_v32 = vpop.f32.mrf.mxu0 }
 0x25d   : > { %19086 = vst [vmem:[#allocation85_spill] sm:$0xff] %v15641_v32  ;;  %v15644_v14 = vadd.f32 %v4485_v41, %v15500_v44 }
 0x25e   : > { %v12838_v43 = vpop.f32.mrf.mxu1  ;;  %v15646_v50 = vpop.f32.mrf.mxu0 }
 0x25f   : > { %19087 = vst [vmem:[#allocation86_spill] sm:$0xff] %v15646_v50  ;;  %v15649_v30 = vadd.f32 %v12838_v43, %v15506_v20 }
 0x260   : > { %v15651_v4 = vpop.f32.mrf.mxu1  ;;  %v15653_v2 = vpop.f32.mrf.mxu0 }
 0x261   : > { %19088 = vst [vmem:[#allocation87_spill] sm:$0xff] %v15649_v30  ;;  %19089 = vst [vmem:[#allocation88_spill] sm:$0xff] %v15653_v2 }
 0x262   : > { %v12841_v22 = vpop.f32.mrf.mxu1  ;;  %v15655_v57 = vpop.f32.mrf.mxu0 }
 0x263   : > { %v15658_v46 = vadd.f32 %v12841_v22, %v15510_v29 }
 0x264   : > { %v4501_v48 = vpop.f32.mrf.mxu1  ;;  %v15660_v32 = vpop.f32.mrf.mxu0 }
 0x265   : > { %19090 = vst [vmem:[#allocation89_spill] sm:$0xff] %v15660_v32  ;;  %v15663_v44 = vadd.f32 %v4501_v48, %v15513_v39 }
 0x266   : > { %v12842_v41 = vpop.f32.mrf.mxu1  ;;  %v15665_v50 = vpop.f32.mrf.mxu0 }
 0x267   : > { %19091 = vst [vmem:[#allocation90_spill] sm:$0xff] %v15665_v50  ;;  %v15668_v20 = vadd.f32 %v12842_v41, %v15519_v47  ;;  %v2695_v41 = vadd.f32 %v15156_v36, %v15181_v55 }
 0x268   : > { %v15670_v43 = vpop.f32.mrf.mxu1  ;;  %v15672_v30 = vpop.f32.mrf.mxu0 }
 0x269   : > { %19092 = vst [vmem:[#allocation91_spill] sm:$0xff] %v15672_v30  ;;  %v2711_v30 = vadd.f32 %v15183_v58, %v15199_v63 }
 0x26a   : > { %v12845_v2 = vpop.f32.mrf.mxu1  ;;  %v15680_v48 = vpop.f32.mrf.mxu0 }
 0x26b   : > { %v15675_v29 = vadd.f32 %v12845_v2, %v15523_v6  ;;  %19094 = vst [vmem:[#allocation93_spill] sm:$0xff] %v15680_v48  ;;  %v2727_v6 = vadd.f32 %v15201_v11, %v15217_v27  ;;  %v3196_v48 = vadd.f32 %v15379_v54, %v2695_v41  ;;  %v19099_v11 = vld [vmem:[#allocation45_spill] sm:$0xff]  ;;  %v19100_v27 = vld [vmem:[#allocation66_spill] sm:$0xff] }
 0x26c   : > { %v4517_v22 = vpop.f32.mrf.mxu1  ;;  %v19102_v54 = vld [vmem:[#allocation18_spill] sm:$0xff] }
 0x26d   : > { %v15678_v32 = vadd.f32 %v4517_v22, %v15529_v16  ;;  %v19096_v16 = vld [vmem:[#allocation64_spill] sm:$0xff]  ;;  %v3204_v55 = vadd.f32 %v15423_v51, %v2727_v6  ;;  %v19104_v51 = vld [vmem:[#allocation42_spill] sm:$0xff] }
 0x26e   : > { %v12846_v39 = vpop.f32.mrf.mxu1  ;;  %v2743_v2 = vadd.f32 %v19096_v16, %v15242_v1  ;;  %v3542_v1 = vadd.f32 %v19100_v27, %v19099_v11  ;;  %v19107_v11 = vld [vmem:[#allocation48_spill] sm:$0xff] }
 0x26f   : > { %19093 = vst [vmem:[#allocation92_spill] sm:$0xff] %v15678_v32  ;;  %v15683_v50 = vadd.f32 %v12846_v39, %v15537_v3  ;;  %v15695_v32 = vpop.f32.mrf.mxu0  ;;  %v19098_v3 = vld [vmem:[#allocation65_spill] sm:$0xff] }
 0x270   : > { %v15685_v47 = vpop.f32.mrf.mxu1  ;;  %19097 = vst [vmem:[#allocation64_spill] sm:$0xff] %v15695_v32  ;;  %v3538_v39 = vadd.f32 %v19098_v3, %v15271_v49  ;;  %v3208_v58 = vadd.f32 %v15446_v38, %v2743_v2  ;;  %v19101_v49 = vld [vmem:[#allocation41_spill] sm:$0xff]  ;;  %v3554_v38 = vadd.f32 %v19104_v51, %v3196_v48  ;;  %v3740_v2 = vadd.f32 %v15476_v18, %v3542_v1  ;;  %v19105_v48 = vld [vmem:[#allocation55_spill] sm:$0xff]  ;;  %v19109_v1 = vld [vmem:[#allocation50_spill] sm:$0xff] }
 0x271   : > { %19095 = vst [vmem:[#allocation94_spill] sm:$0xff] %v15683_v50  ;;  %v3200_v50 = vadd.f32 %v15408_v15, %v2711_v30  ;;  %v3546_v41 = vadd.f32 %v19102_v54, %v19101_v49  ;;  %v19103_v15 = vld [vmem:[#allocation53_spill] sm:$0xff]  ;;  %v19112_v49 = vld [vmem:[#allocation51_spill] sm:$0xff] }
 0x272   : > { %v12849_v22 = vpop.f32.mrf.mxu1  ;;  %v3736_v16 = vadd.f32 %v15465_v21, %v3538_v39  ;;  %v3566_v3 = vadd.f32 %v15425_v35, %v3208_v58  ;;  %v4207_v39 = vadd.f32 %v15433_v52, %v15455_v13  ;;  %v19111_v35 = vld [vmem:[#allocation47_spill] sm:$0xff]  ;;  %v19113_v13 = vld [vmem:[#allocation54_spill] sm:$0xff] }
 0x273   : > { %v15702_v36 = vadd.f32 %v12849_v22, %v15542_v24  ;;  %v3550_v24 = vadd.f32 %v19103_v15, %v15355_v28  ;;  %v15716_v22 = vpop.f32.mrf.mxu0  ;;  %v3558_v6 = vadd.f32 %v15381_v9, %v3200_v50  ;;  %v4205_v28 = vadd.f32 %v15436_v25, %v15460_v26  ;;  %v19106_v50 = vld [vmem:[#allocation46_spill] sm:$0xff]  ;;  %v19114_v25 = vld [vmem:[#allocation60_spill] sm:$0xff] }
 0x274   : > { %v4533_v63 = vpop.f32.mrf.mxu1  ;;  %v4208_v9 = vadd.f32 %v19105_v48, %v15463_v33  ;;  %v4206_v18 = vadd.f32 %v19106_v50, %v3736_v16  ;;  %v3752_v54 = vadd.f32 %v19113_v13, %v3554_v38  ;;  %v19115_v33 = vld [vmem:[#allocation58_spill] sm:$0xff]  ;;  %v19116_v16 = vld [vmem:[#allocation61_spill] sm:$0xff]  ;;  %v3764_v50 = vadd.f32 %v15566_v0, %v3566_v3 }
 0x275   : > { %v15710_v32 = vadd.f32 %v4533_v63, %v15545_v8  ;;  %v3562_v8 = vadd.f32 %v15410_v23, %v3204_v55  ;;  %v3744_v23 = vadd.f32 %v19109_v1, %v3546_v41  ;;  %v19110_v55 = vld [vmem:[#allocation49_spill] sm:$0xff]  ;;  %v3748_v52 = vadd.f32 %v19112_v49, %v3550_v24  ;;  %v19117_v1 = vld [vmem:[#allocation62_spill] sm:$0xff] }
 0x276   : > { %v12850_v30 = vpop.f32.mrf.mxu1  ;;  %v4209_v58 = vadd.f32 %v19111_v35, %v19110_v55  ;;  %v3756_v26 = vadd.f32 %v19114_v25, %v3558_v6  ;;  %v4210_v51 = vadd.f32 %v19115_v33, %v3740_v2  ;;  %v4564_v24 = vadd.f32 %v15576_v62, %v4205_v28  ;;  %v19119_v35 = vld [vmem:[#allocation52_spill] sm:$0xff]  ;;  %v19124_v49 = vld [vmem:[#allocation69_spill] sm:$0xff]  ;;  %v19125_v13 = vld [vmem:[#allocation70_spill] sm:$0xff] }
 0x277   : > { %v15722_v21 = vadd.f32 %v12850_v30, %v15551_v19  ;;  %v19108_v19 = vld [vmem:[#allocation56_spill] sm:$0xff]  ;;  %v15743_v30 = vpop.f32.mrf.mxu0  ;;  %v3760_v48 = vadd.f32 %v19116_v16, %v3562_v8  ;;  %v4567_v38 = vadd.f32 %v15580_v31, %v4208_v9  ;;  %v4565_v6 = vadd.f32 %v15586_v7, %v4206_v18  ;;  %v19121_v9 = vld [vmem:[#allocation59_spill] sm:$0xff] }
 0x278   : > { %v15730_v63 = vpop.f32.mrf.mxu1  ;;  %v4211_v27 = vadd.f32 %v19108_v19, %v19107_v11  ;;  %v4566_v11 = vadd.f32 %v15572_v10, %v4207_v39  ;;  %v4214_v55 = vadd.f32 %v19117_v1, %v3744_v23  ;;  %v4568_v8 = vadd.f32 %v15597_v42, %v4209_v58  ;;  %v19120_v39 = vld [vmem:[#allocation57_spill] sm:$0xff]  ;;  %v19122_v23 = vld [vmem:[#allocation67_spill] sm:$0xff]  ;;  %v19132_v1 = vld [vmem:[#allocation82_spill] sm:$0xff] }
 0x279   : > { %v4222_v10 = vadd.f32 %v19119_v35, %v3752_v54  ;;  %v4226_v62 = vadd.f32 %v19120_v39, %v3756_v26  ;;  %v4569_v31 = vadd.f32 %v15606_v56, %v4210_v51  ;;  %v15765_v28 = vpop.f32.mrf.mxu0  ;;  %v4230_v18 = vadd.f32 %v19121_v9, %v3760_v48  ;;  %v19126_v26 = vld [vmem:[#allocation71_spill] sm:$0xff]  ;;  %v19127_v51 = vld [vmem:[#allocation72_spill] sm:$0xff] }
 0x27a   : > { %v12853_v15 = vpop.f32.mrf.mxu1  ;;  %v4570_v2 = vadd.f32 %v15592_v37, %v4211_v27  ;;  %v4234_v37 = vadd.f32 %v19122_v23, %v3764_v50  ;;  %v4573_v42 = vadd.f32 %v15632_v53, %v4214_v55  ;;  %v19123_v27 = vld [vmem:[#allocation68_spill] sm:$0xff]  ;;  %v5293_v54 = vadd.f32 %v19125_v13, %v4567_v38  ;;  %v19128_v53 = vld [vmem:[#allocation73_spill] sm:$0xff]  ;;  %v19129_v50 = vld [vmem:[#allocation74_spill] sm:$0xff] }
 0x27b   : > { %v15749_v41 = vadd.f32 %v12853_v15, %v15559_v60  ;;  %v19118_v60 = vld [vmem:[#allocation63_spill] sm:$0xff]  ;;  %v5292_v58 = vadd.f32 %v19123_v27, %v4566_v11  ;;  %v5291_v25 = vadd.f32 %v15568_v34, %v4565_v6  ;;  %v15777_v33 = vadd.f32 %v15578_v17, %v4568_v8  ;;  %v19136_v35 = vld [vmem:[#allocation80_spill] sm:$0xff]  ;;  %v19141_v13 = vld [vmem:[#allocation85_spill] sm:$0xff] }
 0x27c   : > { %v4549_v19 = vpop.f32.mrf.mxu1  ;;  %v4218_v3 = vadd.f32 %v19118_v60, %v3748_v52  ;;  %v5290_v52 = vadd.f32 %v19124_v49, %v4564_v24  ;;  %v5296_v15 = vadd.f32 %v19126_v26, %v4570_v2  ;;  %v15781_v16 = vadd.f32 %v19127_v51, %v15604_v12  ;;  %v5275_v24 = vpop.f32.mrf.mxu0  ;;  %v15795_v17 = vld [vmem:[%s18857_s2] ss:$0 sm:$0xff]  ;;  %v19130_v12 = vld [vmem:[#allocation78_spill] sm:$0xff]  ;;  %v19143_v51 = vld [vmem:[#allocation88_spill] sm:$0xff] }
 0x27d   : > { %v15759_v0 = vadd.f32 %v4549_v19, %v15564_v45  ;;  %v15785_v48 = vadd.f32 %v19128_v53, %v4569_v31  ;;  %v15789_v11 = vadd.f32 %v19129_v50, %v15620_v61  ;;  %v4581_v34 = vadd.f32 %v15670_v43, %v4222_v10  ;;  %v19133_v61 = vld [vmem:[#allocation76_spill] sm:$0xff]  ;;  %v19134_v43 = vld [vmem:[#allocation77_spill] sm:$0xff]  ;;  %v19135_v60 = vld [vmem:[#allocation79_spill] sm:$0xff] }
 0x27e   : > { %v12854_v7 = vpop.f32.mrf.mxu1  ;;  %v15799_v6 = vsel %vm6963_vm0, %v19130_v12, 0  ;;  %v15807_v55 = vadd.f32 %v19133_v61, %v19132_v1  ;;  %v15810_v2 = vadd.f32 %v19134_v43, %v4573_v42  ;;  %v15818_v10 = vadd.f32 %v19136_v35, %v15644_v14  ;;  %v19137_v39 = vld [vmem:[#allocation87_spill] sm:$0xff]  ;;  %v19138_v31 = vld [vmem:[#allocation81_spill] sm:$0xff]  ;;  %v12888_v50 = vpop.f32.mrf.mxu0  ;;  %v19146_v61 = vld [vmem:[#allocation94_spill] sm:$0xff] }
 0x27f   : > { %v4595_v45 = vadd.f32 %v12854_v7, %v15570_v40  ;;  %v4577_v40 = vadd.f32 %v15651_v4, %v4218_v3  ;;  %v19131_v4 = vld [vmem:[#allocation75_spill] sm:$0xff]  ;;  %v15814_v3 = vadd.f32 %v19135_v60, %v15639_v59  ;;  %v4585_v7 = vadd.f32 %v15685_v47, %v4226_v62  ;;  %v19140_v59 = vld [vmem:[#allocation84_spill] sm:$0xff]  ;;  %v19142_v47 = vld [vmem:[#allocation86_spill] sm:$0xff] }
 0x280   : > { %v4552_v56 = vpop.f32.mrf.mxu1  ;;  %v15803_v19 = vadd.f32 %v19131_v4, %v15625_v5  ;;  %v15822_v5 = vadd.f32 %v19138_v31, %v19137_v39  ;;  %v15828_v9 = vld [vmem:[%s18858_s3] ss:$0 sm:$0xff]  ;;  %v15840_v26 = vadd.f32 %v19141_v13, %v15663_v44  ;;  %v15844_v62 = vadd.f32 %v19142_v47, %v15668_v20  ;;  %v19144_v4 = vld [vmem:[#allocation92_spill] sm:$0xff]  ;;  %v19145_v1 = vld [vmem:[#allocation89_spill] sm:$0xff] }
 0x281   : > { %v19139_v42 = vld [vmem:[#allocation83_spill] sm:$0xff]  ;;  %v15847_v53 = vadd.f32 %v19143_v51, %v4581_v34  ;;  %v15858_v20 = vadd.f32 %v19145_v1, %v19144_v4  ;;  %v19147_v34 = vld [vmem:[#allocation90_spill] sm:$0xff]  ;;  %v15888_v13 = vadd.f32 %v15765_v28, %v15749_v41 }
 0x282   : > { %v12893_v38 = vpop.f32.mrf.mxu1  ;;  %v15831_v27 = vadd.f32 %v19139_v42, %v4577_v40  ;;  %v4589_v40 = vadd.f32 %v15730_v63, %v4230_v18  ;;  %v15862_v43 = vadd.f32 %v19147_v34, %v19146_v61  ;;  %v19148_v63 = vld [vmem:[#allocation91_spill] sm:$0xff] }
 0x283   : > { %v5762_v8 = vadd.f32 %v12893_v38, %v5292_v58  ;;  %v15835_v58 = vadd.f32 %v19140_v59, %v15658_v46  ;;  %v15852_v46 = vadd.f32 %v15655_v57, %v15675_v29  ;;  %v15865_v18 = vadd.f32 %v19148_v63, %v4585_v7 }
 0x284   : > { %v5633_v23 = vpop.f32.mrf.mxu1  ;;  %v15879_v7 = vadd.f32 %v15716_v22, %v15722_v21  ;;  %v15893_v22 = vadd.f32 %v12888_v50, %v4595_v45  ;;  %v6326_v50 = vld [vmem:[#allocation2 + $0x18] sm:$0xf] }
 0x285   : > { %v5801_v14 = vmul.f32 %v15795_v17, %v5762_v8  ;;  %v5760_v49 = vadd.f32 %v5633_v23, %v5290_v52  ;;  %v4593_v8 = vadd.f32 %v4552_v56, %v4234_v37  ;;  %v19150_v23 = vld [vmem:[#allocation64_spill] sm:$0xff]  ;;  %v15882_v37 = vadd.f32 %v15743_v30, %v4589_v40  ;;  %v5278_v56 = vpop.f32.mrf.mxu0 }
 0x286   : > { %v12894_v38 = vpop.f32.mrf.mxu1  ;;  %v15875_v42 = vadd.f32 %v19150_v23, %v15710_v32  ;;  %v15891_v32 = vadd.f32 %v5275_v24, %v15759_v0 }
 0x287   : > { %v5840_v52 = vadd.f32 %v15828_v9, %v5801_v14  ;;  %v5799_v44 = vmul.f32 %v15795_v17, %v5760_v49  ;;  %v5763_v12 = vadd.f32 %v12894_v38, %v5293_v54  ;;  %v19149_v54 = vld [vmem:[#allocation93_spill] sm:$0xff]  ;;  %v15895_v47 = vadd.f32 %v5278_v56, %v4593_v8 }
 0x288   : > { %v5636_v60 = vpop.f32.mrf.mxu1  ;;  %v15871_v31 = vadd.f32 %v19149_v54, %v15702_v36 }
 0x289   : > { %v5872_v57 = vmax.f32 %v5840_v52, 0.0  ;;  %v5838_v29 = vadd.f32 %v15828_v9, %v5799_v44  ;;  %v5802_v35 = vmul.f32 %v15795_v17, %v5763_v12  ;;  %v5761_v39 = vadd.f32 %v5636_v60, %v5291_v25 }
 0x28a   : > { %v12897_v59 = vpop.f32.mrf.mxu1 }
 0x28b   : > { %v12229_v14 = vpack.c.bf16 %v5872_v57, %v5872_v57  ;;  %v5870_v49 = vmax.f32 %v5838_v29, 0.0  ;;  %v5841_v25 = vadd.f32 %v15828_v9, %v5802_v35  ;;  %v5800_v36 = vmul.f32 %v15795_v17, %v5761_v39 }
 0x28c   : > { %v5766_v21 = vadd.f32 %v12897_v59, %v5296_v15  ;;  %v5649_v30 = vpop.f32.mrf.mxu1 }
 0x28d   : > { %v6016_v51 = vshrl.u32 %v12229_v14, 16  ;;  %v12227_v40 = vpack.c.bf16 %v5870_v49, %v5870_v49  ;;  %v5873_v38 = vmax.f32 %v5841_v25, 0.0  ;;  %v6019_v52 = vshll.u32 %v12229_v14, 16 }
 0x28e   : > { %v5839_v44 = vadd.f32 %v15828_v9, %v5800_v36  ;;  %v5805_v12 = vmul.f32 %v15795_v17, %v5766_v21  ;;  %v5764_v41 = vadd.f32 %v5649_v30, %v15777_v33  ;;  %v12898_v28 = vpop.f32.mrf.mxu1  ;;  %v6330_v36 = vld [vmem:[#allocation2 + $0x20] sm:$0x1] }
 0x28f   : > { %v6018_v4 = vrot.slane %v6016_v51, 7  ;;  %v5999_v0 = vshrl.u32 %v12227_v40, 16  ;;  %v6002_v24 = vshll.u32 %v12227_v40, 16  ;;  %v12230_v45 = vpack.c.bf16 %v5873_v38, %v5873_v38  ;;  %v13425_v38 = vld [vmem:[#allocation2 + $0xc] sm:$0xf] }
 0x290   : > { %v5871_v1 = vmax.f32 %v5839_v44, 0.0  ;;  %v5844_v61 = vadd.f32 %v15828_v9, %v5805_v12  ;;  %v5803_v34 = vmul.f32 %v15795_v17, %v5764_v41  ;;  %v5767_v63 = vadd.f32 %v12898_v28, %v15781_v16  ;;  %v5652_v33 = vpop.f32.mrf.mxu1 }
 0x291   : > { %v6021_v8 = vor.u32 %v6019_v52, %v6018_v4  ;;  %v6022_v60 = vrot.slane %v6018_v4, 4  ;;  %v6001_v57 = vrot.slane %v5999_v0, 7  ;;  %v6024_v29 = vshrl.u32 %v12230_v45, 16 }
 0x292   : > { %v6027_v35 = vshll.u32 %v12230_v45, 16  ;;  %v12228_v39 = vpack.c.bf16 %v5871_v1, %v5871_v1  ;;  %v5876_v54 = vmax.f32 %v5844_v61, 0.0  ;;  %v5842_v23 = vadd.f32 %v15828_v9, %v5803_v34  ;;  %v12901_v56 = vpop.f32.mrf.mxu1 }
 0x293   : > { %v6327_v59 = vsel %vm15902_vm9, %v6021_v8, %v6326_v50  ;;  %v6004_v14 = vor.u32 %v6002_v24, %v6001_v57  ;;  %v6005_v49 = vrot.slane %v6001_v57, 4  ;;  %v6026_v25 = vrot.slane %v6024_v29, 7  ;;  %v6323_v8 = vld [vmem:[#allocation2 + $0x14] sm:$0x1] }
 0x294   : > { %6328 = vst [vmem:[#allocation2 + $0x18] sm:$0xf] %v6327_v59  ;;  %v6007_v16 = vshrl.u32 %v12228_v39, 16  ;;  %v6010_v21 = vshll.u32 %v12228_v39, 16  ;;  %v12233_v30 = vpack.c.bf16 %v5876_v54, %v5876_v54  ;;  %v5874_v51 = vmax.f32 %v5842_v23, 0.0  ;;  %v5665_v40 = vpop.f32.mrf.mxu1 }
 0x295   : > { %v6320_v52 = vsel %vm15902_vm9, %v6004_v14, %v13425_v38  ;;  %v6029_v44 = vor.u32 %v6027_v35, %v6026_v25  ;;  %v6031_v12 = vrot.slane %v6026_v25, 4  ;;  %v5806_v41 = vmul.f32 %v15795_v17, %v5767_v63  ;;  %v6340_v59 = vld [vmem:[#allocation2 + $0x30] sm:$0xf] }
 0x296   : > { %6321 = vst [vmem:[#allocation2 + $0xc] sm:$0xf] %v6320_v52  ;;  %v6009_v28 = vrot.slane %v6007_v16, 7  ;;  %v6050_v4 = vshrl.u32 %v12233_v30, 16  ;;  %v6053_v0 = vshll.u32 %v12233_v30, 16  ;;  %v12231_v24 = vpack.c.bf16 %v5874_v51, %v5874_v51  ;;  %v12902_v45 = vpop.f32.mrf.mxu1 }
 0x297   : > { %v6030_v1 = vsel %vm13666_vm10, %v6022_v60, %v6029_v44  ;;  %v6331_v34 = vsel %vm13619_vm3, %v6031_v12, %v6330_v36  ;;  %v5845_v57 = vadd.f32 %v15828_v9, %v5806_v41  ;;  %v5765_v29 = vadd.f32 %v5652_v33, %v15785_v48 }
 0x298   : > { %6329 = vst.msk [vmem:[#allocation2 + $0x1c] sm:$0xf] %vm372_vm7, %v6030_v1  ;;  %6332 = vst [vmem:[#allocation2 + $0x20] sm:$0x1] %v6331_v34  ;;  %v6012_v63 = vor.u32 %v6010_v21, %v6009_v28  ;;  %v6014_v35 = vrot.slane %v6009_v28, 4  ;;  %v6052_v39 = vrot.slane %v6050_v4, 7  ;;  %v5668_v23 = vpop.f32.mrf.mxu1  ;;  %v5770_v36 = vadd.f32 %v12901_v56, %v15789_v11 }
 0x299   : > { %v6033_v54 = vshrl.u32 %v12231_v24, 16  ;;  %v6036_v14 = vshll.u32 %v12231_v24, 16  ;;  %v5877_v25 = vmax.f32 %v5845_v57, 0.0  ;;  %v5804_v60 = vmul.f32 %v15795_v17, %v5765_v29  ;;  %v6333_v56 = vld [vmem:[#allocation2 + $0x24] sm:$0xf] }
 0x29a   : > { %v6013_v16 = vsel %vm13666_vm10, %v6005_v49, %v6012_v63  ;;  %v6324_v48 = vsel %vm13619_vm3, %v6014_v35, %v6323_v8  ;;  %v6055_v33 = vor.u32 %v6053_v0, %v6052_v39  ;;  %v6056_v30 = vrot.slane %v6052_v39, 4  ;;  %v12905_v21 = vpop.f32.mrf.mxu1 }
 0x29b   : > { %6322 = vst.msk [vmem:[#allocation2 + $0x10] sm:$0xf] %vm372_vm7, %v6013_v16  ;;  %6325 = vst [vmem:[#allocation2 + $0x14] sm:$0x1] %v6324_v48  ;;  %v15929_v51 = vrot.slane %v6033_v54, 7  ;;  %v12234_v38 = vpack.c.bf16 %v5877_v25, %v5877_v25  ;;  %v5843_v52 = vadd.f32 %v15828_v9, %v5804_v60  ;;  %v5809_v44 = vmul.f32 %v15795_v17, %v5770_v36 }
 0x29c   : > { %v6341_v11 = vsel %vm15902_vm9, %v6055_v33, %v6340_v59  ;;  %v5768_v49 = vadd.f32 %v5665_v40, %v15803_v19  ;;  %v5771_v12 = vadd.f32 %v12902_v45, %v15807_v55  ;;  %v5769_v41 = vadd.f32 %v5668_v23, %v15810_v2  ;;  %v5681_v1 = vpop.f32.mrf.mxu1  ;;  %v6344_v2 = vld [vmem:[#allocation2 + $0x38] sm:$0x1] }
 0x29d   : > { %6342 = vst [vmem:[#allocation2 + $0x30] sm:$0xf] %v6341_v11  ;;  %v6038_v28 = vor.u32 %v6036_v14, %v15929_v51  ;;  %v6039_v4 = vrot.slane %v15929_v51, 4  ;;  %v6058_v0 = vshrl.u32 %v12234_v38, 16  ;;  %v6061_v24 = vshll.u32 %v12234_v38, 16 }
 0x29e   : > { %v5875_v34 = vmax.f32 %v5843_v52, 0.0  ;;  %v5848_v8 = vadd.f32 %v15828_v9, %v5809_v44  ;;  %v5807_v57 = vmul.f32 %v15795_v17, %v5768_v49  ;;  %v5810_v29 = vmul.f32 %v15795_v17, %v5771_v12  ;;  %v12906_v60 = vpop.f32.mrf.mxu1  ;;  %v6337_v49 = vld [vmem:[#allocation2 + $0x2c] sm:$0x1] }
 0x29f   : > { %v6334_v19 = vsel %vm15902_vm9, %v6038_v28, %v6333_v56  ;;  %v6060_v55 = vrot.slane %v6058_v0, 7  ;;  %v5808_v40 = vmul.f32 %v15795_v17, %v5769_v41  ;;  %v5774_v45 = vadd.f32 %v12905_v21, %v15814_v3 }
 0x2a0   : > { %6335 = vst [vmem:[#allocation2 + $0x24] sm:$0xf] %v6334_v19  ;;  %v12232_v63 = vpack.c.bf16 %v5875_v34, %v5875_v34  ;;  %v5880_v35 = vmax.f32 %v5848_v8, 0.0  ;;  %v5846_v39 = vadd.f32 %v15828_v9, %v5807_v57  ;;  %v5849_v54 = vadd.f32 %v15828_v9, %v5810_v29  ;;  %v6354_v29 = vld [vmem:[#allocation2 + $0x48] sm:$0xf] }
 0x2a1   : > { %v6063_v23 = vor.u32 %v6061_v24, %v6060_v55  ;;  %v6065_v59 = vrot.slane %v6060_v55, 4  ;;  %v5847_v14 = vadd.f32 %v15828_v9, %v5808_v40  ;;  %v5813_v25 = vmul.f32 %v15795_v17, %v5774_v45 }
 0x2a2   : > { %v6041_v36 = vshrl.u32 %v12232_v63, 16  ;;  %v6044_v16 = vshll.u32 %v12232_v63, 16  ;;  %v12237_v48 = vpack.c.bf16 %v5880_v35, %v5880_v35  ;;  %v5878_v33 = vmax.f32 %v5846_v39, 0.0 }
 0x2a3   : > { %v6064_v3 = vsel %vm13666_vm10, %v6056_v30, %v6063_v23  ;;  %v6345_v21 = vsel %vm13619_vm3, %v6065_v59, %v6344_v2  ;;  %v5881_v51 = vmax.f32 %v5849_v54, 0.0  ;;  %v5879_v38 = vmax.f32 %v5847_v14, 0.0  ;;  %v5684_v30 = vpop.f32.mrf.mxu1 }
 0x2a4   : > { %6343 = vst.msk [vmem:[#allocation2 + $0x34] sm:$0xf] %vm372_vm7, %v6064_v3  ;;  %6346 = vst [vmem:[#allocation2 + $0x38] sm:$0x1] %v6345_v21  ;;  %v6043_v52 = vrot.slane %v6041_v36, 7  ;;  %v6084_v44 = vshrl.u32 %v12237_v48, 16  ;;  %v12235_v56 = vpack.c.bf16 %v5878_v33, %v5878_v33  ;;  %v5852_v28 = vadd.f32 %v15828_v9, %v5813_v25 }
 0x2a5   : > { %v6087_v11 = vshll.u32 %v12237_v48, 16  ;;  %v12238_v12 = vpack.c.bf16 %v5881_v51, %v5881_v51  ;;  %v12236_v41 = vpack.c.bf16 %v5879_v38, %v5879_v38  ;;  %v5772_v0 = vadd.f32 %v5681_v1, %v15818_v10  ;;  %v12909_v59 = vpop.f32.mrf.mxu1  ;;  %v6347_v25 = vld [vmem:[#allocation2 + $0x3c] sm:$0xf]  ;;  %v6358_v36 = vld [vmem:[#allocation2 + $0x50] sm:$0x1] }
 0x2a6   : > { %v6046_v24 = vor.u32 %v6044_v16, %v6043_v52  ;;  %v6048_v34 = vrot.slane %v6043_v52, 4  ;;  %v6086_v8 = vrot.slane %v6084_v44, 7  ;;  %v6067_v57 = vshrl.u32 %v12235_v56, 16  ;;  %v6351_v38 = vld [vmem:[#allocation2 + $0x44] sm:$0x1] }
 0x2a7   : > { %v6070_v19 = vshll.u32 %v12235_v56, 16  ;;  %v6092_v55 = vshrl.u32 %v12238_v12, 16  ;;  %v6095_v2 = vshll.u32 %v12238_v12, 16  ;;  %v6075_v40 = vshrl.u32 %v12236_v41, 16 }
 0x2a8   : > { %v6047_v45 = vsel %vm13666_vm10, %v6039_v4, %v6046_v24  ;;  %v6338_v63 = vsel %vm13619_vm3, %v6048_v34, %v6337_v49  ;;  %v6089_v35 = vor.u32 %v6087_v11, %v6086_v8  ;;  %v6090_v39 = vrot.slane %v6086_v8, 4  ;;  %v11925_v49 = vld [vmem:[%s18859_s4 + $0xc] sm:$0xf] }
 0x2a9   : > { %6336 = vst.msk [vmem:[#allocation2 + $0x28] sm:$0xf] %vm372_vm7, %v6047_v45  ;;  %6339 = vst [vmem:[#allocation2 + $0x2c] sm:$0x1] %v6338_v63  ;;  %v6069_v10 = vrot.slane %v6067_v57, 7  ;;  %v6094_v1 = vrot.slane %v6092_v55, 7  ;;  %v5811_v4 = vmul.f32 %v15795_v17, %v5772_v0  ;;  %v5775_v48 = vadd.f32 %v12906_v60, %v15822_v5  ;;  %13245 = vmatprep.subr.msk.bf16.mxu1 %vm6963_vm0, %v11925_v49 }
 0x2aa   : > { %v6077_v54 = vrot.slane %v6075_v40, 7  ;;  %v6078_v23 = vshll.u32 %v12236_v41, 16  ;;  %v6355_v14 = vsel %vm15902_vm9, %v6089_v35, %v6354_v29  ;;  %v5884_v16 = vmax.f32 %v5852_v28, 0.0  ;;  %v5697_v28 = vpop.f32.mrf.mxu1  ;;  %v6433_v0 = vld [vmem:[#allocation2 + $0xc] sm:$0xf] }
 0x2ab   : > { %6356 = vst [vmem:[#allocation2 + $0x48] sm:$0xf] %v6355_v14  ;;  %v6072_v33 = vor.u32 %v6070_v19, %v6069_v10  ;;  %v6073_v3 = vrot.slane %v6069_v10, 4  ;;  %v6097_v21 = vor.u32 %v6095_v2, %v6094_v1  ;;  %v6099_v51 = vrot.slane %v6094_v1, 4  ;;  %v6361_v49 = vld [vmem:[#allocation2 + $0x54] sm:$0xf] }
 0x2ac   : > { %v6080_v52 = vor.u32 %v6078_v23, %v6077_v54  ;;  %v6082_v44 = vrot.slane %v6077_v54, 4  ;;  %v12241_v11 = vpack.c.bf16 %v5884_v16, %v5884_v16  ;;  %v5850_v56 = vadd.f32 %v15828_v9, %v5811_v4  ;;  %v15991_v14 = vpop.f32.mrf.mxu1  ;;  %v15997_v4 = vld [vmem:[#allocation2 + $0x10] sm:$0xf] }
 0x2ad   : > { %v6348_v12 = vsel %vm15902_vm9, %v6072_v33, %v6347_v25  ;;  %v6098_v5 = vsel %vm13666_vm10, %v6090_v39, %v6097_v21  ;;  %v6359_v60 = vsel %vm13619_vm3, %v6099_v51, %v6358_v36  ;;  %v5814_v41 = vmul.f32 %v15795_v17, %v5775_v48  ;;  %v6368_v39 = vld [vmem:[#allocation2 + $0x60] sm:$0xf] }
 0x2ae   : > { %6349 = vst [vmem:[#allocation2 + $0x3c] sm:$0xf] %v6348_v12  ;;  %6357 = vst.msk [vmem:[#allocation2 + $0x4c] sm:$0xf] %vm372_vm7, %v6098_v5  ;;  %v6081_v24 = vsel %vm13666_vm10, %v6073_v3, %v6080_v52  ;;  %v6352_v34 = vsel %vm13619_vm3, %v6082_v44, %v6351_v38  ;;  %v6118_v8 = vshrl.u32 %v12241_v11, 16  ;;  %v6121_v57 = vshll.u32 %v12241_v11, 16 }
 0x2af   : > { %6360 = vst [vmem:[#allocation2 + $0x50] sm:$0x1] %v6359_v60  ;;  %6350 = vst.msk [vmem:[#allocation2 + $0x40] sm:$0xf] %vm372_vm7, %v6081_v24  ;;  %v5882_v29 = vmax.f32 %v5850_v56, 0.0  ;;  %v5853_v19 = vadd.f32 %v15828_v9, %v5814_v41  ;;  %v5773_v55 = vadd.f32 %v5684_v30, %v15831_v27  ;;  %v5778_v2 = vadd.f32 %v12909_v59, %v15835_v58  ;;  %v5700_v56 = vpop.f32.mrf.mxu1 }
 0x2b0   : > { %6353 = vst [vmem:[#allocation2 + $0x44] sm:$0x1] %v6352_v34  ;;  %v6120_v40 = vrot.slane %v6118_v8, 7  ;;  %v5776_v45 = vadd.f32 %v5697_v28, %v15840_v26  ;;  %v6505_v63 = vshrl.u32 %v6433_v0, 16  ;;  %v6508_v35 = vshll.u32 %v6433_v0, 16 }
 0x2b1   : > { %v12239_v10 = vpack.c.bf16 %v5882_v29, %v5882_v29  ;;  %v5885_v1 = vmax.f32 %v5853_v19, 0.0  ;;  %v5812_v54 = vmul.f32 %v15795_v17, %v5773_v55  ;;  %v5817_v23 = vmul.f32 %v15795_v17, %v5778_v2  ;;  %v6435_v11 = vld [vmem:[#allocation2 + $0x18] sm:$0xf] }
 0x2b2   : > { %v6123_v25 = vor.u32 %v6121_v57, %v6120_v40  ;;  %v6124_v36 = vrot.slane %v6120_v40, 4  ;;  %v5815_v27 = vmul.f32 %v15795_v17, %v5776_v45  ;;  %v15994_v30 = vrot.slane %v6505_v63, 4  ;;  %v6372_v57 = vld [vmem:[#allocation2 + $0x68] sm:$0x1] }
 0x2b3   : > { %v6101_v58 = vshrl.u32 %v12239_v10, 16  ;;  %v6104_v59 = vshll.u32 %v12239_v10, 16  ;;  %v12242_v26 = vpack.c.bf16 %v5885_v1, %v5885_v1  ;;  %v5851_v16 = vadd.f32 %v15828_v9, %v5812_v54 }
 0x2b4   : > { %v6369_v48 = vsel %vm15902_vm9, %v6123_v25, %v6368_v39  ;;  %v5856_v33 = vadd.f32 %v15828_v9, %v5817_v23  ;;  %v5854_v3 = vadd.f32 %v15828_v9, %v5815_v27  ;;  %v16003_v21 = vrot.slane %v6508_v35, 5  ;;  %v12913_v39 = vpop.f32.mrf.mxu1  ;;  %v16010_v23 = vld [vmem:[#allocation2 + $0x1c] sm:$0xf] }
 0x2b5   : > { %6370 = vst [vmem:[#allocation2 + $0x60] sm:$0xf] %v6369_v48  ;;  %v6103_v51 = vrot.slane %v6101_v58, 7  ;;  %v6126_v38 = vshrl.u32 %v12242_v26, 16  ;;  %v6129_v52 = vshll.u32 %v12242_v26, 16  ;;  %v5883_v44 = vmax.f32 %v5851_v16, 0.0 }
 0x2b6   : > { %v5888_v12 = vmax.f32 %v5856_v33, 0.0  ;;  %v5886_v5 = vmax.f32 %v5854_v3, 0.0  ;;  %v6518_v60 = vshrl.u32 %v15997_v4, 16  ;;  %v11845_v41 = vcombine.low %v6433_v0, %v15997_v4  ;;  %v6382_v48 = vld [vmem:[#allocation2 + $0x78] sm:$0xf] }
 0x2b7   : > { %v6106_v28 = vor.u32 %v6104_v59, %v6103_v51  ;;  %v6107_v24 = vrot.slane %v6103_v51, 4  ;;  %v6128_v34 = vrot.slane %v6126_v38, 7  ;;  %v12240_v8 = vpack.c.bf16 %v5883_v44, %v5883_v44  ;;  %v6365_v59 = vld [vmem:[#allocation2 + $0x5c] sm:$0x1] }
 0x2b8   : > { %v12245_v29 = vpack.c.bf16 %v5888_v12, %v5888_v12  ;;  %v12243_v19 = vpack.c.bf16 %v5886_v5, %v5886_v5  ;;  %12960 = vmatmul.mubr.msk.bf16.vlgmr.msra.gmra.mxu1 %vm6914_vm5, %v11845_v41  ;;  %v6529_v55 = vshrl.u32 %v6435_v11, 16  ;;  %v6532_v2 = vshll.u32 %v6435_v11, 16  ;;  %v5713_v12 = vpop.f32.mrf.mxu1 }
 0x2b9   : > { %v6362_v40 = vsel %vm15902_vm9, %v6106_v28, %v6361_v49  ;;  %v6131_v45 = vor.u32 %v6129_v52, %v6128_v34  ;;  %v6133_v63 = vrot.slane %v6128_v34, 4  ;;  %v6109_v35 = vshrl.u32 %v12240_v8, 16  ;;  %v6375_v52 = vld [vmem:[#allocation2 + $0x6c] sm:$0xf] }
 0x2ba   : > { %6363 = vst [vmem:[#allocation2 + $0x54] sm:$0xf] %v6362_v40  ;;  %v6112_v0 = vshll.u32 %v12240_v8, 16  ;;  %v6152_v10 = vshrl.u32 %v12245_v29, 16  ;;  %v6155_v1 = vshll.u32 %v12245_v29, 16  ;;  %v6135_v54 = vshrl.u32 %v12243_v19, 16 }
 0x2bb   : > { %v6132_v25 = vsel %vm13666_vm10, %v6124_v36, %v6131_v45  ;;  %v6373_v27 = vsel %vm13619_vm3, %v6133_v63, %v6372_v57  ;;  %v6111_v58 = vrot.slane %v6109_v35, 7  ;;  %v6138_v26 = vshll.u32 %v12243_v19, 16  ;;  %v6437_v8 = vld [vmem:[#allocation2 + $0x24] sm:$0xf] }
 0x2bc   : > { %6371 = vst.msk [vmem:[#allocation2 + $0x64] sm:$0xf] %vm372_vm7, %v6132_v25  ;;  %6374 = vst [vmem:[#allocation2 + $0x68] sm:$0x1] %v6373_v27  ;;  %v16017_v16 = vrot.slane %v6152_v10, 7  ;;  %v16019_v33 = vrot.slane %v6135_v54, 7  ;;  %v11846_v49 = vcombine.low %v6435_v11, %v16010_v23  ;;  %v5779_v11 = vadd.f32 %v15991_v14, %v15844_v62 }
 0x2bd   : > { %v16021_v3 = vrot.slane %v6529_v55, 4  ;;  %v16023_v51 = vrot.slane %v6532_v2, 5  ;;  %v6114_v38 = vor.u32 %v6112_v0, %v6111_v58  ;;  %v6116_v36 = vrot.slane %v6111_v58, 4  ;;  %v16039_v55 = vld [vmem:[#allocation2 + $0x28] sm:$0xf] }
 0x2be   : > { %v6542_v44 = vshrl.u32 %v16010_v23, 16  ;;  %v6157_v5 = vor.u32 %v6155_v1, %v16017_v16  ;;  %v6158_v41 = vrot.slane %v16017_v16, 4  ;;  %v6140_v28 = vor.u32 %v6138_v26, %v16019_v33  ;;  %12963 = vmatprep.mubr.msk.bf16.mxu1 %vm6914_vm5, %v11846_v49  ;;  %v6465_v1 = vld [vmem:[#allocation2 + $0x14] sm:$0x1]  ;;  %v16066_v26 = vld [vmem:[#allocation2 + $0x30] sm:$0xf] }
 0x2bf   : > { %v6141_v34 = vrot.slane %v16019_v33, 4  ;;  %v6115_v57 = vsel %vm13666_vm10, %v6107_v24, %v6114_v38  ;;  %v6366_v29 = vsel %vm13619_vm3, %v6116_v36, %v6365_v59  ;;  %v5777_v19 = vadd.f32 %v5700_v56, %v15847_v53 }
 0x2c0   : > { %6364 = vst.msk [vmem:[#allocation2 + $0x58] sm:$0xf] %vm372_vm7, %v6115_v57  ;;  %6367 = vst [vmem:[#allocation2 + $0x5c] sm:$0x1] %v6366_v29  ;;  %v6383_v2 = vsel %vm15902_vm9, %v6157_v5, %v6382_v48  ;;  %v6376_v24 = vsel %vm15902_vm9, %v6140_v28, %v6375_v52  ;;  %v5782_v40 = vadd.f32 %v12913_v39, %v15852_v46  ;;  %v6553_v14 = vshrl.u32 %v6437_v8, 16  ;;  %v16068_v48 = vpop.f32.mrf.mxu1 }
 0x2c1   : > { %v5780_v45 = vadd.f32 %v5713_v12, %v15858_v20  ;;  %6384 = vst [vmem:[#allocation2 + $0x78] sm:$0xf] %v6383_v2  ;;  %6377 = vst [vmem:[#allocation2 + $0x6c] sm:$0xf] %v6376_v24  ;;  %v5818_v62 = vmul.f32 %v15795_v17, %v5779_v11  ;;  %v5816_v53 = vmul.f32 %v15795_v17, %v5777_v19  ;;  %v6556_v56 = vshll.u32 %v6437_v8, 16 }
 0x2c2   : > { %v5821_v63 = vmul.f32 %v15795_v17, %v5782_v40  ;;  %v6566_v0 = vshrl.u32 %v16039_v55, 16  ;;  %v11847_v10 = vcombine.low %v6437_v8, %v16039_v55  ;;  %v16056_v39 = vrot.slane %v6553_v14, 4  ;;  %v16075_v14 = vld [vmem:[#allocation2 + $0x34] sm:$0xf] }
 0x2c3   : > { %v5819_v35 = vmul.f32 %v15795_v17, %v5780_v45  ;;  %v5857_v46 = vadd.f32 %v15828_v9, %v5818_v62  ;;  %v5855_v20 = vadd.f32 %v15828_v9, %v5816_v53  ;;  %v16058_v54 = vrot.slane %v6556_v56, 5  ;;  %v5716_v45 = vpop.f32.mrf.mxu1  ;;  %v6386_v56 = vld [vmem:[#allocation2 + $0x80] sm:$0x1] }
 0x2c4   : > { %v5860_v25 = vadd.f32 %v15828_v9, %v5821_v63  ;;  %12964 = vmatmul.mubr.msk.bf16.gmra.mxu1 %vm6914_vm5, %v11847_v10  ;;  %v6511_v58 = vor.u32 %v16003_v21, %v15994_v30  ;;  %v6514_v59 = vshll.u32 %v15997_v4, 16  ;;  %v6520_v52 = vrot.slane %v6518_v60, 4 }
 0x2c5   : > { %v5858_v27 = vadd.f32 %v15828_v9, %v5819_v35  ;;  %v5889_v38 = vmax.f32 %v5857_v46, 0.0  ;;  %v5887_v36 = vmax.f32 %v5855_v20, 0.0  ;;  %v6524_v49 = vshll.u32 %v6465_v1, 16 }
 0x2c6   : > { %v5892_v12 = vmax.f32 %v5860_v25, 0.0  ;;  %v6512_v28 = vrot.slane %v6511_v58, 4  ;;  %v6516_v8 = vrot.slane %v6514_v59, 5  ;;  %v6577_v30 = vshrl.u32 %v16066_v26, 16  ;;  %v6379_v58 = vld [vmem:[#allocation2 + $0x74] sm:$0x1] }
 0x2c7   : > { %v5890_v5 = vmax.f32 %v5858_v27, 0.0  ;;  %v12246_v57 = vpack.c.bf16 %v5889_v38, %v5889_v38  ;;  %v12244_v29 = vpack.c.bf16 %v5887_v36, %v5887_v36  ;;  %v6526_v11 = vrot.slane %v6524_v49, 5  ;;  %v12917_v49 = vpop.f32.mrf.mxu1 }
 0x2c8   : > { %v12249_v21 = vpack.c.bf16 %v5892_v12, %v5892_v12  ;;  %v6517_v24 = vsel %vm13739_vm1, %v6512_v28, %v6516_v8  ;;  %v6521_v40 = vor.u32 %v6520_v52, %v6516_v8  ;;  %v16077_v27 = vrot.slane %v6577_v30, 4 }
 0x2c9   : > { %v12247_v19 = vpack.c.bf16 %v5890_v5, %v5890_v5  ;;  %v6160_v62 = vshrl.u32 %v12246_v57, 16  ;;  %v6163_v4 = vshll.u32 %v12246_v57, 16  ;;  %v6143_v60 = vshrl.u32 %v12244_v29, 16  ;;  %v6396_v57 = vld [vmem:[#allocation2 + $0x90] sm:$0xf] }
 0x2ca   : > { %v6146_v53 = vshll.u32 %v12244_v29, 16  ;;  %v6186_v63 = vshrl.u32 %v12249_v21, 16  ;;  %v6189_v35 = vshll.u32 %v12249_v21, 16  ;;  %v6522_v25 = vrot.slane %v6521_v40, 4  ;;  %v6389_v29 = vld [vmem:[#allocation2 + $0x84] sm:$0xf] }
 0x2cb   : > { %v6169_v10 = vshrl.u32 %v12247_v19, 16  ;;  %v6172_v1 = vshll.u32 %v12247_v19, 16  ;;  %v6162_v46 = vrot.slane %v6160_v62, 7  ;;  %v6145_v20 = vrot.slane %v6143_v60, 7  ;;  %v6466_v62 = vld [vmem:[#allocation2 + $0x20] sm:$0x1] }
 0x2cc   : > { %v16079_v59 = vrot.slane %v6186_v63, 7  ;;  %v6580_v36 = vshll.u32 %v16066_v26, 16  ;;  %v6590_v52 = vshrl.u32 %v16075_v14, 16  ;;  %v6527_v33 = vsel %vm13739_vm1, %v6522_v25, %v6526_v11 }
 0x2cd   : > { %v16081_v38 = vrot.slane %v6169_v10, 7  ;;  %v6165_v12 = vor.u32 %v6163_v4, %v6162_v46  ;;  %v6167_v5 = vrot.slane %v6162_v46, 4  ;;  %v6148_v28 = vor.u32 %v6146_v53, %v6145_v20 }
 0x2ce   : > { %v6150_v8 = vrot.slane %v6145_v20, 4  ;;  %v6191_v21 = vor.u32 %v6189_v35, %v16079_v59  ;;  %v6192_v30 = vrot.slane %v16079_v59, 4  ;;  %v11813_v35 = vcombine.low %v6517_v24, %v6527_v33  ;;  %v6441_v20 = vld [vmem:[#allocation2 + $0x3c] sm:$0xf]  ;;  %v16124_v24 = vld [vmem:[%s18859_s4 + $0x10] sm:$0xf] }
 0x2cf   : > { %v6174_v19 = vor.u32 %v6172_v1, %v16081_v38  ;;  %v6175_v40 = vrot.slane %v16081_v38, 4  ;;  %v6166_v60 = vsel %vm13666_vm10, %v6158_v41, %v6165_v12  ;;  %v6387_v4 = vsel %vm13619_vm3, %v6167_v5, %v6386_v56 }
 0x2d0   : > { %v6149_v53 = vsel %vm13666_vm10, %v6141_v34, %v6148_v28  ;;  %v6380_v63 = vsel %vm13619_vm3, %v6150_v8, %v6379_v58  ;;  %6385 = vst.msk [vmem:[#allocation2 + $0x7c] sm:$0xf] %vm372_vm7, %v6166_v60  ;;  %6388 = vst [vmem:[#allocation2 + $0x80] sm:$0x1] %v6387_v4  ;;  %v6397_v16 = vsel %vm15902_vm9, %v6191_v21, %v6396_v57  ;;  %v16109_v56 = vrot.slane %v6580_v36, 5  ;;  %v5729_v34 = vpop.f32.mrf.mxu1 }
 0x2d1   : > { %6378 = vst.msk [vmem:[#allocation2 + $0x70] sm:$0xf] %vm372_vm7, %v6149_v53  ;;  %6381 = vst [vmem:[#allocation2 + $0x74] sm:$0x1] %v6380_v63  ;;  %v6390_v41 = vsel %vm15902_vm9, %v6174_v19, %v6389_v29  ;;  %v11848_v10 = vcombine.low %v16066_v26, %v16075_v14  ;;  %v5783_v1 = vadd.f32 %v16068_v48, %v15862_v43  ;;  %v6538_v58 = vshll.u32 %v16010_v23, 16 }
 0x2d2   : > { %6398 = vst [vmem:[#allocation2 + $0x90] sm:$0xf] %v6397_v16  ;;  %6391 = vst [vmem:[#allocation2 + $0x84] sm:$0xf] %v6390_v41  ;;  %v6535_v46 = vor.u32 %v16023_v51, %v16021_v3  ;;  %v6544_v11 = vrot.slane %v6542_v44, 4  ;;  %v6548_v25 = vshll.u32 %v6466_v62, 16  ;;  %v5781_v36 = vadd.f32 %v5716_v45, %v15865_v18  ;;  %12926 = vmatmul.mubr.msk.bf16.vlgmr.msra.gmra.mxu0 %vm6914_vm5, %v11813_v35  ;;  %v16153_v33 = vpop.f32.mrf.mxu1 }
 0x2d3   : > { %12967 = vmatprep.mubr.msk.bf16.mxu1 %vm6914_vm5, %v11848_v10  ;;  %v5822_v43 = vmul.f32 %v15795_v17, %v5783_v1  ;;  %v5786_v51 = vadd.f32 %v12917_v49, %v15871_v31  ;;  %v5784_v23 = vadd.f32 %v5729_v34, %v15875_v42  ;;  %12992 = vmatpush3.bf16.msra.mxu0 %v15799_v6  ;;  %v6540_v44 = vrot.slane %v6538_v58, 5  ;;  %v16136_v28 = vld [vmem:[#allocation2 + $0x40] sm:$0xf] }
 0x2d4   : > { %v6536_v3 = vrot.slane %v6535_v46, 4  ;;  %v6550_v18 = vrot.slane %v6548_v25, 5  ;;  %v5820_v26 = vmul.f32 %v15795_v17, %v5781_v36  ;;  %v6601_v48 = vshrl.u32 %v6441_v20, 16  ;;  %13246 = vmatprep.subr.msk.bf16.mxu0 %vm6963_vm0, %v16124_v24 }
 0x2d5   : > { %v5861_v45 = vadd.f32 %v15828_v9, %v5822_v43  ;;  %v5825_v12 = vmul.f32 %v15795_v17, %v5786_v51  ;;  %v5823_v5 = vmul.f32 %v15795_v17, %v5784_v23  ;;  %v6604_v8 = vshll.u32 %v6441_v20, 16 }
 0x2d6   : > { %v6541_v6 = vsel %vm13739_vm1, %v6536_v3, %v6540_v44  ;;  %v6545_v31 = vor.u32 %v6544_v11, %v6540_v44  ;;  %v5859_v42 = vadd.f32 %v15828_v9, %v5820_v26  ;;  %v16143_v49 = vrot.slane %v6601_v48, 4  ;;  %v16161_v11 = vld [vmem:[#allocation2 + $0x2c] sm:$0x1]  ;;  %v5732_v44 = vpop.f32.mrf.mxu1 }
 0x2d7   : > { %v5893_v57 = vmax.f32 %v5861_v45, 0.0  ;;  %v5864_v29 = vadd.f32 %v15828_v9, %v5825_v12  ;;  %v5862_v21 = vadd.f32 %v15828_v9, %v5823_v5  ;;  %v16147_v17 = vrot.slane %v6604_v8, 5  ;;  %v6393_v5 = vld [vmem:[#allocation2 + $0x8c] sm:$0x1] }
 0x2d8   : > { %v6546_v19 = vrot.slane %v6545_v31, 4  ;;  %v5891_v62 = vmax.f32 %v5859_v42, 0.0  ;;  %v6614_v60 = vshrl.u32 %v16136_v28, 16  ;;  %v11849_v4 = vcombine.low %v6441_v20, %v16136_v28 }
 0x2d9   : > { %v12250_v53 = vpack.c.bf16 %v5893_v57, %v5893_v57  ;;  %v5896_v63 = vmax.f32 %v5864_v29, 0.0  ;;  %v5894_v16 = vmax.f32 %v5862_v21, 0.0  ;;  %v6559_v41 = vor.u32 %v16058_v54, %v16056_v39  ;;  %v6410_v57 = vld [vmem:[#allocation2 + $0xa8] sm:$0xf] }
 0x2da   : > { %v6551_v34 = vsel %vm13739_vm1, %v6546_v19, %v6550_v18  ;;  %v12248_v9 = vpack.c.bf16 %v5891_v62, %v5891_v62  ;;  %12968 = vmatmul.mubr.msk.bf16.gmra.mxu1 %vm6914_vm5, %v11849_v4  ;;  %v6562_v35 = vshll.u32 %v16039_v55, 16  ;;  %v6568_v10 = vrot.slane %v6566_v0, 4  ;;  %v6400_v18 = vld [vmem:[#allocation2 + $0x98] sm:$0x1]  ;;  %v6443_v19 = vld [vmem:[#allocation2 + $0x48] sm:$0xf] }
 0x2db   : > { %v6194_v1 = vshrl.u32 %v12250_v53, 16  ;;  %v6197_v46 = vshll.u32 %v12250_v53, 16  ;;  %v11814_v20 = vcombine.low %v6541_v6, %v6551_v34  ;;  %v12253_v58 = vpack.c.bf16 %v5896_v63, %v5896_v63  ;;  %v12921_v34 = vpop.f32.mrf.mxu1 }
 0x2dc   : > { %v6177_v39 = vshrl.u32 %v12248_v9, 16  ;;  %v6180_v54 = vshll.u32 %v12248_v9, 16  ;;  %v12251_v25 = vpack.c.bf16 %v5894_v16, %v5894_v16  ;;  %v6560_v36 = vrot.slane %v6559_v41, 4  ;;  %v6403_v16 = vld [vmem:[#allocation2 + $0x9c] sm:$0xf] }
 0x2dd   : > { %v6196_v43 = vrot.slane %v6194_v1, 7  ;;  %12929 = vmatprep.mubr.msk.bf16.mxu0 %vm6914_vm5, %v11814_v20  ;;  %v6220_v3 = vshrl.u32 %v12253_v58, 16  ;;  %v6223_v51 = vshll.u32 %v12253_v58, 16  ;;  %v6564_v23 = vrot.slane %v6562_v35, 5  ;;  %v16179_v41 = vld [vmem:[#allocation2 + $0x4c] sm:$0xf] }
 0x2de   : > { %v6179_v55 = vrot.slane %v6177_v39, 7  ;;  %v6203_v0 = vshrl.u32 %v12251_v25, 16  ;;  %v6206_v26 = vshll.u32 %v12251_v25, 16  ;;  %v6572_v48 = vshll.u32 %v16161_v11, 16  ;;  %v6445_v25 = vld [vmem:[#allocation2 + $0x54] sm:$0xf] }
 0x2df   : > { %v6199_v45 = vor.u32 %v6197_v46, %v6196_v43  ;;  %v6201_v12 = vrot.slane %v6196_v43, 4  ;;  %v16165_v8 = vrot.slane %v6220_v3, 7  ;;  %v6565_v6 = vsel %vm13739_vm1, %v6560_v36, %v6564_v23 }
 0x2e0   : > { %v6182_v31 = vor.u32 %v6180_v54, %v6179_v55  ;;  %v6184_v42 = vrot.slane %v6179_v55, 4  ;;  %v16169_v29 = vrot.slane %v6203_v0, 7  ;;  %v6569_v21 = vor.u32 %v6568_v10, %v6564_v23  ;;  %v16197_v54 = vld [vmem:[#allocation2 + $0x38] sm:$0x1]  ;;  %v5745_v23 = vpop.f32.mrf.mxu1 }
 0x2e1   : > { %v6200_v62 = vsel %vm13666_vm10, %v6192_v30, %v6199_v45  ;;  %v6401_v4 = vsel %vm13619_vm3, %v6201_v12, %v6400_v18  ;;  %v6225_v53 = vor.u32 %v6223_v51, %v16165_v8  ;;  %v6226_v63 = vrot.slane %v16165_v8, 4 }
 0x2e2   : > { %6399 = vst.msk [vmem:[#allocation2 + $0x94] sm:$0xf] %vm372_vm7, %v6200_v62  ;;  %6402 = vst [vmem:[#allocation2 + $0x98] sm:$0x1] %v6401_v4  ;;  %v6183_v59 = vsel %vm13666_vm10, %v6175_v40, %v6182_v31  ;;  %v6394_v30 = vsel %vm13619_vm3, %v6184_v42, %v6393_v5  ;;  %v6208_v9 = vor.u32 %v6206_v26, %v16169_v29  ;;  %v6209_v35 = vrot.slane %v16169_v29, 4 }
 0x2e3   : > { %6392 = vst.msk [vmem:[#allocation2 + $0x88] sm:$0xf] %vm372_vm7, %v6183_v59  ;;  %6395 = vst [vmem:[#allocation2 + $0x8c] sm:$0x1] %v6394_v30  ;;  %v6411_v10 = vsel %vm15902_vm9, %v6225_v53, %v6410_v57  ;;  %v6570_v1 = vrot.slane %v6569_v21, 4  ;;  %v6574_v46 = vrot.slane %v6572_v48, 5  ;;  %v11850_v39 = vcombine.low %v6443_v19, %v16179_v41 }
 0x2e4   : > { %v6625_v20 = vshrl.u32 %v6443_v19, 16  ;;  %6412 = vst [vmem:[#allocation2 + $0xa8] sm:$0xf] %v6411_v10  ;;  %v6404_v38 = vsel %vm15902_vm9, %v6208_v9, %v6403_v16  ;;  %v6628_v40 = vshll.u32 %v6443_v19, 16  ;;  %v6638_v58 = vshrl.u32 %v16179_v41, 16 }
 0x2e5   : > { %6405 = vst [vmem:[#allocation2 + $0x9c] sm:$0xf] %v6404_v38  ;;  %v6575_v36 = vsel %vm13739_vm1, %v6570_v1, %v6574_v46  ;;  %v5787_v3 = vadd.f32 %v16153_v33, %v15879_v7  ;;  %v6583_v51 = vor.u32 %v16109_v56, %v16077_v27  ;;  %12971 = vmatprep.mubr.msk.bf16.mxu1 %vm6914_vm5, %v11850_v39  ;;  %v6586_v0 = vshll.u32 %v16075_v14, 16  ;;  %v16216_v48 = vld [vmem:[%s18857_s2] ss:$0 sm:$0xff] }
 0x2e6   : > { %v16201_v43 = vrot.slane %v6625_v20, 4  ;;  %v11815_v18 = vcombine.low %v6565_v6, %v6575_v36  ;;  %v16207_v55 = vrot.slane %v6628_v40, 5  ;;  %v6592_v26 = vrot.slane %v6590_v52, 4  ;;  %v16227_v5 = vld [vmem:[%s18858_s3] ss:$0 sm:$0xff] }
 0x2e7   : > { %v5826_v7 = vmul.f32 %v16216_v48, %v5787_v3  ;;  %v6584_v33 = vrot.slane %v6583_v51, 4  ;;  %v6596_v27 = vshll.u32 %v16197_v54, 16  ;;  %v5785_v56 = vadd.f32 %v5732_v44, %v15882_v37  ;;  %v16231_v57 = vld [vmem:[#allocation2 + $0x58] sm:$0xf] }
 0x2e8   : > { %12930 = vmatmul.mubr.msk.bf16.gmra.mxu0 %vm6914_vm5, %v11815_v18  ;;  %v6588_v45 = vrot.slane %v6586_v0, 5  ;;  %v5790_v12 = vadd.f32 %v12921_v34, %v15888_v13  ;;  %v5788_v14 = vadd.f32 %v5745_v23, %v15891_v32  ;;  %v6649_v52 = vshrl.u32 %v6445_v25, 16 }
 0x2e9   : > { %v5865_v6 = vadd.f32 %v16227_v5, %v5826_v7  ;;  %v6598_v31 = vrot.slane %v6596_v27, 5  ;;  %v5824_v42 = vmul.f32 %v16216_v48, %v5785_v56  ;;  %v6652_v37 = vshll.u32 %v6445_v25, 16  ;;  %v6414_v56 = vld [vmem:[#allocation2 + $0xb0] sm:$0x1] }
 0x2ea   : > { %v6589_v44 = vsel %vm13739_vm1, %v6584_v33, %v6588_v45  ;;  %v6593_v13 = vor.u32 %v6592_v26, %v6588_v45  ;;  %v5829_v32 = vmul.f32 %v16216_v48, %v5790_v12  ;;  %v5827_v21 = vmul.f32 %v16216_v48, %v5788_v14  ;;  %v16253_v33 = vld [vmem:[#allocation2 + $0x44] sm:$0x1] }
 0x2eb   : > { %v5897_v19 = vmax.f32 %v5865_v6, 0.0  ;;  %v5863_v62 = vadd.f32 %v16227_v5, %v5824_v42  ;;  %v16238_v4 = vrot.slane %v6649_v52, 4  ;;  %v16240_v53 = vrot.slane %v6652_v37, 5  ;;  %v6407_v37 = vld [vmem:[#allocation2 + $0xa4] sm:$0x1] }
 0x2ec   : > { %v6594_v16 = vrot.slane %v6593_v13, 4  ;;  %v5868_v34 = vadd.f32 %v16227_v5, %v5829_v32  ;;  %v5866_v59 = vadd.f32 %v16227_v5, %v5827_v21  ;;  %v6662_v30 = vshrl.u32 %v16231_v57, 16  ;;  %v6424_v32 = vld [vmem:[#allocation2 + $0xc0] sm:$0xf] }
 0x2ed   : > { %v12254_v9 = vpack.c.bf16 %v5897_v19, %v5897_v19  ;;  %v5895_v10 = vmax.f32 %v5863_v62, 0.0  ;;  %v11851_v1 = vcombine.low %v6445_v25, %v16231_v57  ;;  %v6607_v46 = vor.u32 %v16147_v17, %v16143_v49 }
 0x2ee   : > { %v6599_v20 = vsel %vm13739_vm1, %v6594_v16, %v6598_v31  ;;  %v5900_v38 = vmax.f32 %v5868_v34, 0.0  ;;  %v5898_v40 = vmax.f32 %v5866_v59, 0.0  ;;  %v6610_v39 = vshll.u32 %v16136_v28, 16 }
 0x2ef   : > { %v6228_v36 = vshrl.u32 %v12254_v9, 16  ;;  %v6231_v3 = vshll.u32 %v12254_v9, 16  ;;  %v11816_v51 = vcombine.low %v6589_v44, %v6599_v20  ;;  %v12252_v23 = vpack.c.bf16 %v5895_v10, %v5895_v10  ;;  %12972 = vmatmul.mubr.msk.bf16.gmra.mxu1 %vm6914_vm5, %v11851_v1  ;;  %v6417_v9 = vld [vmem:[#allocation2 + $0xb4] sm:$0xf]  ;;  %v6447_v10 = vld [vmem:[#allocation2 + $0x60] sm:$0xf]  ;;  %v12922_v1 = vpop.f32.mrf.mxu1 }
 0x2f0   : > { %v12257_v18 = vpack.c.bf16 %v5900_v38, %v5900_v38  ;;  %v12255_v0 = vpack.c.bf16 %v5898_v40, %v5898_v40  ;;  %v6608_v26 = vrot.slane %v6607_v46, 4  ;;  %v6612_v25 = vrot.slane %v6610_v39, 5 }
 0x2f1   : > { %v6230_v7 = vrot.slane %v6228_v36, 7  ;;  %12933 = vmatprep.mubr.msk.bf16.mxu0 %vm6914_vm5, %v11816_v51  ;;  %v6211_v49 = vshrl.u32 %v12252_v23, 16  ;;  %v6214_v17 = vshll.u32 %v12252_v23, 16  ;;  %v6616_v27 = vrot.slane %v6614_v60, 4  ;;  %v16283_v51 = vld [vmem:[#allocation2 + $0x50] sm:$0x1] }
 0x2f2   : > { %v6254_v45 = vshrl.u32 %v12257_v18, 16  ;;  %v6257_v12 = vshll.u32 %v12257_v18, 16  ;;  %v6237_v14 = vshrl.u32 %v12255_v0, 16  ;;  %v6240_v52 = vshll.u32 %v12255_v0, 16 }
 0x2f3   : > { %v6233_v6 = vor.u32 %v6231_v3, %v6230_v7  ;;  %v6235_v31 = vrot.slane %v6230_v7, 4  ;;  %v6213_v42 = vrot.slane %v6211_v49, 7  ;;  %v6613_v44 = vsel %vm13739_vm1, %v6608_v26, %v6612_v25  ;;  %v6449_v26 = vld [vmem:[#allocation2 + $0x6c] sm:$0xf] }
 0x2f4   : > { %v16259_v13 = vrot.slane %v6254_v45, 7  ;;  %v16261_v21 = vrot.slane %v6237_v14, 7  ;;  %v6617_v19 = vor.u32 %v6616_v27, %v6612_v25  ;;  %v6620_v60 = vshll.u32 %v16253_v33, 16 }
 0x2f5   : > { %v6234_v62 = vsel %vm13666_vm10, %v6226_v63, %v6233_v6  ;;  %v6415_v16 = vsel %vm13619_vm3, %v6235_v31, %v6414_v56  ;;  %v6216_v34 = vor.u32 %v6214_v17, %v6213_v42  ;;  %v6218_v59 = vrot.slane %v6213_v42, 4  ;;  %v16275_v63 = vld [vmem:[#allocation2 + $0x64] sm:$0xf]  ;;  %v5748_v17 = vpop.f32.mrf.mxu1 }
 0x2f6   : > { %6413 = vst.msk [vmem:[#allocation2 + $0xac] sm:$0xf] %vm372_vm7, %v6234_v62  ;;  %6416 = vst [vmem:[#allocation2 + $0xb0] sm:$0x1] %v6415_v16  ;;  %v6259_v46 = vor.u32 %v6257_v12, %v16259_v13  ;;  %v6260_v20 = vrot.slane %v16259_v13, 4  ;;  %v6242_v8 = vor.u32 %v6240_v52, %v16261_v21  ;;  %v6243_v38 = vrot.slane %v16261_v21, 4 }
 0x2f7   : > { %v6217_v40 = vsel %vm13666_vm10, %v6209_v35, %v6216_v34  ;;  %v6408_v39 = vsel %vm13619_vm3, %v6218_v59, %v6407_v37  ;;  %v6618_v36 = vrot.slane %v6617_v19, 4  ;;  %v6622_v3 = vrot.slane %v6620_v60, 5  ;;  %v16301_v12 = vld [vmem:[#allocation2 + $0x70] sm:$0xf]  ;;  %v16313_v60 = vld [vmem:[#allocation2 + $0x5c] sm:$0x1] }
 0x2f8   : > { %6406 = vst.msk [vmem:[#allocation2 + $0xa0] sm:$0xf] %vm372_vm7, %v6217_v40  ;;  %6409 = vst [vmem:[#allocation2 + $0xa4] sm:$0x1] %v6408_v39  ;;  %v6425_v23 = vsel %vm15902_vm9, %v6259_v46, %v6424_v32  ;;  %v6418_v18 = vsel %vm15902_vm9, %v6242_v8, %v6417_v9  ;;  %v6673_v29 = vshrl.u32 %v6447_v10, 16  ;;  %v6676_v0 = vshll.u32 %v6447_v10, 16 }
 0x2f9   : > { %6426 = vst [vmem:[#allocation2 + $0xc0] sm:$0xf] %v6425_v23  ;;  %6419 = vst [vmem:[#allocation2 + $0xb4] sm:$0xf] %v6418_v18  ;;  %v6623_v35 = vsel %vm13739_vm1, %v6618_v36, %v6622_v3  ;;  %v6686_v25 = vshrl.u32 %v16275_v63, 16  ;;  %v11852_v7 = vcombine.low %v6447_v10, %v16275_v63  ;;  %v5791_v49 = vadd.f32 %v12922_v1, %v15893_v22 }
 0x2fa   : > { %v11817_v27 = vcombine.low %v6613_v44, %v6623_v35  ;;  %v16295_v56 = vrot.slane %v6673_v29, 4  ;;  %v16297_v15 = vrot.slane %v6676_v0, 5  ;;  %v6631_v45 = vor.u32 %v16207_v55, %v16201_v43  ;;  %v6451_v59 = vld [vmem:[#allocation2 + $0x78] sm:$0xf]  ;;  %v16331_v39 = vld [vmem:[#allocation2 + $0x7c] sm:$0xf] }
 0x2fb   : > { %12975 = vmatprep.mubr.msk.bf16.mxu1 %vm6914_vm5, %v11852_v7  ;;  %v5830_v14 = vmul.f32 %v16216_v48, %v5791_v49  ;;  %v6634_v52 = vshll.u32 %v16179_v41, 16  ;;  %v6640_v22 = vrot.slane %v6638_v58, 4  ;;  %v6644_v6 = vshll.u32 %v16283_v51, 16 }
 0x2fc   : > { %12934 = vmatmul.mubr.msk.bf16.gmra.mxu0 %vm6914_vm5, %v11817_v27  ;;  %v6632_v31 = vrot.slane %v6631_v45, 4  ;;  %v5789_v42 = vadd.f32 %v5748_v17, %v15895_v47  ;;  %v6697_v37 = vshrl.u32 %v6449_v26, 16  ;;  %v6700_v43 = vshll.u32 %v6449_v26, 16 }
 0x2fd   : > { %v5869_v55 = vadd.f32 %v16227_v5, %v5830_v14  ;;  %v6636_v44 = vrot.slane %v6634_v52, 5  ;;  %v6646_v32 = vrot.slane %v6644_v6, 5  ;;  %v6710_v19 = vshrl.u32 %v16301_v12, 16  ;;  %v16343_v6 = vld [vmem:[#allocation2 + $0x68] sm:$0x1] }
 0x2fe   : > { %v5828_v62 = vmul.f32 %v16216_v48, %v5789_v42  ;;  %v16316_v58 = vrot.slane %v6697_v37, 4  ;;  %v16318_v16 = vrot.slane %v6700_v43, 5  ;;  %v11853_v34 = vcombine.low %v6449_v26, %v16301_v12 }
 0x2ff   : > { %v5901_v47 = vmax.f32 %v5869_v55, 0.0  ;;  %v6637_v9 = vsel %vm13739_vm1, %v6632_v31, %v6636_v44  ;;  %v6641_v10 = vor.u32 %v6640_v22, %v6636_v44  ;;  %v6655_v1 = vor.u32 %v16240_v53, %v16238_v4  ;;  %v6428_v31 = vld [vmem:[#allocation2 + $0xc8] sm:$0x1] }
 0x300   : > { %v5867_v46 = vadd.f32 %v16227_v5, %v5828_v62  ;;  %12976 = vmatmul.mubr.msk.bf16.gmra.mxu1 %vm6914_vm5, %v11853_v34  ;;  %v6658_v48 = vshll.u32 %v16231_v57, 16  ;;  %v6664_v8 = vrot.slane %v6662_v30, 4  ;;  %v6668_v40 = vshll.u32 %v16313_v60, 16 }
 0x301   : > { %v12258_v36 = vpack.c.bf16 %v5901_v47, %v5901_v47  ;;  %v6642_v3 = vrot.slane %v6641_v10, 4  ;;  %v6656_v23 = vrot.slane %v6655_v1, 4  ;;  %v6721_v18 = vshrl.u32 %v6451_v59, 16 }
 0x302   : > { %v5899_v29 = vmax.f32 %v5867_v46, 0.0  ;;  %v6660_v0 = vrot.slane %v6658_v48, 5  ;;  %v6670_v4 = vrot.slane %v6668_v40, 5  ;;  %v6724_v53 = vshll.u32 %v6451_v59, 16  ;;  %v16355_v46 = vld [vmem:[#allocation2 + $0x88] sm:$0xf] }
 0x303   : > { %v6262_v5 = vshrl.u32 %v12258_v36, 16  ;;  %v6265_v26 = vshll.u32 %v12258_v36, 16  ;;  %v6647_v35 = vsel %vm13739_vm1, %v6642_v3, %v6646_v32  ;;  %v16335_v7 = vrot.slane %v6721_v18, 4  ;;  %v6421_v48 = vld [vmem:[#allocation2 + $0xbc] sm:$0x1] }
 0x304   : > { %v11818_v30 = vcombine.low %v6637_v9, %v6647_v35  ;;  %v12256_v49 = vpack.c.bf16 %v5899_v29, %v5899_v29  ;;  %v6661_v17 = vsel %vm13739_vm1, %v6656_v23, %v6660_v0  ;;  %v6665_v27 = vor.u32 %v6664_v8, %v6660_v0  ;;  %v16363_v40 = vld [vmem:[#allocation2 + $0x74] sm:$0x1]  ;;  %v6455_v29 = vld [vmem:[#allocation2 + $0x90] sm:$0xf] }
 0x305   : > { %v6264_v45 = vrot.slane %v6262_v5, 7  ;;  %v16339_v14 = vrot.slane %v6724_v53, 5  ;;  %v6734_v52 = vshrl.u32 %v16331_v39, 16  ;;  %v11854_v22 = vcombine.low %v6451_v59, %v16331_v39  ;;  %v6453_v59 = vld [vmem:[#allocation2 + $0x84] sm:$0xf] }
 0x306   : > { %12937 = vmatprep.mubr.msk.bf16.mxu0 %vm6914_vm5, %v11818_v30  ;;  %v6245_v42 = vshrl.u32 %v12256_v49, 16  ;;  %v6248_v37 = vshll.u32 %v12256_v49, 16  ;;  %v6666_v43 = vrot.slane %v6665_v27, 4  ;;  %v6679_v55 = vor.u32 %v16297_v15, %v16295_v56  ;;  %v16370_v53 = vld [vmem:[#allocation2 + $0x94] sm:$0xf] }
 0x307   : > { %v6267_v44 = vor.u32 %v6265_v26, %v6264_v45  ;;  %v6269_v32 = vrot.slane %v6264_v45, 4  ;;  %12979 = vmatprep.mubr.msk.bf16.mxu1 %vm6914_vm5, %v11854_v22  ;;  %v6682_v62 = vshll.u32 %v16275_v63, 16  ;;  %v6688_v34 = vrot.slane %v6686_v25, 4  ;;  %v16387_v22 = vld [vmem:[#allocation2 + $0x80] sm:$0x1] }
 0x308   : > { %v6247_v47 = vrot.slane %v6245_v42, 7  ;;  %v6671_v9 = vsel %vm13739_vm1, %v6666_v43, %v6670_v4  ;;  %v6680_v10 = vrot.slane %v6679_v55, 4  ;;  %v6692_v1 = vshll.u32 %v16343_v6, 16 }
 0x309   : > { %v6268_v56 = vsel %vm13666_vm10, %v6260_v20, %v6267_v44  ;;  %v6429_v15 = vsel %vm13619_vm3, %v6269_v32, %v6428_v31  ;;  %v11819_v25 = vcombine.low %v6661_v17, %v6671_v9  ;;  %v6684_v8 = vrot.slane %v6682_v62, 5  ;;  %v16392_v62 = vld [vmem:[#allocation2 + $0xa0] sm:$0xf] }
 0x30a   : > { %6427 = vst.msk [vmem:[#allocation2 + $0xc4] sm:$0xf] %vm372_vm7, %v6268_v56  ;;  %6430 = vst [vmem:[#allocation2 + $0xc8] sm:$0x1] %v6429_v15  ;;  %v6250_v36 = vor.u32 %v6248_v37, %v6247_v47  ;;  %v6252_v3 = vrot.slane %v6247_v47, 4  ;;  %v6694_v23 = vrot.slane %v6692_v1, 5  ;;  %v11855_v30 = vcombine.low %v6453_v59, %v16355_v46 }
 0x30b   : > { %v6745_v18 = vshrl.u32 %v6453_v59, 16  ;;  %12938 = vmatmul.mubr.msk.bf16.gmra.mxu0 %vm6914_vm5, %v11819_v25  ;;  %v6685_v13 = vsel %vm13739_vm1, %v6680_v10, %v6684_v8  ;;  %v6689_v20 = vor.u32 %v6688_v34, %v6684_v8  ;;  %v6748_v0 = vshll.u32 %v6453_v59, 16 }
 0x30c   : > { %v6758_v4 = vshrl.u32 %v16355_v46, 16  ;;  %v6251_v5 = vsel %vm13666_vm10, %v6243_v38, %v6250_v36  ;;  %v6422_v26 = vsel %vm13619_vm3, %v6252_v3, %v6421_v48  ;;  %v6703_v27 = vor.u32 %v16318_v16, %v16316_v58  ;;  %12980 = vmatmul.mubr.msk.bf16.gmra.mxu1 %vm6914_vm5, %v11855_v30  ;;  %v6457_v16 = vld [vmem:[#allocation2 + $0x9c] sm:$0xf]  ;;  %v16406_v36 = vld [vmem:[#allocation2 + $0x8c] sm:$0x1] }
 0x30d   : > { %v6747_v35 = vrot.slane %v6745_v18, 4  ;;  %6420 = vst.msk [vmem:[#allocation2 + $0xb8] sm:$0xf] %vm372_vm7, %v6251_v5  ;;  %6423 = vst [vmem:[#allocation2 + $0xbc] sm:$0x1] %v6422_v26  ;;  %v6690_v49 = vrot.slane %v6689_v20, 4  ;;  %v11856_v59 = vcombine.low %v6455_v29, %v16370_v53  ;;  %v6727_v47 = vor.u32 %v16339_v14, %v16335_v7 }
 0x30e   : > { %v6750_v17 = vrot.slane %v6748_v0, 5  ;;  %v6706_v45 = vshll.u32 %v16301_v12, 16  ;;  %v6712_v50 = vrot.slane %v6710_v19, 4  ;;  %v6716_v61 = vshll.u32 %v16363_v40, 16  ;;  %v6459_v18 = vld [vmem:[#allocation2 + $0xa8] sm:$0xf] }
 0x30f   : > { %v6769_v21 = vshrl.u32 %v6455_v29, 16  ;;  %v6772_v38 = vshll.u32 %v6455_v29, 16  ;;  %v6695_v31 = vsel %vm13739_vm1, %v6690_v49, %v6694_v23  ;;  %v6704_v42 = vrot.slane %v6703_v27, 4  ;;  %12983 = vmatprep.mubr.msk.bf16.mxu1 %vm6914_vm5, %v11856_v59  ;;  %v16414_v0 = vld [vmem:[#allocation2 + $0xac] sm:$0xf] }
 0x310   : > { %v6708_v37 = vrot.slane %v6706_v45, 5  ;;  %v6782_v58 = vshrl.u32 %v16370_v53, 16  ;;  %v11820_v43 = vcombine.low %v6685_v13, %v6695_v31  ;;  %v6718_v55 = vrot.slane %v6716_v61, 5  ;;  %v16423_v31 = vld [vmem:[#allocation2 + $0x98] sm:$0x1] }
 0x311   : > { %v6771_v44 = vrot.slane %v6769_v21, 4  ;;  %v6774_v32 = vrot.slane %v6772_v38, 5  ;;  %v6730_v9 = vshll.u32 %v16331_v39, 16  ;;  %v6736_v10 = vrot.slane %v6734_v52, 4 }
 0x312   : > { %v6709_v19 = vsel %vm13739_vm1, %v6704_v42, %v6708_v37  ;;  %v6713_v34 = vor.u32 %v6712_v50, %v6708_v37  ;;  %12941 = vmatprep.mubr.msk.bf16.mxu0 %vm6914_vm5, %v11820_v43  ;;  %v6740_v1 = vshll.u32 %v16387_v22, 16  ;;  %v6793_v56 = vshrl.u32 %v6457_v16, 16  ;;  %v6461_v43 = vld [vmem:[#allocation2 + $0xb4] sm:$0xf] }
 0x313   : > { %v6728_v48 = vrot.slane %v6727_v47, 4  ;;  %v6796_v25 = vshll.u32 %v6457_v16, 16  ;;  %v6806_v8 = vshrl.u32 %v16392_v62, 16  ;;  %v6732_v7 = vrot.slane %v6730_v9, 5 }
 0x314   : > { %v6714_v15 = vrot.slane %v6713_v34, 4  ;;  %v6742_v14 = vrot.slane %v6740_v1, 5  ;;  %v16408_v3 = vrot.slane %v6793_v56, 4  ;;  %v11857_v23 = vcombine.low %v6457_v16, %v16392_v62  ;;  %v16431_v47 = vld [vmem:[#allocation2 + $0xb8] sm:$0xf] }
 0x315   : > { %v6798_v29 = vrot.slane %v6796_v25, 5  ;;  %v6751_v13 = vor.u32 %v6750_v17, %v6747_v35  ;;  %v6754_v20 = vshll.u32 %v16355_v46, 16  ;;  %v6733_v26 = vsel %vm13739_vm1, %v6728_v48, %v6732_v7 }
 0x316   : > { %v6719_v52 = vsel %vm13739_vm1, %v6714_v15, %v6718_v55  ;;  %v6737_v30 = vor.u32 %v6736_v10, %v6732_v7  ;;  %12984 = vmatmul.mubr.msk.bf16.gmra.mxu1 %vm6914_vm5, %v11857_v23  ;;  %v6760_v49 = vrot.slane %v6758_v4, 4  ;;  %v6764_v50 = vshll.u32 %v16406_v36, 16 }
 0x317   : > { %v11821_v5 = vcombine.low %v6709_v19, %v6719_v52  ;;  %v6752_v27 = vrot.slane %v6751_v13, 4  ;;  %v6756_v45 = vrot.slane %v6754_v20, 5  ;;  %v6817_v61 = vshrl.u32 %v6459_v18, 16 }
 0x318   : > { %v6738_v35 = vrot.slane %v6737_v30, 4  ;;  %v6820_v17 = vshll.u32 %v6459_v18, 16  ;;  %v6830_v21 = vshrl.u32 %v16414_v0, 16  ;;  %v11858_v38 = vcombine.low %v6459_v18, %v16414_v0  ;;  %v16439_v18 = vld [vmem:[#allocation2 + $0xa4] sm:$0x1] }
 0x319   : > { %12942 = vmatmul.mubr.msk.bf16.gmra.mxu0 %vm6914_vm5, %v11821_v5  ;;  %v6757_v42 = vsel %vm13739_vm1, %v6752_v27, %v6756_v45  ;;  %v6761_v37 = vor.u32 %v6760_v49, %v6756_v45  ;;  %v6766_v4 = vrot.slane %v6764_v50, 5  ;;  %v6819_v16 = vrot.slane %v6817_v61, 4  ;;  %v13356_v5 = vld [vmem:[#allocation2 + $0xc] sm:$0xff]  }
 0x31a   : > { %v6743_v55 = vsel %vm13739_vm1, %v6738_v35, %v6742_v14  ;;  %v6822_v19 = vrot.slane %v6820_v17, 5  ;;  %12987 = vmatprep.mubr.msk.bf16.mxu1 %vm6914_vm5, %v11858_v38  ;;  %v6775_v34 = vor.u32 %v6774_v32, %v6771_v44  ;;  %v6778_v59 = vshll.u32 %v16370_v53, 16 }
 0x31b   : > { %v11822_v9 = vcombine.low %v6733_v26, %v6743_v55  ;;  %v6762_v10 = vrot.slane %v6761_v37, 4  ;;  %v6784_v1 = vrot.slane %v6782_v58, 4  ;;  %v6788_v56 = vshll.u32 %v16423_v31, 16  ;;  %v16443_v26 = vld [vmem:[#allocation2 + $0xb0] sm:$0x1] }
 0x31c   : > { %v6776_v15 = vrot.slane %v6775_v34, 4  ;;  %v6780_v48 = vrot.slane %v6778_v59, 5  ;;  %v6841_v25 = vshrl.u32 %v6461_v43, 16  ;;  %v6844_v7 = vshll.u32 %v6461_v43, 16  ;;  %v16455_v55 = vld [vmem:[#allocation2 + $0xbc] sm:$0x1] }
 0x31d   : > { %12945 = vmatprep.mubr.msk.bf16.mxu0 %vm6914_vm5, %v11822_v9  ;;  %v6767_v14 = vsel %vm13739_vm1, %v6762_v10, %v6766_v4  ;;  %v6790_v23 = vrot.slane %v6788_v56, 5  ;;  %v6854_v44 = vshrl.u32 %v16431_v47, 16  ;;  %v11859_v32 = vcombine.low %v6461_v43, %v16431_v47  ;;  %v7420_v9 = vld [vmem:[#allocation2] sm:$0xe]  ;;  %v13428_v56 = vld [vmem:[%s18859_s4 + $0xc] sm:$0xf] }
 0x31e   : > { %v11823_v52 = vcombine.low %v6757_v42, %v6767_v14  ;;  %v6781_v58 = vsel %vm13739_vm1, %v6776_v15, %v6780_v48  ;;  %v6785_v13 = vor.u32 %v6784_v1, %v6780_v48  ;;  %v6843_v20 = vrot.slane %v6841_v25, 4 }
 0x31f   : > { %v6846_v30 = vrot.slane %v6844_v7, 5  ;;  %12988 = vmatmul.mubr.msk.bf16.gmra.mxu1 %vm6914_vm5, %v11859_v32  ;;  %v6799_v49 = vor.u32 %v6798_v29, %v16408_v3  ;;  %v6802_v27 = vshll.u32 %v16392_v62, 16  ;;  %v6808_v45 = vrot.slane %v6806_v8, 4  ;;  %v7421_v32 = vld [vmem:[#allocation2 + $0xc] sm:$0xe] }
 0x320   : > { %v6786_v50 = vrot.slane %v6785_v13, 4  ;;  %v6812_v61 = vshll.u32 %v16439_v18, 16  ;;  %13027 = vmatprep.mubr.msk.bf16.mxu1 %vm6914_vm5, %v13356_v5  ;;  %v6823_v35 = vor.u32 %v6822_v19, %v6819_v16  ;;  %v6826_v17 = vshll.u32 %v16414_v0, 16 }
 0x321   : > { %12946 = vmatmul.mubr.msk.bf16.gmra.mxu0 %vm6914_vm5, %v11823_v52  ;;  %v6800_v38 = vrot.slane %v6799_v49, 4  ;;  %v6804_v42 = vrot.slane %v6802_v27, 5  ;;  %v6832_v37 = vrot.slane %v6830_v21, 4  ;;  %v6836_v4 = vshll.u32 %v16443_v26, 16  ;;  %v16462_v21 = vld [vmem:[%s18859_s4 + $0x14] sm:$0xf] }
 0x322   : > { %v6791_v3 = vsel %vm13739_vm1, %v6786_v50, %v6790_v23  ;;  %v6814_v29 = vrot.slane %v6812_v61, 5  ;;  %v6824_v8 = vrot.slane %v6823_v35, 4  ;;  %v6828_v43 = vrot.slane %v6826_v17, 5  ;;  %v13429_v49 = vld [vmem:[#allocation2 + $0x4] sm:$0xf] }
 0x323   : > { %v11824_v34 = vcombine.low %v6781_v58, %v6791_v3  ;;  %v6805_v59 = vsel %vm13739_vm1, %v6800_v38, %v6804_v42  ;;  %v6809_v16 = vor.u32 %v6808_v45, %v6804_v42  ;;  %v6838_v19 = vrot.slane %v6836_v4, 5  ;;  %v13357_v58 = vld [vmem:[#allocation2 + $0x18] sm:$0xff]   ;;  %v13358_v50 = vld [vmem:[#allocation2 + $0x24] sm:$0xff]  }
 0x324   : > { %v6829_v10 = vsel %vm13739_vm1, %v6824_v8, %v6828_v43  ;;  %v6833_v1 = vor.u32 %v6832_v37, %v6828_v43  ;;  %v8037_v15 = vsel %vm6963_vm0, %v13428_v56, 0  ;;  %v6847_v48 = vor.u32 %v6846_v30, %v6843_v20  ;;  %v13430_v61 = vld [vmem:[#allocation2 + $0x8] sm:$0x1]  ;;  %v7422_v4 = vld [vmem:[#allocation2 + $0x18] sm:$0xe] }
 0x325   : > { %12949 = vmatprep.mubr.msk.bf16.mxu0 %vm6914_vm5, %v11824_v34  ;;  %v6810_v25 = vrot.slane %v6809_v16, 4  ;;  %13026 = vmatpush3.bf16.msra.mxu1 %v8037_v15  ;;  %v6850_v7 = vshll.u32 %v16431_v47, 16  ;;  %v6856_v14 = vrot.slane %v6854_v44, 4  ;;  %v6860_v23 = vshll.u32 %v16455_v55, 16  ;;  %v7423_v34 = vld [vmem:[#allocation2 + $0x24] sm:$0xe] }
 0x326   : > { %v6834_v52 = vrot.slane %v6833_v1, 4  ;;  %v6848_v13 = vrot.slane %v6847_v48, 4  ;;  %v11876_v5 = vrot.slane %v7420_v9, 9  ;;  %v7470_v27 = vrot.slane %v13429_v49, 5  ;;  %13247 = vmatprep.subr.msk.bf16.mxu1 %vm6963_vm0, %v16462_v21  ;;  %v13431_v16 = vld [vmem:[#allocation2 + $0x10] sm:$0xf] }
 0x327   : > { %v6815_v20 = vsel %vm13739_vm1, %v6810_v25, %v6814_v29  ;;  %v6852_v30 = vrot.slane %v6850_v7, 5  ;;  %v6862_v45 = vrot.slane %v6860_v23, 5  ;;  %v7473_v44 = vrot.slane %v13430_v61, 5  ;;  %v13432_v9 = vld [vmem:[#allocation2 + $0x14] sm:$0x1] }
 0x328   : > { %v11825_v35 = vcombine.low %v6805_v59, %v6815_v20  ;;  %v6839_v17 = vsel %vm13739_vm1, %v6834_v52, %v6838_v19  ;;  %13028 = vmatmul.mubr.msk.bf16.vlgmr.msra.gmra.mxu1 %vm6914_vm5, %v13357_v58  ;;  %v16482_v42 = vsel %vm14377_vm8, %v11876_v5, %v7470_v27  ;;  %v7472_v37 = vrot.slane %v7470_v27, 4  ;;  %v13433_v25 = vld [vmem:[#allocation2 + $0x1c] sm:$0xf]  ;;  %v13434_v52 = vld [vmem:[#allocation2 + $0x20] sm:$0x1]  ;;  %v13359_v61 = vld [vmem:[#allocation2 + $0x30] sm:$0xff]  }
 0x329   : > { %v11826_v3 = vcombine.low %v6829_v10, %v6839_v17  ;;  %v6853_v29 = vsel %vm13739_vm1, %v6848_v13, %v6852_v30  ;;  %v6857_v8 = vor.u32 %v6856_v14, %v6852_v30  ;;  %13031 = vmatprep.mubr.msk.bf16.mxu1 %vm6914_vm5, %v13358_v50  ;;  %v11877_v43 = vrot.slane %v7421_v32, 9  ;;  %v7424_v14 = vld [vmem:[#allocation2 + $0x30] sm:$0xe]  ;;  %v13435_v27 = vld [vmem:[#allocation2 + $0x28] sm:$0xf] }
 0x32a   : > { %12950 = vmatmul.mubr.msk.bf16.gmra.mxu0 %vm6914_vm5, %v11825_v35  ;;  %v7474_v59 = vsel %vm14377_vm8, %v7472_v37, %v7473_v44  ;;  %v7477_v19 = vrot.slane %v13431_v16, 5  ;;  %v7480_v1 = vrot.slane %v13432_v9, 5  ;;  %v16492_v10 = vsel %vm6963_vm0, %v16124_v24, 0  ;;  %v7425_v30 = vld [vmem:[#allocation2 + $0x3c] sm:$0xe] }
 0x32b   : > { %12953 = vmatprep.mubr.msk.bf16.mxu0 %vm6914_vm5, %v11826_v3  ;;  %v6858_v56 = vrot.slane %v6857_v8, 4  ;;  %v11893_v15 = vcombine.low %v16482_v42, %v7474_v59  ;;  %v11878_v48 = vrot.slane %v7422_v4, 9  ;;  %v7484_v7 = vrot.slane %v13433_v25, 5  ;;  %v7426_v42 = vld [vmem:[#allocation2 + $0x48] sm:$0xe]  ;;  %v13360_v37 = vld [vmem:[#allocation2 + $0x3c] sm:$0xff]  }
 0x32c   : > { %v16498_v23 = vsel %vm14377_vm8, %v11877_v43, %v7477_v19  ;;  %v7479_v32 = vrot.slane %v7477_v19, 4  ;;  %v7487_v58 = vrot.slane %v13434_v52, 5  ;;  %v11879_v13 = vrot.slane %v7423_v34, 9  ;;  %v13436_v8 = vld [vmem:[#allocation2 + $0x34] sm:$0xf] }
 0x32d   : > { %v6863_v24 = vsel %vm13739_vm1, %v6858_v56, %v6862_v45  ;;  %v16504_v5 = vsel %vm14377_vm8, %v11878_v48, %v7484_v7  ;;  %v7486_v49 = vrot.slane %v7484_v7, 4  ;;  %v7491_v20 = vrot.slane %v13435_v27, 5  ;;  %v7427_v16 = vld [vmem:[#allocation2 + $0x54] sm:$0xe]  ;;  %v7430_v27 = vld [vmem:[#allocation2 + $0x78] sm:$0xe] }
 0x32e   : > { %v11827_v50 = vcombine.low %v6853_v29, %v6863_v24  ;;  %v16508_v44 = vsel %vm14377_vm8, %v7479_v32, %v7480_v1  ;;  %v7494_v35 = vrot.slane %v16161_v11, 5  ;;  %v11880_v17 = vrot.slane %v7424_v14, 9  ;;  %v7428_v14 = vld [vmem:[#allocation2 + $0x60] sm:$0xe] }
 0x32f   : > { %v11894_v45 = vcombine.low %v16498_v23, %v16508_v44  ;;  %v16515_v4 = vsel %vm14377_vm8, %v7486_v49, %v7487_v58  ;;  %v16519_v3 = vsel %vm14377_vm8, %v11879_v13, %v7491_v20  ;;  %v7493_v29 = vrot.slane %v7491_v20, 4  ;;  %v13361_v20 = vld [vmem:[#allocation2 + $0x48] sm:$0xff]   ;;  %v13362_v44 = vld [vmem:[#allocation2 + $0x54] sm:$0xff]  }
 0x330   : > { %13032 = vmatmul.mubr.msk.bf16.gmra.mxu1 %vm6914_vm5, %v13359_v61  ;;  %v11895_v11 = vcombine.low %v16504_v5, %v16515_v4  ;;  %v7498_v43 = vrot.slane %v13436_v8, 5  ;;  %v7501_v34 = vrot.slane %v16197_v54, 5  ;;  %v11881_v59 = vrot.slane %v7425_v30, 9 }
 0x331   : > { %13035 = vmatprep.mubr.msk.bf16.mxu1 %vm6914_vm5, %v13360_v37  ;;  %v16528_v19 = vsel %vm14377_vm8, %v7493_v29, %v7494_v35  ;;  %v7505_v9 = vrot.slane %v16136_v28, 5  ;;  %v7508_v1 = vrot.slane %v16253_v33, 5  ;;  %v11882_v56 = vrot.slane %v7426_v42, 9  ;;  %v7431_v37 = vld [vmem:[#allocation2 + $0x84] sm:$0xe] }
 0x332   : > { %12954 = vmatmul.mubr.msk.bf16.gmra.mxu0 %vm6914_vm5, %v11827_v50  ;;  %v11896_v48 = vcombine.low %v16519_v3, %v16528_v19  ;;  %v16537_v54 = vsel %vm14377_vm8, %v11880_v17, %v7498_v43  ;;  %v7500_v25 = vrot.slane %v7498_v43, 4  ;;  %v7512_v7 = vrot.slane %v16179_v41, 5 }
 0x333   : > { %12993 = vmatprep.mubr.msk.bf16.mxu0 %vm6914_vm5, %v11893_v15  ;;  %v16543_v28 = vsel %vm14377_vm8, %v11881_v59, %v7505_v9  ;;  %v7507_v33 = vrot.slane %v7505_v9, 4  ;;  %v7515_v23 = vrot.slane %v16283_v51, 5  ;;  %v11883_v32 = vrot.slane %v7427_v16, 9  ;;  %v7429_v15 = vld [vmem:[#allocation2 + $0x6c] sm:$0xe] }
 0x334   : > { %v16548_v52 = vsel %vm14377_vm8, %v7500_v25, %v7501_v34  ;;  %v16552_v58 = vsel %vm14377_vm8, %v11882_v56, %v7512_v7  ;;  %v7514_v41 = vrot.slane %v7512_v7, 4  ;;  %v7519_v13 = vrot.slane %v16231_v57, 5  ;;  %v7432_v16 = vld [vmem:[#allocation2 + $0x90] sm:$0xe] }
 0x335   : > { %v11897_v24 = vcombine.low %v16537_v54, %v16548_v52  ;;  %v16559_v5 = vsel %vm14377_vm8, %v7507_v33, %v7508_v1  ;;  %v7522_v51 = vrot.slane %v16313_v60, 5  ;;  %v11884_v49 = vrot.slane %v7428_v14, 9  ;;  %v7433_v14 = vld [vmem:[#allocation2 + $0x9c] sm:$0xe] }
 0x336   : > { %v11898_v30 = vcombine.low %v16543_v28, %v16559_v5  ;;  %v16566_v50 = vsel %vm14377_vm8, %v7514_v41, %v7515_v23  ;;  %v16570_v57 = vsel %vm14377_vm8, %v11883_v32, %v7519_v13  ;;  %v7521_v61 = vrot.slane %v7519_v13, 4  ;;  %v8958_v23 = vld [vmem:[#allocation2 + $0xc] sm:$0xe] }
 0x337   : > { %v11899_v35 = vcombine.low %v16552_v58, %v16566_v50  ;;  %v7526_v60 = vrot.slane %v16275_v63, 5  ;;  %v7529_v17 = vrot.slane %v16343_v6, 5  ;;  %v11885_v42 = vrot.slane %v7429_v15, 9  ;;  %v16632_v15 = vld [vmem:[#allocation2 + $0x10] sm:$0xf] }
 0x338   : > { %13036 = vmatmul.mubr.msk.bf16.gmra.mxu1 %vm6914_vm5, %v13361_v20  ;;  %v16579_v4 = vsel %vm14377_vm8, %v7521_v61, %v7522_v51  ;;  %v7533_v29 = vrot.slane %v16301_v12, 5  ;;  %v7536_v8 = vrot.slane %v16363_v40, 5  ;;  %v11886_v43 = vrot.slane %v7430_v27, 9  ;;  %v16594_v12 = vld [vmem:[%s18859_s4 + $0x18] sm:$0xf]  ;;  %v13363_v51 = vld [vmem:[#allocation2 + $0x60] sm:$0xff]  }
 0x339   : > { %13039 = vmatprep.mubr.msk.bf16.mxu1 %vm6914_vm5, %v13362_v44  ;;  %v11900_v63 = vcombine.low %v16570_v57, %v16579_v4  ;;  %v16588_v6 = vsel %vm14377_vm8, %v11884_v49, %v7526_v60  ;;  %v7528_v34 = vrot.slane %v7526_v60, 4  ;;  %v7540_v59 = vrot.slane %v16331_v39, 5  ;;  %v7434_v44 = vld [vmem:[#allocation2 + $0xa8] sm:$0xe]  ;;  %v13364_v60 = vld [vmem:[#allocation2 + $0x6c] sm:$0xff]  }
 0x33a   : > { %12994 = vmatmul.mubr.msk.bf16.vlgmr.msra.gmra.mxu0 %vm6914_vm5, %v11894_v45  ;;  %v16599_v40 = vsel %vm14377_vm8, %v11885_v42, %v7533_v29  ;;  %v7535_v9 = vrot.slane %v7533_v29, 4  ;;  %v7543_v1 = vrot.slane %v16387_v22, 5  ;;  %v11887_v56 = vrot.slane %v7431_v37, 9 }
 0x33b   : > { %13060 = vmatpush3.bf16.msra.mxu0 %v16492_v10  ;;  %12997 = vmatprep.mubr.msk.bf16.mxu0 %vm6914_vm5, %v11895_v11  ;;  %v16606_v39 = vsel %vm14377_vm8, %v7528_v34, %v7529_v17  ;;  %v16610_v25 = vsel %vm14377_vm8, %v11886_v43, %v7540_v59  ;;  %v7542_v45 = vrot.slane %v7540_v59, 4  ;;  %v7547_v7 = vrot.slane %v16355_v46, 5  ;;  %v8959_v34 = vld [vmem:[#allocation2 + $0x18] sm:$0xe] }
 0x33c   : > { %v11901_v22 = vcombine.low %v16588_v6, %v16606_v39  ;;  %v16617_v10 = vsel %vm14377_vm8, %v7535_v9, %v7536_v8  ;;  %v7550_v11 = vrot.slane %v16406_v36, 5  ;;  %v11888_v33 = vrot.slane %v7432_v16, 9  ;;  %13248 = vmatprep.subr.msk.bf16.mxu0 %vm6963_vm0, %v16594_v12  ;;  %v16634_v36 = vld [vmem:[#allocation2 + $0x14] sm:$0x1]  ;;  %v16660_v9 = vld [vmem:[#allocation2 + $0x1c] sm:$0xf] }
 0x33d   : > { %v11902_v32 = vcombine.low %v16599_v40, %v16617_v10  ;;  %v16626_v46 = vsel %vm14377_vm8, %v7542_v45, %v7543_v1  ;;  %v16630_v41 = vsel %vm14377_vm8, %v11887_v56, %v7547_v7  ;;  %v7549_v13 = vrot.slane %v7547_v7, 4  ;;  %v8964_v40 = vld [vmem:[#allocation2 + $0x54] sm:$0xe] }
 0x33e   : > { %v11903_v49 = vcombine.low %v16610_v25, %v16626_v46  ;;  %v7554_v27 = vrot.slane %v16370_v53, 5  ;;  %v7557_v20 = vrot.slane %v16423_v31, 5  ;;  %v11889_v61 = vrot.slane %v7433_v14, 9  ;;  %v16675_v14 = vld [vmem:[#allocation2 + $0x20] sm:$0x1] }
 0x33f   : > { %v16642_v17 = vsel %vm14377_vm8, %v7549_v13, %v7550_v11  ;;  %v7561_v42 = vrot.slane %v16392_v62, 5  ;;  %v7564_v37 = vrot.slane %v16439_v18, 5  ;;  %v11991_v29 = vrot.slane %v8958_v23, 9  ;;  %v12073_v11 = vld [vmem:[%s18859_s4 + $0x1c] sm:$0xf] }
 0x340   : > { %13040 = vmatmul.mubr.msk.bf16.gmra.mxu1 %vm6914_vm5, %v13363_v51  ;;  %v11904_v8 = vcombine.low %v16630_v41, %v16642_v17  ;;  %v16651_v53 = vsel %vm14377_vm8, %v11888_v33, %v7554_v27  ;;  %v7556_v31 = vrot.slane %v7554_v27, 4  ;;  %v9024_v43 = vrot.slane %v16632_v15, 5  ;;  %v7435_v33 = vld [vmem:[#allocation2 + $0xb4] sm:$0xe]  ;;  %v16703_v13 = vld [vmem:[#allocation2 + $0x28] sm:$0xf] }
 0x341   : > { %13043 = vmatprep.mubr.msk.bf16.mxu1 %vm6914_vm5, %v13364_v60  ;;  %v16657_v62 = vsel %vm14377_vm8, %v11889_v61, %v7561_v42  ;;  %v7563_v18 = vrot.slane %v7561_v42, 4  ;;  %v9027_v59 = vrot.slane %v16634_v36, 5  ;;  %v11890_v16 = vrot.slane %v7434_v44, 9  ;;  %v16709_v61 = vld [vmem:[#allocation2 + $0x2c] sm:$0x1]  ;;  %v13365_v44 = vld [vmem:[#allocation2 + $0x78] sm:$0xff]  }
 0x342   : > { %12998 = vmatmul.mubr.msk.bf16.gmra.mxu0 %vm6914_vm5, %v11896_v48  ;;  %v16668_v1 = vsel %vm14377_vm8, %v7556_v31, %v7557_v20  ;;  %v16672_v56 = vsel %vm14377_vm8, %v11991_v29, %v9024_v43  ;;  %v9026_v45 = vrot.slane %v9024_v43, 4  ;;  %v7568_v7 = vrot.slane %v16414_v0, 5  ;;  %v8232_v31 = vld [vmem:[#allocation2 + $0xc] sm:$0xf]  ;;  %v13366_v43 = vld [vmem:[#allocation2 + $0x84] sm:$0xff]  }
 0x343   : > { %13001 = vmatprep.mubr.msk.bf16.mxu0 %vm6914_vm5, %v11897_v24  ;;  %v11905_v3 = vcombine.low %v16651_v53, %v16668_v1  ;;  %v16688_v19 = vsel %vm14377_vm8, %v7563_v18, %v7564_v37  ;;  %v7571_v0 = vrot.slane %v16443_v26, 5  ;;  %v9233_v48 = vsel %vm6963_vm0, %v16462_v21, 0  ;;  %v8960_v26 = vld [vmem:[#allocation2 + $0x24] sm:$0xe] }
 0x344   : > { %v16697_v54 = vsel %vm14377_vm8, %v9026_v45, %v9027_v59  ;;  %v16701_v52 = vsel %vm14377_vm8, %v11890_v16, %v7568_v7  ;;  %v7570_v24 = vrot.slane %v7568_v7, 4  ;;  %13094 = vmatpush3.bf16.msra.mxu1 %v9233_v48  ;;  %v11992_v51 = vrot.slane %v8959_v34, 9 }
 0x345   : > { %v12008_v21 = vcombine.low %v16672_v56, %v16697_v54  ;;  %v9031_v27 = vrot.slane %v16660_v9, 5  ;;  %v9034_v20 = vrot.slane %v16675_v14, 5  ;;  %13249 = vmatprep.subr.msk.bf16.mxu1 %vm6963_vm0, %v12073_v11  ;;  %v11891_v42 = vrot.slane %v7435_v33, 9  ;;  %v8965_v54 = vld [vmem:[#allocation2 + $0x60] sm:$0xe] }
 0x346   : > { %v16714_v60 = vsel %vm14377_vm8, %v7570_v24, %v7571_v0  ;;  %v7575_v37 = vrot.slane %v16431_v47, 5  ;;  %v7578_v29 = vrot.slane %v16455_v55, 5  ;;  %v11993_v16 = vrot.slane %v8960_v26, 9  ;;  %v8961_v24 = vld [vmem:[#allocation2 + $0x30] sm:$0xe] }
 0x347   : > { %v16722_v18 = vsel %vm14377_vm8, %v11992_v51, %v9031_v27  ;;  %v9033_v59 = vrot.slane %v9031_v27, 4  ;;  %v9038_v55 = vrot.slane %v16703_v13, 5  ;;  %v9041_v7 = vrot.slane %v16709_v61, 5 }
 0x348   : > { %13044 = vmatmul.mubr.msk.bf16.gmra.mxu1 %vm6914_vm5, %v13365_v44  ;;  %v16727_v45 = vsel %vm14377_vm8, %v11891_v42, %v7575_v37  ;;  %v7577_v47 = vrot.slane %v7575_v37, 4  ;;  %v8281_v0 = vshrl.u32 %v8232_v31, 16  ;;  %v8284_v48 = vshll.u32 %v8232_v31, 16  ;;  %v16751_v44 = vld [vmem:[#allocation2 + $0x34] sm:$0xf] }
 0x349   : > { %13047 = vmatprep.mubr.msk.bf16.mxu1 %vm6914_vm5, %v13366_v43  ;;  %v16734_v11 = vsel %vm14377_vm8, %v9033_v59, %v9034_v20  ;;  %v8290_v33 = vshll.u32 %v16632_v15, 16  ;;  %v16749_v27 = vsel %vm14377_vm8, %v11993_v16, %v9038_v55  ;;  %v9040_v20 = vrot.slane %v9038_v55, 4  ;;  %v16753_v42 = vld [vmem:[#allocation2 + $0x38] sm:$0x1]  ;;  %v13367_v55 = vld [vmem:[#allocation2 + $0x90] sm:$0xff]  }
 0x34a   : > { %13002 = vmatmul.mubr.msk.bf16.gmra.mxu0 %vm6914_vm5, %v11898_v30  ;;  %v12009_v26 = vcombine.low %v16722_v18, %v16734_v11  ;;  %v16745_v51 = vsel %vm14377_vm8, %v7577_v47, %v7578_v29  ;;  %v8283_v5 = vrot.slane %v8281_v0, 4  ;;  %v8286_v30 = vrot.slane %v8284_v48, 5  ;;  %v8235_v29 = vld [vmem:[#allocation2 + $0x18] sm:$0xf] }
 0x34b   : > { %13005 = vmatprep.mubr.msk.bf16.mxu0 %vm6914_vm5, %v11899_v35  ;;  %v8292_v37 = vrot.slane %v8290_v33, 5  ;;  %v16763_v31 = vsel %vm14377_vm8, %v9040_v20, %v9041_v7  ;;  %v8294_v43 = vshrl.u32 %v16632_v15, 16  ;;  %v8300_v59 = vshll.u32 %v16634_v36, 16  ;;  %v8962_v7 = vld [vmem:[#allocation2 + $0x3c] sm:$0xe] }
 0x34c   : > { %v11994_v16 = vrot.slane %v8961_v24, 9  ;;  %v8287_v50 = vor.u32 %v8286_v30, %v8283_v5  ;;  %v9045_v35 = vrot.slane %v16751_v44, 5  ;;  %v9048_v47 = vrot.slane %v16753_v42, 5  ;;  %v13368_v20 = vld [vmem:[#allocation2 + $0x9c] sm:$0xff]  }
 0x34d   : > { %v8296_v0 = vrot.slane %v8294_v43, 4  ;;  %v8302_v48 = vrot.slane %v8300_v59, 5  ;;  %v8305_v33 = vshrl.u32 %v8235_v29, 16  ;;  %v8308_v28 = vshll.u32 %v8235_v29, 16  ;;  %v16776_v5 = vld [vmem:[#allocation2 + $0x40] sm:$0xf] }
 0x34e   : > { %v8288_v34 = vrot.slane %v8287_v50, 4  ;;  %v16773_v15 = vsel %vm14377_vm8, %v11994_v16, %v9045_v35  ;;  %v9047_v36 = vrot.slane %v9045_v35, 4  ;;  %v8314_v24 = vshll.u32 %v16660_v9, 16  ;;  %v16780_v29 = vld [vmem:[#allocation2 + $0x44] sm:$0x1] }
 0x34f   : > { %v8297_v30 = vor.u32 %v8296_v0, %v8292_v37  ;;  %v8307_v23 = vrot.slane %v8305_v33, 4  ;;  %v8310_v43 = vrot.slane %v8308_v28, 5  ;;  %v8318_v59 = vshrl.u32 %v16660_v9, 16  ;;  %v8238_v33 = vld [vmem:[#allocation2 + $0x24] sm:$0xf] }
 0x350   : > { %13048 = vmatmul.mubr.msk.bf16.gmra.mxu1 %vm6914_vm5, %v13367_v55  ;;  %v8293_v16 = vsel %vm13739_vm1, %v8288_v34, %v8292_v37  ;;  %v16787_v50 = vsel %vm14377_vm8, %v9047_v36, %v9048_v47  ;;  %v8316_v35 = vrot.slane %v8314_v24, 5  ;;  %v8324_v58 = vshll.u32 %v16675_v14, 16  ;;  %v13369_v36 = vld [vmem:[#allocation2 + $0xa8] sm:$0xff]  }
 0x351   : > { %13051 = vmatprep.mubr.msk.bf16.mxu1 %vm6914_vm5, %v13368_v20  ;;  %v8298_v9 = vrot.slane %v8297_v30, 4  ;;  %v12011_v28 = vcombine.low %v16773_v15, %v16787_v50  ;;  %v8311_v55 = vor.u32 %v8310_v43, %v8307_v23  ;;  %v8320_v0 = vrot.slane %v8318_v59, 4  ;;  %v13370_v59 = vld [vmem:[#allocation2 + $0xb4] sm:$0xff]  }
 0x352   : > { %13006 = vmatmul.mubr.msk.bf16.gmra.mxu0 %vm6914_vm5, %v11900_v63  ;;  %v8326_v34 = vrot.slane %v8324_v58, 5  ;;  %v11995_v37 = vrot.slane %v8962_v7, 9  ;;  %v9052_v14 = vrot.slane %v16776_v5, 5  ;;  %v9055_v57 = vrot.slane %v16780_v29, 5  ;;  %v8963_v58 = vld [vmem:[#allocation2 + $0x48] sm:$0xe] }
 0x353   : > { %13009 = vmatprep.mubr.msk.bf16.mxu0 %vm6914_vm5, %v11901_v22  ;;  %v8303_v4 = vsel %vm13739_vm1, %v8298_v9, %v8302_v48  ;;  %v8312_v63 = vrot.slane %v8311_v55, 4  ;;  %v8321_v47 = vor.u32 %v8320_v0, %v8316_v35  ;;  %v16806_v23 = vsel %vm6963_vm0, %v16594_v12, 0  ;;  %v8241_v7 = vld [vmem:[#allocation2 + $0x30] sm:$0xf]  ;;  %v16817_v12 = vld [vmem:[#allocation2 + $0x4c] sm:$0xf] }
 0x354   : > { %v16808_v20 = vcombine.low %v8293_v16, %v8303_v4  ;;  %v16812_v6 = vsel %vm14377_vm8, %v11995_v37, %v9052_v14  ;;  %v9054_v39 = vrot.slane %v9052_v14, 4  ;;  %v8329_v22 = vshrl.u32 %v8238_v33, 16  ;;  %v16825_v37 = vld [vmem:[#allocation2 + $0x50] sm:$0x1] }
 0x355   : > { %v8317_v48 = vsel %vm13739_vm1, %v8312_v63, %v8316_v35  ;;  %v8322_v24 = vrot.slane %v8321_v47, 4  ;;  %v8332_v30 = vshll.u32 %v8238_v33, 16  ;;  %v8338_v43 = vshll.u32 %v16703_v13, 16 }
 0x356   : > { %v16821_v16 = vsel %vm14377_vm8, %v9054_v39, %v9055_v57  ;;  %v8331_v9 = vrot.slane %v8329_v22, 4  ;;  %v8342_v55 = vshrl.u32 %v16703_v13, 16  ;;  %v8348_v0 = vshll.u32 %v16709_v61, 16 }
 0x357   : > { %v8327_v35 = vsel %vm13739_vm1, %v8322_v24, %v8326_v34  ;;  %v12012_v33 = vcombine.low %v16812_v6, %v16821_v16  ;;  %v8334_v14 = vrot.slane %v8332_v30, 5  ;;  %v8340_v4 = vrot.slane %v8338_v43, 5 }
 0x358   : > { %13052 = vmatmul.mubr.msk.bf16.gmra.mxu1 %vm6914_vm5, %v13369_v36  ;;  %v16833_v57 = vcombine.low %v8317_v48, %v8327_v35  ;;  %v8344_v63 = vrot.slane %v8342_v55, 4  ;;  %v8350_v13 = vrot.slane %v8348_v0, 5  ;;  %v11996_v47 = vrot.slane %v8963_v58, 9  ;;  %v16853_v55 = vld [vmem:[#allocation2 + $0x5c] sm:$0x1] }
 0x359   : > { %13055 = vmatprep.mubr.msk.bf16.mxu1 %vm6914_vm5, %v13370_v59  ;;  %v8335_v61 = vor.u32 %v8334_v14, %v8331_v9  ;;  %v9059_v34 = vrot.slane %v16817_v12, 5  ;;  %v9062_v39 = vrot.slane %v16825_v37, 5  ;;  %v8353_v22 = vshrl.u32 %v8241_v7, 16  ;;  %v16851_v59 = vld [vmem:[#allocation2 + $0x58] sm:$0xf] }
 0x35a   : > { %13010 = vmatmul.mubr.msk.bf16.gmra.mxu0 %vm6914_vm5, %v11902_v32  ;;  %v8345_v36 = vor.u32 %v8344_v63, %v8340_v4  ;;  %v8356_v48 = vshll.u32 %v8241_v7, 16  ;;  %v8362_v58 = vshll.u32 %v16751_v44, 16  ;;  %v8366_v24 = vshrl.u32 %v16751_v44, 16  ;;  %v13371_v7 = vld [vmem:[#allocation2 + $0xc0] sm:$0xff]   ;;  %v8244_v63 = vld [vmem:[#allocation2 + $0x3c] sm:$0xf] }
 0x35b   : > { %13013 = vmatprep.mubr.msk.bf16.mxu0 %vm6914_vm5, %v11903_v49  ;;  %v8336_v10 = vrot.slane %v8335_v61, 4  ;;  %v16849_v32 = vsel %vm14377_vm8, %v11996_v47, %v9059_v34  ;;  %v9061_v30 = vrot.slane %v9059_v34, 4  ;;  %v8355_v43 = vrot.slane %v8353_v22, 4 }
 0x35c   : > { %v8346_v9 = vrot.slane %v8345_v36, 4  ;;  %v8358_v25 = vrot.slane %v8356_v48, 5  ;;  %v8364_v46 = vrot.slane %v8362_v58, 5  ;;  %v8368_v49 = vrot.slane %v8366_v24, 4 }
 0x35d   : > { %v8341_v44 = vsel %vm13739_vm1, %v8336_v10, %v8340_v4  ;;  %v16859_v0 = vsel %vm14377_vm8, %v9061_v30, %v9062_v39  ;;  %v8372_v35 = vshll.u32 %v16753_v42, 16  ;;  %v11997_v14 = vrot.slane %v8964_v40, 9  ;;  %v8247_v40 = vld [vmem:[#allocation2 + $0x48] sm:$0xf] }
 0x35e   : > { %v8351_v47 = vsel %vm13739_vm1, %v8346_v9, %v8350_v13  ;;  %v12013_v61 = vcombine.low %v16849_v32, %v16859_v0  ;;  %v8359_v34 = vor.u32 %v8358_v25, %v8355_v43  ;;  %v8369_v22 = vor.u32 %v8368_v49, %v8364_v46  ;;  %v16893_v9 = vld [vmem:[#allocation2 + $0x64] sm:$0xf]  ;;  %v16895_v25 = vld [vmem:[#allocation2 + $0x68] sm:$0x1]  ;;  %v17026_v0 = vld [vmem:[%s18859_s4 + $0x20] sm:$0xf] }
 0x35f   : > { %v16867_v36 = vcombine.low %v8341_v44, %v8351_v47  ;;  %v8374_v4 = vrot.slane %v8372_v35, 5  ;;  %v9066_v39 = vrot.slane %v16851_v59, 5  ;;  %v9069_v48 = vrot.slane %v16853_v55, 5 }
 0x360   : > { %13056 = vmatmul.mubr.msk.bf16.gmra.mxu1 %vm6914_vm5, %v13371_v7  ;;  %v8360_v42 = vrot.slane %v8359_v34, 4  ;;  %v8370_v13 = vrot.slane %v8369_v22, 4  ;;  %v8377_v58 = vshrl.u32 %v8244_v63, 16  ;;  %v8380_v24 = vshll.u32 %v8244_v63, 16 }
 0x361   : > { %13095 = vmatprep.mubr.msk.bf16.mxu1 %vm6914_vm5, %v12008_v21  ;;  %v16881_v10 = vsel %vm14377_vm8, %v11997_v14, %v9066_v39  ;;  %v9068_v30 = vrot.slane %v9066_v39, 4  ;;  %v8386_v43 = vshll.u32 %v16776_v5, 16  ;;  %v8390_v56 = vshrl.u32 %v16776_v5, 16 }
 0x362   : > { %13014 = vmatmul.mubr.msk.bf16.gmra.mxu0 %vm6914_vm5, %v11904_v8  ;;  %v8365_v41 = vsel %vm13739_vm1, %v8360_v42, %v8364_v46  ;;  %v8375_v17 = vsel %vm13739_vm1, %v8370_v13, %v8374_v4  ;;  %v8379_v8 = vrot.slane %v8377_v58, 4  ;;  %v8382_v21 = vrot.slane %v8380_v24, 5  ;;  %v8250_v42 = vld [vmem:[#allocation2 + $0x54] sm:$0xf] }
 0x363   : > { %13017 = vmatprep.mubr.msk.bf16.mxu0 %vm6914_vm5, %v11905_v3  ;;  %v16897_v49 = vcombine.low %v8365_v41, %v8375_v17  ;;  %v16901_v5 = vsel %vm14377_vm8, %v9068_v30, %v9069_v48  ;;  %v8388_v53 = vrot.slane %v8386_v43, 5  ;;  %v8392_v1 = vrot.slane %v8390_v56, 4  ;;  %v8966_v48 = vld [vmem:[#allocation2 + $0x6c] sm:$0xe]  ;;  %v16917_v30 = vld [vmem:[#allocation2 + $0x70] sm:$0xf] }
 0x364   : > { %v12014_v3 = vcombine.low %v16881_v10, %v16901_v5  ;;  %v8383_v46 = vor.u32 %v8382_v21, %v8379_v8  ;;  %v8396_v7 = vshll.u32 %v16780_v29, 16  ;;  %v11998_v44 = vrot.slane %v8965_v54, 9  ;;  %v16926_v56 = vld [vmem:[#allocation2 + $0x74] sm:$0x1] }
 0x365   : > { %v8393_v35 = vor.u32 %v8392_v1, %v8388_v53  ;;  %v9073_v14 = vrot.slane %v16893_v9, 5  ;;  %v9076_v63 = vrot.slane %v16895_v25, 5  ;;  %v8401_v47 = vshrl.u32 %v8247_v40, 16 }
 0x366   : > { %v8384_v34 = vrot.slane %v8383_v46, 4  ;;  %v8398_v22 = vrot.slane %v8396_v7, 5  ;;  %v8404_v4 = vshll.u32 %v8247_v40, 16  ;;  %v8410_v39 = vshll.u32 %v16817_v12, 16 }
 0x367   : > { %v8394_v29 = vrot.slane %v8393_v35, 4  ;;  %v16915_v13 = vsel %vm14377_vm8, %v11998_v44, %v9073_v14  ;;  %v9075_v58 = vrot.slane %v9073_v14, 4  ;;  %v8403_v24 = vrot.slane %v8401_v47, 4 }
 0x368   : > { %13096 = vmatmul.mubr.msk.bf16.vlgmr.msra.gmra.mxu1 %vm6914_vm5, %v12009_v26  ;;  %v19157_v40 = vcombine.low %v16749_v27, %v16763_v31  ;;  %v8389_v43 = vsel %vm13739_vm1, %v8384_v34, %v8388_v53  ;;  %v8406_v18 = vrot.slane %v8404_v4, 5  ;;  %v8412_v11 = vrot.slane %v8410_v39, 5 }
 0x369   : > { %v8414_v26 = vshrl.u32 %v16817_v12, 16  ;;  %v19158_v54 = vcombine.low %v16657_v62, %v16688_v19  ;;  %v8399_v41 = vsel %vm13739_vm1, %v8394_v29, %v8398_v22  ;;  %v16936_v27 = vsel %vm14377_vm8, %v9075_v58, %v9076_v63  ;;  %v16955_v22 = vld [vmem:[#allocation2 + $0x7c] sm:$0xf] }
 0x36a   : > { %13099 = vmatprep.mubr.msk.bf16.mxu1 %vm6914_vm5, %v19157_v40  ;;  %v8420_v31 = vshll.u32 %v16825_v37, 16  ;;  %v11999_v17 = vrot.slane %v8966_v48, 9  ;;  %v19159_v12 = vcombine.low %v16701_v52, %v16714_v60  ;;  %v16943_v8 = vcombine.low %v8389_v43, %v8399_v41  ;;  %v8967_v60 = vld [vmem:[#allocation2 + $0x78] sm:$0xe]  ;;  %v8253_v43 = vld [vmem:[#allocation2 + $0x60] sm:$0xf] }
 0x36b   : > { %13018 = vmatmul.mubr.msk.bf16.gmra.mxu0 %vm6914_vm5, %v19158_v54  ;;  %v12015_v62 = vcombine.low %v16915_v13, %v16936_v27  ;;  %v8407_v19 = vor.u32 %v8406_v18, %v8403_v24  ;;  %v8416_v21 = vrot.slane %v8414_v26, 4  ;;  %v9080_v1 = vrot.slane %v16917_v30, 5 }
 0x36c   : > { %13021 = vmatprep.mubr.msk.bf16.mxu0 %vm6914_vm5, %v19159_v12  ;;  %v8422_v53 = vrot.slane %v8420_v31, 5  ;;  %v9083_v46 = vrot.slane %v16926_v56, 5  ;;  %v8425_v7 = vshrl.u32 %v8250_v42, 16  ;;  %v8428_v35 = vshll.u32 %v8250_v42, 16  ;;  %v16959_v42 = vld [vmem:[#allocation2 + $0x80] sm:$0x1] }
 0x36d   : > { %v8408_v37 = vrot.slane %v8407_v19, 4  ;;  %v8417_v44 = vor.u32 %v8416_v21, %v8412_v11  ;;  %v8434_v52 = vshll.u32 %v16851_v59, 16  ;;  %v16952_v14 = vsel %vm14377_vm8, %v11999_v17, %v9080_v1  ;;  %v8256_v17 = vld [vmem:[#allocation2 + $0x6c] sm:$0xf]  ;;  %v8968_v21 = vld [vmem:[#allocation2 + $0x84] sm:$0xe] }
 0x36e   : > { %v9082_v63 = vrot.slane %v9080_v1, 4  ;;  %v8427_v47 = vrot.slane %v8425_v7, 4  ;;  %v8438_v34 = vshrl.u32 %v16851_v59, 16  ;;  %v8430_v48 = vrot.slane %v8428_v35, 5  ;;  %v17001_v7 = vld [vmem:[#allocation2 + $0x88] sm:$0xf] }
 0x36f   : > { %v8413_v4 = vsel %vm13739_vm1, %v8408_v37, %v8412_v11  ;;  %v8418_v39 = vrot.slane %v8417_v44, 4  ;;  %v8436_v29 = vrot.slane %v8434_v52, 5  ;;  %v8444_v24 = vshll.u32 %v16853_v55, 16  ;;  %v17003_v37 = vld [vmem:[#allocation2 + $0x8c] sm:$0x1] }
 0x370   : > { %13100 = vmatmul.mubr.msk.bf16.gmra.mxu1 %vm6914_vm5, %v12011_v28  ;;  %v16967_v58 = vsel %vm14377_vm8, %v9082_v63, %v9083_v46  ;;  %v8440_v59 = vrot.slane %v8438_v34, 4  ;;  %v12000_v40 = vrot.slane %v8967_v60, 9  ;;  %v8431_v50 = vor.u32 %v8430_v48, %v8427_v47 }
 0x371   : > { %13103 = vmatprep.mubr.msk.bf16.mxu1 %vm6914_vm5, %v12012_v33  ;;  %v8423_v18 = vsel %vm13739_vm1, %v8418_v39, %v8422_v53  ;;  %v12016_v15 = vcombine.low %v16952_v14, %v16967_v58  ;;  %v9087_v28 = vrot.slane %v16955_v22, 5  ;;  %v19160_v11 = vcombine.low %v16727_v45, %v16745_v51 }
 0x372   : > { %v16983_v55 = vcombine.low %v8413_v4, %v8423_v18  ;;  %v8441_v26 = vor.u32 %v8440_v59, %v8436_v29  ;;  %v8446_v6 = vrot.slane %v8444_v24, 5  ;;  %v9090_v16 = vrot.slane %v16959_v42, 5 }
 0x373   : > { %13022 = vmatmul.mubr.msk.bf16.gmra.mxu0 %vm6914_vm5, %v19160_v11  ;;  %v8432_v33 = vrot.slane %v8431_v50, 4  ;;  %v16990_v54 = vsel %vm14377_vm8, %v12000_v40, %v9087_v28  ;;  %v9089_v41 = vrot.slane %v9087_v28, 4  ;;  %v8449_v31 = vshrl.u32 %v8253_v43, 16  ;;  %v17039_v11 = vld [vmem:[#allocation2 + $0x98] sm:$0x1] }
 0x374   : > { %13061 = vmatprep.mubr.msk.bf16.mxu0 %vm6914_vm5, %v16808_v20  ;;  %v8442_v45 = vrot.slane %v8441_v26, 4  ;;  %v8452_v51 = vshll.u32 %v8253_v43, 16  ;;  %v8458_v12 = vshll.u32 %v16893_v9, 16  ;;  %v8462_v19 = vshrl.u32 %v16893_v9, 16  ;;  %v17034_v43 = vld [vmem:[#allocation2 + $0x94] sm:$0xf] }
 0x375   : > { %v8437_v53 = vsel %vm13739_vm1, %v8432_v33, %v8436_v29  ;;  %v16998_v20 = vsel %vm14377_vm8, %v9089_v41, %v9090_v16  ;;  %v8451_v1 = vrot.slane %v8449_v31, 4  ;;  %v8468_v46 = vshll.u32 %v16895_v25, 16  ;;  %v8969_v29 = vld [vmem:[#allocation2 + $0x90] sm:$0xe] }
 0x376   : > { %v8447_v44 = vsel %vm13739_vm1, %v8442_v45, %v8446_v6  ;;  %v12017_v9 = vcombine.low %v16990_v54, %v16998_v20  ;;  %v8454_v35 = vrot.slane %v8452_v51, 5  ;;  %v8460_v52 = vrot.slane %v8458_v12, 5 }
 0x377   : > { %v17009_v60 = vcombine.low %v8437_v53, %v8447_v44  ;;  %v8464_v63 = vrot.slane %v8462_v19, 4  ;;  %v8470_v47 = vrot.slane %v8468_v46, 5  ;;  %v12001_v34 = vrot.slane %v8968_v21, 9 }
 0x378   : > { %13104 = vmatmul.mubr.msk.bf16.gmra.mxu1 %vm6914_vm5, %v12013_v61  ;;  %v8455_v25 = vor.u32 %v8454_v35, %v8451_v1  ;;  %v9094_v4 = vrot.slane %v17001_v7, 5  ;;  %v9097_v39 = vrot.slane %v17003_v37, 5  ;;  %v8473_v48 = vshrl.u32 %v8256_v17, 16  ;;  %v8262_v1 = vld [vmem:[#allocation2 + $0x84] sm:$0xf] }
 0x379   : > { %13107 = vmatprep.mubr.msk.bf16.mxu1 %vm6914_vm5, %v12014_v3  ;;  %v8465_v59 = vor.u32 %v8464_v63, %v8460_v52  ;;  %v8476_v24 = vshll.u32 %v8256_v17, 16  ;;  %v8482_v40 = vshll.u32 %v16917_v30, 16  ;;  %v8486_v32 = vshrl.u32 %v16917_v30, 16  ;;  %v8970_v63 = vld [vmem:[#allocation2 + $0x9c] sm:$0xe] }
 0x37a   : > { %v8456_v61 = vrot.slane %v8455_v25, 4  ;;  %v17032_v10 = vsel %vm14377_vm8, %v12001_v34, %v9094_v4  ;;  %v9096_v5 = vrot.slane %v9094_v4, 4  ;;  %v8475_v3 = vrot.slane %v8473_v48, 4  ;;  %v17078_v25 = vld [vmem:[#allocation2 + $0xa0] sm:$0xf] }
 0x37b   : > { %13062 = vmatmul.mubr.msk.bf16.vlgmr.msra.gmra.mxu0 %vm6914_vm5, %v16833_v57  ;;  %v8466_v30 = vrot.slane %v8465_v59, 4  ;;  %v8478_v18 = vrot.slane %v8476_v24, 5  ;;  %v8484_v50 = vrot.slane %v8482_v40, 5  ;;  %v8488_v28 = vrot.slane %v8486_v32, 4  ;;  %v17080_v4 = vld [vmem:[#allocation2 + $0xa4] sm:$0x1] }
 0x37c   : > { %13128 = vmatpush3.bf16.msra.mxu0 %v16806_v23  ;;  %13065 = vmatprep.mubr.msk.bf16.mxu0 %vm6914_vm5, %v16867_v36  ;;  %v8461_v57 = vsel %vm13739_vm1, %v8456_v61, %v8460_v52  ;;  %v17045_v26 = vsel %vm14377_vm8, %v9096_v5, %v9097_v39  ;;  %v8492_v6 = vshll.u32 %v16926_v56, 16  ;;  %v12002_v16 = vrot.slane %v8969_v29, 9  ;;  %v8259_v23 = vld [vmem:[#allocation2 + $0x78] sm:$0xf] }
 0x37d   : > { %13250 = vmatprep.subr.msk.bf16.mxu0 %vm6963_vm0, %v17026_v0  ;;  %v8471_v36 = vsel %vm13739_vm1, %v8466_v30, %v8470_v47  ;;  %v12018_v33 = vcombine.low %v17032_v10, %v17045_v26  ;;  %v8479_v41 = vor.u32 %v8478_v18, %v8475_v3  ;;  %v8489_v31 = vor.u32 %v8488_v28, %v8484_v50  ;;  %v17068_v47 = vpop.f32.mrf.mxu1  ;;  %v8971_v18 = vld [vmem:[#allocation2 + $0xa8] sm:$0xe] }
 0x37e   : > { %v17054_v17 = vcombine.low %v8461_v57, %v8471_v36  ;;  %v8494_v45 = vrot.slane %v8492_v6, 5  ;;  %v9101_v51 = vrot.slane %v17034_v43, 5  ;;  %v9104_v56 = vrot.slane %v17039_v11, 5 }
 0x37f   : > { %v8480_v12 = vrot.slane %v8479_v41, 4  ;;  %v8490_v19 = vrot.slane %v8489_v31, 4  ;;  %v8497_v21 = vshrl.u32 %v8259_v23, 16  ;;  %v8500_v53 = vshll.u32 %v8259_v23, 16  ;;  %v17097_v61 = vpop.f32.mrf.mxu1 }
 0x380   : > { %13108 = vmatmul.mubr.msk.bf16.gmra.mxu1 %vm6914_vm5, %v12015_v62  ;;  %v17064_v46 = vsel %vm14377_vm8, %v12002_v16, %v9101_v51  ;;  %v9103_v44 = vrot.slane %v9101_v51, 4  ;;  %v8506_v35 = vshll.u32 %v16955_v22, 16  ;;  %v8510_v52 = vshrl.u32 %v16955_v22, 16  ;;  %v17102_v16 = vld [vmem:[#allocation2 + $0xac] sm:$0xf] }
 0x381   : > { %13111 = vmatprep.mubr.msk.bf16.mxu1 %vm6914_vm5, %v12016_v15  ;;  %v8485_v13 = vsel %vm13739_vm1, %v8480_v12, %v8484_v50  ;;  %v8495_v27 = vsel %vm13739_vm1, %v8490_v19, %v8494_v45  ;;  %v8499_v62 = vrot.slane %v8497_v21, 4  ;;  %v8502_v34 = vrot.slane %v8500_v53, 5  ;;  %v8265_v50 = vld [vmem:[#allocation2 + $0x90] sm:$0xf]  ;;  %v17118_v21 = vpop.f32.mrf.mxu1 }
 0x382   : > { %v17084_v22 = vcombine.low %v8485_v13, %v8495_v27  ;;  %v17088_v14 = vsel %vm14377_vm8, %v9103_v44, %v9104_v56  ;;  %v8508_v58 = vrot.slane %v8506_v35, 5  ;;  %v8512_v15 = vrot.slane %v8510_v52, 4  ;;  %v17107_v45 = vld [vmem:[#allocation2 + $0xb0] sm:$0x1]  ;;  %v8972_v52 = vld [vmem:[#allocation2 + $0xb4] sm:$0xe] }
 0x383   : > { %13066 = vmatmul.mubr.msk.bf16.gmra.mxu0 %vm6914_vm5, %v16897_v49  ;;  %v12019_v39 = vcombine.low %v17064_v46, %v17088_v14  ;;  %v8503_v48 = vor.u32 %v8502_v34, %v8499_v62  ;;  %v8516_v29 = vshll.u32 %v16959_v42, 16  ;;  %v12003_v59 = vrot.slane %v8970_v63, 9  ;;  %v17138_v62 = vld [vmem:[#allocation2 + $0xb8] sm:$0xf]  ;;  %v17140_v34 = vpop.f32.mrf.mxu1 }
 0x384   : > { %13069 = vmatprep.mubr.msk.bf16.mxu0 %vm6914_vm5, %v16943_v8  ;;  %v8513_v24 = vor.u32 %v8512_v15, %v8508_v58  ;;  %v9108_v49 = vrot.slane %v17078_v25, 5  ;;  %v9111_v40 = vrot.slane %v17080_v4, 5  ;;  %v8521_v32 = vshrl.u32 %v8262_v1, 16 }
 0x385   : > { %v8504_v5 = vrot.slane %v8503_v48, 4  ;;  %v8518_v3 = vrot.slane %v8516_v29, 5  ;;  %v8524_v30 = vshll.u32 %v8262_v1, 16  ;;  %v8530_v8 = vshll.u32 %v17001_v7, 16  ;;  %v17144_v29 = vld [vmem:[#allocation2 + $0xbc] sm:$0x1] }
 0x386   : > { %v8514_v28 = vrot.slane %v8513_v24, 4  ;;  %v9109_v42 = vsel %vm14377_vm8, %v12003_v59, %v9108_v49  ;;  %v9110_v57 = vrot.slane %v9108_v49, 4  ;;  %v8523_v6 = vrot.slane %v8521_v32, 4 }
 0x387   : > { %v8509_v23 = vsel %vm13739_vm1, %v8504_v5, %v8508_v58  ;;  %v8526_v36 = vrot.slane %v8524_v30, 5  ;;  %v8532_v41 = vrot.slane %v8530_v8, 5  ;;  %v8534_v31 = vshrl.u32 %v17001_v7, 16 }
 0x388   : > { %13112 = vmatmul.mubr.msk.bf16.gmra.mxu1 %vm6914_vm5, %v12017_v9  ;;  %v8519_v51 = vsel %vm13739_vm1, %v8514_v28, %v8518_v3  ;;  %v9112_v56 = vsel %vm14377_vm8, %v9110_v57, %v9111_v40  ;;  %v8540_v12 = vshll.u32 %v17003_v37, 16  ;;  %v12004_v19 = vrot.slane %v8971_v18, 9  ;;  %v17158_v28 = vpop.f32.mrf.mxu1 }
 0x389   : > { %13115 = vmatprep.mubr.msk.bf16.mxu1 %vm6914_vm5, %v12018_v33  ;;  %v17124_v7 = vcombine.low %v8509_v23, %v8519_v51  ;;  %v12020_v54 = vcombine.low %v9109_v42, %v9112_v56  ;;  %v8527_v20 = vor.u32 %v8526_v36, %v8523_v6  ;;  %v8536_v9 = vrot.slane %v8534_v31, 4  ;;  %v8271_v36 = vld [vmem:[#allocation2 + $0xa8] sm:$0xf]  ;;  %v8973_v31 = vld [vmem:[#allocation2 + $0xc0] sm:$0xe] }
 0x38a   : > { %v8542_v53 = vrot.slane %v8540_v12, 5  ;;  %v9115_v1 = vrot.slane %v17102_v16, 5  ;;  %v9118_v37 = vrot.slane %v17107_v45, 5  ;;  %v8545_v44 = vshrl.u32 %v8265_v50, 16 }
 0x38b   : > { %13070 = vmatmul.mubr.msk.bf16.gmra.mxu0 %vm6914_vm5, %v16983_v55  ;;  %v8528_v10 = vrot.slane %v8527_v20, 4  ;;  %v8537_v26 = vor.u32 %v8536_v9, %v8532_v41  ;;  %v8548_v33 = vshll.u32 %v8265_v50, 16  ;;  %v8554_v35 = vshll.u32 %v17034_v43, 16 }
 0x38c   : > { %13073 = vmatprep.mubr.msk.bf16.mxu0 %vm6914_vm5, %v17009_v60  ;;  %v17135_v63 = vsel %vm14377_vm8, %v12004_v19, %v9115_v1  ;;  %v9117_v55 = vrot.slane %v9115_v1, 4  ;;  %v8547_v13 = vrot.slane %v8545_v44, 4  ;;  %v8558_v27 = vshrl.u32 %v17034_v43, 16  ;;  %v8268_v43 = vld [vmem:[#allocation2 + $0x9c] sm:$0xf] }
 0x38d   : > { %v8533_v60 = vsel %vm13739_vm1, %v8528_v10, %v8532_v41  ;;  %v8538_v58 = vrot.slane %v8537_v26, 4  ;;  %v8550_v15 = vrot.slane %v8548_v33, 5  ;;  %v8556_v48 = vrot.slane %v8554_v35, 5 }
 0x38e   : > { %v9119_v59 = vsel %vm14377_vm8, %v9117_v55, %v9118_v37  ;;  %v8560_v24 = vrot.slane %v8558_v27, 4  ;;  %v8564_v49 = vshll.u32 %v17039_v11, 16  ;;  %v12005_v40 = vrot.slane %v8972_v52, 9  ;;  %v9786_v27 = vld [vmem:[#allocation2 + $0x18] sm:$0xf] }
 0x38f   : > { %v8543_v32 = vsel %vm13739_vm1, %v8538_v58, %v8542_v53  ;;  %v12021_v5 = vcombine.low %v17135_v63, %v9119_v59  ;;  %v8551_v3 = vor.u32 %v8550_v15, %v8547_v13  ;;  %v9122_v30 = vrot.slane %v17138_v62, 5 }
 0x390   : > { %13116 = vmatmul.mubr.msk.bf16.gmra.mxu1 %vm6914_vm5, %v12019_v39  ;;  %v11969_v8 = vcombine.low %v8533_v60, %v8543_v32  ;;  %v8561_v18 = vor.u32 %v8560_v24, %v8556_v48  ;;  %v8566_v50 = vrot.slane %v8564_v49, 5  ;;  %v9125_v11 = vrot.slane %v17144_v29, 5 }
 0x391   : > { %13119 = vmatprep.mubr.msk.bf16.mxu1 %vm6914_vm5, %v12020_v54  ;;  %v8552_v42 = vrot.slane %v8551_v3, 4  ;;  %v9123_v57 = vsel %vm14377_vm8, %v12005_v40, %v9122_v30  ;;  %v9124_v6 = vrot.slane %v9122_v30, 4  ;;  %v8569_v23 = vshrl.u32 %v8268_v43, 16  ;;  %v17176_v54 = vld [vmem:[#allocation2 + $0xc8] sm:$0x1] }
 0x392   : > { %v8562_v46 = vrot.slane %v8561_v18, 4  ;;  %v8572_v14 = vshll.u32 %v8268_v43, 16  ;;  %v8578_v39 = vshll.u32 %v17078_v25, 16  ;;  %v8582_v41 = vshrl.u32 %v17078_v25, 16  ;;  %v17201_v3 = vld [vmem:[#allocation2 + $0x1c] sm:$0xf] }
 0x393   : > { %13074 = vmatmul.mubr.msk.bf16.gmra.mxu0 %vm6914_vm5, %v17054_v17  ;;  %v8557_v51 = vsel %vm13739_vm1, %v8552_v42, %v8556_v48  ;;  %v9126_v56 = vsel %vm14377_vm8, %v9124_v6, %v9125_v11  ;;  %v8571_v12 = vrot.slane %v8569_v23, 4  ;;  %v8588_v19 = vshll.u32 %v17080_v4, 16  ;;  %v17174_v17 = vld [vmem:[#allocation2 + $0xc4] sm:$0xf] }
 0x394   : > { %13077 = vmatprep.mubr.msk.bf16.mxu0 %vm6914_vm5, %v17084_v22  ;;  %v8567_v25 = vsel %vm13739_vm1, %v8562_v46, %v8566_v50  ;;  %v12022_v20 = vcombine.low %v9123_v57, %v9126_v56  ;;  %v8574_v9 = vrot.slane %v8572_v14, 5  ;;  %v8580_v53 = vrot.slane %v8578_v39, 5  ;;  %v17180_v22 = vpop.f32.mrf.mxu1  ;;  %v8274_v57 = vld [vmem:[#allocation2 + $0xb4] sm:$0xf]  ;;  %v17208_v14 = vpop.f32.mrf.mxu0 }
 0x395   : > { %v17182_v1 = vcombine.low %v8557_v51, %v8567_v25  ;;  %v8584_v37 = vrot.slane %v8582_v41, 4  ;;  %v8590_v44 = vrot.slane %v8588_v19, 5  ;;  %v12006_v10 = vrot.slane %v8973_v31, 9 }
 0x396   : > { %v8575_v26 = vor.u32 %v8574_v9, %v8571_v12  ;;  %v9129_v4 = vrot.slane %v17174_v17, 5  ;;  %v9132_v33 = vrot.slane %v17176_v54, 5  ;;  %v8593_v35 = vshrl.u32 %v8271_v36, 16  ;;  %v17191_v59 = vpop.f32.mrf.mxu1 }
 0x397   : > { %v8585_v52 = vor.u32 %v8584_v37, %v8580_v53  ;;  %v8596_v63 = vshll.u32 %v8271_v36, 16  ;;  %v8602_v55 = vshll.u32 %v17102_v16, 16  ;;  %v8606_v13 = vshrl.u32 %v17102_v16, 16  ;;  %v9789_v37 = vld [vmem:[#allocation2 + $0x24] sm:$0xf] }
 0x398   : > { %13120 = vmatmul.mubr.msk.bf16.gmra.mxu1 %vm6914_vm5, %v12021_v5  ;;  %v8576_v60 = vrot.slane %v8575_v26, 4  ;;  %v9130_v58 = vsel %vm14377_vm8, %v12006_v10, %v9129_v4  ;;  %v9131_v15 = vrot.slane %v9129_v4, 4  ;;  %v8595_v48 = vrot.slane %v8593_v35, 4 }
 0x399   : > { %13123 = vmatprep.mubr.msk.bf16.mxu1 %vm6914_vm5, %v12022_v20  ;;  %v8586_v24 = vrot.slane %v8585_v52, 4  ;;  %v8598_v49 = vrot.slane %v8596_v63, 5  ;;  %v8604_v40 = vrot.slane %v8602_v55, 5  ;;  %v8608_v43 = vrot.slane %v8606_v13, 4 }
 0x39a   : > { %v8581_v16 = vsel %vm13739_vm1, %v8576_v60, %v8580_v53  ;;  %v9133_v32 = vsel %vm14377_vm8, %v9131_v15, %v9132_v33  ;;  %v8612_v5 = vshll.u32 %v17107_v45, 16  ;;  %v9835_v30 = vshrl.u32 %v9786_v27, 16  ;;  %v17210_v45 = vpop.f32.mrf.mxu1  ;;  %v17220_v33 = vpop.f32.mrf.mxu0 }
 0x39b   : > { %13078 = vmatmul.mubr.msk.bf16.gmra.mxu0 %vm6914_vm5, %v17124_v7  ;;  %v8591_v18 = vsel %vm13739_vm1, %v8586_v24, %v8590_v44  ;;  %v12023_v50 = vcombine.low %v9130_v58, %v9133_v32  ;;  %v8599_v11 = vor.u32 %v8598_v49, %v8595_v48  ;;  %v8609_v42 = vor.u32 %v8608_v43, %v8604_v40  ;;  %v17206_v7 = vld [vmem:[#allocation2 + $0x20] sm:$0x1]  ;;  %v13437_v58 = vld [vmem:[%s18859_s4 + $0x1c] sm:$0xf]  ;;  %v17233_v48 = vld [vmem:[#allocation2 + $0x28] sm:$0xf] }
 0x39c   : > { %13081 = vmatprep.mubr.msk.bf16.mxu0 %vm6914_vm5, %v11969_v8  ;;  %v11971_v6 = vcombine.low %v8581_v16, %v8591_v18  ;;  %v8614_v23 = vrot.slane %v8612_v5, 5  ;;  %v9837_v36 = vrot.slane %v9835_v30, 4  ;;  %v9838_v46 = vshll.u32 %v9786_v27, 16  ;;  %19161 = vst [vmem:[#allocation65_spill] sm:$0xff] %v17210_v45  ;;  %v17222_v35 = vpop.f32.mrf.mxu1  ;;  %v8277_v30 = vld [vmem:[#allocation2 + $0xc0] sm:$0xf]  ;;  %v17240_v18 = vpop.f32.mrf.mxu0 }
 0x39d   : > { %v8600_v39 = vrot.slane %v8599_v11, 4  ;;  %v8610_v41 = vrot.slane %v8609_v42, 4  ;;  %v9844_v8 = vshll.u32 %v17201_v3, 16  ;;  %v9848_v31 = vshrl.u32 %v17201_v3, 16 }
 0x39e   : > { %v9840_v51 = vrot.slane %v9838_v46, 5  ;;  %v9854_v56 = vshll.u32 %v17206_v7, 16  ;;  %v8617_v12 = vshrl.u32 %v8274_v57, 16  ;;  %v8620_v19 = vshll.u32 %v8274_v57, 16 }
 0x39f   : > { %v8605_v25 = vsel %vm13739_vm1, %v8600_v39, %v8604_v40  ;;  %v8615_v20 = vsel %vm13739_vm1, %v8610_v41, %v8614_v23  ;;  %v9846_v9 = vrot.slane %v9844_v8, 5  ;;  %v9850_v53 = vrot.slane %v9848_v31, 4 }
 0x3a0   : > { %13124 = vmatmul.mubr.msk.bf16.gmra.mxu1 %vm6914_vm5, %v12023_v50  ;;  %v11972_v44 = vcombine.low %v8605_v25, %v8615_v20  ;;  %v9841_v10 = vor.u32 %v9840_v51, %v9837_v36  ;;  %v9856_v26 = vrot.slane %v9854_v56, 5  ;;  %v8619_v4 = vrot.slane %v8617_v12, 4  ;;  %v17242_v50 = vpop.f32.mrf.mxu1  ;;  %v9792_v20 = vld [vmem:[#allocation2 + $0x30] sm:$0xf] }
 0x3a1   : > { %v9851_v52 = vor.u32 %v9850_v53, %v9846_v9  ;;  %v8622_v63 = vrot.slane %v8620_v19, 5  ;;  %v8626_v55 = vshll.u32 %v17138_v62, 16  ;;  %v8630_v13 = vshrl.u32 %v17138_v62, 16 }
 0x3a2   : > { %v9842_v27 = vrot.slane %v9841_v10, 4  ;;  %v8636_v60 = vshll.u32 %v17144_v29, 16  ;;  %v10317_v15 = vsel %vm6963_vm0, %v13437_v58, 0  ;;  %v9859_v24 = vshrl.u32 %v9789_v37, 16  ;;  %v17254_v53 = vpop.f32.mrf.mxu1 }
 0x3a3   : > { %13082 = vmatmul.mubr.msk.bf16.gmra.mxu0 %vm6914_vm5, %v17182_v1  ;;  %v9852_v49 = vrot.slane %v9851_v52, 4  ;;  %v8623_v40 = vor.u32 %v8622_v63, %v8619_v4  ;;  %v8628_v62 = vrot.slane %v8626_v55, 5  ;;  %v8632_v43 = vrot.slane %v8630_v13, 4  ;;  %13162 = vmatpush3.bf16.msra.mxu1 %v10317_v15  ;;  %v17236_v1 = vld [vmem:[#allocation2 + $0x2c] sm:$0x1] }
 0x3a4   : > { %13085 = vmatprep.mubr.msk.bf16.mxu0 %vm6914_vm5, %v11971_v6  ;;  %v9847_v29 = vsel %vm13739_vm1, %v9842_v27, %v9846_v9  ;;  %v8638_v16 = vrot.slane %v8636_v60, 5  ;;  %v9861_v32 = vrot.slane %v9859_v24, 4  ;;  %v9862_v5 = vshll.u32 %v9789_v37, 16  ;;  %v17252_v9 = vpop.f32.mrf.mxu0  ;;  %v17261_v27 = vld [vmem:[#allocation2 + $0x34] sm:$0xf] }
 0x3a5   : > { %v9857_v11 = vsel %vm13739_vm1, %v9852_v49, %v9856_v26  ;;  %v8624_v42 = vrot.slane %v8623_v40, 4  ;;  %v8633_v57 = vor.u32 %v8632_v43, %v8628_v62  ;;  %v9868_v6 = vshll.u32 %v17233_v48, 16 }
 0x3a6   : > { %v12074_v23 = vcombine.low %v9847_v29, %v9857_v11  ;;  %v9864_v36 = vrot.slane %v9862_v5, 5  ;;  %v9872_v46 = vshrl.u32 %v17233_v48, 16  ;;  %v9878_v39 = vshll.u32 %v17236_v1, 16  ;;  %v17271_v29 = vpop.f32.mrf.mxu1 }
 0x3a7   : > { %v8629_v41 = vsel %vm13739_vm1, %v8624_v42, %v8628_v62  ;;  %v8634_v8 = vrot.slane %v8633_v57, 4  ;;  %v9870_v31 = vrot.slane %v9868_v6, 5  ;;  %v8641_v51 = vshrl.u32 %v8277_v30, 16  ;;  %v17267_v62 = vld [vmem:[#allocation2 + $0x38] sm:$0x1] }
 0x3a8   : > { %13163 = vmatprep.mubr.msk.bf16.mxu1 %vm6914_vm5, %v12074_v23  ;;  %v9865_v56 = vor.u32 %v9864_v36, %v9861_v32  ;;  %v9874_v12 = vrot.slane %v9872_v46, 4  ;;  %v9880_v19 = vrot.slane %v9878_v39, 5  ;;  %v8644_v25 = vshll.u32 %v8277_v30, 16  ;;  %v17269_v43 = vpop.f32.mrf.mxu0  ;;  %v9795_v30 = vld [vmem:[#allocation2 + $0x3c] sm:$0xf] }
 0x3a9   : > { %v8639_v37 = vsel %vm13739_vm1, %v8634_v8, %v8638_v16  ;;  %v8643_v10 = vrot.slane %v8641_v51, 4  ;;  %v8650_v26 = vshll.u32 %v17174_v17, 16  ;;  %v8654_v4 = vshrl.u32 %v17174_v17, 16  ;;  %v17277_v23 = vld [vmem:[#allocation2 + $0x40] sm:$0xf] }
 0x3aa   : > { %v11973_v52 = vcombine.low %v8629_v41, %v8639_v37  ;;  %v9866_v63 = vrot.slane %v9865_v56, 4  ;;  %v9875_v55 = vor.u32 %v9874_v12, %v9870_v31  ;;  %v8646_v13 = vrot.slane %v8644_v25, 5  ;;  %v17280_v56 = vpop.f32.mrf.mxu0 }
 0x3ab   : > { %13086 = vmatmul.mubr.msk.bf16.gmra.mxu0 %vm6914_vm5, %v11972_v44  ;;  %v8652_v60 = vrot.slane %v8650_v26, 5  ;;  %v8656_v58 = vrot.slane %v8654_v4, 4  ;;  %v8660_v15 = vshll.u32 %v17176_v54, 16  ;;  %v9883_v24 = vshrl.u32 %v9792_v20, 16  ;;  %v9798_v26 = vld [vmem:[#allocation2 + $0x48] sm:$0xf] }
 0x3ac   : > { %13089 = vmatprep.mubr.msk.bf16.mxu0 %vm6914_vm5, %v11973_v52  ;;  %v9871_v49 = vsel %vm13739_vm1, %v9866_v63, %v9870_v31  ;;  %v9876_v40 = vrot.slane %v9875_v55, 4  ;;  %v8647_v17 = vor.u32 %v8646_v13, %v8643_v10  ;;  %v9886_v44 = vshll.u32 %v9792_v20, 16  ;;  %v17289_v20 = vld [vmem:[#allocation2 + $0x44] sm:$0x1]  ;;  %v13372_v55 = vld [vmem:[#allocation2 + $0x18] sm:$0xff]  }
 0x3ad   : > { %v8657_v16 = vor.u32 %v8656_v58, %v8652_v60  ;;  %v8662_v32 = vrot.slane %v8660_v15, 5  ;;  %v9885_v5 = vrot.slane %v9883_v24, 4  ;;  %v9892_v54 = vshll.u32 %v17261_v27, 16 }
 0x3ae   : > { %v9881_v11 = vsel %vm13739_vm1, %v9876_v40, %v9880_v19  ;;  %v8648_v42 = vrot.slane %v8647_v17, 4  ;;  %v9888_v57 = vrot.slane %v9886_v44, 5  ;;  %v9896_v6 = vshrl.u32 %v17261_v27, 16 }
 0x3af   : > { %v12075_v36 = vcombine.low %v9871_v49, %v9881_v11  ;;  %v8658_v46 = vrot.slane %v8657_v16, 4  ;;  %v9894_v39 = vrot.slane %v9892_v54, 5  ;;  %v9902_v41 = vshll.u32 %v17267_v62, 16  ;;  %v17282_v12 = vpop.f32.mrf.mxu1 }
 0x3b0   : > { %v9889_v8 = vor.u32 %v9888_v57, %v9885_v5  ;;  %v9898_v31 = vrot.slane %v9896_v6, 4  ;;  %v9907_v51 = vshrl.u32 %v9795_v30, 16  ;;  %v8653_v19 = vsel %vm13739_vm1, %v8648_v42, %v8652_v60  ;;  %v17293_v60 = vld [vmem:[#allocation2 + $0x4c] sm:$0xf]  ;;  %v17308_v42 = vld [vmem:[#allocation2 + $0x50] sm:$0x1] }
 0x3b1   : > { %13164 = vmatmul.mubr.msk.bf16.vlgmr.msra.gmra.mxu1 %vm6914_vm5, %v12075_v36  ;;  %v8663_v25 = vsel %vm13739_vm1, %v8658_v46, %v8662_v32  ;;  %v9910_v37 = vshll.u32 %v9795_v30, 16  ;;  %v9916_v10 = vshll.u32 %v17277_v23, 16  ;;  %v9904_v58 = vrot.slane %v9902_v41, 5  ;;  %v17301_v32 = vpop.f32.mrf.mxu0  ;;  %v17303_v5 = vpop.f32.mrf.mxu1 }
 0x3b2   : > { %v11974_v4 = vcombine.low %v8653_v19, %v8663_v25  ;;  %v9890_v52 = vrot.slane %v9889_v8, 4  ;;  %v9899_v63 = vor.u32 %v9898_v31, %v9894_v39  ;;  %v9909_v13 = vrot.slane %v9907_v51, 4 }
 0x3b3   : > { %v9912_v15 = vrot.slane %v9910_v37, 5  ;;  %v9918_v24 = vrot.slane %v9916_v10, 5  ;;  %v9920_v49 = vshrl.u32 %v17277_v23, 16  ;;  %v9926_v17 = vshll.u32 %v17289_v20, 16  ;;  %v9801_v37 = vld [vmem:[#allocation2 + $0x54] sm:$0xf]  ;;  %v17315_v10 = vpop.f32.mrf.mxu0 }
 0x3b4   : > { %13090 = vmatmul.mubr.msk.bf16.gmra.mxu0 %vm6914_vm5, %v11974_v4  ;;  %v9900_v40 = vrot.slane %v9899_v63, 4  ;;  %v17299_v44 = vadd.f32 %v17068_v47, %v17208_v14  ;;  %v9931_v16 = vshrl.u32 %v9798_v26, 16  ;;  %v9895_v54 = vsel %vm13739_vm1, %v9890_v52, %v9894_v39  ;;  %19162 = vst [vmem:[#allocation45_spill] sm:$0xff] %v17315_v10  ;;  %v9813_v10 = vld [vmem:[#allocation2 + $0x84] sm:$0xf] }
 0x3b5   : > { %13129 = vmatprep.mubr.msk.bf16.mxu0 %vm6914_vm5, %v13372_v55  ;;  %v9913_v30 = vor.u32 %v9912_v15, %v9909_v13  ;;  %v9922_v11 = vrot.slane %v9920_v49, 4  ;;  %v9934_v57 = vshll.u32 %v9798_v26, 16  ;;  %v9940_v14 = vshll.u32 %v17293_v60, 16  ;;  %v17317_v26 = vpop.f32.mrf.mxu1  ;;  %v17326_v13 = vld [vmem:[#allocation2 + $0x58] sm:$0xf]  ;;  %v13373_v15 = vld [vmem:[#allocation2 + $0x24] sm:$0xff]  }
 0x3b6   : > { %v9905_v6 = vsel %vm13739_vm1, %v9900_v40, %v9904_v58  ;;  %v9933_v47 = vrot.slane %v9931_v16, 4  ;;  %v9944_v36 = vshrl.u32 %v17293_v60, 16  ;;  %v9928_v39 = vrot.slane %v9926_v17, 5  ;;  %v17334_v16 = vld [vmem:[#allocation2 + $0x5c] sm:$0x1] }
 0x3b7   : > { %v12076_v46 = vcombine.low %v9895_v54, %v9905_v6  ;;  %v9914_v41 = vrot.slane %v9913_v30, 4  ;;  %v9923_v8 = vor.u32 %v9922_v11, %v9918_v24  ;;  %v9936_v31 = vrot.slane %v9934_v57, 5 }
 0x3b8   : > { %v9942_v51 = vrot.slane %v9940_v14, 5  ;;  %v9946_v19 = vrot.slane %v9944_v36, 4  ;;  %v9950_v25 = vshll.u32 %v17308_v42, 16  ;;  %v10787_v63 = vsel %vm6963_vm0, %v17026_v0, 0 }
 0x3b9   : > { %13167 = vmatprep.mubr.msk.bf16.mxu1 %vm6914_vm5, %v12076_v46  ;;  %v9924_v4 = vrot.slane %v9923_v8, 4  ;;  %v9937_v52 = vor.u32 %v9936_v31, %v9933_v47  ;;  %v17324_v55 = vadd.f32 %v17097_v61, %v17220_v33  ;;  %v9919_v58 = vsel %vm13739_vm1, %v9914_v41, %v9918_v24  ;;  %v13374_v61 = vld [vmem:[#allocation2 + $0x30] sm:$0xff]   ;;  %v9804_v47 = vld [vmem:[#allocation2 + $0x60] sm:$0xf]  ;;  %v17349_v8 = vld [vmem:[#allocation2 + $0x64] sm:$0xf] }
 0x3ba   : > { %v9947_v49 = vor.u32 %v9946_v19, %v9942_v51  ;;  %v9952_v40 = vrot.slane %v9950_v25, 5  ;;  %v17332_v17 = vadd.f32 %v17118_v21, %v17240_v18  ;;  %v9955_v33 = vshrl.u32 %v9801_v37, 16  ;;  %v17343_v18 = vpop.f32.mrf.mxu1 }
 0x3bb   : > { %v9929_v0 = vsel %vm13739_vm1, %v9924_v4, %v9928_v39  ;;  %v9938_v54 = vrot.slane %v9937_v52, 4  ;;  %v9958_v30 = vshll.u32 %v9801_v37, 16  ;;  %v9964_v57 = vshll.u32 %v17326_v13, 16 }
 0x3bc   : > { %v12077_v11 = vcombine.low %v9919_v58, %v9929_v0  ;;  %13130 = vmatmul.mubr.msk.bf16.vlgmr.msra.gmra.mxu0 %vm6914_vm5, %v13373_v15  ;;  %v9948_v24 = vrot.slane %v9947_v49, 4  ;;  %v9968_v6 = vshrl.u32 %v17326_v13, 16  ;;  %v17341_v21 = vpop.f32.mrf.mxu0  ;;  %v9957_v36 = vrot.slane %v9955_v33, 4 }
 0x3bd   : > { %v9943_v14 = vsel %vm13739_vm1, %v9938_v54, %v9942_v51  ;;  %13196 = vmatpush3.bf16.msra.mxu0 %v10787_v63  ;;  %13133 = vmatprep.mubr.msk.bf16.mxu0 %vm6914_vm5, %v13374_v61  ;;  %v9960_v46 = vrot.slane %v9958_v30, 5  ;;  %v9974_v41 = vshll.u32 %v17334_v16, 16  ;;  %v9966_v39 = vrot.slane %v9964_v57, 5  ;;  %v17358_v51 = vld [vmem:[#allocation2 + $0x68] sm:$0x1] }
 0x3be   : > { %13168 = vmatmul.mubr.msk.bf16.gmra.mxu1 %vm6914_vm5, %v12077_v11  ;;  %v9953_v31 = vsel %vm13739_vm1, %v9948_v24, %v9952_v40  ;;  %v9970_v19 = vrot.slane %v9968_v6, 4  ;;  %v17356_v25 = vadd.f32 %v17158_v28, %v17269_v43  ;;  %v9979_v63 = vshrl.u32 %v9804_v47, 16  ;;  %v17360_v58 = vpop.f32.mrf.mxu0  ;;  %v13375_v43 = vld [vmem:[#allocation2 + $0x3c] sm:$0xff]   ;;  %v9807_v11 = vld [vmem:[#allocation2 + $0x6c] sm:$0xf] }
 0x3bf   : > { %v12078_v37 = vcombine.low %v9943_v14, %v9953_v31  ;;  %v9961_v4 = vor.u32 %v9960_v46, %v9957_v36  ;;  %v9976_v52 = vrot.slane %v9974_v41, 5  ;;  %v9982_v49 = vshll.u32 %v9804_v47, 16  ;;  %v17372_v14 = vld [vmem:[#allocation2 + $0x70] sm:$0xf]  ;;  %v13376_v31 = vld [vmem:[#allocation2 + $0x48] sm:$0xff]  }
 0x3c0   : > { %19163 = vst [vmem:[#allocation66_spill] sm:$0xff] %v17356_v25  ;;  %v9971_v15 = vor.u32 %v9970_v19, %v9966_v39  ;;  %v9988_v0 = vshll.u32 %v17349_v8, 16  ;;  %v9992_v40 = vshrl.u32 %v17349_v8, 16  ;;  %v17364_v54 = vpop.f32.mrf.mxu1  ;;  %v9981_v61 = vrot.slane %v9979_v63, 4 }
 0x3c1   : > { %13171 = vmatprep.mubr.msk.bf16.mxu1 %vm6914_vm5, %v12078_v37  ;;  %v9962_v28 = vrot.slane %v9961_v4, 4  ;;  %v9998_v33 = vshll.u32 %v17358_v51, 16  ;;  %v17370_v30 = vadd.f32 %v17180_v22, %v17280_v56  ;;  %v9984_v57 = vrot.slane %v9982_v49, 5  ;;  %v17382_v22 = vld [vmem:[#allocation2 + $0x74] sm:$0x1]  ;;  %v12936_v56 = vpop.f32.mrf.mxu0 }
 0x3c2   : > { %v9972_v24 = vrot.slane %v9971_v15, 4  ;;  %v9990_v6 = vrot.slane %v9988_v0, 5  ;;  %v9994_v47 = vrot.slane %v9992_v40, 4  ;;  %v17374_v36 = vpop.f32.mrf.mxu1  ;;  %v17380_v19 = vadd.f32 %v17191_v59, %v17301_v32  ;;  %v9810_v32 = vld [vmem:[#allocation2 + $0x78] sm:$0xf] }
 0x3c3   : > { %19164 = vst [vmem:[#allocation41_spill] sm:$0xff] %v17370_v30  ;;  %v9967_v46 = vsel %vm13739_vm1, %v9962_v28, %v9966_v39  ;;  %v10000_v41 = vrot.slane %v9998_v33, 5  ;;  %v9985_v4 = vor.u32 %v9984_v57, %v9981_v61  ;;  %v10003_v15 = vshrl.u32 %v9807_v11, 16 }
 0x3c4   : > { %19165 = vst [vmem:[#allocation18_spill] sm:$0xff] %v17380_v19  ;;  %v9977_v37 = vsel %vm13739_vm1, %v9972_v24, %v9976_v52  ;;  %13134 = vmatmul.mubr.msk.bf16.gmra.mxu0 %vm6914_vm5, %v13375_v43  ;;  %v9995_v63 = vor.u32 %v9994_v47, %v9990_v6  ;;  %v10006_v39 = vshll.u32 %v9807_v11, 16  ;;  %v10012_v0 = vshll.u32 %v17372_v14, 16  ;;  %v17391_v52 = vld [vmem:[#allocation2 + $0x7c] sm:$0xf]  ;;  %v17393_v43 = vpop.f32.mrf.mxu1 }
 0x3c5   : > { %v12079_v49 = vcombine.low %v9967_v46, %v9977_v37  ;;  %13137 = vmatprep.mubr.msk.bf16.mxu0 %vm6914_vm5, %v13376_v31  ;;  %v10016_v59 = vshrl.u32 %v17372_v14, 16  ;;  %v9986_v40 = vrot.slane %v9985_v4, 4  ;;  %v10005_v33 = vrot.slane %v10003_v15, 4  ;;  %v17400_v47 = vld [vmem:[#allocation2 + $0x80] sm:$0x1]  ;;  %v7036_v46 = vpop.f32.mrf.mxu0 }
 0x3c6   : > { %v9996_v28 = vrot.slane %v9995_v63, 4  ;;  %v10022_v19 = vshll.u32 %v17382_v22, 16  ;;  %v10008_v61 = vrot.slane %v10006_v39, 5  ;;  %v10014_v24 = vrot.slane %v10012_v0, 5  ;;  %v13377_v0 = vld [vmem:[#allocation2 + $0x54] sm:$0xff]   ;;  %v17409_v30 = vpop.f32.mrf.mxu1 }
 0x3c7   : > { %13172 = vmatmul.mubr.msk.bf16.gmra.mxu1 %vm6914_vm5, %v12079_v49  ;;  %v10018_v57 = vrot.slane %v10016_v59, 4  ;;  %v17398_v11 = vadd.f32 %v17222_v35, %v17341_v21  ;;  %v9991_v31 = vsel %vm13739_vm1, %v9986_v40, %v9990_v6  ;;  %v10027_v63 = vshrl.u32 %v9810_v32, 16  ;;  %v13378_v40 = vld [vmem:[#allocation2 + $0x60] sm:$0xff]  }
 0x3c8   : > { %v10001_v37 = vsel %vm13739_vm1, %v9996_v28, %v10000_v41  ;;  %v10024_v4 = vrot.slane %v10022_v19, 5  ;;  %v10009_v49 = vor.u32 %v10008_v61, %v10005_v33  ;;  %v10030_v59 = vshll.u32 %v9810_v32, 16  ;;  %v17416_v32 = vld [vmem:[#allocation2 + $0x88] sm:$0xf] }
 0x3c9   : > { %19166 = vst [vmem:[#allocation53_spill] sm:$0xff] %v17398_v11  ;;  %v12080_v15 = vcombine.low %v9991_v31, %v10001_v37  ;;  %v10019_v39 = vor.u32 %v10018_v57, %v10014_v24  ;;  %v10029_v45 = vrot.slane %v10027_v63, 4  ;;  %v10036_v35 = vshll.u32 %v17391_v52, 16  ;;  %19168 = vst [vmem:[#allocation55_spill] sm:$0xff] %v17416_v32  ;;  %v17422_v63 = vld [vmem:[#allocation2 + $0x8c] sm:$0x1] }
 0x3ca   : > { %v10040_v21 = vshrl.u32 %v17391_v52, 16  ;;  %v10046_v11 = vshll.u32 %v17400_v47, 16  ;;  %v10010_v6 = vrot.slane %v10009_v49, 4  ;;  %v10032_v19 = vrot.slane %v10030_v59, 5  ;;  %19170 = vst [vmem:[#allocation48_spill] sm:$0xff] %v17422_v63 }
 0x3cb   : > { %13175 = vmatprep.mubr.msk.bf16.mxu1 %vm6914_vm5, %v12080_v15  ;;  %v10020_v41 = vrot.slane %v10019_v39, 4  ;;  %v17414_v28 = vadd.f32 %v17242_v50, %v17360_v58  ;;  %v12939_v33 = vpop.f32.mrf.mxu0  ;;  %v10038_v61 = vrot.slane %v10036_v35, 5  ;;  %v17420_v37 = vadd.f32 %v17254_v53, %v12936_v56 }
 0x3cc   : > { %13138 = vmatmul.mubr.msk.bf16.gmra.mxu0 %vm6914_vm5, %v13377_v0  ;;  %v10042_v57 = vrot.slane %v10040_v21, 4  ;;  %v10048_v31 = vrot.slane %v10046_v11, 5  ;;  %v10015_v15 = vsel %vm13739_vm1, %v10010_v6, %v10014_v24  ;;  %v10033_v58 = vor.u32 %v10032_v19, %v10029_v45  ;;  %v17432_v56 = vpop.f32.mrf.mxu1  ;;  %v9816_v45 = vld [vmem:[#allocation2 + $0x90] sm:$0xf]  ;;  %v17441_v19 = vld [vmem:[#allocation2 + $0x94] sm:$0xf] }
 0x3cd   : > { %19167 = vst [vmem:[#allocation42_spill] sm:$0xff] %v17414_v28  ;;  %19169 = vst [vmem:[#allocation46_spill] sm:$0xff] %v17420_v37  ;;  %v10025_v50 = vsel %vm13739_vm1, %v10020_v41, %v10024_v4  ;;  %13141 = vmatprep.mubr.msk.bf16.mxu0 %vm6914_vm5, %v13378_v40  ;;  %v17430_v49 = vadd.f32 %v17271_v29, %v7036_v46  ;;  %v7049_v39 = vpop.f32.mrf.mxu0  ;;  %v10051_v59 = vshrl.u32 %v9813_v10, 16  ;;  %v10054_v53 = vshll.u32 %v9813_v10, 16 }
 0x3ce   : > { %v12081_v0 = vcombine.low %v10015_v15, %v10025_v50  ;;  %v10043_v11 = vor.u32 %v10042_v57, %v10038_v61  ;;  %v10034_v35 = vrot.slane %v10033_v58, 4  ;;  %v10060_v21 = vshll.u32 %v17416_v32, 16  ;;  %19173 = vst [vmem:[#allocation49_spill] sm:$0xff] %v17441_v19  ;;  %v17443_v40 = vpop.f32.mrf.mxu1 }
 0x3cf   : > { %19171 = vst [vmem:[#allocation56_spill] sm:$0xff] %v17430_v49  ;;  %v10064_v24 = vshrl.u32 %v17416_v32, 16  ;;  %v10070_v4 = vshll.u32 %v17422_v63, 16  ;;  %v10053_v29 = vrot.slane %v10051_v59, 4  ;;  %v10056_v46 = vrot.slane %v10054_v53, 5  ;;  %v12940_v10 = vpop.f32.mrf.mxu0  ;;  %v13379_v59 = vld [vmem:[#allocation2 + $0x6c] sm:$0xff]  }
 0x3d0   : > { %13176 = vmatmul.mubr.msk.bf16.gmra.mxu1 %vm6914_vm5, %v12081_v0  ;;  %v10044_v6 = vrot.slane %v10043_v11, 4  ;;  %v17439_v41 = vadd.f32 %v17282_v12, %v12939_v33  ;;  %v10039_v57 = vsel %vm13739_vm1, %v10034_v35, %v10038_v61  ;;  %v10062_v15 = vrot.slane %v10060_v21, 5  ;;  %v17447_v49 = vld [vmem:[#allocation2 + $0x98] sm:$0x1]  ;;  %v17451_v53 = vpop.f32.mrf.mxu1 }
 0x3d1   : > { %v10066_v50 = vrot.slane %v10064_v24, 4  ;;  %v10072_v58 = vrot.slane %v10070_v4, 5  ;;  %19174 = vst [vmem:[#allocation47_spill] sm:$0xff] %v17447_v49  ;;  %v10057_v11 = vor.u32 %v10056_v46, %v10053_v29  ;;  %v10075_v12 = vshrl.u32 %v9816_v45, 16  ;;  %v13380_v35 = vld [vmem:[#allocation2 + $0x78] sm:$0xff]  }
 0x3d2   : > { %19172 = vst [vmem:[#allocation50_spill] sm:$0xff] %v17439_v41  ;;  %v10049_v0 = vsel %vm13739_vm1, %v10044_v6, %v10048_v31  ;;  %v10078_v33 = vshll.u32 %v9816_v45, 16  ;;  %v10084_v28 = vshll.u32 %v17441_v19, 16  ;;  %v10088_v61 = vshrl.u32 %v17441_v19, 16  ;;  %v7052_v6 = vpop.f32.mrf.mxu0  ;;  %v9819_v29 = vld [vmem:[#allocation2 + $0x9c] sm:$0xf]  ;;  %v17457_v46 = vpop.f32.mrf.mxu1 }
 0x3d3   : > { %v12082_v41 = vcombine.low %v10039_v57, %v10049_v0  ;;  %v10067_v37 = vor.u32 %v10066_v50, %v10062_v15  ;;  %v10058_v21 = vrot.slane %v10057_v11, 4  ;;  %v10077_v24 = vrot.slane %v10075_v12, 4  ;;  %v17464_v11 = vld [vmem:[#allocation2 + $0xa0] sm:$0xf]  ;;  %v17471_v19 = vld [vmem:[#allocation2 + $0xa4] sm:$0x1] }
 0x3d4   : > { %13142 = vmatmul.mubr.msk.bf16.gmra.mxu0 %vm6914_vm5, %v13379_v59  ;;  %v10080_v4 = vrot.slane %v10078_v33, 5  ;;  %v10094_v31 = vshll.u32 %v17447_v49, 16  ;;  %v10086_v57 = vrot.slane %v10084_v28, 5  ;;  %v10090_v50 = vrot.slane %v10088_v61, 4  ;;  %19176 = vst [vmem:[#allocation54_spill] sm:$0xff] %v17464_v11  ;;  %19178 = vst [vmem:[#allocation58_spill] sm:$0xff] %v17471_v19 }
 0x3d5   : > { %13179 = vmatprep.mubr.msk.bf16.mxu1 %vm6914_vm5, %v12082_v41  ;;  %v10068_v45 = vrot.slane %v10067_v37, 4  ;;  %13145 = vmatprep.mubr.msk.bf16.mxu0 %vm6914_vm5, %v13380_v35  ;;  %v17462_v0 = vadd.f32 %v17303_v5, %v7049_v39  ;;  %v10063_v59 = vsel %vm13739_vm1, %v10058_v21, %v10062_v15  ;;  %v17469_v49 = vadd.f32 %v17317_v26, %v12940_v10  ;;  %v9822_v26 = vld [vmem:[#allocation2 + $0xa8] sm:$0xf] }
 0x3d6   : > { %v10081_v12 = vor.u32 %v10080_v4, %v10077_v24  ;;  %v10096_v33 = vrot.slane %v10094_v31, 5  ;;  %v17473_v37 = vpop.f32.mrf.mxu1  ;;  %v10091_v41 = vor.u32 %v10090_v50, %v10086_v57  ;;  %v17478_v5 = vadd.f32 %v17343_v18, %v7052_v6 }
 0x3d7   : > { %19175 = vst [vmem:[#allocation51_spill] sm:$0xff] %v17462_v0  ;;  %19177 = vst [vmem:[#allocation60_spill] sm:$0xff] %v17469_v49  ;;  %v10073_v28 = vsel %vm13739_vm1, %v10068_v45, %v10072_v58  ;;  %v10099_v39 = vshrl.u32 %v9819_v29, 16  ;;  %v10102_v15 = vshll.u32 %v9819_v29, 16  ;;  %v10108_v21 = vshll.u32 %v17464_v11, 16 }
 0x3d8   : > { %19179 = vst [vmem:[#allocation61_spill] sm:$0xff] %v17478_v5  ;;  %v12083_v61 = vcombine.low %v10063_v59, %v10073_v28  ;;  %v10082_v35 = vrot.slane %v10081_v12, 4  ;;  %v17481_v10 = vpop.f32.mrf.mxu1  ;;  %v10092_v4 = vrot.slane %v10091_v41, 4  ;;  %v10112_v49 = vshrl.u32 %v17464_v11, 16  ;;  %v17485_v45 = vld [vmem:[#allocation2 + $0xac] sm:$0xf] }
 0x3d9   : > { %v12943_v24 = vpop.f32.mrf.mxu0  ;;  %v10101_v31 = vrot.slane %v10099_v39, 4  ;;  %v10118_v58 = vshll.u32 %v17471_v19, 16  ;;  %19180 = vst [vmem:[#allocation62_spill] sm:$0xff] %v17485_v45  ;;  %v10104_v6 = vrot.slane %v10102_v15, 5  ;;  %v10110_v29 = vrot.slane %v10108_v21, 5  ;;  %v13381_v59 = vld [vmem:[#allocation2 + $0x84] sm:$0xff]  }
 0x3da   : > { %13180 = vmatmul.mubr.msk.bf16.gmra.mxu1 %vm6914_vm5, %v12083_v61  ;;  %v10087_v18 = vsel %vm13739_vm1, %v10082_v35, %v10086_v57  ;;  %v17491_v50 = vadd.f32 %v17364_v54, %v12943_v24  ;;  %v17493_v12 = vld [vmem:[#allocation2 + $0xb0] sm:$0x1]  ;;  %v17495_v41 = vpop.f32.mrf.mxu1  ;;  %v10097_v39 = vsel %vm13739_vm1, %v10092_v4, %v10096_v33  ;;  %v10114_v5 = vrot.slane %v10112_v49, 4  ;;  %v9825_v49 = vld [vmem:[#allocation2 + $0xb4] sm:$0xf] }
 0x3db   : > { %19182 = vst [vmem:[#allocation52_spill] sm:$0xff] %v17493_v12  ;;  %v7065_v28 = vpop.f32.mrf.mxu0  ;;  %v10120_v0 = vrot.slane %v10118_v58, 5  ;;  %v10123_v61 = vshrl.u32 %v9822_v26, 16  ;;  %v13382_v19 = vld [vmem:[#allocation2 + $0x90] sm:$0xff]   ;;  %v12084_v11 = vcombine.low %v10087_v18, %v10097_v39  ;;  %v10105_v57 = vor.u32 %v10104_v6, %v10101_v31  ;;  %v17510_v6 = vld [vmem:[#allocation2 + $0xb8] sm:$0xf] }
 0x3dc   : > { %19181 = vst [vmem:[#allocation63_spill] sm:$0xff] %v17491_v50  ;;  %13146 = vmatmul.mubr.msk.bf16.gmra.mxu0 %vm6914_vm5, %v13381_v59  ;;  %v10126_v35 = vshll.u32 %v9822_v26, 16  ;;  %v10132_v54 = vshll.u32 %v17485_v45, 16  ;;  %v17501_v21 = vpop.f32.mrf.mxu1  ;;  %v10115_v24 = vor.u32 %v10114_v5, %v10110_v29  ;;  %v10136_v63 = vshrl.u32 %v17485_v45, 16  ;;  %19184 = vst [vmem:[#allocation59_spill] sm:$0xff] %v17510_v6 }
 0x3dd   : > { %v12944_v15 = vpop.f32.mrf.mxu0  ;;  %v10125_v50 = vrot.slane %v10123_v61, 4  ;;  %v10142_v33 = vshll.u32 %v17493_v12, 16  ;;  %13149 = vmatprep.mubr.msk.bf16.mxu0 %vm6914_vm5, %v13382_v19  ;;  %13183 = vmatprep.mubr.msk.bf16.mxu1 %vm6914_vm5, %v12084_v11  ;;  %v10106_v4 = vrot.slane %v10105_v57, 4  ;;  %v17508_v26 = vadd.f32 %v17374_v36, %v7065_v28  ;;  %v17522_v36 = vld [vmem:[#allocation2 + $0xbc] sm:$0x1] }
 0x3de   : > { %v10128_v31 = vrot.slane %v10126_v35, 5  ;;  %v10134_v58 = vrot.slane %v10132_v54, 5  ;;  %v10116_v5 = vrot.slane %v10115_v24, 4  ;;  %v10138_v59 = vrot.slane %v10136_v63, 4  ;;  %19187 = vst [vmem:[#allocation69_spill] sm:$0xff] %v17522_v36 }
 0x3df   : > { %19183 = vst [vmem:[#allocation57_spill] sm:$0xff] %v17508_v26  ;;  %v7068_v18 = vpop.f32.mrf.mxu0  ;;  %v10144_v39 = vrot.slane %v10142_v33, 5  ;;  %v17513_v61 = vadd.f32 %v17393_v43, %v12944_v15  ;;  %v17515_v12 = vpop.f32.mrf.mxu1  ;;  %v10111_v19 = vsel %vm13739_vm1, %v10106_v4, %v10110_v29  ;;  %v10147_v28 = vshrl.u32 %v9825_v49, 16  ;;  %v9828_v15 = vld [vmem:[#allocation2 + $0xc0] sm:$0xf] }
 0x3e0   : > { %v10129_v11 = vor.u32 %v10128_v31, %v10125_v50  ;;  %v17520_v57 = vadd.f32 %v17409_v30, %v7068_v18  ;;  %v10121_v63 = vsel %vm13739_vm1, %v10116_v5, %v10120_v0  ;;  %v10139_v54 = vor.u32 %v10138_v59, %v10134_v58  ;;  %v13383_v4 = vld [vmem:[#allocation2 + $0x9c] sm:$0xff]   ;;  %v13384_v31 = vld [vmem:[#allocation2 + $0xa8] sm:$0xff]   ;;  %v17531_v5 = vld [vmem:[#allocation2 + $0xc4] sm:$0xf] }
 0x3e1   : > { %19185 = vst [vmem:[#allocation67_spill] sm:$0xff] %v17513_v61  ;;  %v12947_v35 = vpop.f32.mrf.mxu0  ;;  %v10150_v24 = vshll.u32 %v9825_v49, 16  ;;  %v10156_v43 = vshll.u32 %v17510_v6, 16  ;;  %v17527_v33 = vpop.f32.mrf.mxu1  ;;  %v12085_v61 = vcombine.low %v10111_v19, %v10121_v63  ;;  %v10149_v50 = vrot.slane %v10147_v28, 4  ;;  %v17542_v28 = vld [vmem:[#allocation2 + $0xc8] sm:$0x1] }
 0x3e2   : > { %19186 = vst [vmem:[#allocation68_spill] sm:$0xff] %v17520_v57  ;;  %v10130_v29 = vrot.slane %v10129_v11, 4  ;;  %v10160_v30 = vshrl.u32 %v17510_v6, 16  ;;  %v10140_v57 = vrot.slane %v10139_v54, 4  ;;  %v10166_v0 = vshll.u32 %v17522_v36, 16 }
 0x3e3   : > { %v7081_v18 = vpop.f32.mrf.mxu0  ;;  %v10152_v26 = vrot.slane %v10150_v24, 5  ;;  %v10158_v45 = vrot.slane %v10156_v43, 5  ;;  %v17533_v49 = vpop.f32.mrf.mxu1  ;;  %13184 = vmatmul.mubr.msk.bf16.gmra.mxu1 %vm6914_vm5, %v12085_v61  ;;  %v17539_v11 = vadd.f32 %v17432_v56, %v12947_v35  ;;  %v10171_v63 = vshrl.u32 %v9828_v15, 16 }
 0x3e4   : > { %v10135_v59 = vsel %vm13739_vm1, %v10130_v29, %v10134_v58  ;;  %v10162_v19 = vrot.slane %v10160_v30, 4  ;;  %13150 = vmatmul.mubr.msk.bf16.gmra.mxu0 %vm6914_vm5, %v13383_v4  ;;  %v10145_v24 = vsel %vm13739_vm1, %v10140_v57, %v10144_v39  ;;  %v10168_v36 = vrot.slane %v10166_v0, 5 }
 0x3e5   : > { %19188 = vst [vmem:[#allocation70_spill] sm:$0xff] %v17539_v11  ;;  %v12948_v54 = vpop.f32.mrf.mxu0  ;;  %v10153_v43 = vor.u32 %v10152_v26, %v10149_v50  ;;  %v10174_v6 = vshll.u32 %v9828_v15, 16  ;;  %13153 = vmatprep.mubr.msk.bf16.mxu0 %vm6914_vm5, %v13384_v31  ;;  %v17547_v61 = vpop.f32.mrf.mxu1  ;;  %v12086_v58 = vcombine.low %v10135_v59, %v10145_v24  ;;  %v10173_v56 = vrot.slane %v10171_v63, 4  ;;  %v10512_v59 = vld [vmem:[#allocation2 + $0x18] sm:$0xe] }
 0x3e6   : > { %v10163_v29 = vor.u32 %v10162_v19, %v10158_v45  ;;  %v10180_v35 = vshll.u32 %v17531_v5, 16  ;;  %v10184_v25 = vshrl.u32 %v17531_v5, 16  ;;  %v10190_v32 = vshll.u32 %v17542_v28, 16  ;;  %v9831_v19 = vld [vmem:[#allocation2 + $0xcc] sm:$0xf] }
 0x3e7   : > { %v7084_v30 = vpop.f32.mrf.mxu0  ;;  %v10154_v4 = vrot.slane %v10153_v43, 4  ;;  %v10176_v11 = vrot.slane %v10174_v6, 5  ;;  %13187 = vmatprep.mubr.msk.bf16.mxu1 %vm6914_vm5, %v12086_v58  ;;  %v17554_v57 = vadd.f32 %v17443_v40, %v7081_v18  ;;  %v17557_v15 = vadd.f32 %v17451_v53, %v12948_v54  ;;  %v13385_v54 = vld [vmem:[#allocation2 + $0xb4] sm:$0xff]   ;;  %v13386_v58 = vld [vmem:[#allocation2 + $0xc0] sm:$0xff]  }
 0x3e8   : > { %v10164_v26 = vrot.slane %v10163_v29, 4  ;;  %v10182_v39 = vrot.slane %v10180_v35, 5  ;;  %v17559_v50 = vpop.f32.mrf.mxu1  ;;  %v17563_v31 = vadd.f32 %v17140_v34, %v17252_v9  ;;  %v10186_v0 = vrot.slane %v10184_v25, 4 }
 0x3e9   : > { %v10177_v6 = vor.u32 %v10176_v11, %v10173_v56  ;;  %v10159_v63 = vsel %vm13739_vm1, %v10154_v4, %v10158_v45  ;;  %v17570_v18 = vadd.f32 %v17457_v46, %v7084_v30  ;;  %v10578_v34 = vrot.slane %v17201_v3, 5  ;;  %v17578_v45 = vld [vmem:[#allocation2 + $0xd0] sm:$0xf] }
 0x3ea   : > { %v10169_v40 = vsel %vm13739_vm1, %v10164_v26, %v10168_v36  ;;  %v12951_v53 = vpop.f32.mrf.mxu0  ;;  %v17572_v24 = vpop.f32.mrf.mxu1  ;;  %v10187_v25 = vor.u32 %v10186_v0, %v10182_v39  ;;  %v10192_v29 = vrot.slane %v10190_v32, 5  ;;  %v12106_v36 = vrot.slane %v10512_v59, 9  ;;  %v17589_v26 = vld [vmem:[#allocation2 + $0xd4] sm:$0x1] }
 0x3eb   : > { %v12087_v9 = vcombine.low %v10159_v63, %v10169_v40  ;;  %v10178_v11 = vrot.slane %v10177_v6, 4  ;;  %v17576_v43 = vadd.f32 %v17473_v37, %v12951_v53  ;;  %v10580_v56 = vrot.slane %v10578_v34, 4 }
 0x3ec   : > { %13154 = vmatmul.mubr.msk.bf16.gmra.mxu0 %vm6914_vm5, %v13385_v54  ;;  %v7097_v46 = vpop.f32.mrf.mxu0  ;;  %v10195_v35 = vshrl.u32 %v9831_v19, 16  ;;  %v17581_v30 = vpop.f32.mrf.mxu1  ;;  %v10188_v3 = vrot.slane %v10187_v25, 4  ;;  %v10581_v4 = vrot.slane %v17206_v7, 5  ;;  %v10198_v32 = vshll.u32 %v9831_v19, 16  ;;  %v13387_v25 = vld [vmem:[#allocation2 + $0xcc] sm:$0xff]  }
 0x3ed   : > { %19189 = vst [vmem:[#allocation71_spill] sm:$0xff] %v17576_v43  ;;  %13188 = vmatmul.mubr.msk.bf16.gmra.mxu1 %vm6914_vm5, %v12087_v9  ;;  %13157 = vmatprep.mubr.msk.bf16.mxu0 %vm6914_vm5, %v13386_v58  ;;  %v17586_v37 = vadd.f32 %v17481_v10, %v7097_v46  ;;  %v10183_v6 = vsel %vm13739_vm1, %v10178_v11, %v10182_v39  ;;  %v10204_v63 = vshll.u32 %v17578_v45, 16  ;;  %v10208_v40 = vshrl.u32 %v17578_v45, 16  ;;  %v10513_v9 = vld [vmem:[#allocation2 + $0x24] sm:$0xe] }
 0x3ee   : > { %v12952_v0 = vpop.f32.mrf.mxu0  ;;  %v10197_v59 = vrot.slane %v10195_v35, 4  ;;  %v17595_v53 = vpop.f32.mrf.mxu1  ;;  %v10193_v10 = vsel %vm13739_vm1, %v10188_v3, %v10192_v29  ;;  %v10582_v7 = vsel %vm14377_vm8, %v10580_v56, %v10581_v4  ;;  %v10200_v19 = vrot.slane %v10198_v32, 5  ;;  %v10514_v3 = vld [vmem:[#allocation2 + $0x30] sm:$0xe] }
 0x3ef   : > { %19190 = vst [vmem:[#allocation72_spill] sm:$0xff] %v17586_v37  ;;  %v17600_v54 = vadd.f32 %v17495_v41, %v12952_v0  ;;  %v12088_v39 = vcombine.low %v10183_v6, %v10193_v10  ;;  %v10206_v58 = vrot.slane %v10204_v63, 5  ;;  %v10210_v46 = vrot.slane %v10208_v40, 4 }
 0x3f0   : > { %v7100_v11 = vpop.f32.mrf.mxu0  ;;  %v10214_v35 = vshll.u32 %v17589_v26, 16  ;;  %v17605_v37 = vpop.f32.mrf.mxu1  ;;  %v10579_v41 = vsel %vm14377_vm8, %v12106_v36, %v10578_v34  ;;  %v10201_v29 = vor.u32 %v10200_v19, %v10197_v59  ;;  %v10585_v56 = vrot.slane %v17233_v48, 5  ;;  %v10515_v36 = vld [vmem:[#allocation2 + $0x3c] sm:$0xe] }
 0x3f1   : > { %v17608_v43 = vadd.f32 %v17501_v21, %v7100_v11  ;;  %13191 = vmatprep.mubr.msk.bf16.mxu1 %vm6914_vm5, %v12088_v39  ;;  %v12123_v32 = vcombine.low %v10579_v41, %v10582_v7  ;;  %v10211_v6 = vor.u32 %v10210_v46, %v10206_v58  ;;  %v12107_v63 = vrot.slane %v10513_v9, 9 }
 0x3f2   : > { %v12955_v4 = vpop.f32.mrf.mxu0  ;;  %v10216_v0 = vrot.slane %v10214_v35, 5  ;;  %v17614_v40 = vpop.f32.mrf.mxu1  ;;  %v10202_v21 = vrot.slane %v10201_v29, 4  ;;  %v10587_v11 = vrot.slane %v10585_v56, 4  ;;  %v10588_v34 = vrot.slane %v17236_v1, 5 }
 0x3f3   : > { %v17617_v10 = vadd.f32 %v17515_v12, %v12955_v4  ;;  %v10212_v59 = vrot.slane %v10211_v6, 4  ;;  %v10586_v7 = vsel %vm14377_vm8, %v12107_v63, %v10585_v56  ;;  %v12108_v19 = vrot.slane %v10514_v3, 9 }
 0x3f4   : > { %13158 = vmatmul.mubr.msk.bf16.gmra.mxu0 %vm6914_vm5, %v13387_v25  ;;  %v7113_v48 = vpop.f32.mrf.mxu0  ;;  %v10592_v9 = vrot.slane %v17261_v27, 5  ;;  %v17624_v39 = vpop.f32.mrf.mxu1  ;;  %v10207_v1 = vsel %vm13739_vm1, %v10202_v21, %v10206_v58  ;;  %v10589_v25 = vsel %vm14377_vm8, %v10587_v11, %v10588_v34  ;;  %v10599_v46 = vrot.slane %v17277_v23, 5  ;;  %v10517_v11 = vld [vmem:[#allocation2 + $0x54] sm:$0xe] }
 0x3f5   : > { %19191 = vst [vmem:[#allocation73_spill] sm:$0xff] %v17617_v10  ;;  %13197 = vmatprep.mubr.msk.bf16.mxu0 %vm6914_vm5, %v12123_v32  ;;  %v17628_v12 = vadd.f32 %v17527_v33, %v7113_v48  ;;  %v10217_v35 = vsel %vm13739_vm1, %v10212_v59, %v10216_v0  ;;  %v10595_v29 = vrot.slane %v17267_v62, 5  ;;  %v12109_v3 = vrot.slane %v10515_v36, 9  ;;  %v10516_v33 = vld [vmem:[#allocation2 + $0x48] sm:$0xe]  ;;  %v19209_v10 = vld [vmem:[#allocation69_spill] sm:$0xff] }
 0x3f6   : > { %v12956_v41 = vpop.f32.mrf.mxu0  ;;  %v10594_v27 = vrot.slane %v10592_v9, 4  ;;  %v17638_v56 = vpop.f32.mrf.mxu1  ;;  %v12089_v4 = vcombine.low %v10207_v1, %v10217_v35  ;;  %v12124_v58 = vcombine.low %v10586_v7, %v10589_v25  ;;  %v10601_v6 = vrot.slane %v10599_v46, 4  ;;  %v10518_v1 = vld [vmem:[#allocation2 + $0x60] sm:$0xe] }
 0x3f7   : > { %19192 = vst [vmem:[#allocation74_spill] sm:$0xff] %v17628_v12  ;;  %v17641_v32 = vadd.f32 %v17533_v49, %v12956_v41  ;;  %v10593_v23 = vsel %vm14377_vm8, %v12108_v19, %v10592_v9  ;;  %v10602_v62 = vrot.slane %v17289_v20, 5  ;;  %v10606_v21 = vrot.slane %v17293_v60, 5 }
 0x3f8   : > { %v7116_v63 = vpop.f32.mrf.mxu0  ;;  %v10596_v2 = vsel %vm14377_vm8, %v10594_v27, %v10595_v29  ;;  %v17647_v0 = vpop.f32.mrf.mxu1  ;;  %13192 = vmatmul.mubr.msk.bf16.gmra.mxu1 %vm6914_vm5, %v12089_v4  ;;  %v10600_v36 = vsel %vm14377_vm8, %v12109_v3, %v10599_v46  ;;  %v12110_v48 = vrot.slane %v10516_v33, 9  ;;  %v10609_v60 = vrot.slane %v17308_v42, 5 }
 0x3f9   : > { %19193 = vst [vmem:[#allocation78_spill] sm:$0xff] %v17641_v32  ;;  %v17653_v49 = vadd.f32 %v17547_v61, %v7116_v63  ;;  %v12125_v34 = vcombine.low %v10593_v23, %v10596_v2  ;;  %v10603_v7 = vsel %vm14377_vm8, %v10601_v6, %v10602_v62  ;;  %v10608_v20 = vrot.slane %v10606_v21, 4 }
 0x3fa   : > { %v12995_v59 = vpop.f32.mrf.mxu0  ;;  %v17659_v19 = vpop.f32.mrf.mxu1  ;;  %v10613_v9 = vrot.slane %v17326_v13, 5  ;;  %v12126_v25 = vcombine.low %v10600_v36, %v10603_v7  ;;  %v10607_v46 = vsel %vm14377_vm8, %v12110_v48, %v10606_v21  ;;  %v12111_v35 = vrot.slane %v10517_v11, 9 }
 0x3fb   : > { %19194 = vst [vmem:[#allocation75_spill] sm:$0xff] %v17653_v49  ;;  %v17664_v61 = vadd.f32 %v12995_v59, %v17299_v44  ;;  %v10610_v27 = vsel %vm14377_vm8, %v10608_v20, %v10609_v60  ;;  %v10616_v13 = vrot.slane %v17334_v16, 5  ;;  %v10620_v3 = vrot.slane %v17349_v8, 5  ;;  %v10519_v44 = vld [vmem:[#allocation2 + $0x6c] sm:$0xe] }
 0x3fc   : > { %13198 = vmatmul.mubr.msk.bf16.vlgmr.msra.gmra.mxu0 %vm6914_vm5, %v12124_v58  ;;  %v7715_v41 = vpop.f32.mrf.mxu0  ;;  %v17671_v29 = vpop.f32.mrf.mxu1  ;;  %v10615_v42 = vrot.slane %v10613_v9, 4  ;;  %v12127_v4 = vcombine.low %v10607_v46, %v10610_v27  ;;  %v17681_v58 = vsel %vm14377_vm8, %v12111_v35, %v10613_v9  ;;  %v12112_v6 = vrot.slane %v10518_v1, 9  ;;  %v10521_v20 = vld [vmem:[#allocation2 + $0x84] sm:$0xe] }
 0x3fd   : > { %13201 = vmatprep.mubr.msk.bf16.mxu0 %vm6914_vm5, %v12125_v34  ;;  %v17677_v33 = vadd.f32 %v7715_v41, %v17324_v55  ;;  %v10622_v8 = vrot.slane %v10620_v3, 4  ;;  %v10623_v2 = vrot.slane %v17358_v51, 5  ;;  %v10627_v62 = vrot.slane %v17372_v14, 5  ;;  %v10520_v55 = vld [vmem:[#allocation2 + $0x78] sm:$0xe] }
 0x3fe   : > { %v12996_v63 = vpop.f32.mrf.mxu0  ;;  %v17683_v23 = vpop.f32.mrf.mxu1  ;;  %v17687_v16 = vsel %vm14377_vm8, %v10615_v42, %v10616_v13  ;;  %v17698_v34 = vsel %vm14377_vm8, %v12112_v6, %v10620_v3  ;;  %v12113_v36 = vrot.slane %v10519_v44, 9  ;;  %v10630_v7 = vrot.slane %v17382_v22, 5  ;;  %v10522_v13 = vld [vmem:[#allocation2 + $0x90] sm:$0xe]  ;;  %v19196_v3 = vld [vmem:[#allocation66_spill] sm:$0xff] }
 0x3ff   : > { %v17692_v21 = vadd.f32 %v12996_v63, %v17332_v17  ;;  %v17704_v51 = vsel %vm14377_vm8, %v10622_v8, %v10623_v2  ;;  %v10629_v14 = vrot.slane %v10627_v62, 4  ;;  %v10634_v17 = vrot.slane %v17391_v52, 5  ;;  %v19204_v6 = vld [vmem:[#allocation18_spill] sm:$0xff] }
 0x400   : > { %v7718_v48 = vpop.f32.mrf.mxu0  ;;  %v17700_v59 = vpop.f32.mrf.mxu1  ;;  %v12129_v9 = vcombine.low %v17698_v34, %v17704_v51  ;;  %v17715_v1 = vsel %vm14377_vm8, %v12113_v36, %v10627_v62  ;;  %v12114_v46 = vrot.slane %v10520_v55, 9  ;;  %v10637_v27 = vrot.slane %v17400_v47, 5  ;;  %v19197_v34 = vld [vmem:[#allocation48_spill] sm:$0xff] }
 0x401   : > { %v17709_v60 = vadd.f32 %v7718_v48, %v17563_v31  ;;  %v17721_v22 = vsel %vm14377_vm8, %v10629_v14, %v10630_v7  ;;  %v10636_v52 = vrot.slane %v10634_v17, 4  ;;  %v19195_v31 = vld [vmem:[#allocation55_spill] sm:$0xff]  ;;  %v12115_v8 = vrot.slane %v10521_v20, 9  ;;  %v19198_v48 = vld [vmem:[#allocation49_spill] sm:$0xff]  ;;  %v10523_v14 = vld [vmem:[#allocation2 + $0x9c] sm:$0xe] }
 0x402   : > { %v12999_v35 = vpop.f32.mrf.mxu0  ;;  %v17717_v41 = vpop.f32.mrf.mxu1  ;;  %v10641_v42 = vrot.slane %v19195_v31, 5  ;;  %v17732_v63 = vsel %vm14377_vm8, %v12114_v46, %v10634_v17  ;;  %v10644_v36 = vrot.slane %v19197_v34, 5  ;;  %v10648_v51 = vrot.slane %v19198_v48, 5  ;;  %v19199_v7 = vld [vmem:[#allocation41_spill] sm:$0xff]  ;;  %v19201_v34 = vld [vmem:[#allocation54_spill] sm:$0xff] }
 0x403   : > { %v17726_v44 = vadd.f32 %v12999_v35, %v19196_v3  ;;  %v17739_v47 = vsel %vm14377_vm8, %v10636_v52, %v10637_v27  ;;  %v12116_v46 = vrot.slane %v10522_v13, 9  ;;  %v19200_v3 = vld [vmem:[#allocation47_spill] sm:$0xff]  ;;  %v19202_v48 = vld [vmem:[#allocation45_spill] sm:$0xff]  ;;  %v12117_v13 = vrot.slane %v10523_v14, 9 }
 0x404   : > { %13202 = vmatmul.mubr.msk.bf16.gmra.mxu0 %vm6914_vm5, %v12126_v25  ;;  %v7731_v2 = vpop.f32.mrf.mxu0  ;;  %v17735_v62 = vpop.f32.mrf.mxu1  ;;  %v10643_v55 = vrot.slane %v10641_v42, 4  ;;  %v17749_v20 = vsel %vm14377_vm8, %v12115_v8, %v10641_v42  ;;  %v10650_v31 = vrot.slane %v10648_v51, 4 }
 0x405   : > { %13205 = vmatprep.mubr.msk.bf16.mxu0 %vm6914_vm5, %v12127_v4  ;;  %v7846_v17 = vadd.f32 %v7731_v2, %v19199_v7  ;;  %v10651_v4 = vrot.slane %v19200_v3, 5  ;;  %v10655_v2 = vrot.slane %v19201_v34, 5  ;;  %v19203_v7 = vld [vmem:[#allocation65_spill] sm:$0xff]  ;;  %v19205_v34 = vld [vmem:[#allocation58_spill] sm:$0xff] }
 0x406   : > { %v13000_v35 = vpop.f32.mrf.mxu0  ;;  %v17751_v52 = vpop.f32.mrf.mxu1  ;;  %v17755_v27 = vsel %vm14377_vm8, %v10643_v55, %v10644_v36  ;;  %v7313_v25 = vadd.f32 %v19203_v7, %v19202_v48  ;;  %v17768_v55 = vsel %vm14377_vm8, %v12116_v46, %v10648_v51  ;;  %v10658_v48 = vrot.slane %v19205_v34, 5  ;;  %v19206_v46 = vld [vmem:[#allocation59_spill] sm:$0xff] }
 0x407   : > { %v7849_v11 = vadd.f32 %v13000_v35, %v19204_v6  ;;  %v17772_v36 = vsel %vm14377_vm8, %v10650_v31, %v10651_v4  ;;  %v10657_v3 = vrot.slane %v10655_v2, 4  ;;  %v10525_v35 = vld [vmem:[#allocation2 + $0xb4] sm:$0xe]  ;;  %v17781_v32 = vsel %vm14377_vm8, %v12117_v13, %v10655_v2 }
 0x408   : > { %v7734_v8 = vpop.f32.mrf.mxu0  ;;  %v17764_v49 = vpop.f32.mrf.mxu1  ;;  %v10669_v31 = vrot.slane %v19206_v46, 5  ;;  %v19207_v4 = vld [vmem:[#allocation53_spill] sm:$0xff]  ;;  %v12119_v2 = vrot.slane %v10525_v35, 9 }
 0x409   : > { %v7847_v7 = vadd.f32 %v7734_v8, %v7313_v25  ;;  %v17785_v51 = vsel %vm14377_vm8, %v10657_v3, %v10658_v48  ;;  %v19208_v8 = vcombine.low %v17681_v58, %v17687_v16  ;;  %v10672_v3 = vrot.slane %v19209_v10, 5  ;;  %v19210_v48 = vld [vmem:[#allocation42_spill] sm:$0xff] }
 0x40a   : > { %v13003_v14 = vpop.f32.mrf.mxu0  ;;  %v17777_v42 = vpop.f32.mrf.mxu1  ;;  %v10671_v13 = vrot.slane %v10669_v31, 4  ;;  %v17804_v25 = vsel %vm14377_vm8, %v12119_v2, %v10669_v31  ;;  %v19211_v16 = vld [vmem:[#allocation46_spill] sm:$0xff]  ;;  %v17821_v31 = vadd.f32 %v17572_v24, %v17677_v33  ;;  %v19212_v2 = vld [vmem:[#allocation56_spill] sm:$0xff]  ;;  %v17839_v24 = vadd.f32 %v17614_v40, %v7846_v17 }
 0x40b   : > { %v7852_v34 = vadd.f32 %v13003_v14, %v19207_v4  ;;  %v17842_v33 = vadd.f32 %v17624_v39, %v7849_v11  ;;  %v19216_v11 = vld [vmem:[#allocation51_spill] sm:$0xff] }
 0x40c   : > { %13206 = vmatmul.mubr.msk.bf16.gmra.mxu0 %vm6914_vm5, %v19208_v8  ;;  %v7747_v6 = vpop.f32.mrf.mxu0  ;;  %v17795_v12 = vpop.f32.mrf.mxu1  ;;  %v17808_v58 = vsel %vm14377_vm8, %v10671_v13, %v10672_v3  ;;  %v17826_v13 = vadd.f32 %v17581_v30, %v17692_v21  ;;  %v17830_v3 = vadd.f32 %v17595_v53, %v17709_v60  ;;  %v17846_v21 = vadd.f32 %v17638_v56, %v7847_v7 }
 0x40d   : > { %13209 = vmatprep.mubr.msk.bf16.mxu0 %vm6914_vm5, %v12129_v9  ;;  %v7850_v46 = vadd.f32 %v7747_v6, %v19210_v48  ;;  %v12136_v10 = vcombine.low %v17804_v25, %v17808_v58  ;;  %v17815_v9 = vadd.f32 %v17559_v50, %v17664_v61  ;;  %v17836_v61 = vadd.f32 %v17605_v37, %v17726_v44 }
 0x40e   : > { %v13004_v14 = vpop.f32.mrf.mxu0  ;;  %v17800_v4 = vpop.f32.mrf.mxu1  ;;  %v17849_v53 = vadd.f32 %v17647_v0, %v7852_v34  ;;  %v19214_v60 = vcombine.low %v17715_v1, %v17721_v22  ;;  %v19215_v0 = vcombine.low %v17732_v63, %v17739_v47  ;;  %v19219_v47 = vld [vmem:[#allocation61_spill] sm:$0xff] }
 0x40f   : > { %v7853_v35 = vadd.f32 %v13004_v14, %v19211_v16  ;;  %v19213_v16 = vld [vmem:[#allocation50_spill] sm:$0xff]  ;;  %v17858_v40 = vadd.f32 %v17659_v19, %v7850_v46  ;;  %v19217_v19 = vld [vmem:[#allocation60_spill] sm:$0xff] }
 0x410   : > { %v7750_v6 = vpop.f32.mrf.mxu0  ;;  %v17817_v8 = vpop.f32.mrf.mxu1 }
 0x411   : > { %v7851_v48 = vadd.f32 %v7750_v6, %v19212_v2  ;;  %v17861_v39 = vadd.f32 %v17671_v29, %v7853_v35  ;;  %v19218_v35 = vld [vmem:[#allocation62_spill] sm:$0xff] }
 0x412   : > { %v13007_v14 = vpop.f32.mrf.mxu0  ;;  %v17832_v50 = vpop.f32.mrf.mxu1  ;;  %v10662_v63 = vrot.slane %v19218_v35, 5 }
 0x413   : > { %v7856_v30 = vadd.f32 %v13007_v14, %v19213_v16  ;;  %v17864_v56 = vadd.f32 %v17683_v23, %v7851_v48  ;;  %v19220_v14 = vld [vmem:[#allocation63_spill] sm:$0xff] }
 0x414   : > { %13210 = vmatmul.mubr.msk.bf16.gmra.mxu0 %vm6914_vm5, %v19214_v60  ;;  %v7763_v37 = vpop.f32.mrf.mxu0  ;;  %v17855_v44 = vpop.f32.mrf.mxu1 }
 0x415   : > { %13213 = vmatprep.mubr.msk.bf16.mxu0 %vm6914_vm5, %v19215_v0  ;;  %v7854_v1 = vadd.f32 %v7763_v37, %v19216_v11  ;;  %v17872_v22 = vadd.f32 %v17700_v59, %v7856_v30  ;;  %v10664_v37 = vrot.slane %v10662_v63, 4  ;;  %v19223_v11 = vld [vmem:[#allocation57_spill] sm:$0xff] }
 0x416   : > { %v13008_v17 = vpop.f32.mrf.mxu0  ;;  %v17874_v7 = vpop.f32.mrf.mxu1 }
 0x417   : > { %v7857_v34 = vadd.f32 %v13008_v17, %v19217_v19  ;;  %v17878_v29 = vadd.f32 %v17717_v41, %v7854_v1  ;;  %v19221_v41 = vcombine.low %v17749_v20, %v17755_v27  ;;  %v10524_v17 = vld [vmem:[#allocation2 + $0xa8] sm:$0xe] }
 0x418   : > { %v7766_v23 = vpop.f32.mrf.mxu0  ;;  %v17880_v46 = vpop.f32.mrf.mxu1 }
 0x419   : > { %v7855_v6 = vadd.f32 %v7766_v23, %v19219_v47  ;;  %v17885_v2 = vadd.f32 %v17735_v62, %v7857_v34  ;;  %v19222_v62 = vcombine.low %v17768_v55, %v17772_v36  ;;  %v19224_v34 = vld [vmem:[#allocation52_spill] sm:$0xff]  ;;  %v19225_v23 = vld [vmem:[#allocation67_spill] sm:$0xff]  ;;  %v12118_v55 = vrot.slane %v10524_v17, 9 }
 0x41a   : > { %v13011_v59 = vpop.f32.mrf.mxu0  ;;  %v17887_v48 = vpop.f32.mrf.mxu1  ;;  %v10665_v20 = vrot.slane %v19224_v34, 5 }
 0x41b   : > { %v7860_v16 = vadd.f32 %v13011_v59, %v19220_v14  ;;  %v17891_v30 = vadd.f32 %v17751_v52, %v7855_v6  ;;  %v19226_v14 = vld [vmem:[#allocation68_spill] sm:$0xff] }
 0x41c   : > { %13214 = vmatmul.mubr.msk.bf16.gmra.mxu0 %vm6914_vm5, %v19221_v41  ;;  %v7779_v60 = vpop.f32.mrf.mxu0  ;;  %v17897_v0 = vpop.f32.mrf.mxu1  ;;  %v10666_v36 = vsel %vm14377_vm8, %v10664_v37, %v10665_v20  ;;  %v10526_v20 = vld [vmem:[#allocation2 + $0xc0] sm:$0xe] }
 0x41d   : > { %13217 = vmatprep.mubr.msk.bf16.mxu0 %vm6914_vm5, %v19222_v62  ;;  %v7858_v1 = vadd.f32 %v7779_v60, %v19223_v11  ;;  %v17905_v52 = vadd.f32 %v17764_v49, %v7860_v16  ;;  %v10676_v49 = vrot.slane %v17531_v5, 5  ;;  %v10663_v62 = vsel %vm14377_vm8, %v12118_v55, %v10662_v63  ;;  %v19227_v11 = vld [vmem:[#allocation70_spill] sm:$0xff] }
 0x41e   : > { %v13012_v19 = vpop.f32.mrf.mxu0  ;;  %v17908_v27 = vpop.f32.mrf.mxu1  ;;  %v12135_v17 = vcombine.low %v10663_v62, %v10666_v36  ;;  %v19228_v5 = vcombine.low %v17781_v32, %v17785_v51  ;;  %v10679_v55 = vrot.slane %v17542_v28, 5 }
 0x41f   : > { %v7861_v35 = vadd.f32 %v13012_v19, %v19225_v23  ;;  %v17912_v47 = vadd.f32 %v17777_v42, %v7858_v1  ;;  %v10527_v23 = vld [vmem:[#allocation2 + $0xcc] sm:$0xe] }
 0x420   : > { %v7782_v6 = vpop.f32.mrf.mxu0  ;;  %v17916_v59 = vpop.f32.mrf.mxu1 }
 0x421   : > { %v7859_v16 = vadd.f32 %v7782_v6, %v19226_v14  ;;  %v17921_v41 = vadd.f32 %v17795_v12, %v7861_v35  ;;  %v10678_v12 = vrot.slane %v10676_v49, 4  ;;  %v10683_v35 = vrot.slane %v17578_v45, 5 }
 0x422   : > { %v13015_v60 = vpop.f32.mrf.mxu0  ;;  %v17925_v42 = vpop.f32.mrf.mxu1  ;;  %v12121_v45 = vrot.slane %v10527_v23, 9 }
 0x423   : > { %v7864_v1 = vadd.f32 %v13015_v60, %v19227_v11  ;;  %v17929_v37 = vadd.f32 %v17800_v4, %v7859_v16  ;;  %v12120_v16 = vrot.slane %v10526_v20, 9  ;;  %v10685_v62 = vrot.slane %v10683_v35, 4 }
 0x424   : > { %13218 = vmatmul.mubr.msk.bf16.gmra.mxu0 %vm6914_vm5, %v19228_v5  ;;  %v7795_v19 = vpop.f32.mrf.mxu0  ;;  %v13058_v34 = vpop.f32.mrf.mxu1  ;;  %v10686_v11 = vrot.slane %v17589_v26, 5 }
 0x425   : > { %13221 = vmatprep.mubr.msk.bf16.mxu0 %vm6914_vm5, %v12135_v17  ;;  %v7862_v63 = vadd.f32 %v7795_v19, %v17554_v57  ;;  %v17939_v6 = vadd.f32 %v17817_v8, %v7864_v1  ;;  %v10680_v57 = vsel %vm14377_vm8, %v10678_v12, %v10679_v55  ;;  %v19229_v17 = vld [vmem:[#allocation71_spill] sm:$0xff] }
 0x426   : > { %v13016_v4 = vpop.f32.mrf.mxu0  ;;  %v8188_v32 = vpop.f32.mrf.mxu1  ;;  %v10687_v20 = vsel %vm14377_vm8, %v10685_v62, %v10686_v11 }
 0x427   : > { %v7865_v51 = vadd.f32 %v13016_v4, %v17557_v15  ;;  %v17944_v36 = vadd.f32 %v17832_v50, %v7862_v63  ;;  %v10677_v50 = vsel %vm14377_vm8, %v12120_v16, %v10676_v49  ;;  %v10684_v63 = vsel %vm14377_vm8, %v12121_v45, %v10683_v35  ;;  %v19231_v16 = vld [vmem:[#allocation73_spill] sm:$0xff] }
 0x428   : > { %v7798_v14 = vpop.f32.mrf.mxu0  ;;  %v17948_v60 = vpop.f32.mrf.mxu1  ;;  %v12137_v19 = vcombine.low %v10677_v50, %v10680_v57  ;;  %v12138_v55 = vcombine.low %v10684_v63, %v10687_v20 }
 0x429   : > { %v7863_v8 = vadd.f32 %v7798_v14, %v17570_v18  ;;  %v17953_v28 = vadd.f32 %v17855_v44, %v7865_v51  ;;  %v19230_v44 = vld [vmem:[#allocation72_spill] sm:$0xff] }
 0x42a   : > { %v17957_v1 = vpop.f32.mrf.mxu1 }
 0x42b   : > { %v13019_v15 = vpop.f32.mrf.mxu0  ;;  %v17961_v12 = vadd.f32 %v17874_v7, %v7863_v8  ;;  %v19232_v8 = vld [vmem:[#allocation74_spill] sm:$0xff] }
 0x42c   : > { %v7868_v5 = vadd.f32 %v13019_v15, %v19229_v17  ;;  %13222 = vmatmul.mubr.msk.bf16.gmra.mxu0 %vm6914_vm5, %v12136_v10  ;;  %v17967_v26 = vpop.f32.mrf.mxu1  ;;  %v19233_v15 = vld [vmem:[#allocation78_spill] sm:$0xff] }
 0x42d   : > { %v7811_v18 = vpop.f32.mrf.mxu0  ;;  %13225 = vmatprep.mubr.msk.bf16.mxu0 %vm6914_vm5, %v12137_v19  ;;  %v19234_v19 = vld [vmem:[#allocation75_spill] sm:$0xff] }
 0x42e   : > { %v7866_v49 = vadd.f32 %v7811_v18, %v19230_v44  ;;  %v17976_v7 = vadd.f32 %v17880_v46, %v7868_v5  ;;  %v17978_v25 = vpop.f32.mrf.mxu1 }
 0x42f   : > { %v13020_v23 = vpop.f32.mrf.mxu0 }
 0x430   : > { %v7869_v58 = vadd.f32 %v13020_v23, %v17600_v54  ;;  %v17982_v10 = vadd.f32 %v17887_v48, %v7866_v49  ;;  %v17984_v51 = vpop.f32.mrf.mxu1 }
 0x431   : > { %v7814_v4 = vpop.f32.mrf.mxu0 }
 0x432   : > { %v7867_v35 = vadd.f32 %v7814_v4, %v17608_v43  ;;  %v17988_v38 = vadd.f32 %v17897_v0, %v7869_v58  ;;  %v17990_v46 = vpop.f32.mrf.mxu1 }
 0x433   : > { %v13023_v14 = vpop.f32.mrf.mxu0 }
 0x434   : > { %v7872_v57 = vadd.f32 %v13023_v14, %v19231_v16  ;;  %v17994_v45 = vadd.f32 %v17908_v27, %v7867_v35  ;;  %13226 = vmatmul.mubr.msk.bf16.gmra.mxu0 %vm6914_vm5, %v12138_v55  ;;  %v17997_v48 = vpop.f32.mrf.mxu1 }
 0x435   : > { %v7827_v54 = vpop.f32.mrf.mxu0 }
 0x436   : > { %v7870_v62 = vadd.f32 %v7827_v54, %v19232_v8  ;;  %v18001_v43 = vadd.f32 %v17916_v59, %v7872_v57  ;;  %v18003_v11 = vpop.f32.mrf.mxu1 }
 0x437   : > { %v13024_v0 = vpop.f32.mrf.mxu0 }
 0x438   : > { %v7873_v50 = vadd.f32 %v13024_v0, %v19233_v15  ;;  %v18007_v17 = vadd.f32 %v17925_v42, %v7870_v62  ;;  %v18009_v5 = vpop.f32.mrf.mxu1 }
 0x439   : > { %v7830_v27 = vpop.f32.mrf.mxu0 }
 0x43a   : > { %v7871_v18 = vadd.f32 %v7830_v27, %v19234_v19  ;;  %v18012_v44 = vadd.f32 %v13058_v34, %v7873_v50  ;;  %v18014_v63 = vpop.f32.mrf.mxu1 }
 0x43b   : > { %v13063_v49 = vpop.f32.mrf.mxu0 }
 0x43c   : > { %v18017_v59 = vadd.f32 %v13063_v49, %v17815_v9  ;;  %v18019_v20 = vadd.f32 %v8188_v32, %v7871_v18  ;;  %v18021_v58 = vpop.f32.mrf.mxu1 }
 0x43d   : > { %v8799_v23 = vpop.f32.mrf.mxu0 }
 0x43e   : > { %v18024_v42 = vadd.f32 %v8799_v23, %v17821_v31  ;;  %v18026_v55 = vpop.f32.mrf.mxu1 }
 0x43f   : > { %v13064_v4 = vpop.f32.mrf.mxu0 }
 0x440   : > { %v18029_v34 = vadd.f32 %v13064_v4, %v17826_v13  ;;  %v18031_v14 = vpop.f32.mrf.mxu1 }
 0x441   : > { %v8802_v35 = vpop.f32.mrf.mxu0 }
 0x442   : > { %v18034_v9 = vadd.f32 %v8802_v35, %v17830_v3  ;;  %v18036_v16 = vpop.f32.mrf.mxu1 }
 0x443   : > { %v13067_v32 = vpop.f32.mrf.mxu0 }
 0x444   : > { %v18039_v57 = vadd.f32 %v13067_v32, %v17836_v61  ;;  %v18041_v54 = vpop.f32.mrf.mxu1 }
 0x445   : > { %v8815_v31 = vpop.f32.mrf.mxu0 }
 0x446   : > { %v18044_v8 = vadd.f32 %v8815_v31, %v17839_v24  ;;  %v18046_v62 = vpop.f32.mrf.mxu1 }
 0x447   : > { %v13068_v13 = vpop.f32.mrf.mxu0 }
 0x448   : > { %v18049_v0 = vadd.f32 %v13068_v13, %v17842_v33  ;;  %v18051_v15 = vpop.f32.mrf.mxu1 }
 0x449   : > { %v8818_v3 = vpop.f32.mrf.mxu0 }
 0x44a   : > { %v18054_v50 = vadd.f32 %v8818_v3, %v17846_v21  ;;  %v18056_v27 = vpop.f32.mrf.mxu1 }
 0x44b   : > { %v13071_v61 = vpop.f32.mrf.mxu0 }
 0x44c   : > { %v18059_v19 = vadd.f32 %v13071_v61, %v17849_v53  ;;  %v18061_v18 = vpop.f32.mrf.mxu1 }
 0x44d   : > { %v8831_v24 = vpop.f32.mrf.mxu0 }
 0x44e   : > { %v18064_v49 = vadd.f32 %v8831_v24, %v17858_v40  ;;  %v18066_v23 = vpop.f32.mrf.mxu1 }
 0x44f   : > { %v13072_v33 = vpop.f32.mrf.mxu0 }
 0x450   : > { %v18069_v4 = vadd.f32 %v13072_v33, %v17861_v39  ;;  %v18071_v35 = vpop.f32.mrf.mxu1 }
 0x451   : > { %v8834_v21 = vpop.f32.mrf.mxu0  ;;  %19235 = vst [vmem:[#allocation82_spill] sm:$0xff] %v18071_v35 }
 0x452   : > { %v18074_v32 = vadd.f32 %v8834_v21, %v17864_v56  ;;  %v18076_v31 = vpop.f32.mrf.mxu1 }
 0x453   : > { %v13075_v53 = vpop.f32.mrf.mxu0  ;;  %19236 = vst [vmem:[#allocation76_spill] sm:$0xff] %v18076_v31 }
 0x454   : > { %v18079_v13 = vadd.f32 %v13075_v53, %v17872_v22  ;;  %v18081_v3 = vpop.f32.mrf.mxu1 }
 0x455   : > { %v8847_v40 = vpop.f32.mrf.mxu0  ;;  %19237 = vst [vmem:[#allocation77_spill] sm:$0xff] %v18081_v3 }
 0x456   : > { %v18084_v61 = vadd.f32 %v8847_v40, %v17878_v29  ;;  %v18089_v33 = vpop.f32.mrf.mxu1 }
 0x457   : > { %v13076_v39 = vpop.f32.mrf.mxu0  ;;  %19238 = vst [vmem:[#allocation79_spill] sm:$0xff] %v18089_v33 }
 0x458   : > { %v18087_v24 = vadd.f32 %v13076_v39, %v17885_v2  ;;  %v18097_v53 = vpop.f32.mrf.mxu1 }
 0x459   : > { %v8850_v56 = vpop.f32.mrf.mxu0  ;;  %19239 = vst [vmem:[#allocation80_spill] sm:$0xff] %v18097_v53 }
 0x45a   : > { %v18092_v21 = vadd.f32 %v8850_v56, %v17891_v30  ;;  %v18105_v39 = vpop.f32.mrf.mxu1 }
 0x45b   : > { %v13079_v31 = vpop.f32.mrf.mxu0  ;;  %19240 = vst [vmem:[#allocation87_spill] sm:$0xff] %v18105_v39 }
 0x45c   : > { %v18095_v22 = vadd.f32 %v13079_v31, %v17905_v52  ;;  %v18113_v31 = vpop.f32.mrf.mxu1 }
 0x45d   : > { %v8863_v3 = vpop.f32.mrf.mxu0  ;;  %19242 = vst [vmem:[#allocation83_spill] sm:$0xff] %v18113_v31 }
 0x45e   : > { %v18100_v29 = vadd.f32 %v8863_v3, %v17912_v47 }
 0x45f   : > { %v13080_v40 = vpop.f32.mrf.mxu0 }
 0x460   : > { %v18103_v2 = vadd.f32 %v13080_v40, %v17921_v41  ;;  %v18121_v40 = vpop.f32.mrf.mxu1 }
 0x461   : > { %v8866_v33 = vpop.f32.mrf.mxu0  ;;  %19245 = vst [vmem:[#allocation86_spill] sm:$0xff] %v18121_v40 }
 0x462   : > { %v18108_v30 = vadd.f32 %v8866_v33, %v17929_v37  ;;  %v18126_v35 = vpop.f32.mrf.mxu1 }
 0x463   : > { %v13083_v56 = vpop.f32.mrf.mxu0  ;;  %19247 = vst [vmem:[#allocation92_spill] sm:$0xff] %v18126_v35 }
 0x464   : > { %v18111_v52 = vadd.f32 %v13083_v56, %v17939_v6  ;;  %v18134_v31 = vpop.f32.mrf.mxu1 }
 0x465   : > { %v8879_v53 = vpop.f32.mrf.mxu0  ;;  %19250 = vst [vmem:[#allocation90_spill] sm:$0xff] %v18134_v31 }
 0x466   : > { %19241 = vst [vmem:[#allocation81_spill] sm:$0xff] %v18111_v52  ;;  %v18116_v47 = vadd.f32 %v8879_v53, %v17944_v36 }
 0x467   : > { %v13084_v3 = vpop.f32.mrf.mxu0 }
 0x468   : > { %19243 = vst [vmem:[#allocation84_spill] sm:$0xff] %v18116_v47  ;;  %v18119_v41 = vadd.f32 %v13084_v3, %v17953_v28 }
 0x469   : > { %v8882_v39 = vpop.f32.mrf.mxu0 }
 0x46a   : > { %19244 = vst [vmem:[#allocation85_spill] sm:$0xff] %v18119_v41  ;;  %v18124_v37 = vadd.f32 %v8882_v39, %v17961_v12  ;;  %v18142_v39 = vpop.f32.mrf.mxu1 }
 0x46b   : > { %v13087_v33 = vpop.f32.mrf.mxu0  ;;  %19253 = vst [vmem:[#allocation64_spill] sm:$0xff] %v18142_v39 }
 0x46c   : > { %19246 = vst [vmem:[#allocation88_spill] sm:$0xff] %v18124_v37  ;;  %v18129_v6 = vadd.f32 %v13087_v33, %v17976_v7  ;;  %v18147_v40 = vpop.f32.mrf.mxu1 }
 0x46d   : > { %v8895_v56 = vpop.f32.mrf.mxu0  ;;  %19255 = vst [vmem:[#allocation6_spill] sm:$0xff] %v18147_v40 }
 0x46e   : > { %19248 = vst [vmem:[#allocation89_spill] sm:$0xff] %v18129_v6  ;;  %v18132_v36 = vadd.f32 %v8895_v56, %v17982_v10 }
 0x46f   : > { %v13088_v53 = vpop.f32.mrf.mxu0 }
 0x470   : > { %19249 = vst [vmem:[#allocation94_spill] sm:$0xff] %v18132_v36  ;;  %v18137_v28 = vadd.f32 %v13088_v53, %v17988_v38 }
 0x471   : > { %v8898_v3 = vpop.f32.mrf.mxu0  ;;  %v18155_v31 = vpop.f32.mrf.mxu1 }
 0x472   : > { %19251 = vst [vmem:[#allocation91_spill] sm:$0xff] %v18137_v28  ;;  %v18140_v12 = vadd.f32 %v8898_v3, %v17994_v45 }
 0x474   : > { %19252 = vst [vmem:[#allocation93_spill] sm:$0xff] %v18140_v12  ;;  %v13091_v35 = vpop.f32.mrf.mxu0 }
 0x475   : > { %v18145_v7 = vadd.f32 %v13091_v35, %v18001_v43  ;;  %v18162_v43 = vpop.f32.mrf.mxu1 }
 0x476   : > { %v8911_v33 = vpop.f32.mrf.mxu0 }
 0x477   : > { %19254 = vst [vmem:[#allocation8_spill] sm:$0xff] %v18145_v7  ;;  %v18150_v10 = vadd.f32 %v8911_v33, %v18007_v17  ;;  %v18168_v17 = vpop.f32.mrf.mxu1 }
 0x478   : > { %v13092_v56 = vpop.f32.mrf.mxu0 }
 0x479   : > { %19256 = vst [vmem:[#allocation9_spill] sm:$0xff] %v18150_v10  ;;  %v18153_v38 = vadd.f32 %v13092_v56, %v18012_v44  ;;  %v18174_v56 = vpop.f32.mrf.mxu1 }
 0x47a   : > { %v8914_v53 = vpop.f32.mrf.mxu0 }
 0x47b   : > { %19257 = vst [vmem:[#allocation21_spill] sm:$0xff] %v18153_v38  ;;  %v18158_v45 = vadd.f32 %v8914_v53, %v18019_v20 }
 0x47c   : > { %v13131_v3 = vpop.f32.mrf.mxu0 }
 0x47d   : > { %19258 = vst [vmem:[#allocation55_spill] sm:$0xff] %v18158_v45 }
 0x47e   : > { %v18160_v39 = vpop.f32.mrf.mxu0  ;;  %v18180_v53 = vpop.f32.mrf.mxu1 }
 0x47f   : > { %19259 = vst [vmem:[#allocation66_spill] sm:$0xff] %v18180_v53 }
 0x480   : > { %v18164_v35 = vpop.f32.mrf.mxu0  ;;  %v18186_v7 = vpop.f32.mrf.mxu1 }
 0x481   : > { %19262 = vst [vmem:[#allocation41_spill] sm:$0xff] %v18186_v7 }
 0x482   : > { %v18166_v40 = vpop.f32.mrf.mxu0  ;;  %v18192_v36 = vpop.f32.mrf.mxu1 }
 0x483   : > { %19265 = vst [vmem:[#allocation45_spill] sm:$0xff] %v18192_v36 }
 0x484   : > { %v18170_v33 = vpop.f32.mrf.mxu0  ;;  %v18198_v41 = vpop.f32.mrf.mxu1 }
 0x485   : > { %19268 = vst [vmem:[#allocation58_spill] sm:$0xff] %v18198_v41 }
 0x486   : > { %v18172_v44 = vpop.f32.mrf.mxu0 }
 0x488   : > { %v18176_v38 = vpop.f32.mrf.mxu0 }
 0x48a   : > { %v18178_v20 = vpop.f32.mrf.mxu0 }
 0x48c   : > { %v18182_v45 = vpop.f32.mrf.mxu0 }
 0x48d   : > { %19260 = vst [vmem:[#allocation48_spill] sm:$0xff] %v18182_v45  ;;  %v18204_v45 = vpop.f32.mrf.mxu1 }
 0x48e   : > { %v18184_v10 = vpop.f32.mrf.mxu0  ;;  %19271 = vst [vmem:[#allocation69_spill] sm:$0xff] %v18204_v45 }
 0x48f   : > { %19261 = vst [vmem:[#allocation49_spill] sm:$0xff] %v18184_v10 }
 0x490   : > { %v18188_v12 = vpop.f32.mrf.mxu0 }
 0x491   : > { %19263 = vst [vmem:[#allocation47_spill] sm:$0xff] %v18188_v12  ;;  %v18210_v12 = vpop.f32.mrf.mxu1 }
 0x492   : > { %v18190_v28 = vpop.f32.mrf.mxu0  ;;  %19274 = vst [vmem:[#allocation56_spill] sm:$0xff] %v18210_v12 }
 0x493   : > { %19264 = vst [vmem:[#allocation54_spill] sm:$0xff] %v18190_v28 }
 0x494   : > { %v18194_v6 = vpop.f32.mrf.mxu0 }
 0x495   : > { %19266 = vst [vmem:[#allocation65_spill] sm:$0xff] %v18194_v6  ;;  %v18216_v6 = vpop.f32.mrf.mxu1 }
 0x496   : > { %v18196_v37 = vpop.f32.mrf.mxu0  ;;  %19277 = vst [vmem:[#allocation60_spill] sm:$0xff] %v18216_v6  ;;  %v19296_v6 = vld [vmem:[#allocation27_spill] sm:$0xff] }
 0x497   : > { %19267 = vst [vmem:[#allocation18_spill] sm:$0xff] %v18196_v37 }
 0x498   : > { %v18200_v47 = vpop.f32.mrf.mxu0 }
 0x499   : > { %19269 = vst [vmem:[#allocation59_spill] sm:$0xff] %v18200_v47  ;;  %v18222_v47 = vpop.f32.mrf.mxu1 }
 0x49a   : > { %v18202_v52 = vpop.f32.mrf.mxu0  ;;  %19280 = vst [vmem:[#allocation63_spill] sm:$0xff] %v18222_v47 }
 0x49b   : > { %19270 = vst [vmem:[#allocation53_spill] sm:$0xff] %v18202_v52 }
 0x49c   : > { %v18206_v10 = vpop.f32.mrf.mxu0 }
 0x49d   : > { %19272 = vst [vmem:[#allocation42_spill] sm:$0xff] %v18206_v10  ;;  %v18228_v10 = vpop.f32.mrf.mxu1 }
 0x49e   : > { %v18208_v7 = vpop.f32.mrf.mxu0  ;;  %19283 = vst [vmem:[#allocation67_spill] sm:$0xff] %v18228_v10  ;;  %v19291_v10 = vld [vmem:[#allocation25_spill] sm:$0xff] }
 0x49f   : > { %19273 = vst [vmem:[#allocation46_spill] sm:$0xff] %v18208_v7 }
 0x4a0   : > { %v18212_v28 = vpop.f32.mrf.mxu0 }
 0x4a1   : > { %19275 = vst [vmem:[#allocation50_spill] sm:$0xff] %v18212_v28  ;;  %v18234_v28 = vpop.f32.mrf.mxu1 }
 0x4a2   : > { %v18214_v36 = vpop.f32.mrf.mxu0  ;;  %19286 = vst [vmem:[#allocation71_spill] sm:$0xff] %v18234_v28  ;;  %v19294_v28 = vld [vmem:[#allocation23_spill] sm:$0xff] }
 0x4a3   : > { %19276 = vst [vmem:[#allocation51_spill] sm:$0xff] %v18214_v36 }
 0x4a4   : > { %v18218_v37 = vpop.f32.mrf.mxu0 }
 0x4a5   : > { %19278 = vst [vmem:[#allocation62_spill] sm:$0xff] %v18218_v37  ;;  %v18239_v37 = vld [vmem:[%s18863_s8] ss:$0 sm:$0xff] }
 0x4a6   : > { %v18220_v41 = vpop.f32.mrf.mxu0  ;;  %v18257_v47 = vadd.f32 %v18239_v37, %v19294_v28  ;;  %v18261_v53 = vadd.f32 %v18239_v37, %v19296_v6  ;;  %v19305_v28 = vld [vmem:[#allocation17_spill] sm:$0xff]  ;;  %v19307_v6 = vld [vmem:[#allocation28_spill] sm:$0xff] }
 0x4a7   : > { %19279 = vst [vmem:[#allocation61_spill] sm:$0xff] %v18220_v41 }
 0x4a8   : > { %v18224_v52 = vpop.f32.mrf.mxu0  ;;  %19297 = vst [vmem:[#allocation25_spill] sm:$0xff] %v18261_v53  ;;  %v18283_v53 = vadd.f32 %v19307_v6, %v18239_v37 }
 0x4a9   : > { %19281 = vst [vmem:[#allocation57_spill] sm:$0xff] %v18224_v52  ;;  %v19289_v52 = vld [vmem:[#allocation22_spill] sm:$0xff] }
 0x4aa   : > { %v18226_v45 = vpop.f32.mrf.mxu0  ;;  %19295 = vst [vmem:[#allocation22_spill] sm:$0xff] %v18257_v47  ;;  %v18279_v47 = vadd.f32 %v18239_v37, %v19305_v28  ;;  %19308 = vst [vmem:[#allocation17_spill] sm:$0xff] %v18283_v53  ;;  %v19314_v28 = vld [vmem:[#allocation19_spill] sm:$0xff]  ;;  %v19317_v53 = vld [vmem:[#allocation10_spill] sm:$0xff] }
 0x4ab   : > { %19282 = vst [vmem:[#allocation52_spill] sm:$0xff] %v18226_v45  ;;  %v18247_v45 = vadd.f32 %v19289_v52, %v18239_v37  ;;  %v19300_v52 = vld [vmem:[#allocation29_spill] sm:$0xff] }
 0x4ac   : > { %v18230_v7 = vpop.f32.mrf.mxu0 }
 0x4ad   : > { %19284 = vst [vmem:[#allocation68_spill] sm:$0xff] %v18230_v7  ;;  %19290 = vst [vmem:[#allocation74_spill] sm:$0xff] %v18247_v45  ;;  %v18251_v7 = vadd.f32 %v19291_v10, %v18239_v37  ;;  %v18269_v45 = vadd.f32 %v19300_v52, %v18239_v37  ;;  %v19309_v52 = vld [vmem:[#allocation31_spill] sm:$0xff] }
 0x4ae   : > { %v18232_v12 = vpop.f32.mrf.mxu0 }
 0x4af   : > { %19285 = vst [vmem:[#allocation70_spill] sm:$0xff] %v18232_v12  ;;  %19292 = vst [vmem:[#allocation78_spill] sm:$0xff] %v18251_v7  ;;  %v18253_v12 = vpop.f32.mrf.mxu1  ;;  %v19303_v7 = vld [vmem:[#allocation26_spill] sm:$0xff] }
 0x4b0   : > { %v18241_v41 = vpop.f32.mrf.mxu0  ;;  %19293 = vst [vmem:[#allocation75_spill] sm:$0xff] %v18253_v12  ;;  %19301 = vst [vmem:[#allocation27_spill] sm:$0xff] %v18269_v45  ;;  %v18275_v12 = vadd.f32 %v18239_v37, %v19303_v7  ;;  %v18289_v45 = vadd.f32 %v19309_v52, %v18239_v37  ;;  %v19312_v7 = vld [vmem:[#allocation30_spill] sm:$0xff] }
 0x4b1   : > { %19287 = vst [vmem:[#allocation72_spill] sm:$0xff] %v18241_v41  ;;  %19306 = vst [vmem:[#allocation26_spill] sm:$0xff] %v18279_v47  ;;  %v18301_v47 = vadd.f32 %v18239_v37, %v19314_v28 }
 0x4b2   : > { %v18243_v36 = vpop.f32.mrf.mxu0  ;;  %19304 = vst [vmem:[#allocation29_spill] sm:$0xff] %v18275_v12  ;;  %19310 = vst [vmem:[#allocation28_spill] sm:$0xff] %v18289_v45  ;;  %v18297_v12 = vadd.f32 %v19312_v7, %v18239_v37  ;;  %v9396_v45 = vadd.f32 %v17957_v1, %v18024_v42  ;;  %v18315_v7 = vpop.f32.mrf.mxu1  ;;  %v19329_v1 = vld [vmem:[#allocation35_spill] sm:$0xff] }
 0x4b3   : > { %19288 = vst [vmem:[#allocation73_spill] sm:$0xff] %v18243_v36  ;;  %v19298_v36 = vld [vmem:[#allocation24_spill] sm:$0xff]  ;;  %v18337_v42 = vadd.f32 %v19329_v1, %v18239_v37 }
 0x4b4   : > { %v18265_v41 = vadd.f32 %v19298_v36, %v18239_v37  ;;  %v18271_v10 = vpop.f32.mrf.mxu0  ;;  %v9398_v36 = vadd.f32 %v17948_v60, %v18017_v59  ;;  %19313 = vst [vmem:[#allocation31_spill] sm:$0xff] %v18297_v12  ;;  %v18307_v60 = vadd.f32 %v18239_v37, %v19317_v53  ;;  %v19319_v59 = vld [vmem:[#allocation33_spill] sm:$0xff]  ;;  %v19322_v12 = vld [vmem:[#allocation12_spill] sm:$0xff]  ;;  %v19325_v53 = vld [vmem:[#allocation11_spill] sm:$0xff] }
 0x4b5   : > { %19302 = vst [vmem:[#allocation24_spill] sm:$0xff] %v18271_v10  ;;  %v19311_v10 = vld [vmem:[#allocation15_spill] sm:$0xff]  ;;  %v18311_v52 = vadd.f32 %v19319_v59, %v18239_v37  ;;  %19321 = vst [vmem:[#allocation33_spill] sm:$0xff] %v18315_v7  ;;  %v18319_v28 = vadd.f32 %v18239_v37, %v19322_v12  ;;  %v19326_v59 = vld [vmem:[#allocation34_spill] sm:$0xff] }
 0x4b6   : > { %19299 = vst [vmem:[#allocation23_spill] sm:$0xff] %v18265_v41  ;;  %v18293_v41 = vadd.f32 %v18239_v37, %v19311_v10  ;;  %19315 = vst [vmem:[#allocation15_spill] sm:$0xff] %v18301_v47  ;;  %v18303_v6 = vpop.f32.mrf.mxu0  ;;  %v9756_v10 = vadd.f32 %v13131_v3, %v9398_v36  ;;  %v18331_v3 = vadd.f32 %v19326_v59, %v18239_v37  ;;  %v19331_v12 = vld [vmem:[#allocation13_spill] sm:$0xff]  ;;  %v19334_v59 = vld [vmem:[#allocation36_spill] sm:$0xff] }
 0x4b7   : > { %19316 = vst [vmem:[#allocation30_spill] sm:$0xff] %v18303_v6  ;;  %19318 = vst [vmem:[#allocation19_spill] sm:$0xff] %v18307_v60  ;;  %v19324_v6 = vld [vmem:[#allocation32_spill] sm:$0xff]  ;;  %v18327_v60 = vadd.f32 %v18239_v37, %v19325_v53  ;;  %v9399_v53 = vadd.f32 %v17967_v26, %v18029_v34 }
 0x4b8   : > { %19320 = vst [vmem:[#allocation10_spill] sm:$0xff] %v18311_v52  ;;  %19323 = vst [vmem:[#allocation12_spill] sm:$0xff] %v18319_v28  ;;  %v18323_v47 = vadd.f32 %v19324_v6, %v18239_v37  ;;  %v18333_v36 = vpop.f32.mrf.mxu0  ;;  %v18341_v28 = vadd.f32 %v18239_v37, %v19331_v12  ;;  %v9754_v6 = vadd.f32 %v18160_v39, %v9396_v45  ;;  %v19332_v52 = vld [vmem:[#allocation14_spill] sm:$0xff]  ;;  %v19336_v12 = vld [vmem:[#allocation7_spill] sm:$0xff] }
 0x4b9   : > { %19327 = vst [vmem:[#allocation32_spill] sm:$0xff] %v18331_v3  ;;  %19328 = vst [vmem:[#allocation11_spill] sm:$0xff] %v18333_v36  ;;  %v18348_v7 = vadd.f32 %v18239_v37, %v19332_v52  ;;  %v18352_v36 = vadd.f32 %v19334_v59, %v18239_v37  ;;  %v19335_v3 = vld [vmem:[#allocation38_spill] sm:$0xff]  ;;  %v19338_v45 = vld [vmem:[#allocation39_spill] sm:$0xff]  ;;  %v9757_v34 = vadd.f32 %v18164_v35, %v9399_v53  ;;  %v18371_v59 = vpop.f32.mrf.mxu1 }
 0x4ba   : > { %19330 = vst [vmem:[#allocation34_spill] sm:$0xff] %v18337_v42  ;;  %v18356_v1 = vadd.f32 %v18239_v37, %v19335_v3  ;;  %v18360_v42 = vadd.f32 %v19336_v12, %v18239_v37  ;;  %v18362_v39 = vpop.f32.mrf.mxu0  ;;  %v18366_v26 = vadd.f32 %v18239_v37, %v19338_v45  ;;  %v9397_v52 = vadd.f32 %v17978_v25, %v18034_v9  ;;  %v18385_v25 = vld [vmem:[%s18860_s5] ss:$0 sm:$0xff] }
 0x4bb   : > { %19333 = vst [vmem:[#allocation35_spill] sm:$0xff] %v18348_v7  ;;  %19337 = vst [vmem:[#allocation13_spill] sm:$0xff] %v18362_v39  ;;  %v10482_v3 = vadd.f32 %v18155_v31, %v9756_v10  ;;  %v9402_v7 = vadd.f32 %v17984_v51, %v18039_v57  ;;  %v9400_v12 = vadd.f32 %v17990_v46, %v18044_v8 }
 0x4bc   : > { %v9403_v39 = vadd.f32 %v17997_v48, %v18049_v0  ;;  %v9401_v45 = vadd.f32 %v18003_v11, %v18054_v50  ;;  %v13199_v35 = vpop.f32.mrf.mxu0  ;;  %v9755_v9 = vadd.f32 %v18166_v40, %v9397_v52  ;;  %v9406_v51 = vadd.f32 %v18009_v5, %v18059_v19  ;;  %v18406_v5 = vld [vmem:[%s18861_s6] ss:$0 sm:$0xff]  ;;  %v18408_v19 = vpop.f32.mrf.mxu1 }
 0x4bd   : > { %v10952_v57 = vadd.f32 %v13199_v35, %v10482_v3  ;;  %v10480_v46 = vadd.f32 %v18162_v43, %v9754_v6  ;;  %v9404_v48 = vadd.f32 %v18014_v63, %v18064_v49  ;;  %v9407_v11 = vadd.f32 %v18021_v58, %v18069_v4  ;;  %v19341_v6 = vld [vmem:[#allocation74_spill] sm:$0xff]  ;;  %v19342_v3 = vld [vmem:[#allocation48_spill] sm:$0xff]  ;;  %v19343_v35 = vld [vmem:[#allocation81_spill] sm:$0xff] }
 0x4be   : > { %v18397_v8 = vadd.f32 %v18026_v55, %v18074_v32  ;;  %v18401_v0 = vadd.f32 %v18031_v14, %v18079_v13  ;;  %v10823_v50 = vpop.f32.mrf.mxu0  ;;  %v18412_v63 = vadd.f32 %v18036_v16, %v18084_v61  ;;  %v10483_v49 = vadd.f32 %v18168_v17, %v9757_v34 }
 0x4bf   : > { %v10991_v58 = vmul.f32 %v18385_v25, %v10952_v57  ;;  %v10950_v55 = vadd.f32 %v10823_v50, %v10480_v46  ;;  %v9760_v14 = vadd.f32 %v18170_v33, %v9402_v7  ;;  %v9758_v4 = vadd.f32 %v18172_v44, %v9400_v12  ;;  %v19346_v50 = vld [vmem:[#allocation22_spill] sm:$0xff] }
 0x4c0   : > { %v18420_v32 = vadd.f32 %v18041_v54, %v18087_v24  ;;  %v18424_v13 = vadd.f32 %v18046_v62, %v18092_v21  ;;  %v13200_v16 = vpop.f32.mrf.mxu0  ;;  %v10481_v43 = vadd.f32 %v18174_v56, %v9755_v9  ;;  %v9761_v17 = vadd.f32 %v18176_v38, %v9403_v39  ;;  %v18442_v21 = vpop.f32.mrf.mxu1  ;;  %v19345_v9 = vld [vmem:[#allocation45_spill] sm:$0xff] }
 0x4c1   : > { %v11030_v61 = vadd.f32 %v18406_v5, %v10991_v58  ;;  %v10989_v31 = vmul.f32 %v18385_v25, %v10950_v55  ;;  %v10953_v40 = vadd.f32 %v13200_v16, %v10483_v49  ;;  %v18432_v33 = vadd.f32 %v18051_v15, %v18095_v22 }
 0x4c2   : > { %v18436_v54 = vadd.f32 %v18056_v27, %v18100_v29  ;;  %v18440_v62 = vadd.f32 %v18061_v18, %v18103_v2  ;;  %v10826_v24 = vpop.f32.mrf.mxu0  ;;  %v9759_v15 = vadd.f32 %v18178_v20, %v9401_v45  ;;  %v18456_v27 = vadd.f32 %v18066_v23, %v18108_v30  ;;  %v19339_v18 = vld [vmem:[#allocation66_spill] sm:$0xff]  ;;  %v19340_v2 = vld [vmem:[#allocation41_spill] sm:$0xff]  ;;  %v18469_v46 = vpop.f32.mrf.mxu1 }
 0x4c3   : > { %v11062_v44 = vmax.f32 %v11030_v61, 0.0  ;;  %v11028_v56 = vadd.f32 %v18406_v5, %v10989_v31  ;;  %v10992_v38 = vmul.f32 %v18385_v25, %v10953_v40  ;;  %v10951_v10 = vadd.f32 %v10826_v24, %v10481_v43  ;;  %v19344_v20 = vld [vmem:[#allocation82_spill] sm:$0xff]  ;;  %v19349_v61 = vld [vmem:[#allocation85_spill] sm:$0xff] }
 0x4c4   : > { %v10486_v22 = vadd.f32 %v19339_v18, %v9760_v14  ;;  %v13203_v29 = vpop.f32.mrf.mxu0  ;;  %v10484_v7 = vadd.f32 %v19340_v2, %v9758_v4  ;;  %v9764_v12 = vadd.f32 %v19342_v3, %v9406_v51  ;;  %v18466_v45 = vadd.f32 %v19344_v20, %v19343_v35  ;;  %v19347_v51 = vld [vmem:[#allocation84_spill] sm:$0xff]  ;;  %v19350_v31 = vld [vmem:[#allocation77_spill] sm:$0xff]  ;;  %v19351_v24 = vld [vmem:[#allocation58_spill] sm:$0xff]  ;;  %v18493_v3 = vpop.f32.mrf.mxu1 }
 0x4c5   : > { %v11094_v53 = vadd.f32 %v11062_v44, %v19341_v6  ;;  %v11060_v39 = vmax.f32 %v11028_v56, 0.0  ;;  %v11031_v34 = vadd.f32 %v18406_v5, %v10992_v38  ;;  %v10990_v52 = vmul.f32 %v18385_v25, %v10951_v10  ;;  %v19348_v4 = vld [vmem:[#allocation76_spill] sm:$0xff]  ;;  %v19352_v56 = vld [vmem:[#allocation23_spill] sm:$0xff] }
 0x4c6   : > { %v10956_v23 = vadd.f32 %v13203_v29, %v10486_v22  ;;  %v10839_v30 = vpop.f32.mrf.mxu0  ;;  %v10487_v57 = vadd.f32 %v19345_v9, %v9761_v17  ;;  %v18477_v16 = vadd.f32 %v19348_v4, %v19347_v51  ;;  %v18481_v40 = vadd.f32 %v19350_v31, %v19349_v61  ;;  %v19353_v29 = vld [vmem:[#allocation49_spill] sm:$0xff] }
 0x4c7   : > { %11126 = vst.msk [vmem:[%s18451_s29 + $0x10] sm:$0xff] %vm6914_vm5, %v11094_v53  ;;  %v11092_v58 = vadd.f32 %v11060_v39, %v19346_v50  ;;  %v11063_v55 = vmax.f32 %v11031_v34, 0.0  ;;  %v11029_v49 = vadd.f32 %v18406_v5, %v10990_v52  ;;  %v10954_v14 = vadd.f32 %v10839_v30, %v10484_v7  ;;  %v19354_v7 = vld [vmem:[#allocation47_spill] sm:$0xff]  ;;  %v19355_v34 = vld [vmem:[#allocation69_spill] sm:$0xff] }
 0x4c8   : > { %v10995_v43 = vmul.f32 %v18385_v25, %v10956_v23  ;;  %v13204_v17 = vpop.f32.mrf.mxu0  ;;  %v10485_v44 = vadd.f32 %v19351_v24, %v9759_v15  ;;  %v9762_v2 = vadd.f32 %v19353_v29, %v9404_v48  ;;  %v9765_v6 = vadd.f32 %v19354_v7, %v9407_v11  ;;  %v19356_v15 = vld [vmem:[#allocation29_spill] sm:$0xff]  ;;  %v19357_v48 = vld [vmem:[#allocation54_spill] sm:$0xff]  ;;  %v19358_v11 = vld [vmem:[#allocation88_spill] sm:$0xff]  ;;  %v18521_v29 = vpop.f32.mrf.mxu1 }
 0x4c9   : > { %11124 = vst.msk [vmem:[%s18451_s29] sm:$0xff] %vm6914_vm5, %v11092_v58  ;;  %v11095_v38 = vadd.f32 %v11063_v55, %v19352_v56  ;;  %v11061_v10 = vmax.f32 %v11029_v49, 0.0  ;;  %v10993_v18 = vmul.f32 %v18385_v25, %v10954_v14  ;;  %v10957_v22 = vadd.f32 %v13204_v17, %v10487_v57  ;;  %v19359_v57 = vld [vmem:[#allocation79_spill] sm:$0xff]  ;;  %v19360_v58 = vld [vmem:[#allocation89_spill] sm:$0xff]  ;;  %v19365_v56 = vld [vmem:[#allocation56_spill] sm:$0xff] }
 0x4ca   : > { %v11034_v53 = vadd.f32 %v18406_v5, %v10995_v43  ;;  %v10842_v39 = vpop.f32.mrf.mxu0  ;;  %v10490_v52 = vadd.f32 %v19355_v34, %v9764_v12  ;;  %v9763_v9 = vadd.f32 %v19357_v48, %v18397_v8  ;;  %v18504_v50 = vadd.f32 %v19359_v57, %v19358_v11  ;;  %v19361_v12 = vld [vmem:[#allocation80_spill] sm:$0xff]  ;;  %v19362_v8 = vld [vmem:[#allocation94_spill] sm:$0xff]  ;;  %v19363_v43 = vld [vmem:[#allocation87_spill] sm:$0xff] }
 0x4cb   : > { %11127 = vst.msk [vmem:[%s18451_s29 + $0x18] sm:$0xff] %vm6914_vm5, %v11095_v38  ;;  %v11093_v35 = vadd.f32 %v11061_v10, %v19356_v15  ;;  %v11032_v20 = vadd.f32 %v18406_v5, %v10993_v18  ;;  %v10996_v23 = vmul.f32 %v18385_v25, %v10957_v22  ;;  %v10955_v30 = vadd.f32 %v10842_v39, %v10485_v44  ;;  %v19364_v24 = vld [vmem:[#allocation17_spill] sm:$0xff]  ;;  %v19366_v18 = vld [vmem:[#allocation60_spill] sm:$0xff] }
 0x4cc   : > { %v18508_v55 = vadd.f32 %v19361_v12, %v19360_v58  ;;  %v11066_v49 = vmax.f32 %v11034_v53, 0.0  ;;  %v13207_v14 = vpop.f32.mrf.mxu0  ;;  %v18516_v17 = vadd.f32 %v19363_v43, %v19362_v8  ;;  %v10488_v38 = vadd.f32 %v19365_v56, %v9762_v2  ;;  %v19372_v12 = vld [vmem:[#allocation91_spill] sm:$0xff]  ;;  %v18548_v8 = vpop.f32.mrf.mxu1 }
 0x4cd   : > { %11125 = vst.msk [vmem:[%s18451_s29 + $0x8] sm:$0xff] %vm6914_vm5, %v11093_v35  ;;  %v11064_v51 = vmax.f32 %v11032_v20, 0.0  ;;  %v11035_v4 = vadd.f32 %v18406_v5, %v10996_v23  ;;  %v10994_v61 = vmul.f32 %v18385_v25, %v10955_v30  ;;  %v10960_v31 = vadd.f32 %v13207_v14, %v10490_v52  ;;  %v19367_v52 = vld [vmem:[#allocation65_spill] sm:$0xff]  ;;  %v19368_v35 = vld [vmem:[#allocation18_spill] sm:$0xff]  ;;  %v19369_v23 = vld [vmem:[#allocation63_spill] sm:$0xff] }
 0x4ce   : > { %v11098_v44 = vadd.f32 %v11066_v49, %v19364_v24  ;;  %v10855_v10 = vpop.f32.mrf.mxu0  ;;  %v10491_v22 = vadd.f32 %v19366_v18, %v9765_v6  ;;  %v9768_v15 = vadd.f32 %v19367_v52, %v18401_v0  ;;  %v9766_v20 = vadd.f32 %v19368_v35, %v18412_v63  ;;  %v19371_v63 = vld [vmem:[#allocation59_spill] sm:$0xff] }
 0x4cf   : > { %v11096_v7 = vadd.f32 %v11064_v51, %v18293_v41  ;;  %v11067_v53 = vmax.f32 %v11035_v4, 0.0  ;;  %v11033_v39 = vadd.f32 %v18406_v5, %v10994_v61  ;;  %v10999_v34 = vmul.f32 %v18385_v25, %v10960_v31  ;;  %v19370_v41 = vld [vmem:[#allocation31_spill] sm:$0xff]  ;;  %v19374_v51 = vld [vmem:[#allocation93_spill] sm:$0xff] }
 0x4d0   : > { %11130 = vst.msk [vmem:[%s18451_s29 + $0x30] sm:$0xff] %vm6914_vm5, %v11098_v44  ;;  %v10958_v2 = vadd.f32 %v10855_v10, %v10488_v38  ;;  %v13208_v6 = vpop.f32.mrf.mxu0  ;;  %v10489_v30 = vadd.f32 %v19369_v23, %v9763_v9  ;;  %v9769_v58 = vadd.f32 %v19371_v63, %v18420_v32  ;;  %v19373_v49 = vld [vmem:[#allocation83_spill] sm:$0xff]  ;;  %v19375_v9 = vld [vmem:[#allocation86_spill] sm:$0xff]  ;;  %v19377_v38 = vld [vmem:[#allocation53_spill] sm:$0xff] }
 0x4d1   : > { %11128 = vst.msk [vmem:[%s18451_s29 + $0x20] sm:$0xff] %vm6914_vm5, %v11096_v7  ;;  %v11099_v48 = vadd.f32 %v11067_v53, %v19370_v41  ;;  %v11065_v11 = vmax.f32 %v11033_v39, 0.0  ;;  %v11038_v57 = vadd.f32 %v18406_v5, %v10999_v34  ;;  %v10961_v0 = vadd.f32 %v13208_v6, %v10491_v22  ;;  %v19376_v43 = vld [vmem:[#allocation15_spill] sm:$0xff] }
 0x4d2   : > { %v18541_v14 = vadd.f32 %v19373_v49, %v19372_v12  ;;  %v18545_v4 = vadd.f32 %v19375_v9, %v19374_v51  ;;  %v10997_v61 = vmul.f32 %v18385_v25, %v10958_v2  ;;  %v10858_v31 = vpop.f32.mrf.mxu0  ;;  %v9767_v10 = vadd.f32 %v19377_v38, %v18424_v13  ;;  %v19378_v53 = vld [vmem:[#allocation67_spill] sm:$0xff]  ;;  %v19382_v51 = vld [vmem:[#allocation46_spill] sm:$0xff] }
 0x4d3   : > { %11131 = vst.msk [vmem:[%s18451_s29 + $0x38] sm:$0xff] %vm6914_vm5, %v11099_v48  ;;  %v11097_v24 = vadd.f32 %v11065_v11, %v19376_v43  ;;  %v11070_v44 = vmax.f32 %v11038_v57, 0.0  ;;  %v11000_v32 = vmul.f32 %v18385_v25, %v10961_v0  ;;  %v10959_v56 = vadd.f32 %v10858_v31, %v10489_v30  ;;  %v19379_v52 = vld [vmem:[#allocation71_spill] sm:$0xff]  ;;  %v19380_v30 = vld [vmem:[#allocation42_spill] sm:$0xff]  ;;  %v19383_v43 = vld [vmem:[#allocation33_spill] sm:$0xff] }
 0x4d4   : > { %v11156_v18 = vld [vmem:[%s18451_s29] ss:$2 sm:$0xff]  ;;  %v12164_v22 = vld [vmem:[%s18451_s29 + $0x1] ss:$2 sm:$0xff]  ;;  %v11036_v7 = vadd.f32 %v18406_v5, %v10997_v61  ;;  %v10494_v39 = vadd.f32 %v19378_v53, %v9768_v15  ;;  %v13211_v34 = vpop.f32.mrf.mxu0  ;;  %v10492_v35 = vadd.f32 %v19379_v52, %v9766_v20  ;;  %v9772_v41 = vadd.f32 %v19380_v30, %v18432_v33  ;;  %v12172_v48 = vld [vmem:[%s18451_s29 + $0x10] ss:$2 sm:$0xff]  ;;  %v18575_v20 = vpop.f32.mrf.mxu1 }
 0x4d5   : > { %v11187_v2 = vmax.f32 %v11156_v18, %v12164_v22  ;;  %11129 = vst.msk [vmem:[%s18451_s29 + $0x28] sm:$0xff] %vm6914_vm5, %v11097_v24  ;;  %v11102_v6 = vadd.f32 %v11070_v44, %v18323_v47  ;;  %v11039_v23 = vadd.f32 %v18406_v5, %v11000_v32  ;;  %v10998_v13 = vmul.f32 %v18385_v25, %v10959_v56  ;;  %v19381_v0 = vld [vmem:[#allocation75_spill] sm:$0xff]  ;;  %v12180_v44 = vld [vmem:[%s18451_s29 + $0x11] ss:$2 sm:$0xff]  ;;  %v19384_v32 = vld [vmem:[#allocation32_spill] sm:$0xff] }
 0x4d6   : > { %v11068_v11 = vmax.f32 %v11036_v7, 0.0  ;;  %v10964_v15 = vadd.f32 %v13211_v34, %v10494_v39  ;;  %v10871_v57 = vpop.f32.mrf.mxu0  ;;  %v10495_v63 = vadd.f32 %v19381_v0, %v9769_v58  ;;  %v9770_v9 = vadd.f32 %v19382_v51, %v18436_v54  ;;  %v19385_v7 = vld [vmem:[#allocation50_spill] sm:$0xff]  ;;  %v19386_v53 = vld [vmem:[#allocation8_spill] sm:$0xff] }
 0x4d7   : > { %v11211_v47 = vmax.f32 %v11187_v2, %v12172_v48  ;;  %11134 = vst.msk [vmem:[%s18451_s29 + $0x50] sm:$0xff] %vm6914_vm5, %v11102_v6  ;;  %v11071_v12 = vmax.f32 %v11039_v23, 0.0  ;;  %v11037_v49 = vadd.f32 %v18406_v5, %v10998_v13  ;;  %v10962_v33 = vadd.f32 %v10871_v57, %v10492_v35  ;;  %v18597_v35 = vpop.f32.mrf.mxu1  ;;  %v19388_v13 = vld [vmem:[#allocation51_spill] sm:$0xff] }
 0x4d8   : > { %v11100_v61 = vadd.f32 %v11068_v11, %v18327_v60  ;;  %v11003_v58 = vmul.f32 %v18385_v25, %v10964_v15  ;;  %v13212_v31 = vpop.f32.mrf.mxu0  ;;  %v10493_v24 = vadd.f32 %v19383_v43, %v9767_v10  ;;  %v9773_v54 = vadd.f32 %v19385_v7, %v18440_v62  ;;  %v19387_v60 = vld [vmem:[#allocation92_spill] sm:$0xff]  ;;  %v19391_v7 = vld [vmem:[#allocation57_spill] sm:$0xff] }
 0x4d9   : > { %v11103_v56 = vadd.f32 %v11071_v12, %v19384_v32  ;;  %v11069_v38 = vmax.f32 %v11037_v49, 0.0  ;;  %v11001_v18 = vmul.f32 %v18385_v25, %v10962_v33  ;;  %v10965_v22 = vadd.f32 %v13212_v31, %v10495_v63 }
 0x4da   : > { %v18592_v39 = vadd.f32 %v19387_v60, %v19386_v53  ;;  %11132 = vst.msk [vmem:[%s18451_s29 + $0x40] sm:$0xff] %vm6914_vm5, %v11100_v61  ;;  %v11042_v10 = vadd.f32 %v18406_v5, %v11003_v58  ;;  %v10874_v34 = vpop.f32.mrf.mxu0  ;;  %v11235_v52 = vmax.f32 %v11211_v47, %v12180_v44  ;;  %v9771_v30 = vadd.f32 %v19388_v13, %v18456_v27  ;;  %v12173_v49 = vld [vmem:[%s18451_s29 + $0x30] ss:$2 sm:$0xff]  ;;  %v18624_v61 = vpop.f32.mrf.mxu1 }
 0x4db   : > { %11135 = vst.msk [vmem:[%s18451_s29 + $0x58] sm:$0xff] %vm6914_vm5, %v11103_v56  ;;  %v11101_v2 = vadd.f32 %v11069_v38, %v18341_v28  ;;  %v11040_v62 = vadd.f32 %v18406_v5, %v11001_v18  ;;  %v11004_v6 = vmul.f32 %v18385_v25, %v10965_v22  ;;  %v10963_v23 = vadd.f32 %v10874_v34, %v10493_v24  ;;  %v19390_v44 = vld [vmem:[#allocation61_spill] sm:$0xff]  ;;  %v19393_v60 = vld [vmem:[#allocation90_spill] sm:$0xff] }
 0x4dc   : > { %v12157_v48 = vld [vmem:[%s18451_s29 + $0x20] ss:$2 sm:$0xff]  ;;  %v12165_v11 = vld [vmem:[%s18451_s29 + $0x21] ss:$2 sm:$0xff]  ;;  %v11074_v15 = vmax.f32 %v11042_v10, 0.0  ;;  %v10498_v57 = vadd.f32 %v18371_v59, %v9772_v41  ;;  %v13215_v0 = vpop.f32.mrf.mxu0  ;;  %v10496_v63 = vadd.f32 %v18408_v19, %v9770_v9  ;;  %11243 = vst.msk [vmem:[%s18611_s30] sm:$0xff] %vm6914_vm5, %v11235_v52  ;;  %v10499_v9 = vadd.f32 %v18442_v21, %v9773_v54 }
 0x4dd   : > { %v11188_v28 = vmax.f32 %v12157_v48, %v12165_v11  ;;  %11133 = vst.msk [vmem:[%s18451_s29 + $0x48] sm:$0xff] %vm6914_vm5, %v11101_v2  ;;  %v11072_v47 = vmax.f32 %v11040_v62, 0.0  ;;  %v11043_v27 = vadd.f32 %v18406_v5, %v11004_v6  ;;  %v11002_v12 = vmul.f32 %v18385_v25, %v10963_v23  ;;  %v19389_v59 = vld [vmem:[#allocation62_spill] sm:$0xff]  ;;  %v19392_v53 = vld [vmem:[#allocation9_spill] sm:$0xff]  ;;  %v18646_v2 = vpop.f32.mrf.mxu1  ;;  %v19394_v23 = vld [vmem:[#allocation52_spill] sm:$0xff] }
 0x4de   : > { %v9776_v41 = vadd.f32 %v19389_v59, %v18466_v45  ;;  %v11106_v19 = vadd.f32 %v11074_v15, %v18352_v36  ;;  %v10968_v33 = vadd.f32 %v13215_v0, %v10498_v57  ;;  %v10887_v51 = vpop.f32.mrf.mxu0  ;;  %v9774_v32 = vadd.f32 %v19390_v44, %v18477_v16  ;;  %v12181_v45 = vld [vmem:[%s18451_s29 + $0x31] ss:$2 sm:$0xff] }
 0x4df   : > { %v11212_v58 = vmax.f32 %v11188_v28, %v12173_v49  ;;  %v11104_v31 = vadd.f32 %v11072_v47, %v18356_v1  ;;  %v11075_v43 = vmax.f32 %v11043_v27, 0.0  ;;  %v11041_v24 = vadd.f32 %v18406_v5, %v11002_v12  ;;  %v19395_v47 = vld [vmem:[#allocation68_spill] sm:$0xff]  ;;  %v19396_v12 = vld [vmem:[#allocation78_spill] sm:$0xff] }
 0x4e0   : > { %11138 = vst.msk [vmem:[%s18451_s29 + $0x70] sm:$0xff] %vm6914_vm5, %v11106_v19  ;;  %v11007_v36 = vmul.f32 %v18385_v25, %v10968_v33  ;;  %v10966_v56 = vadd.f32 %v10887_v51, %v10496_v63  ;;  %v13216_v38 = vpop.f32.mrf.mxu0  ;;  %v10497_v21 = vadd.f32 %v18469_v46, %v9771_v30  ;;  %v9777_v54 = vadd.f32 %v19391_v7, %v18481_v40  ;;  %v10452_v19 = vpop.f32.mrf.mxu1  ;;  %v19402_v7 = vld [vmem:[#allocation64_spill] sm:$0xff] }
 0x4e1   : > { %11136 = vst.msk [vmem:[%s18451_s29 + $0x60] sm:$0xff] %vm6914_vm5, %v11104_v31  ;;  %v11107_v1 = vadd.f32 %v11075_v43, %v18360_v42  ;;  %v11073_v18 = vmax.f32 %v11041_v24, 0.0  ;;  %v10969_v22 = vadd.f32 %v13216_v38, %v10499_v9  ;;  %v11236_v16 = vmax.f32 %v11212_v58, %v12181_v45  ;;  %v19397_v31 = vld [vmem:[#allocation70_spill] sm:$0xff] }
 0x4e2   : > { %v18642_v10 = vadd.f32 %v19393_v60, %v19392_v53  ;;  %v11046_v34 = vadd.f32 %v18406_v5, %v11007_v36  ;;  %v11005_v46 = vmul.f32 %v18385_v25, %v10966_v56  ;;  %v10890_v52 = vpop.f32.mrf.mxu0  ;;  %v10502_v40 = vadd.f32 %v18493_v3, %v9776_v41  ;;  %v12174_v27 = vld [vmem:[%s18451_s29 + $0x50] ss:$2 sm:$0xff]  ;;  %v18678_v45 = vpop.f32.mrf.mxu1  ;;  %v12182_v36 = vld [vmem:[%s18451_s29 + $0x51] ss:$2 sm:$0xff]  ;;  %v19399_v56 = vld [vmem:[#allocation27_spill] sm:$0xff] }
 0x4e3   : > { %11139 = vst.msk [vmem:[%s18451_s29 + $0x78] sm:$0xff] %vm6914_vm5, %v11107_v1  ;;  %v11105_v42 = vadd.f32 %v11073_v18, %v18366_v26  ;;  %v11008_v62 = vmul.f32 %v18385_v25, %v10969_v22  ;;  %v10967_v6 = vadd.f32 %v10890_v52, %v10497_v21  ;;  %11244 = vst.msk [vmem:[%s18611_s30 + $0x8] sm:$0xff] %vm6914_vm5, %v11236_v16  ;;  %v19400_v18 = vld [vmem:[#allocation72_spill] sm:$0xff]  ;;  %v19401_v16 = vld [vmem:[#allocation21_spill] sm:$0xff] }
 0x4e4   : > { %v9775_v13 = vadd.f32 %v19394_v23, %v18504_v50  ;;  %v12158_v30 = vld [vmem:[%s18451_s29 + $0x40] ss:$2 sm:$0xff]  ;;  %v12166_v48 = vld [vmem:[%s18451_s29 + $0x41] ss:$2 sm:$0xff]  ;;  %v11078_v11 = vmax.f32 %v11046_v34, 0.0  ;;  %v11044_v15 = vadd.f32 %v18406_v5, %v11005_v46  ;;  %v13219_v57 = vpop.f32.mrf.mxu0  ;;  %v10500_v0 = vadd.f32 %v18521_v29, %v9774_v32  ;;  %v19403_v34 = vld [vmem:[#allocation26_spill] sm:$0xff] }
 0x4e5   : > { %v11189_v26 = vmax.f32 %v12158_v30, %v12166_v48  ;;  %11137 = vst.msk [vmem:[%s18451_s29 + $0x68] sm:$0xff] %vm6914_vm5, %v11105_v42  ;;  %v11047_v63 = vadd.f32 %v18406_v5, %v11008_v62  ;;  %v11006_v3 = vmul.f32 %v18385_v25, %v10967_v6  ;;  %v10972_v28 = vadd.f32 %v13219_v57, %v10502_v40 }
 0x4e6   : > { %v9780_v50 = vadd.f32 %v19395_v47, %v18508_v55  ;;  %v11110_v59 = vadd.f32 %v11078_v11, %v19396_v12  ;;  %v11076_v41 = vmax.f32 %v11044_v15, 0.0  ;;  %v10903_v49 = vpop.f32.mrf.mxu0  ;;  %v10503_v29 = vadd.f32 %v18548_v8, %v9777_v54  ;;  %v19398_v55 = vld [vmem:[#allocation25_spill] sm:$0xff]  ;;  %v10465_v15 = vpop.f32.mrf.mxu1 }
 0x4e7   : > { %v11213_v33 = vmax.f32 %v11189_v26, %v12174_v27  ;;  %v11079_v51 = vmax.f32 %v11047_v63, 0.0  ;;  %v11045_v9 = vadd.f32 %v18406_v5, %v11006_v3  ;;  %v11011_v58 = vmul.f32 %v18385_v25, %v10972_v28  ;;  %v19406_v3 = vld [vmem:[#allocation55_spill] sm:$0xff]  ;;  %v19407_v28 = vld [vmem:[#allocation6_spill] sm:$0xff] }
 0x4e8   : > { %v9778_v43 = vadd.f32 %v19397_v31, %v18516_v17  ;;  %11142 = vst.msk [vmem:[%s18451_s29 + $0x90] sm:$0xff] %vm6914_vm5, %v11110_v59  ;;  %v11108_v24 = vadd.f32 %v11076_v41, %v19398_v55  ;;  %v10970_v44 = vadd.f32 %v10903_v49, %v10500_v0  ;;  %v13220_v32 = vpop.f32.mrf.mxu0  ;;  %v10501_v8 = vadd.f32 %v18575_v20, %v9775_v13  ;;  %v19405_v0 = vld [vmem:[#allocation28_spill] sm:$0xff] }
 0x4e9   : > { %v11111_v38 = vadd.f32 %v11079_v51, %v19399_v56  ;;  %v11077_v21 = vmax.f32 %v11045_v9, 0.0  ;;  %v11050_v1 = vadd.f32 %v18406_v5, %v11011_v58  ;;  %v10973_v17 = vadd.f32 %v13220_v32, %v10503_v29  ;;  %v19409_v9 = vld [vmem:[#allocation19_spill] sm:$0xff] }
 0x4ea   : > { %v9781_v22 = vadd.f32 %v19400_v18, %v18541_v14  ;;  %v9427_v54 = vadd.f32 %v19402_v7, %v19401_v16  ;;  %11140 = vst.msk [vmem:[%s18451_s29 + $0x80] sm:$0xff] %vm6914_vm5, %v11108_v24  ;;  %v11009_v20 = vmul.f32 %v18385_v25, %v10970_v44  ;;  %v10906_v53 = vpop.f32.mrf.mxu0  ;;  %v11237_v60 = vmax.f32 %v11213_v33, %v12182_v36  ;;  %v19404_v14 = vld [vmem:[#allocation73_spill] sm:$0xff]  ;;  %v19408_v33 = vld [vmem:[#allocation24_spill] sm:$0xff]  ;;  %v13194_v24 = vpop.f32.mrf.mxu1  ;;  %v19410_v44 = vld [vmem:[#allocation10_spill] sm:$0xff] }
 0x4eb   : > { %11143 = vst.msk [vmem:[%s18451_s29 + $0x98] sm:$0xff] %vm6914_vm5, %v11111_v38  ;;  %v11109_v46 = vadd.f32 %v11077_v21, %v19403_v34  ;;  %v11082_v52 = vmax.f32 %v11050_v1, 0.0  ;;  %v11012_v42 = vmul.f32 %v18385_v25, %v10973_v17  ;;  %v10971_v62 = vadd.f32 %v10906_v53, %v10501_v8  ;;  %v19411_v38 = vld [vmem:[#allocation30_spill] sm:$0xff]  ;;  %v19412_v21 = vld [vmem:[#allocation11_spill] sm:$0xff]  ;;  %v19415_v34 = vld [vmem:[#allocation13_spill] sm:$0xff] }
 0x4ec   : > { %v9779_v6 = vadd.f32 %v19404_v14, %v18545_v4  ;;  %v12159_v40 = vld [vmem:[%s18451_s29 + $0x60] ss:$2 sm:$0xff]  ;;  %v12167_v23 = vld [vmem:[%s18451_s29 + $0x61] ss:$2 sm:$0xff]  ;;  %v11048_v13 = vadd.f32 %v18406_v5, %v11009_v20  ;;  %v10506_v30 = vadd.f32 %v18597_v35, %v9780_v50  ;;  %v13223_v48 = vpop.f32.mrf.mxu0  ;;  %v10504_v11 = vadd.f32 %v18624_v61, %v9778_v43  ;;  %11245 = vst.msk [vmem:[%s18611_s30 + $0x10] sm:$0xff] %vm6914_vm5, %v11237_v60 }
 0x4ed   : > { %v11190_v57 = vmax.f32 %v12159_v40, %v12167_v23  ;;  %11141 = vst.msk [vmem:[%s18451_s29 + $0x88] sm:$0xff] %vm6914_vm5, %v11109_v46  ;;  %v11114_v26 = vadd.f32 %v11082_v52, %v19405_v0  ;;  %v11051_v4 = vadd.f32 %v18406_v5, %v11012_v42  ;;  %v11010_v63 = vmul.f32 %v18385_v25, %v10971_v62  ;;  %v12175_v35 = vld [vmem:[%s18451_s29 + $0x70] ss:$2 sm:$0xff] }
 0x4ee   : > { %v9425_v47 = vadd.f32 %v19407_v28, %v19406_v3  ;;  %v11080_v50 = vmax.f32 %v11048_v13, 0.0  ;;  %v10976_v27 = vadd.f32 %v13223_v48, %v10506_v30  ;;  %v10919_v61 = vpop.f32.mrf.mxu0  ;;  %v10507_v12 = vadd.f32 %v18646_v2, %v9781_v22  ;;  %v12183_v2 = vld [vmem:[%s18451_s29 + $0x71] ss:$2 sm:$0xff]  ;;  %v19413_v22 = vld [vmem:[#allocation12_spill] sm:$0xff]  ;;  %v19417_v3 = vld [vmem:[#allocation35_spill] sm:$0xff] }
 0x4ef   : > { %v11214_v59 = vmax.f32 %v11190_v57, %v12175_v35  ;;  %11146 = vst.msk [vmem:[%s18451_s29 + $0xb0] sm:$0xff] %vm6914_vm5, %v11114_v26  ;;  %v11083_v41 = vmax.f32 %v11051_v4, 0.0  ;;  %v11049_v49 = vadd.f32 %v18406_v5, %v11010_v63  ;;  %v10974_v29 = vadd.f32 %v10919_v61, %v10504_v11  ;;  %v19416_v57 = vld [vmem:[#allocation34_spill] sm:$0xff] }
 0x4f0   : > { %v9784_v51 = vadd.f32 %v19408_v33, %v18592_v39  ;;  %v11112_v58 = vadd.f32 %v11080_v50, %v19409_v9  ;;  %v11015_v31 = vmul.f32 %v18385_v25, %v10976_v27  ;;  %v13224_v43 = vpop.f32.mrf.mxu0  ;;  %v10505_v55 = vadd.f32 %v10452_v19, %v9779_v6  ;;  %v10468_v6 = vpop.f32.mrf.mxu1  ;;  %v19418_v50 = vld [vmem:[#allocation16_spill] sm:$0xff] }
 0x4f1   : > { %v11115_v32 = vadd.f32 %v11083_v41, %v19410_v44  ;;  %v11081_v8 = vmax.f32 %v11049_v49, 0.0  ;;  %v11013_v36 = vmul.f32 %v18385_v25, %v10974_v29  ;;  %v10977_v56 = vadd.f32 %v13224_v43, %v10507_v12 }
 0x4f2   : > { %v9782_v39 = vadd.f32 %v19411_v38, %v18642_v10  ;;  %v9785_v1 = vadd.f32 %v19412_v21, %v9427_v54  ;;  %11144 = vst.msk [vmem:[%s18451_s29 + $0xa0] sm:$0xff] %vm6914_vm5, %v11112_v58  ;;  %v11054_v19 = vadd.f32 %v18406_v5, %v11015_v31  ;;  %v10922_v17 = vpop.f32.mrf.mxu0  ;;  %v11238_v18 = vmax.f32 %v11214_v59, %v12183_v2  ;;  %v19414_v10 = vld [vmem:[#allocation37_spill] sm:$0xff]  ;;  %v19419_v2 = vld [vmem:[#allocation40_spill] sm:$0xff] }
 0x4f3   : > { %11147 = vst.msk [vmem:[%s18451_s29 + $0xb8] sm:$0xff] %vm6914_vm5, %v11115_v32  ;;  %v11113_v16 = vadd.f32 %v11081_v8, %v19413_v22  ;;  %v11052_v7 = vadd.f32 %v18406_v5, %v11013_v36  ;;  %v11016_v20 = vmul.f32 %v18385_v25, %v10977_v56  ;;  %v10975_v53 = vadd.f32 %v10922_v17, %v10505_v55  ;;  %v12176_v11 = vld [vmem:[%s18451_s29 + $0x90] ss:$2 sm:$0xff]  ;;  %v12184_v12 = vld [vmem:[%s18451_s29 + $0x91] ss:$2 sm:$0xff] }
 0x4f4   : > { %v1748_v54 = vadd.f32 %v19414_v10, %v18239_v37  ;;  %v10510_v60 = vadd.f32 %v18678_v45, %v9784_v51  ;;  %v9783_v46 = vadd.f32 %v19415_v34, %v9425_v47  ;;  %v12160_v52 = vld [vmem:[%s18451_s29 + $0x80] ss:$2 sm:$0xff]  ;;  %v12168_v42 = vld [vmem:[%s18451_s29 + $0x81] ss:$2 sm:$0xff]  ;;  %v11086_v62 = vmax.f32 %v11054_v19, 0.0  ;;  %v13227_v14 = vpop.f32.mrf.mxu0  ;;  %11246 = vst.msk [vmem:[%s18611_s30 + $0x18] sm:$0xff] %vm6914_vm5, %v11238_v18 }
 0x4f5   : > { %v11191_v40 = vmax.f32 %v12160_v52, %v12168_v42  ;;  %11145 = vst.msk [vmem:[%s18451_s29 + $0xa8] sm:$0xff] %vm6914_vm5, %v11113_v16  ;;  %v11084_v23 = vmax.f32 %v11052_v7, 0.0  ;;  %v11055_v13 = vadd.f32 %v18406_v5, %v11016_v20  ;;  %v11014_v30 = vmul.f32 %v18385_v25, %v10975_v53  ;;  %v19421_v16 = vld [vmem:[#allocation43_spill] sm:$0xff] }
 0x4f6   : > { %v10508_v45 = vadd.f32 %v10465_v15, %v9782_v39  ;;  %v10511_v48 = vadd.f32 %v13194_v24, %v9785_v1  ;;  %v11118_v0 = vadd.f32 %v11086_v62, %v19416_v57  ;;  %v10980_v26 = vadd.f32 %v13227_v14, %v10510_v60  ;;  %v10935_v4 = vpop.f32.mrf.mxu0  ;;  %v19420_v1 = vld [vmem:[#allocation20_spill] sm:$0xff] }
 0x4f7   : > { %v11215_v63 = vmax.f32 %v11191_v40, %v12176_v11  ;;  %v11116_v28 = vadd.f32 %v11084_v23, %v19417_v3  ;;  %v11087_v47 = vmax.f32 %v11055_v13, 0.0  ;;  %v11053_v35 = vadd.f32 %v18406_v5, %v11014_v30  ;;  %v19422_v60 = vld [vmem:[#allocation44_spill] sm:$0xff] }
 0x4f8   : > { %v1740_v27 = vadd.f32 %v18239_v37, %v19418_v50  ;;  %v10509_v61 = vadd.f32 %v10468_v6, %v9783_v46  ;;  %11150 = vst.msk [vmem:[%s18451_s29 + $0xd0] sm:$0xff] %vm6914_vm5, %v11118_v0  ;;  %v11019_v15 = vmul.f32 %v18385_v25, %v10980_v26  ;;  %v10978_v59 = vadd.f32 %v10935_v4, %v10508_v45  ;;  %v13228_v41 = vpop.f32.mrf.mxu0 }
 0x4f9   : > { %11148 = vst.msk [vmem:[%s18451_s29 + $0xc0] sm:$0xff] %vm6914_vm5, %v11116_v28  ;;  %v11119_v49 = vadd.f32 %v11087_v47, %v1748_v54  ;;  %v11085_v29 = vmax.f32 %v11053_v35, 0.0  ;;  %v10981_v33 = vadd.f32 %v13228_v41, %v10511_v48  ;;  %v11239_v51 = vmax.f32 %v11215_v63, %v12184_v12 }
 0x4fa   : > { %v11058_v9 = vadd.f32 %v18406_v5, %v11019_v15  ;;  %v11017_v58 = vmul.f32 %v18385_v25, %v10978_v59  ;;  %v10938_v31 = vpop.f32.mrf.mxu0  ;;  %v1761_v44 = vadd.f32 %v19419_v2, %v18239_v37  ;;  %v1753_v19 = vadd.f32 %v18239_v37, %v19420_v1  ;;  %v12177_v17 = vld [vmem:[%s18451_s29 + $0xb0] ss:$2 sm:$0xff] }
 0x4fb   : > { %11151 = vst.msk [vmem:[%s18451_s29 + $0xd8] sm:$0xff] %vm6914_vm5, %v11119_v49  ;;  %v11117_v43 = vadd.f32 %v11085_v29, %v1740_v27  ;;  %v11020_v55 = vmul.f32 %v18385_v25, %v10981_v33  ;;  %v10979_v24 = vadd.f32 %v10938_v31, %v10509_v61  ;;  %11247 = vst.msk [vmem:[%s18611_s30 + $0x20] sm:$0xff] %vm6914_vm5, %v11239_v51 }
 0x4fc   : > { %v12161_v32 = vld [vmem:[%s18451_s29 + $0xa0] ss:$2 sm:$0xff]  ;;  %v12169_v8 = vld [vmem:[%s18451_s29 + $0xa1] ss:$2 sm:$0xff]  ;;  %v11090_v36 = vmax.f32 %v11058_v9, 0.0  ;;  %v11056_v56 = vadd.f32 %v18406_v5, %v11017_v58  ;;  %v1764_v7 = vadd.f32 %v19421_v16, %v18239_v37  ;;  %v1756_v34 = vadd.f32 %v18239_v37, %v19422_v60 }
 0x4fd   : > { %v11192_v38 = vmax.f32 %v12161_v32, %v12169_v8  ;;  %11149 = vst.msk [vmem:[%s18451_s29 + $0xc8] sm:$0xff] %vm6914_vm5, %v11117_v43  ;;  %v11059_v39 = vadd.f32 %v18406_v5, %v11020_v55  ;;  %v11018_v21 = vmul.f32 %v18385_v25, %v10979_v24  ;;  %v12185_v25 = vld [vmem:[%s18451_s29 + $0xb1] ss:$2 sm:$0xff] }
 0x4fe   : > { %v11122_v18 = vadd.f32 %v11090_v36, %v1761_v44  ;;  %v11088_v22 = vmax.f32 %v11056_v56, 0.0 }
 0x4ff   : > { %v11216_v20 = vmax.f32 %v11192_v38, %v12177_v17  ;;  %v11091_v53 = vmax.f32 %v11059_v39, 0.0  ;;  %v11057_v10 = vadd.f32 %v18406_v5, %v11018_v21 }
 0x500   : > { %11154 = vst.msk [vmem:[%s18451_s29 + $0xf0] sm:$0xff] %vm6914_vm5, %v11122_v18  ;;  %v11120_v54 = vadd.f32 %v11088_v22, %v1753_v19 }
 0x501   : > { %v11123_v46 = vadd.f32 %v11091_v53, %v1764_v7  ;;  %v11089_v52 = vmax.f32 %v11057_v10, 0.0  ;;  %v11240_v42 = vmax.f32 %v11216_v20, %v12185_v25 }
 0x502   : > { %11152 = vst.msk [vmem:[%s18451_s29 + $0xe0] sm:$0xff] %vm6914_vm5, %v11120_v54  ;;  %v12178_v6 = vld [vmem:[%s18451_s29 + $0xd0] ss:$2 sm:$0xff]  ;;  %v12186_v23 = vld [vmem:[%s18451_s29 + $0xd1] ss:$2 sm:$0xff] }
 0x503   : > { %11155 = vst.msk [vmem:[%s18451_s29 + $0xf8] sm:$0xff] %vm6914_vm5, %v11123_v46  ;;  %v11121_v5 = vadd.f32 %v11089_v52, %v1756_v34  ;;  %11248 = vst.msk [vmem:[%s18611_s30 + $0x28] sm:$0xff] %vm6914_vm5, %v11240_v42 }
 0x504   : > { %v12162_v62 = vld [vmem:[%s18451_s29 + $0xc0] ss:$2 sm:$0xff]  ;;  %v12170_v14 = vld [vmem:[%s18451_s29 + $0xc1] ss:$2 sm:$0xff] }
 0x505   : > { %v11193_v37 = vmax.f32 %v12162_v62, %v12170_v14  ;;  %11153 = vst.msk [vmem:[%s18451_s29 + $0xe8] sm:$0xff] %vm6914_vm5, %v11121_v5 }
 0x507   : > { %v11217_v40 = vmax.f32 %v11193_v37, %v12178_v6 }
 0x509   : > { %v11241_v13 = vmax.f32 %v11217_v40, %v12186_v23 }
 0x50a   : > { %v12179_v11 = vld [vmem:[%s18451_s29 + $0xf0] ss:$2 sm:$0xff]  ;;  %v12187_v0 = vld [vmem:[%s18451_s29 + $0xf1] ss:$2 sm:$0xff] }
 0x50b   : > { %11249 = vst.msk [vmem:[%s18611_s30 + $0x30] sm:$0xff] %vm6914_vm5, %v11241_v13 }
 0x50c   : > { %v12163_v30 = vld [vmem:[%s18451_s29 + $0xe0] ss:$2 sm:$0xff]  ;;  %v12171_v45 = vld [vmem:[%s18451_s29 + $0xe1] ss:$2 sm:$0xff]  ;;  %s13442_s29 = sshll.u32 %s13501_s26, 4  ;;  %s13443_s29 = int_to_ptr.vmem [resolvable:$false] %s13442_s29 }
 0x50d   : > { %v11194_v48 = vmax.f32 %v12163_v30, %v12171_v45  ;;  %s13444_s28 = scalar_lea.vmem %s13443_s29, 2048  ;;  %p13445_p0 = scmp.lt.s32.totalorder %s18809_s12, %s13443_s29 }
 0x50e   : > { %p13446_p1 = scmp.lt.s32.totalorder %s13444_s28, %s13438_s17 }
 0x50f   : > { %v11218_v57 = vmax.f32 %v11194_v48, %v12179_v11 }
 0x510   : > { %p13447_p2 = por %p13446_p1, %p13445_p0 }
 0x511   : > { %v11242_v26 = vmax.f32 %v11218_v57, %v12187_v0 }
 0x512   : > { %p13448_p3 = pnand %p13447_p2, %p13441_p13 }
 0x513   : > { %11250 = vst.msk [vmem:[%s18611_s30 + $0x38] sm:$0xff] %vm6914_vm5, %v11242_v26 }
 0x514   : > { %13451 = shalt.err (!%p13448_p3)
}
 0x515   : > { %s13452_s27 = scalar_lea.hbm %s18807_s21, 1024  ;;  %s13456_s18 = scalar_lea.hbm %s18865_s10, 2048 }
 0x516   : > { %p13453_p4 = scmp.ne.s32.totalorder %s18807_s21, %s13452_s27  ;;  %p13457_p9 = scmp.lt.s32.totalorder %s18807_s21, %s18865_s10 }
 0x517   : > { %p13458_p10 = scmp.lt.s32.totalorder %s13456_s18, %s13452_s27 }
 0x518   : > { %p13454_p7 = pnand %p13453_p4, %p13597_p5 }
 0x519   : > { %p13459_p11 = por %p13458_p10, %p13457_p9 }
 0x51a   : > { %p13455_p8 = pneg %p13454_p7 }
 0x51c   : > { %p13460_p12 = pnand %p13459_p11, %p13455_p8 }
 0x51e   : > { %13463 = shalt.err (!%p13460_p12)
}
 0x51f   : > { %s13502_s17 = smov 128   ;;  %s13503_s29 = smov 8  }
 0x520   : > { %13251 = dma.vmem_to_hbm [thread:$0]  (%p13597_p5), %s18809_s12, 1024, %s18807_s21, %s18815_s25, %s13502_s17, %s13502_s17, %s13503_s29  }
 0x521 PF: > { %p13257_p13 = scmp.ge.s32.totalorder %s13498_s16, 2  ;;  %s11296_s28 = sand.u32 1, %s13486_s13  }
 0x522   : > { %s11297_s27 = scalar_lea.sflag [#allocation4], %s11296_s28 }
 0x523   : > { %p13254_p0 = pnand %p13257_p13, %p13601_p6 }
 0x525   : > { %p13255_p1 = pneg %p13254_p0 }
 0x527   : > { %13481 = dma.done.wait (%p13255_p1), %s11297_s27, 1024  }
 0x528   : > { %13483 = vsyncadd (%p13255_p1), %s11297_s27, 4294966272  ;;  %p21_p2 = scmp.ge.s32.totalorder %s13584_s19, 4   ;;  %s19423_s13 = smov %s13490_s14 }
 0x529   : > { %s19424_s14 = smov %s13494_s15  ;;  %s19425_s15 = smov %s13595_s22 }
 0x52a   : > { %s19426_s16 = smov %s13584_s19  ;;  %23 = sbr.rel (!%p21_p2) target bundleno = 3 (0x3), region = 153 }
 0x52f   :  { %11302 = vsyncpa [#allocation4], 1 }
 0x530   :  { %11304 = vsyncpa [#allocation4 + $0x1], 1 }

</bundles_post_ra>
